<compile_context>
chip_gen: v7x
topology: tpu7x:2x2x1
jax: 0.10.0
libtpu: 0.0.40
codegen_flags: <defaults>
</compile_context>

<pallas_src>
import functools

import jax
import jax.numpy as jnp
from jax.experimental import pallas as pl
from jax.experimental.pallas import tpu as pltpu

MIN_VALUE = -0.19839155912338596
MAX_VALUE = 7.613178804127784

_ALIGN = 16                      # sublane alignment (bf16 tile is (16, 128))
_TM_TARGET = 1024                # target flattened-output rows per grid step
_VMEM_LIMIT = 32 * 1024 * 1024


def _round_up(x, m):
    return ((x + m - 1) // m) * m


def _cdiv(a, b):
    return -(-a // b)


# ---------------------------------------------------------------------------
# Layer-1 kernel: one lane-dense MXU matmul per tile.
#   out[m, :256] = P[m, :72] @ W + bias
# P is the host-packed 3x3-neighbourhood plane of the (3->8 ch) input; W packs
# all phase/tap weight blocks along the contraction axis.
# ---------------------------------------------------------------------------
def _l1_kernel(x_ref, w_ref, b_ref, o_ref):
    acc = jnp.dot(x_ref[0], w_ref[...], preferred_element_type=jnp.float32)
    acc = acc + b_ref[...].astype(jnp.float32)
    o_ref[0] = acc.astype(o_ref.dtype)


def _deconv_layer1(x_nhwc, w_packed, bias_row, *, out_dtype=jnp.bfloat16):
    n, h, w, c = x_nhwc.shape
    k_rows, nout = w_packed.shape            # (72, 256)
    cpad = k_rows // 9                       # 8 channels per patch position

    # Host prep: 1px zero pad, channel pad 3->8, gather the 3x3 neighbourhood
    # along lanes (K = 9*8 = 72).  Tiny tensor (input has 3 channels) -> one
    # dense matmul per tile instead of 16 K=8 matmuls.
    xp = jnp.pad(x_nhwc.astype(jnp.bfloat16),
                 ((0, 0), (1, 1), (1, 1), (0, cpad - c)))
    patches = jnp.concatenate(
        [xp[:, r:r + h, s:s + w, :] for r in range(3) for s in range(3)],
        axis=-1)                              # (n, h, w, 72)

    m_valid = h * w
    num_tiles = max(1, _cdiv(m_valid, _TM_TARGET))
    tm = _round_up(_cdiv(m_valid, num_tiles), _ALIGN)
    m_pad = num_tiles * tm
    p_flat = jnp.pad(patches.reshape(n, m_valid, k_rows),
                     ((0, 0), (0, m_pad - m_valid), (0, 0)))

    out = pl.pallas_call(
        _l1_kernel,
        out_shape=jax.ShapeDtypeStruct((n, m_pad, nout), out_dtype),
        grid=(n, num_tiles),
        in_specs=[
            pl.BlockSpec((1, tm, k_rows), lambda b, i: (b, i, 0)),
            pl.BlockSpec((k_rows, nout), lambda b, i: (0, 0)),
            pl.BlockSpec((1, nout), lambda b, i: (0, 0)),
        ],
        out_specs=pl.BlockSpec((1, tm, nout), lambda b, i: (b, i, 0)),
        compiler_params=pltpu.CompilerParams(
            dimension_semantics=("parallel", "parallel"),
            vmem_limit_bytes=_VMEM_LIMIT,
        ),
    )(p_flat, w_packed, bias_row)
    # rows m = oh*w + ow, lanes = 4 phases x 64 channels
    return out


# ---------------------------------------------------------------------------
# Generic 3x3 "position tap" conv over a resident, row-major flattened,
# zero-padded activation plane (used by layers 2 and 3).
#   out[m, :] = act( sum_{r,s}  X[m + r*wp + s, :] @ W[3r+s]  + bias )
# wp (padded plane width) and tm are multiples of 16, so each row tap is one
# aligned extended load; the three column taps are cheap static sublane shifts
# of that shared load (dedup: 3 loads / 9 matmuls per tile).
# ---------------------------------------------------------------------------
def _conv3x3_kernel(x_ref, w_ref, b_ref, o_ref, *, wp, fuse_act, min_v, max_v):
    tm = o_ref.shape[1]
    m0 = pl.program_id(1) * tm

    acc = None
    for r in range(3):
        start = pl.multiple_of(m0 + r * wp, _ALIGN)        # aligned by design
        ext = x_ref[0, pl.ds(start, tm + _ALIGN), :]        # shared row-tap load
        for s in range(3):
            a = ext[s:s + tm, :]                            # shared static shift
            contrib = jnp.dot(a, w_ref[3 * r + s],
                              preferred_element_type=jnp.float32)
            acc = contrib if acc is None else acc + contrib

    acc = acc + b_ref[...].astype(jnp.float32)
    if fuse_act:
        acc = jnp.clip(acc, min_v, max_v)   # torch.clamp
        acc = jnp.maximum(acc, 0.0)         # ReLU
        acc = jnp.tanh(acc)                 # Tanh
    o_ref[0] = acc.astype(o_ref.dtype)


def _conv3x3_layer(x_nhwc, w_pos, bias_row, *, fuse_act=False,
                   out_dtype=jnp.bfloat16):
    n, h, w, c = x_nhwc.shape
    t9, c_w, nout = w_pos.shape
    assert t9 == 9 and c_w == c and c % 8 == 0

    hp = h + 2
    wp = _round_up(w + 2, _ALIGN)     # aligned padded width -> aligned row taps
    m_valid = h * wp                  # output rows (cols >= w are discarded)

    num_tiles = max(1, _cdiv(m_valid, _TM_TARGET))
    tm = _round_up(_cdiv(m_valid, num_tiles), _ALIGN)
    m_pad = num_tiles * tm
    plane_len = max(hp * wp, m_pad + 2 * wp + _ALIGN)

    # Host prep: single fused pad/reshape (1 px spatial pad + width alignment).
    xp = jnp.pad(x_nhwc.astype(jnp.bfloat16),
                 ((0, 0), (1, 1), (1, wp - w - 1), (0, 0)))
    x_flat = jnp.pad(xp.reshape(n, hp * wp, c),
                     ((0, 0), (0, plane_len - hp * wp), (0, 0)))

    kernel = functools.partial(_conv3x3_kernel, wp=wp, fuse_act=fuse_act,
                               min_v=MIN_VALUE, max_v=MAX_VALUE)
    out = pl.pallas_call(
        kernel,
        out_shape=jax.ShapeDtypeStruct((n, m_pad, nout), out_dtype),
        grid=(n, num_tiles),
        in_specs=[
            # whole padded plane, VMEM-resident across the tile axis
            pl.BlockSpec((1, plane_len, c), lambda b, i: (b, 0, 0)),
            pl.BlockSpec((9, c, nout), lambda b, i: (0, 0, 0)),
            pl.BlockSpec((1, nout), lambda b, i: (0, 0)),
        ],
        out_specs=pl.BlockSpec((1, tm, nout), lambda b, i: (b, i, 0)),
        compiler_params=pltpu.CompilerParams(
            # batch parallel / tiles arbitrary: a megacore shards images
            # instead of duplicating the resident-plane DMA per core.
            dimension_semantics=("parallel", "arbitrary"),
            vmem_limit_bytes=_VMEM_LIMIT,
        ),
    )(x_flat, w_pos, bias_row)
    return out, (h, w, wp, m_valid)


# ---------------------------------------------------------------------------
# One-time weight packing (outside the jitted forward).
# ---------------------------------------------------------------------------
def prepare_params(params):
    w1, b1 = params["w1"], params["b1"]   # (3, 64, 4, 4), (64,)
    w2, b2 = params["w2"], params["b2"]   # (64, 64, 3, 3), (64,)
    w3, b3 = params["w3"], params["b3"]   # (64, 3, 4, 4), (3,)

    # Layer 1: stride-2 deconv, sub-pixel (phase) decomposed.  The 16
    # (a,b,dh,dw) taps collapse onto 9 positions (r,s)=(a+dh,b+dw); the
    # position blocks are stacked along the contraction axis (K = 9*8 = 72)
    # and the 4 phases packed along lanes (N = 4*64 = 256).
    w1p = jnp.zeros((9, 8, 256), jnp.float32)
    for r in range(3):
        for s in range(3):
            for a in range(2):
                for b in range(2):
                    dh, dw = r - a, s - b
                    if 0 <= dh <= 1 and 0 <= dw <= 1:
                        blk = w1[:, :, 3 - a - 2 * dh, 3 - b - 2 * dw]  # (3,64)
                        col0 = (2 * a + b) * 64
                        w1p = w1p.at[3 * r + s, :3, col0:col0 + 64].set(blk)
    w1_packed = w1p.reshape(72, 256).astype(jnp.bfloat16)
    b1_row = jnp.tile(b1, 4).reshape(1, 256).astype(jnp.float32)

    # Layer 2: stride-1 pad-1 ConvTranspose == forward conv with the flipped
    # kernel over the 1-padded input; 9 position taps, real K = N = 64
    # (no zero lane padding on the layer-2 -> layer-3 interface).
    w2_pos = jnp.stack([w2[:, :, 2 - r, 2 - s]
                        for r in range(3) for s in range(3)]
                       ).astype(jnp.bfloat16)                       # (9,64,64)
    b2_row = b2.reshape(1, 64).astype(jnp.float32)

    # Layer 3: stride-2 deconv, phase taps merged onto 9 positions; output is
    # 4 phases x 3 channels = 12 real lanes padded to 16 (small writeback).
    w3p = jnp.zeros((9, 64, 16), jnp.float32)
    for a in range(2):
        for b in range(2):
            for dh in range(2):
                for dw in range(2):
                    r, s = a + dh, b + dw
                    blk = w3[:, :, 3 - a - 2 * dh, 3 - b - 2 * dw]   # (64,3)
                    col0 = (2 * a + b) * 3
                    w3p = w3p.at[3 * r + s, :, col0:col0 + 3].set(blk)
    w3_pos = w3p.astype(jnp.bfloat16)
    b3_row = jnp.concatenate([jnp.tile(b3, 4), jnp.zeros((4,), jnp.float32)]
                             ).reshape(1, 16).astype(jnp.float32)

    return {"w1": w1_packed, "b1": b1_row,
            "w2": w2_pos, "b2": b2_row,
            "w3": w3_pos, "b3": b3_row}


# ---------------------------------------------------------------------------
# Model forward (NCHW in / NCHW out, same semantics as the PyTorch module).
# ---------------------------------------------------------------------------
@jax.jit
def model_forward(x_nchw, prep):
    n, _, h, w = x_nchw.shape
    x = jnp.transpose(x_nchw, (0, 2, 3, 1))      # NCHW -> NHWC

    # layer 1: ConvTranspose2d(3, 64, 4, stride=2, padding=1)
    o1 = _deconv_layer1(x, prep["w1"], prep["b1"])
    # phase de-interleave (the one remaining XLA relayout between kernels;
    # a polyphase-aware layer 2 would remove it).
    v1 = (o1[:, :h * w, :]
          .reshape(n, h, w, 2, 2, 64)
          .transpose(0, 1, 3, 2, 4, 5)
          .reshape(n, 2 * h, 2 * w, 64))

    # layer 2: ConvTranspose2d(64, 64, 3, stride=1, padding=1)
    o2, (h2, w2, wp2, mv2) = _conv3x3_layer(v1, prep["w2"], prep["b2"])
    v2 = o2[:, :mv2, :].reshape(n, h2, wp2, 64)[:, :, :w2, :]

    # layer 3: ConvTranspose2d(64, 3, 4, stride=2, padding=1) + clamp/relu/tanh
    o3, (h3, w3, wp3, mv3) = _conv3x3_layer(v2, prep["w3"], prep["b3"],
                                            fuse_act=True,
                                            out_dtype=jnp.float32)
    out = (o3[:, :mv3, :12]
           .reshape(n, h3, wp3, 2, 2, 3)[:, :, :w3]
           .transpose(0, 5, 1, 3, 2, 4)
           .reshape(n, 3, 2 * h3, 2 * w3))       # NCHW
    return out


# ---------------------------------------------------------------------------
# Pure-JAX references (independent path through lax.conv_general_dilated).
# ---------------------------------------------------------------------------
def _conv_transpose_ref(x, w_t, bias, stride, padding, *, operand_dtype=None,
                        precision=jax.lax.Precision.HIGHEST):
    k = w_t.shape[2]
    w_conv = jnp.flip(w_t, axis=(2, 3)).transpose(1, 0, 2, 3)  # (Cout,Cin,kh,kw)
    if operand_dtype is not None:
        x = x.astype(operand_dtype)
        w_conv = w_conv.astype(operand_dtype)
    pad = k - 1 - padding
    out = jax.lax.conv_general_dilated(
        x, w_conv, window_strides=(1, 1),
        padding=[(pad, pad), (pad, pad)],
        lhs_dilation=(stride, stride),
        dimension_numbers=("NCHW", "OIHW", "NCHW"),
        preferred_element_type=jnp.float32,
        precision=precision)
    return out + bias[None, :, None, None].astype(jnp.float32)


@jax.jit
def model_ref_f32(x, p):
    v = _conv_transpose_ref(x, p["w1"], p["b1"], 2, 1)
    v = _conv_transpose_ref(v, p["w2"], p["b2"], 1, 1)
    v = _conv_transpose_ref(v, p["w3"], p["b3"], 2, 1)
    return jnp.tanh(jnp.maximum(jnp.clip(v, MIN_VALUE, MAX_VALUE), 0.0))


@jax.jit
def model_ref_bf16(x, p):
    # Mirrors the kernel's precision choices: bf16 operands, f32 accumulation,
    # bf16 storage of the intermediate activations.
    kw = dict(operand_dtype=jnp.bfloat16, precision=jax.lax.Precision.DEFAULT)
    v = _conv_transpose_ref(x, p["w1"], p["b1"], 2, 1, **kw)
    v = v.astype(jnp.bfloat16).astype(jnp.float32)
    v = _conv_transpose_ref(v, p["w2"], p["b2"], 1, 1, **kw)
    v = v.astype(jnp.bfloat16).astype(jnp.float32)
    v = _conv_transpose_ref(v, p["w3"], p["b3"], 2, 1, **kw)
    return jnp.tanh(jnp.maximum(jnp.clip(v, MIN_VALUE, MAX_VALUE), 0.0))


def init_params(key):
    def uinit(k, shape, fan_in):
        bound = 1.0 / jnp.sqrt(fan_in)
        return jax.random.uniform(k, shape, jnp.float32, -bound, bound)

    ks = jax.random.split(key, 6)
    return {
        "w1": uinit(ks[0], (3, 64, 4, 4), 3 * 4 * 4),
        "b1": uinit(ks[1], (64,), 3 * 4 * 4),
        "w2": uinit(ks[2], (64, 64, 3, 3), 64 * 3 * 3),
        "b2": uinit(ks[3], (64,), 64 * 3 * 3),
        "w3": uinit(ks[4], (64, 3, 4, 4), 64 * 4 * 4),
        "b3": uinit(ks[5], (3,), 64 * 4 * 4),
    }


if __name__ == "__main__":
    key = jax.random.PRNGKey(0)
    k_x, k_p = jax.random.split(key)

    # small shapes consistent with the module (original example: (1, 3, 64, 64))
    x = jax.random.normal(k_x, (2, 3, 16, 16), jnp.float32)
    params = init_params(k_p)
    prep = prepare_params(params)          # one-time weight packing

    out = jax.block_until_ready(model_forward(x, prep))
    assert out.shape == (2, 3, 64, 64), out.shape
    assert bool(jnp.all(jnp.isfinite(out)))

    # tight check against a reference with the same bf16/f32 precision choices
    ref_m = jax.block_until_ready(model_ref_bf16(x, params))
    err_m = float(jnp.max(jnp.abs(out - ref_m)))
    assert err_m < 5e-3, f"mismatch vs bf16-matched reference: {err_m}"

    # looser check against the full-f32 reference (bf16 operand rounding only)
    ref_f = jax.block_until_ready(model_ref_f32(x, params))
    err_f = float(jnp.max(jnp.abs(out - ref_f)))
    assert err_f < 3e-2, f"mismatch vs f32 reference: {err_f}"

    print("KERNEL_OK")
</pallas_src>

<mosaic_0001>
module attributes {stable_mosaic.version = 11 : i64} {
  func.func @_l1_kernel(%arg0: i32, %arg1: i32, %arg2: memref<1x256x72xbf16, #tpu.memory_space<vmem>>, %arg3: memref<72x256xbf16, #tpu.memory_space<vmem>>, %arg4: memref<1x256xf32, #tpu.memory_space<vmem>>, %arg5: memref<1x256x256xbf16, #tpu.memory_space<vmem>>) attributes {dimension_semantics = [#tpu.dimension_semantics<parallel>, #tpu.dimension_semantics<parallel>], iteration_bounds = array<i64: 2, 1>, scalar_prefetch = 0 : i64, scratch_operands = 0 : i64, tpu.core_type = #tpu.core_type<tc>, window_params = [{transform_indices = @transform_0, window_bounds = array<i64: 1, 256, 72>}, {pipeline_mode = #tpu.pipeline_mode<synchronous>, transform_indices = @transform_1, window_bounds = array<i64: 72, 256>}, {pipeline_mode = #tpu.pipeline_mode<synchronous>, transform_indices = @transform_2, window_bounds = array<i64: 1, 256>}, {transform_indices = @transform_3, window_bounds = array<i64: 1, 256, 256>}]} {
    %c0 = arith.constant 0 : index
    %c0_0 = arith.constant 0 : index
    %c0_1 = arith.constant 0 : index
    %0 = vector.load %arg2[%c0, %c0_0, %c0_1] : memref<1x256x72xbf16, #tpu.memory_space<vmem>>, vector<1x256x72xbf16>
    %1 = vector.shape_cast %0 : vector<1x256x72xbf16> to vector<256x72xbf16>
    %c0_2 = arith.constant 0 : index
    %c0_3 = arith.constant 0 : index
    %2 = vector.load %arg3[%c0_2, %c0_3] : memref<72x256xbf16, #tpu.memory_space<vmem>>, vector<72x256xbf16>
    %cst = arith.constant dense<0.000000e+00> : vector<256x256xf32>
    %3 = tpu.matmul %1, %2, %cst {dimension_numbers = #tpu.dot_dimension_numbers<[1], [0], [0], [1], [0, 0, 1, 1], [], []>} : vector<256x72xbf16>, vector<72x256xbf16>, vector<256x256xf32> -> vector<256x256xf32>
    %c0_4 = arith.constant 0 : index
    %c0_5 = arith.constant 0 : index
    %4 = vector.load %arg4[%c0_4, %c0_5] : memref<1x256xf32, #tpu.memory_space<vmem>>, vector<1x256xf32>
    %5 = vector.broadcast %4 : vector<1x256xf32> to vector<256x256xf32>
    %6 = arith.addf %3, %5 : vector<256x256xf32>
    %7 = arith.truncf %6 : vector<256x256xf32> to vector<256x256xbf16>
    %c0_6 = arith.constant 0 : index
    %c0_7 = arith.constant 0 : index
    %c0_8 = arith.constant 0 : index
    %8 = vector.load %arg5[%c0_6, %c0_7, %c0_8] : memref<1x256x256xbf16, #tpu.memory_space<vmem>>, vector<1x256x256xbf16>
    %9 = vector.shape_cast %8 : vector<1x256x256xbf16> to vector<256x256xbf16>
    %10 = vector.shape_cast %7 : vector<256x256xbf16> to vector<1x256x256xbf16>
    tpu.vector_store %arg5[%c0_6, %c0_7, %c0_8], %10 {strides = array<i32>} : memref<1x256x256xbf16, #tpu.memory_space<vmem>>, vector<1x256x256xbf16>,
    return
  }
  func.func @transform_0(%arg0: i32, %arg1: i32) -> (i32, i32, i32) {
    %c0_i32 = arith.constant 0 : i32
    %c0_i32_0 = arith.constant 0 : i32
    return %arg0, %arg1, %c0_i32 : i32, i32, i32
  }
  func.func @transform_1(%arg0: i32, %arg1: i32) -> (i32, i32) {
    %c0_i32 = arith.constant 0 : i32
    %c0_i32_0 = arith.constant 0 : i32
    %c0_i32_1 = arith.constant 0 : i32
    return %c0_i32, %c0_i32_0 : i32, i32
  }
  func.func @transform_2(%arg0: i32, %arg1: i32) -> (i32, i32) {
    %c0_i32 = arith.constant 0 : i32
    %c0_i32_0 = arith.constant 0 : i32
    %c0_i32_1 = arith.constant 0 : i32
    return %c0_i32, %c0_i32_0 : i32, i32
  }
  func.func @transform_3(%arg0: i32, %arg1: i32) -> (i32, i32, i32) {
    %c0_i32 = arith.constant 0 : i32
    %c0_i32_0 = arith.constant 0 : i32
    return %arg0, %arg1, %c0_i32 : i32, i32, i32
  }
}

module attributes {stable_mosaic.version = 11 : i64} {
  func.func @_conv3x3_kernel(%arg0: i32, %arg1: i32, %arg2: memref<1x1648x64xbf16, #tpu.memory_space<vmem>>, %arg3: memref<9x64x64xbf16, #tpu.memory_space<vmem>>, %arg4: memref<1x64xf32, #tpu.memory_space<vmem>>, %arg5: memref<1x768x64xbf16, #tpu.memory_space<vmem>>) attributes {dimension_semantics = [#tpu.dimension_semantics<parallel>, #tpu.dimension_semantics<arbitrary>], iteration_bounds = array<i64: 2, 2>, scalar_prefetch = 0 : i64, scratch_operands = 0 : i64, tpu.core_type = #tpu.core_type<tc>, window_params = [{transform_indices = @transform_0, window_bounds = array<i64: 1, 1648, 64>}, {pipeline_mode = #tpu.pipeline_mode<synchronous>, transform_indices = @transform_1, window_bounds = array<i64: 9, 64, 64>}, {pipeline_mode = #tpu.pipeline_mode<synchronous>, transform_indices = @transform_2, window_bounds = array<i64: 1, 64>}, {transform_indices = @transform_3, window_bounds = array<i64: 1, 768, 64>}]} {
    %c768_i32 = arith.constant 768 : i32
    %0 = arith.muli %arg1, %c768_i32 : i32
    %c0_i32 = arith.constant 0 : i32
    %1 = arith.addi %0, %c0_i32 : i32
    %2 = tpu.assume_multiple %1, 16 : i32
    %c0 = arith.constant 0 : index
    %3 = arith.index_cast %2 : i32 to index
    %c0_0 = arith.constant 0 : index
    %4 = vector.load %arg2[%c0, %3, %c0_0] : memref<1x1648x64xbf16, #tpu.memory_space<vmem>>, vector<1x784x64xbf16>
    %5 = vector.shape_cast %4 : vector<1x784x64xbf16> to vector<784x64xbf16>
    %6 = vector.extract_strided_slice %5 {offsets = [0, 0], sizes = [768, 64], strides = [1, 1]} : vector<784x64xbf16> to vector<768x64xbf16>
    %c0_1 = arith.constant 0 : index
    %c0_2 = arith.constant 0 : index
    %c0_3 = arith.constant 0 : index
    %7 = vector.load %arg3[%c0_1, %c0_2, %c0_3] : memref<9x64x64xbf16, #tpu.memory_space<vmem>>, vector<1x64x64xbf16>
    %8 = vector.shape_cast %7 : vector<1x64x64xbf16> to vector<64x64xbf16>
    %cst = arith.constant dense<0.000000e+00> : vector<768x64xf32>
    %9 = tpu.matmul %6, %8, %cst {dimension_numbers = #tpu.dot_dimension_numbers<[1], [0], [0], [1], [0, 0, 1, 1], [], []>} : vector<768x64xbf16>, vector<64x64xbf16>, vector<768x64xf32> -> vector<768x64xf32>
    %10 = vector.extract_strided_slice %5 {offsets = [1, 0], sizes = [768, 64], strides = [1, 1]} : vector<784x64xbf16> to vector<768x64xbf16>
    %c1 = arith.constant 1 : index
    %c0_4 = arith.constant 0 : index
    %c0_5 = arith.constant 0 : index
    %11 = vector.load %arg3[%c1, %c0_4, %c0_5] : memref<9x64x64xbf16, #tpu.memory_space<vmem>>, vector<1x64x64xbf16>
    %12 = vector.shape_cast %11 : vector<1x64x64xbf16> to vector<64x64xbf16>
    %cst_6 = arith.constant dense<0.000000e+00> : vector<768x64xf32>
    %13 = tpu.matmul %10, %12, %cst_6 {dimension_numbers = #tpu.dot_dimension_numbers<[1], [0], [0], [1], [0, 0, 1, 1], [], []>} : vector<768x64xbf16>, vector<64x64xbf16>, vector<768x64xf32> -> vector<768x64xf32>
    %14 = arith.addf %9, %13 : vector<768x64xf32>
    %15 = vector.extract_strided_slice %5 {offsets = [2, 0], sizes = [768, 64], strides = [1, 1]} : vector<784x64xbf16> to vector<768x64xbf16>
    %c2 = arith.constant 2 : index
    %c0_7 = arith.constant 0 : index
    %c0_8 = arith.constant 0 : index
    %16 = vector.load %arg3[%c2, %c0_7, %c0_8] : memref<9x64x64xbf16, #tpu.memory_space<vmem>>, vector<1x64x64xbf16>
    %17 = vector.shape_cast %16 : vector<1x64x64xbf16> to vector<64x64xbf16>
    %cst_9 = arith.constant dense<0.000000e+00> : vector<768x64xf32>
    %18 = tpu.matmul %15, %17, %cst_9 {dimension_numbers = #tpu.dot_dimension_numbers<[1], [0], [0], [1], [0, 0, 1, 1], [], []>} : vector<768x64xbf16>, vector<64x64xbf16>, vector<768x64xf32> -> vector<768x64xf32>
    %19 = arith.addf %14, %18 : vector<768x64xf32>
    %c48_i32 = arith.constant 48 : i32
    %20 = arith.addi %0, %c48_i32 : i32
    %21 = tpu.assume_multiple %20, 16 : i32
    %c0_10 = arith.constant 0 : index
    %22 = arith.index_cast %21 : i32 to index
    %c0_11 = arith.constant 0 : index
    %23 = vector.load %arg2[%c0_10, %22, %c0_11] : memref<1x1648x64xbf16, #tpu.memory_space<vmem>>, vector<1x784x64xbf16>
    %24 = vector.shape_cast %23 : vector<1x784x64xbf16> to vector<784x64xbf16>
    %25 = vector.extract_strided_slice %24 {offsets = [0, 0], sizes = [768, 64], strides = [1, 1]} : vector<784x64xbf16> to vector<768x64xbf16>
    %c3 = arith.constant 3 : index
    %c0_12 = arith.constant 0 : index
    %c0_13 = arith.constant 0 : index
    %26 = vector.load %arg3[%c3, %c0_12, %c0_13] : memref<9x64x64xbf16, #tpu.memory_space<vmem>>, vector<1x64x64xbf16>
    %27 = vector.shape_cast %26 : vector<1x64x64xbf16> to vector<64x64xbf16>
    %cst_14 = arith.constant dense<0.000000e+00> : vector<768x64xf32>
    %28 = tpu.matmul %25, %27, %cst_14 {dimension_numbers = #tpu.dot_dimension_numbers<[1], [0], [0], [1], [0, 0, 1, 1], [], []>} : vector<768x64xbf16>, vector<64x64xbf16>, vector<768x64xf32> -> vector<768x64xf32>
    %29 = arith.addf %19, %28 : vector<768x64xf32>
    %30 = vector.extract_strided_slice %24 {offsets = [1, 0], sizes = [768, 64], strides = [1, 1]} : vector<784x64xbf16> to vector<768x64xbf16>
    %c4 = arith.constant 4 : index
    %c0_15 = arith.constant 0 : index
    %c0_16 = arith.constant 0 : index
    %31 = vector.load %arg3[%c4, %c0_15, %c0_16] : memref<9x64x64xbf16, #tpu.memory_space<vmem>>, vector<1x64x64xbf16>
    %32 = vector.shape_cast %31 : vector<1x64x64xbf16> to vector<64x64xbf16>
    %cst_17 = arith.constant dense<0.000000e+00> : vector<768x64xf32>
    %33 = tpu.matmul %30, %32, %cst_17 {dimension_numbers = #tpu.dot_dimension_numbers<[1], [0], [0], [1], [0, 0, 1, 1], [], []>} : vector<768x64xbf16>, vector<64x64xbf16>, vector<768x64xf32> -> vector<768x64xf32>
    %34 = arith.addf %29, %33 : vector<768x64xf32>
    %35 = vector.extract_strided_slice %24 {offsets = [2, 0], sizes = [768, 64], strides = [1, 1]} : vector<784x64xbf16> to vector<768x64xbf16>
    %c5 = arith.constant 5 : index
    %c0_18 = arith.constant 0 : index
    %c0_19 = arith.constant 0 : index
    %36 = vector.load %arg3[%c5, %c0_18, %c0_19] : memref<9x64x64xbf16, #tpu.memory_space<vmem>>, vector<1x64x64xbf16>
    %37 = vector.shape_cast %36 : vector<1x64x64xbf16> to vector<64x64xbf16>
    %cst_20 = arith.constant dense<0.000000e+00> : vector<768x64xf32>
    %38 = tpu.matmul %35, %37, %cst_20 {dimension_numbers = #tpu.dot_dimension_numbers<[1], [0], [0], [1], [0, 0, 1, 1], [], []>} : vector<768x64xbf16>, vector<64x64xbf16>, vector<768x64xf32> -> vector<768x64xf32>
    %39 = arith.addf %34, %38 : vector<768x64xf32>
    %c96_i32 = arith.constant 96 : i32
    %40 = arith.addi %0, %c96_i32 : i32
    %41 = tpu.assume_multiple %40, 16 : i32
    %c0_21 = arith.constant 0 : index
    %42 = arith.index_cast %41 : i32 to index
    %c0_22 = arith.constant 0 : index
    %43 = vector.load %arg2[%c0_21, %42, %c0_22] : memref<1x1648x64xbf16, #tpu.memory_space<vmem>>, vector<1x784x64xbf16>
    %44 = vector.shape_cast %43 : vector<1x784x64xbf16> to vector<784x64xbf16>
    %45 = vector.extract_strided_slice %44 {offsets = [0, 0], sizes = [768, 64], strides = [1, 1]} : vector<784x64xbf16> to vector<768x64xbf16>
    %c6 = arith.constant 6 : index
    %c0_23 = arith.constant 0 : index
    %c0_24 = arith.constant 0 : index
    %46 = vector.load %arg3[%c6, %c0_23, %c0_24] : memref<9x64x64xbf16, #tpu.memory_space<vmem>>, vector<1x64x64xbf16>
    %47 = vector.shape_cast %46 : vector<1x64x64xbf16> to vector<64x64xbf16>
    %cst_25 = arith.constant dense<0.000000e+00> : vector<768x64xf32>
    %48 = tpu.matmul %45, %47, %cst_25 {dimension_numbers = #tpu.dot_dimension_numbers<[1], [0], [0], [1], [0, 0, 1, 1], [], []>} : vector<768x64xbf16>, vector<64x64xbf16>, vector<768x64xf32> -> vector<768x64xf32>
    %49 = arith.addf %39, %48 : vector<768x64xf32>
    %50 = vector.extract_strided_slice %44 {offsets = [1, 0], sizes = [768, 64], strides = [1, 1]} : vector<784x64xbf16> to vector<768x64xbf16>
    %c7 = arith.constant 7 : index
    %c0_26 = arith.constant 0 : index
    %c0_27 = arith.constant 0 : index
    %51 = vector.load %arg3[%c7, %c0_26, %c0_27] : memref<9x64x64xbf16, #tpu.memory_space<vmem>>, vector<1x64x64xbf16>
    %52 = vector.shape_cast %51 : vector<1x64x64xbf16> to vector<64x64xbf16>
    %cst_28 = arith.constant dense<0.000000e+00> : vector<768x64xf32>
    %53 = tpu.matmul %50, %52, %cst_28 {dimension_numbers = #tpu.dot_dimension_numbers<[1], [0], [0], [1], [0, 0, 1, 1], [], []>} : vector<768x64xbf16>, vector<64x64xbf16>, vector<768x64xf32> -> vector<768x64xf32>
    %54 = arith.addf %49, %53 : vector<768x64xf32>
    %55 = vector.extract_strided_slice %44 {offsets = [2, 0], sizes = [768, 64], strides = [1, 1]} : vector<784x64xbf16> to vector<768x64xbf16>
    %c8 = arith.constant 8 : index
    %c0_29 = arith.constant 0 : index
    %c0_30 = arith.constant 0 : index
    %56 = vector.load %arg3[%c8, %c0_29, %c0_30] : memref<9x64x64xbf16, #tpu.memory_space<vmem>>, vector<1x64x64xbf16>
    %57 = vector.shape_cast %56 : vector<1x64x64xbf16> to vector<64x64xbf16>
    %cst_31 = arith.constant dense<0.000000e+00> : vector<768x64xf32>
    %58 = tpu.matmul %55, %57, %cst_31 {dimension_numbers = #tpu.dot_dimension_numbers<[1], [0], [0], [1], [0, 0, 1, 1], [], []>} : vector<768x64xbf16>, vector<64x64xbf16>, vector<768x64xf32> -> vector<768x64xf32>
    %59 = arith.addf %54, %58 : vector<768x64xf32>
    %c0_32 = arith.constant 0 : index
    %c0_33 = arith.constant 0 : index
    %60 = vector.load %arg4[%c0_32, %c0_33] : memref<1x64xf32, #tpu.memory_space<vmem>>, vector<1x64xf32>
    %61 = vector.broadcast %60 : vector<1x64xf32> to vector<768x64xf32>
    %62 = arith.addf %59, %61 : vector<768x64xf32>
    %63 = arith.truncf %62 : vector<768x64xf32> to vector<768x64xbf16>
    %c0_34 = arith.constant 0 : index
    %c0_35 = arith.constant 0 : index
    %c0_36 = arith.constant 0 : index
    %64 = vector.load %arg5[%c0_34, %c0_35, %c0_36] : memref<1x768x64xbf16, #tpu.memory_space<vmem>>, vector<1x768x64xbf16>
    %65 = vector.shape_cast %64 : vector<1x768x64xbf16> to vector<768x64xbf16>
    %66 = vector.shape_cast %63 : vector<768x64xbf16> to vector<1x768x64xbf16>
    tpu.vector_store %arg5[%c0_34, %c0_35, %c0_36], %66 {strides = array<i32>} : memref<1x768x64xbf16, #tpu.memory_space<vmem>>, vector<1x768x64xbf16>,
    return
  }
  func.func @transform_0(%arg0: i32, %arg1: i32) -> (i32, i32, i32) {
    %c0_i32 = arith.constant 0 : i32
    %c0_i32_0 = arith.constant 0 : i32
    %c0_i32_1 = arith.constant 0 : i32
    return %arg0, %c0_i32, %c0_i32_0 : i32, i32, i32
  }
  func.func @transform_1(%arg0: i32, %arg1: i32) -> (i32, i32, i32) {
    %c0_i32 = arith.constant 0 : i32
    %c0_i32_0 = arith.constant 0 : i32
    %c0_i32_1 = arith.constant 0 : i32
    %c0_i32_2 = arith.constant 0 : i32
    return %c0_i32, %c0_i32_0, %c0_i32_1 : i32, i32, i32
  }
  func.func @transform_2(%arg0: i32, %arg1: i32) -> (i32, i32) {
    %c0_i32 = arith.constant 0 : i32
    %c0_i32_0 = arith.constant 0 : i32
    %c0_i32_1 = arith.constant 0 : i32
    return %c0_i32, %c0_i32_0 : i32, i32
  }
  func.func @transform_3(%arg0: i32, %arg1: i32) -> (i32, i32, i32) {
    %c0_i32 = arith.constant 0 : i32
    %c0_i32_0 = arith.constant 0 : i32
    return %arg0, %arg1, %c0_i32 : i32, i32, i32
  }
}

module attributes {stable_mosaic.version = 11 : i64} {
  func.func @_conv3x3_kernel(%arg0: i32, %arg1: i32, %arg2: memref<1x1648x64xbf16, #tpu.memory_space<vmem>>, %arg3: memref<9x64x16xbf16, #tpu.memory_space<vmem>>, %arg4: memref<1x16xf32, #tpu.memory_space<vmem>>, %arg5: memref<1x768x16xf32, #tpu.memory_space<vmem>>) attributes {dimension_semantics = [#tpu.dimension_semantics<parallel>, #tpu.dimension_semantics<arbitrary>], iteration_bounds = array<i64: 2, 2>, scalar_prefetch = 0 : i64, scratch_operands = 0 : i64, tpu.core_type = #tpu.core_type<tc>, window_params = [{transform_indices = @transform_0, window_bounds = array<i64: 1, 1648, 64>}, {pipeline_mode = #tpu.pipeline_mode<synchronous>, transform_indices = @transform_1, window_bounds = array<i64: 9, 64, 16>}, {pipeline_mode = #tpu.pipeline_mode<synchronous>, transform_indices = @transform_2, window_bounds = array<i64: 1, 16>}, {transform_indices = @transform_3, window_bounds = array<i64: 1, 768, 16>}]} {
    %c768_i32 = arith.constant 768 : i32
    %0 = arith.muli %arg1, %c768_i32 : i32
    %c0_i32 = arith.constant 0 : i32
    %1 = arith.addi %0, %c0_i32 : i32
    %2 = tpu.assume_multiple %1, 16 : i32
    %c0 = arith.constant 0 : index
    %3 = arith.index_cast %2 : i32 to index
    %c0_0 = arith.constant 0 : index
    %4 = vector.load %arg2[%c0, %3, %c0_0] : memref<1x1648x64xbf16, #tpu.memory_space<vmem>>, vector<1x784x64xbf16>
    %5 = vector.shape_cast %4 : vector<1x784x64xbf16> to vector<784x64xbf16>
    %6 = vector.extract_strided_slice %5 {offsets = [0, 0], sizes = [768, 64], strides = [1, 1]} : vector<784x64xbf16> to vector<768x64xbf16>
    %c0_1 = arith.constant 0 : index
    %c0_2 = arith.constant 0 : index
    %c0_3 = arith.constant 0 : index
    %7 = vector.load %arg3[%c0_1, %c0_2, %c0_3] : memref<9x64x16xbf16, #tpu.memory_space<vmem>>, vector<1x64x16xbf16>
    %8 = vector.shape_cast %7 : vector<1x64x16xbf16> to vector<64x16xbf16>
    %cst = arith.constant dense<0.000000e+00> : vector<768x16xf32>
    %9 = tpu.matmul %6, %8, %cst {dimension_numbers = #tpu.dot_dimension_numbers<[1], [0], [0], [1], [0, 0, 1, 1], [], []>} : vector<768x64xbf16>, vector<64x16xbf16>, vector<768x16xf32> -> vector<768x16xf32>
    %10 = vector.extract_strided_slice %5 {offsets = [1, 0], sizes = [768, 64], strides = [1, 1]} : vector<784x64xbf16> to vector<768x64xbf16>
    %c1 = arith.constant 1 : index
    %c0_4 = arith.constant 0 : index
    %c0_5 = arith.constant 0 : index
    %11 = vector.load %arg3[%c1, %c0_4, %c0_5] : memref<9x64x16xbf16, #tpu.memory_space<vmem>>, vector<1x64x16xbf16>
    %12 = vector.shape_cast %11 : vector<1x64x16xbf16> to vector<64x16xbf16>
    %cst_6 = arith.constant dense<0.000000e+00> : vector<768x16xf32>
    %13 = tpu.matmul %10, %12, %cst_6 {dimension_numbers = #tpu.dot_dimension_numbers<[1], [0], [0], [1], [0, 0, 1, 1], [], []>} : vector<768x64xbf16>, vector<64x16xbf16>, vector<768x16xf32> -> vector<768x16xf32>
    %14 = arith.addf %9, %13 : vector<768x16xf32>
    %15 = vector.extract_strided_slice %5 {offsets = [2, 0], sizes = [768, 64], strides = [1, 1]} : vector<784x64xbf16> to vector<768x64xbf16>
    %c2 = arith.constant 2 : index
    %c0_7 = arith.constant 0 : index
    %c0_8 = arith.constant 0 : index
    %16 = vector.load %arg3[%c2, %c0_7, %c0_8] : memref<9x64x16xbf16, #tpu.memory_space<vmem>>, vector<1x64x16xbf16>
    %17 = vector.shape_cast %16 : vector<1x64x16xbf16> to vector<64x16xbf16>
    %cst_9 = arith.constant dense<0.000000e+00> : vector<768x16xf32>
    %18 = tpu.matmul %15, %17, %cst_9 {dimension_numbers = #tpu.dot_dimension_numbers<[1], [0], [0], [1], [0, 0, 1, 1], [], []>} : vector<768x64xbf16>, vector<64x16xbf16>, vector<768x16xf32> -> vector<768x16xf32>
    %19 = arith.addf %14, %18 : vector<768x16xf32>
    %c48_i32 = arith.constant 48 : i32
    %20 = arith.addi %0, %c48_i32 : i32
    %21 = tpu.assume_multiple %20, 16 : i32
    %c0_10 = arith.constant 0 : index
    %22 = arith.index_cast %21 : i32 to index
    %c0_11 = arith.constant 0 : index
    %23 = vector.load %arg2[%c0_10, %22, %c0_11] : memref<1x1648x64xbf16, #tpu.memory_space<vmem>>, vector<1x784x64xbf16>
    %24 = vector.shape_cast %23 : vector<1x784x64xbf16> to vector<784x64xbf16>
    %25 = vector.extract_strided_slice %24 {offsets = [0, 0], sizes = [768, 64], strides = [1, 1]} : vector<784x64xbf16> to vector<768x64xbf16>
    %c3 = arith.constant 3 : index
    %c0_12 = arith.constant 0 : index
    %c0_13 = arith.constant 0 : index
    %26 = vector.load %arg3[%c3, %c0_12, %c0_13] : memref<9x64x16xbf16, #tpu.memory_space<vmem>>, vector<1x64x16xbf16>
    %27 = vector.shape_cast %26 : vector<1x64x16xbf16> to vector<64x16xbf16>
    %cst_14 = arith.constant dense<0.000000e+00> : vector<768x16xf32>
    %28 = tpu.matmul %25, %27, %cst_14 {dimension_numbers = #tpu.dot_dimension_numbers<[1], [0], [0], [1], [0, 0, 1, 1], [], []>} : vector<768x64xbf16>, vector<64x16xbf16>, vector<768x16xf32> -> vector<768x16xf32>
    %29 = arith.addf %19, %28 : vector<768x16xf32>
    %30 = vector.extract_strided_slice %24 {offsets = [1, 0], sizes = [768, 64], strides = [1, 1]} : vector<784x64xbf16> to vector<768x64xbf16>
    %c4 = arith.constant 4 : index
    %c0_15 = arith.constant 0 : index
    %c0_16 = arith.constant 0 : index
    %31 = vector.load %arg3[%c4, %c0_15, %c0_16] : memref<9x64x16xbf16, #tpu.memory_space<vmem>>, vector<1x64x16xbf16>
    %32 = vector.shape_cast %31 : vector<1x64x16xbf16> to vector<64x16xbf16>
    %cst_17 = arith.constant dense<0.000000e+00> : vector<768x16xf32>
    %33 = tpu.matmul %30, %32, %cst_17 {dimension_numbers = #tpu.dot_dimension_numbers<[1], [0], [0], [1], [0, 0, 1, 1], [], []>} : vector<768x64xbf16>, vector<64x16xbf16>, vector<768x16xf32> -> vector<768x16xf32>
    %34 = arith.addf %29, %33 : vector<768x16xf32>
    %35 = vector.extract_strided_slice %24 {offsets = [2, 0], sizes = [768, 64], strides = [1, 1]} : vector<784x64xbf16> to vector<768x64xbf16>
    %c5 = arith.constant 5 : index
    %c0_18 = arith.constant 0 : index
    %c0_19 = arith.constant 0 : index
    %36 = vector.load %arg3[%c5, %c0_18, %c0_19] : memref<9x64x16xbf16, #tpu.memory_space<vmem>>, vector<1x64x16xbf16>
    %37 = vector.shape_cast %36 : vector<1x64x16xbf16> to vector<64x16xbf16>
    %cst_20 = arith.constant dense<0.000000e+00> : vector<768x16xf32>
    %38 = tpu.matmul %35, %37, %cst_20 {dimension_numbers = #tpu.dot_dimension_numbers<[1], [0], [0], [1], [0, 0, 1, 1], [], []>} : vector<768x64xbf16>, vector<64x16xbf16>, vector<768x16xf32> -> vector<768x16xf32>
    %39 = arith.addf %34, %38 : vector<768x16xf32>
    %c96_i32 = arith.constant 96 : i32
    %40 = arith.addi %0, %c96_i32 : i32
    %41 = tpu.assume_multiple %40, 16 : i32
    %c0_21 = arith.constant 0 : index
    %42 = arith.index_cast %41 : i32 to index
    %c0_22 = arith.constant 0 : index
    %43 = vector.load %arg2[%c0_21, %42, %c0_22] : memref<1x1648x64xbf16, #tpu.memory_space<vmem>>, vector<1x784x64xbf16>
    %44 = vector.shape_cast %43 : vector<1x784x64xbf16> to vector<784x64xbf16>
    %45 = vector.extract_strided_slice %44 {offsets = [0, 0], sizes = [768, 64], strides = [1, 1]} : vector<784x64xbf16> to vector<768x64xbf16>
    %c6 = arith.constant 6 : index
    %c0_23 = arith.constant 0 : index
    %c0_24 = arith.constant 0 : index
    %46 = vector.load %arg3[%c6, %c0_23, %c0_24] : memref<9x64x16xbf16, #tpu.memory_space<vmem>>, vector<1x64x16xbf16>
    %47 = vector.shape_cast %46 : vector<1x64x16xbf16> to vector<64x16xbf16>
    %cst_25 = arith.constant dense<0.000000e+00> : vector<768x16xf32>
    %48 = tpu.matmul %45, %47, %cst_25 {dimension_numbers = #tpu.dot_dimension_numbers<[1], [0], [0], [1], [0, 0, 1, 1], [], []>} : vector<768x64xbf16>, vector<64x16xbf16>, vector<768x16xf32> -> vector<768x16xf32>
    %49 = arith.addf %39, %48 : vector<768x16xf32>
    %50 = vector.extract_strided_slice %44 {offsets = [1, 0], sizes = [768, 64], strides = [1, 1]} : vector<784x64xbf16> to vector<768x64xbf16>
    %c7 = arith.constant 7 : index
    %c0_26 = arith.constant 0 : index
    %c0_27 = arith.constant 0 : index
    %51 = vector.load %arg3[%c7, %c0_26, %c0_27] : memref<9x64x16xbf16, #tpu.memory_space<vmem>>, vector<1x64x16xbf16>
    %52 = vector.shape_cast %51 : vector<1x64x16xbf16> to vector<64x16xbf16>
    %cst_28 = arith.constant dense<0.000000e+00> : vector<768x16xf32>
    %53 = tpu.matmul %50, %52, %cst_28 {dimension_numbers = #tpu.dot_dimension_numbers<[1], [0], [0], [1], [0, 0, 1, 1], [], []>} : vector<768x64xbf16>, vector<64x16xbf16>, vector<768x16xf32> -> vector<768x16xf32>
    %54 = arith.addf %49, %53 : vector<768x16xf32>
    %55 = vector.extract_strided_slice %44 {offsets = [2, 0], sizes = [768, 64], strides = [1, 1]} : vector<784x64xbf16> to vector<768x64xbf16>
    %c8 = arith.constant 8 : index
    %c0_29 = arith.constant 0 : index
    %c0_30 = arith.constant 0 : index
    %56 = vector.load %arg3[%c8, %c0_29, %c0_30] : memref<9x64x16xbf16, #tpu.memory_space<vmem>>, vector<1x64x16xbf16>
    %57 = vector.shape_cast %56 : vector<1x64x16xbf16> to vector<64x16xbf16>
    %cst_31 = arith.constant dense<0.000000e+00> : vector<768x16xf32>
    %58 = tpu.matmul %55, %57, %cst_31 {dimension_numbers = #tpu.dot_dimension_numbers<[1], [0], [0], [1], [0, 0, 1, 1], [], []>} : vector<768x64xbf16>, vector<64x16xbf16>, vector<768x16xf32> -> vector<768x16xf32>
    %59 = arith.addf %54, %58 : vector<768x16xf32>
    %c0_32 = arith.constant 0 : index
    %c0_33 = arith.constant 0 : index
    %60 = vector.load %arg4[%c0_32, %c0_33] : memref<1x16xf32, #tpu.memory_space<vmem>>, vector<1x16xf32>
    %61 = vector.broadcast %60 : vector<1x16xf32> to vector<768x16xf32>
    %62 = arith.addf %59, %61 : vector<768x16xf32>
    %cst_34 = arith.constant -0.198391557 : f32
    %cst_35 = arith.constant 7.61317873 : f32
    %63 = vector.broadcast %cst_34 : f32 to vector<768x16xf32>
    %64 = arith.maximumf %63, %62 : vector<768x16xf32>
    %65 = vector.broadcast %cst_35 : f32 to vector<768x16xf32>
    %66 = arith.minimumf %65, %64 : vector<768x16xf32>
    %cst_36 = arith.constant 0.000000e+00 : f32
    %67 = vector.broadcast %cst_36 : f32 to vector<768x16xf32>
    %68 = arith.maximumf %66, %67 : vector<768x16xf32>
    %69 = math.tanh %68 : vector<768x16xf32>
    %c0_37 = arith.constant 0 : index
    %c0_38 = arith.constant 0 : index
    %c0_39 = arith.constant 0 : index
    %70 = vector.load %arg5[%c0_37, %c0_38, %c0_39] : memref<1x768x16xf32, #tpu.memory_space<vmem>>, vector<1x768x16xf32>
    %71 = vector.shape_cast %70 : vector<1x768x16xf32> to vector<768x16xf32>
    %72 = vector.shape_cast %69 : vector<768x16xf32> to vector<1x768x16xf32>
    tpu.vector_store %arg5[%c0_37, %c0_38, %c0_39], %72 {strides = array<i32>} : memref<1x768x16xf32, #tpu.memory_space<vmem>>, vector<1x768x16xf32>,
    return
  }
  func.func @transform_0(%arg0: i32, %arg1: i32) -> (i32, i32, i32) {
    %c0_i32 = arith.constant 0 : i32
    %c0_i32_0 = arith.constant 0 : i32
    %c0_i32_1 = arith.constant 0 : i32
    return %arg0, %c0_i32, %c0_i32_0 : i32, i32, i32
  }
  func.func @transform_1(%arg0: i32, %arg1: i32) -> (i32, i32, i32) {
    %c0_i32 = arith.constant 0 : i32
    %c0_i32_0 = arith.constant 0 : i32
    %c0_i32_1 = arith.constant 0 : i32
    %c0_i32_2 = arith.constant 0 : i32
    return %c0_i32, %c0_i32_0, %c0_i32_1 : i32, i32, i32
  }
  func.func @transform_2(%arg0: i32, %arg1: i32) -> (i32, i32) {
    %c0_i32 = arith.constant 0 : i32
    %c0_i32_0 = arith.constant 0 : i32
    %c0_i32_1 = arith.constant 0 : i32
    return %c0_i32, %c0_i32_0 : i32, i32
  }
  func.func @transform_3(%arg0: i32, %arg1: i32) -> (i32, i32, i32) {
    %c0_i32 = arith.constant 0 : i32
    %c0_i32_0 = arith.constant 0 : i32
    return %arg0, %arg1, %c0_i32 : i32, i32, i32
  }
}

</mosaic_0001>

<bundles_post_ra>
// kernel: model_forward.3
= control target key start
LH: loop header
LB: loop body
LE: loop exit
PB: predicated region body
PF: predicated region fallthrough
CT: control target
= control target key end

     0   :  { %8 = vsyncpa [#allocation3], 0  ;;  %s1601_s0 = inlined_call_operand.vmem [shape: bf16[2,256,72], index: 0, kind: input, shape index: {}]   ;;  %s1602_s1 = inlined_call_operand.hbm [shape: bf16[72,256], index: 1, kind: input, shape index: {}]   ;;  %s1603_s2 = inlined_call_operand.hbm [shape: f32[1,256], index: 2, kind: input, shape index: {}]   ;;  %s1604_s3 = inlined_call_operand.vmem [shape: bf16[2,256,256], index: 3, kind: output, shape index: {}]  }
   0x1   :  { %9 = vsyncpa [#allocation5], 0  ;;  %s1332_s12 = smov 0   ;;  %s1334_s13 = smov 0  }
   0x2   :  { %s1336_s14 = smov 0  }
   0x3 LB: > { %s1007_s15 = sadd.s32 4294967295, %s1305_s14   ;;  %s27_s16 = sadd.s32 1, %s1301_s13  ;;  %s1305_s14 = sphi %s1336_s14, %s15_s14   ;;  %s1301_s13 = sphi %s1334_s13, %s1614_s13   ;;  %s1297_s12 = sphi %s1332_s12, %s1613_s12  }
   0x4   : > { %p29_p0 = scmp.ge.s32.totalorder %s27_s16, 2  ;;  %p1009_p1 = scmp.ge.s32.totalorder %s1305_s14, 1 }
   0x5   : > { %p130_p2 = scmp.lt.s32.totalorder %s1305_s14, 3  ;;  %p1357_p4 = scmp.eq.s32.totalorder %s1007_s15, 0 }
   0x6   : > { %s1616_s16 = smov (%p29_p0, %s27_s16), 0  ;;  %s1307_s19 = smov [#allocation2]  }
   0x7   : > { %p1353_p3 = pnand %p1009_p1, %p130_p2  ;;  %s142_s20 = sshll.u32 %s1307_s19, 4  ;;  %s143_s20 = int_to_ptr.vmem [resolvable:$true] %s142_s20 }
   0x8   : > { %s1609_s18 = scalar_select %p1357_p4, 1, 0 }
   0x9   : > { %s1608_s17 = scalar_select %p1353_p3, 1, 0 }
   0xa   : > { %p1149_p5 = pneg %p1353_p3  ;;  %s1308_s22 = smov [#allocation4]  }
   0xb   : > { %s156_s23 = sshll.u32 %s1308_s22, 4  ;;  %s1219_s26 = scalar_lea.hbm %s1602_s1, 1152  ;;  %s1369_s23 = int_to_ptr.vmem [resolvable:$true] %s156_s23 }
   0xc   : > { %p1365_p6 = pnand %p1357_p4, %p1149_p5  ;;  %p1220_p7 = scmp.ne.s32.totalorder %s1602_s1, %s1219_s26 }
   0xd   : > { %p1226_p11 = scmp.lt.u32.totalorder %s1219_s26, %s1602_s1 }
   0xe   : > { %p1221_p8 = pneg %p1365_p6 }
  0x10   : > { %p1222_p9 = pnand %p1221_p8, %p1220_p7 }
  0x12   : > { %p1223_p10 = pneg %p1222_p9 }
  0x14   : > { %p1228_p12 = pnand %p1226_p11, %p1223_p10 }
  0x16   : > { %1231 = shalt.err (!%p1228_p12)
}
  0x17   : > { %s1232_s4 = scalar_lea.vmem %s143_s20, 1152  ;;  %p1240_p2 = scmp.lt.s32.totalorder %s143_s20, %s143_s20 }
  0x18   : > { %p1233_p13 = scmp.ne.s32.totalorder %s143_s20, %s1232_s4  ;;  %p1241_p5 = scmp.lt.s32.totalorder %s1232_s4, %s1232_s4 }
  0x1a   : > { %p1235_p0 = pnand %p1233_p13, %p1221_p8  ;;  %p1242_p4 = por %p1241_p5, %p1240_p2 }
  0x1c   : > { %p1236_p1 = pneg %p1235_p0 }
  0x1e   : > { %p1243_p3 = pnand %p1242_p4, %p1236_p1 }
  0x20   : > { %1246 = shalt.err (!%p1243_p3)
}
  0x21   : > { %s1309_s5 = smov 128   ;;  %s1310_s6 = smov 8  }
  0x22   : > { %1152 = dma.hbm_to_vmem [thread:$0]  (!%p1365_p6), %s1602_s1, 1152, %s143_s20, [#allocation3], %s1309_s5, %s1309_s5, %s1310_s6  }
  0x23   : > { %s1247_s11 = scalar_lea.hbm %s1603_s2, 32 }
  0x24   : > { %p1248_p7 = scmp.ne.s32.totalorder %s1603_s2, %s1247_s11  ;;  %p1254_p9 = scmp.lt.u32.totalorder %s1247_s11, %s1603_s2 }
  0x26   : > { %p1250_p3 = pnand %p1248_p7, %p1221_p8 }
  0x28   : > { %p1251_p4 = pneg %p1250_p3 }
  0x2a   : > { %p1256_p10 = pnand %p1254_p9, %p1251_p4 }
  0x2c   : > { %1259 = shalt.err (!%p1256_p10)
}
  0x2d   : > { %s1260_s20 = scalar_lea.vmem %s1369_s23, 32  ;;  %p1268_p0 = scmp.lt.s32.totalorder %s1369_s23, %s1369_s23 }
  0x2e   : > { %p1261_p11 = scmp.ne.s32.totalorder %s1369_s23, %s1260_s20  ;;  %p1269_p1 = scmp.lt.s32.totalorder %s1260_s20, %s1260_s20 }
  0x30   : > { %p1263_p12 = pnand %p1261_p11, %p1221_p8  ;;  %p1270_p2 = por %p1269_p1, %p1268_p0 }
  0x32   : > { %p1264_p13 = pneg %p1263_p12 }
  0x34   : > { %p1271_p5 = pnand %p1270_p2, %p1264_p13 }
  0x36   : > { %1274 = shalt.err (!%p1271_p5)
}
  0x37   : > { %1155 = dma.hbm_to_vmem [thread:$0]  (!%p1365_p6), %s1603_s2, 32, %s1369_s23, [#allocation5]  }
  0x38   : > { %p1611_p7 = scmp.ne.s32.totalorder %s1608_s17, 0 }
  0x39   : > { %p1612_p3 = scmp.ne.s32.totalorder (!%p1611_p7), %s1609_s18, 0 }
  0x3a   : > { %182 = sbr.rel (%p1611_p7) target bundleno = 366 (0x16e), region = 32 }
  0x41   : > { %1288 = dma.done.wait (%p1612_p3), [#allocation3], 1152  }
  0x42   : > { %1290 = vsyncadd (%p1612_p3), [#allocation3], 4294966144 }
  0x43   : > { %1292 = dma.done.wait (%p1612_p3), [#allocation5], 32  }
  0x44   : > { %1294 = vsyncadd (%p1612_p3), [#allocation5], 4294967264  ;;  %p220_p8 = scmp.lt.s32.totalorder %s1297_s12, 1  ;;  %v1311_v0 = vmov 0   ;;  %v1189_v1 = vld [vmem:[#allocation2 + $0x4] ss:$8 sps:$4 sm:$0xff]   ;;  %v284_v29 = vlaneseq }
  0x45   : > { %507 = vmatprep.mubr.bf16.mxu0 %v1311_v0  ;;  %587 = vmatprep.mubr.bf16.mxu1 %v1311_v0  ;;  %v1191_v2 = vld [vmem:[#allocation2] ss:$8 sps:$4 sm:$0xff]   ;;  %v1192_v3 = vld [vmem:[#allocation2 + $0x14] ss:$8 sps:$4 sm:$0xff]   ;;  %v1194_v4 = vld [vmem:[#allocation2 + $0x10] ss:$8 sps:$4 sm:$0xff]  }
  0x46   : > { %s1618_s12 = smov (!%p220_p8, %s1297_s12), 1  ;;  %475 = vmatprep.subr.bf16.mxu0 %v1189_v1  ;;  %1131 = vmatprep.subr.bf16.mxu1 %v1189_v1  ;;  %v1195_v5 = vld [vmem:[#allocation2 + $0x24] ss:$8 sps:$4 sm:$0xff]   ;;  %v1197_v6 = vld [vmem:[#allocation2 + $0x20] ss:$8 sps:$4 sm:$0xff]   ;;  %vm468_vm0 = vcmask 1043456  }
  0x47   : > { %s1097_s17 = sshll.u32 %s1618_s12, 7  ;;  %476 = vmatpush1.bf16.msra.mxu0 %v1191_v2  ;;  %1136 = vmatpush1.bf16.msra.mxu1 %v1191_v2  ;;  %v1198_v7 = vld [vmem:[#allocation2 + $0x34] ss:$8 sps:$4 sm:$0xff]   ;;  %v281_v8 = vld [vmem:[#allocation2 + $0x40] sm:$0xff]  ;;  %v1200_v9 = vld [vmem:[#allocation2 + $0x30] ss:$8 sps:$4 sm:$0xff]  }
  0x48   : > { %477 = vmatprep.subr.bf16.mxu0 %v1192_v3  ;;  %1132 = vmatprep.subr.bf16.mxu1 %v1192_v3  ;;  %s1438_s23 = scalar_lea.vmem %s1601_s0, %s1097_s17  ;;  %v1045_v10 = vcombine.high %v281_v8, %v281_v8  ;;  %v1044_v11 = vcombine.low %v281_v8, %v281_v8  ;;  %vm419_vm1 = vcmask 588800   ;;  %v285_v30 = vshrl.u32 %v284_v29, 7  ;;  %v282_v32 = vld [vmem:[#allocation4] sm:$0x3]  ;;  %s1098_s27 = sshll.u32 %s1618_s12, 8 }
  0x49   : > { %v1203_v13 = vld [vmem:[%s1438_s23] sm:$0xff]   ;;  %v1205_v15 = vld [vmem:[%s1438_s23 + $0x8] sm:$0xff]   ;;  %v1207_v17 = vld [vmem:[%s1438_s23 + $0x10] sm:$0xff]   ;;  %s1498_s30 = scalar_lea.vmem %s1604_s3, %s1098_s27 }
  0x4a   : > { %v470_v12 = vsel %vm468_vm0, %v1044_v11, 0  ;;  %v1204_v14 = vld [vmem:[%s1438_s23 + $0x40] sm:$0xff]   ;;  %v1206_v16 = vld [vmem:[%s1438_s23 + $0x48] sm:$0xff]   ;;  %v1208_v18 = vld [vmem:[%s1438_s23 + $0x50] sm:$0xff]   ;;  %v286_v31 = vsub.s32 0, %v285_v30  ;;  %v290_v33 = vsub.s32 1, %v285_v30 }
  0x4b   : > { %478 = vmatpush1.bf16.msra.mxu0 %v1194_v4  ;;  %1137 = vmatpush1.bf16.msra.mxu1 %v1194_v4  ;;  %v1209_v19 = vld [vmem:[%s1438_s23 + $0x18] sm:$0xff]   ;;  %v1211_v21 = vld [vmem:[%s1438_s23 + $0x20] sm:$0xff]   ;;  %v1213_v23 = vld [vmem:[%s1438_s23 + $0x28] sm:$0xff]  }
  0x4c   : > { %479 = vmatprep.subr.bf16.mxu0 %v1195_v5  ;;  %1133 = vmatprep.subr.bf16.mxu1 %v1195_v5  ;;  %v1210_v20 = vld [vmem:[%s1438_s23 + $0x58] sm:$0xff]   ;;  %v1212_v22 = vld [vmem:[%s1438_s23 + $0x60] sm:$0xff]   ;;  %v1214_v24 = vld [vmem:[%s1438_s23 + $0x68] sm:$0xff]   ;;  %v1486_v34 = vrot.slane %v282_v32, %v286_v31  ;;  %v1488_v35 = vrot.slane %v282_v32, %v290_v33 }
  0x4d   : > { %v1215_v25 = vld [vmem:[%s1438_s23 + $0x30] sm:$0xff]   ;;  %v1217_v27 = vld [vmem:[%s1438_s23 + $0x38] sm:$0xff]  }
  0x4e   : > { %v1216_v26 = vld [vmem:[%s1438_s23 + $0x70] sm:$0xff]   ;;  %v1218_v28 = vld [vmem:[%s1438_s23 + $0x78] sm:$0xff]  }
  0x4f   : > { %480 = vmatpush1.bf16.msra.mxu0 %v1197_v6  ;;  %1138 = vmatpush1.bf16.msra.mxu1 %v1197_v6 }
  0x50   : > { %481 = vmatprep.subr.bf16.mxu0 %v1198_v7  ;;  %1134 = vmatprep.subr.bf16.mxu1 %v1198_v7 }
  0x53   : > { %482 = vmatpush1.bf16.msra.mxu0 %v1200_v9  ;;  %1139 = vmatpush1.bf16.msra.mxu1 %v1200_v9 }
  0x54   : > { %1046 = vmatprep.subr.msk.bf16.mxu0 %vm468_vm0, %v1045_v10  ;;  %1135 = vmatprep.subr.msk.bf16.mxu1 %vm468_vm0, %v1045_v10 }
  0x57   : > { %484 = vmatpush1.bf16.msra.mxu0 %v470_v12  ;;  %1140 = vmatpush1.bf16.msra.mxu1 %v470_v12 }
  0x5a   : > { %1047 = vmatmul.mubr.msk.bf16.vlgmr.msra.gmra.mrb[0].mxu0 %vm419_vm1, %v1203_v13  ;;  %1055 = vmatmul.mubr.msk.bf16.vlgmr.msra.gmra.mrb[0].mxu1 %vm419_vm1, %v1204_v14 }
  0x5b   : > { %517 = vmatprep.mubr.bf16.mxu0 %v1311_v0  ;;  %597 = vmatprep.mubr.bf16.mxu1 %v1311_v0 }
  0x62   : > { %1048 = vmatmul.mubr.msk.bf16.gmra.mrb[4].mxu0 %vm419_vm1, %v1205_v15  ;;  %1056 = vmatmul.mubr.msk.bf16.gmra.mrb[4].mxu1 %vm419_vm1, %v1206_v16 }
  0x63   : > { %527 = vmatprep.mubr.bf16.mxu0 %v1311_v0  ;;  %607 = vmatprep.mubr.bf16.mxu1 %v1311_v0 }
  0x6a   : > { %1049 = vmatmul.mubr.msk.bf16.gmra.mrb[8].mxu0 %vm419_vm1, %v1207_v17  ;;  %1057 = vmatmul.mubr.msk.bf16.gmra.mrb[8].mxu1 %vm419_vm1, %v1208_v18 }
  0x6b   : > { %537 = vmatprep.mubr.bf16.mxu0 %v1311_v0  ;;  %617 = vmatprep.mubr.bf16.mxu1 %v1311_v0 }
  0x72   : > { %1050 = vmatmul.mubr.msk.bf16.gmra.mrb[12].mxu0 %vm419_vm1, %v1209_v19  ;;  %1058 = vmatmul.mubr.msk.bf16.gmra.mrb[12].mxu1 %vm419_vm1, %v1210_v20 }
  0x73   : > { %547 = vmatprep.mubr.bf16.mxu0 %v1311_v0  ;;  %627 = vmatprep.mubr.bf16.mxu1 %v1311_v0 }
  0x7a   : > { %1051 = vmatmul.mubr.msk.bf16.gmra.mrb[16].mxu0 %vm419_vm1, %v1211_v21  ;;  %1059 = vmatmul.mubr.msk.bf16.gmra.mrb[16].mxu1 %vm419_vm1, %v1212_v22 }
  0x7b   : > { %557 = vmatprep.mubr.bf16.mxu0 %v1311_v0  ;;  %637 = vmatprep.mubr.bf16.mxu1 %v1311_v0 }
  0x82   : > { %1052 = vmatmul.mubr.msk.bf16.gmra.mrb[20].mxu0 %vm419_vm1, %v1213_v23  ;;  %1060 = vmatmul.mubr.msk.bf16.gmra.mrb[20].mxu1 %vm419_vm1, %v1214_v24 }
  0x83   : > { %567 = vmatprep.mubr.bf16.mxu0 %v1311_v0  ;;  %647 = vmatprep.mubr.bf16.mxu1 %v1311_v0 }
  0x8a   : > { %1053 = vmatmul.mubr.msk.bf16.gmra.mrb[24].mxu0 %vm419_vm1, %v1215_v25  ;;  %1061 = vmatmul.mubr.msk.bf16.gmra.mrb[24].mxu1 %vm419_vm1, %v1216_v26 }
  0x8b   : > { %577 = vmatprep.mubr.bf16.mxu0 %v1311_v0  ;;  %657 = vmatprep.mubr.bf16.mxu1 %v1311_v0 }
  0x92   : > { %1054 = vmatmul.mubr.msk.bf16.gmra.mrb[28].mxu0 %vm419_vm1, %v1217_v27  ;;  %1062 = vmatmul.mubr.msk.bf16.gmra.mrb[28].mxu1 %vm419_vm1, %v1218_v28 }
 0x12d   : > { %v509_v36 = vpop.f32.mrb[0].mxu0  ;;  %v589_v37 = vpop.f32.mrb[0].mxu1 }
 0x12e   : > { %v510_v38 = vadd.f32 %v509_v36, %v1486_v34  ;;  %v590_v39 = vadd.f32 %v589_v37, %v1486_v34  ;;  %v511_v40 = vpop.f32.mrb[1].mxu0  ;;  %v591_v41 = vpop.f32.mrb[1].mxu1 }
 0x12f   : > { %v512_v42 = vadd.f32 %v511_v40, %v1488_v35  ;;  %v592_v43 = vadd.f32 %v591_v41, %v1488_v35  ;;  %v513_v44 = vpop.f32.mrb[2].mxu0  ;;  %v593_v45 = vpop.f32.mrb[2].mxu1 }
 0x130   : > { %v514_v46 = vadd.f32 %v513_v44, %v1486_v34  ;;  %v594_v47 = vadd.f32 %v593_v45, %v1486_v34  ;;  %v515_v48 = vpop.f32.mrb[3].mxu0  ;;  %v595_v49 = vpop.f32.mrb[3].mxu1 }
 0x131   : > { %v1099_v50 = vpack.c.bf16 %v512_v42, %v510_v38  ;;  %v1115_v51 = vpack.c.bf16 %v592_v43, %v590_v39  ;;  %v516_v52 = vadd.f32 %v515_v48, %v1488_v35  ;;  %v596_v53 = vadd.f32 %v595_v49, %v1488_v35 }
 0x133   : > { %860 = vst [vmem:[%s1498_s30] sm:$0xff] %v1099_v50  ;;  %876 = vst [vmem:[%s1498_s30 + $0x80] sm:$0xff] %v1115_v51  ;;  %v1100_v54 = vpack.c.bf16 %v516_v52, %v514_v46  ;;  %v1116_v55 = vpack.c.bf16 %v596_v53, %v594_v47 }
 0x135   : > { %861 = vst [vmem:[%s1498_s30 + $0x8] sm:$0xff] %v1100_v54  ;;  %877 = vst [vmem:[%s1498_s30 + $0x88] sm:$0xff] %v1116_v55  ;;  %v519_v56 = vpop.f32.mrb[4].mxu0  ;;  %v599_v57 = vpop.f32.mrb[4].mxu1 }
 0x136   : > { %v520_v58 = vadd.f32 %v519_v56, %v1486_v34  ;;  %v600_v59 = vadd.f32 %v599_v57, %v1486_v34  ;;  %v521_v60 = vpop.f32.mrb[5].mxu0  ;;  %v601_v61 = vpop.f32.mrb[5].mxu1 }
 0x137   : > { %v522_v62 = vadd.f32 %v521_v60, %v1488_v35  ;;  %v602_v63 = vadd.f32 %v601_v61, %v1488_v35  ;;  %v523_v0 = vpop.f32.mrb[6].mxu0  ;;  %v603_v1 = vpop.f32.mrb[6].mxu1 }
 0x138   : > { %v524_v2 = vadd.f32 %v523_v0, %v1486_v34  ;;  %v604_v3 = vadd.f32 %v603_v1, %v1486_v34  ;;  %v525_v4 = vpop.f32.mrb[7].mxu0  ;;  %v605_v5 = vpop.f32.mrb[7].mxu1 }
 0x139   : > { %v1101_v6 = vpack.c.bf16 %v522_v62, %v520_v58  ;;  %v1117_v7 = vpack.c.bf16 %v602_v63, %v600_v59  ;;  %v526_v8 = vadd.f32 %v525_v4, %v1488_v35  ;;  %v606_v9 = vadd.f32 %v605_v5, %v1488_v35 }
 0x13b   : > { %862 = vst [vmem:[%s1498_s30 + $0x10] sm:$0xff] %v1101_v6  ;;  %878 = vst [vmem:[%s1498_s30 + $0x90] sm:$0xff] %v1117_v7  ;;  %v1102_v10 = vpack.c.bf16 %v526_v8, %v524_v2  ;;  %v1118_v11 = vpack.c.bf16 %v606_v9, %v604_v3 }
 0x13d   : > { %863 = vst [vmem:[%s1498_s30 + $0x18] sm:$0xff] %v1102_v10  ;;  %879 = vst [vmem:[%s1498_s30 + $0x98] sm:$0xff] %v1118_v11  ;;  %v529_v12 = vpop.f32.mrb[8].mxu0  ;;  %v609_v13 = vpop.f32.mrb[8].mxu1 }
 0x13e   : > { %v530_v14 = vadd.f32 %v529_v12, %v1486_v34  ;;  %v610_v15 = vadd.f32 %v609_v13, %v1486_v34  ;;  %v531_v16 = vpop.f32.mrb[9].mxu0  ;;  %v611_v17 = vpop.f32.mrb[9].mxu1 }
 0x13f   : > { %v532_v18 = vadd.f32 %v531_v16, %v1488_v35  ;;  %v612_v19 = vadd.f32 %v611_v17, %v1488_v35  ;;  %v533_v20 = vpop.f32.mrb[10].mxu0  ;;  %v613_v21 = vpop.f32.mrb[10].mxu1 }
 0x140   : > { %v534_v22 = vadd.f32 %v533_v20, %v1486_v34  ;;  %v614_v23 = vadd.f32 %v613_v21, %v1486_v34  ;;  %v535_v24 = vpop.f32.mrb[11].mxu0  ;;  %v615_v25 = vpop.f32.mrb[11].mxu1 }
 0x141   : > { %v1103_v26 = vpack.c.bf16 %v532_v18, %v530_v14  ;;  %v1119_v27 = vpack.c.bf16 %v612_v19, %v610_v15  ;;  %v536_v28 = vadd.f32 %v535_v24, %v1488_v35  ;;  %v616_v29 = vadd.f32 %v615_v25, %v1488_v35 }
 0x143   : > { %864 = vst [vmem:[%s1498_s30 + $0x20] sm:$0xff] %v1103_v26  ;;  %880 = vst [vmem:[%s1498_s30 + $0xa0] sm:$0xff] %v1119_v27  ;;  %v1104_v30 = vpack.c.bf16 %v536_v28, %v534_v22  ;;  %v1120_v31 = vpack.c.bf16 %v616_v29, %v614_v23 }
 0x145   : > { %865 = vst [vmem:[%s1498_s30 + $0x28] sm:$0xff] %v1104_v30  ;;  %881 = vst [vmem:[%s1498_s30 + $0xa8] sm:$0xff] %v1120_v31  ;;  %v539_v32 = vpop.f32.mrb[12].mxu0  ;;  %v619_v33 = vpop.f32.mrb[12].mxu1 }
 0x146   : > { %v540_v36 = vadd.f32 %v539_v32, %v1486_v34  ;;  %v620_v37 = vadd.f32 %v619_v33, %v1486_v34  ;;  %v541_v38 = vpop.f32.mrb[13].mxu0  ;;  %v621_v39 = vpop.f32.mrb[13].mxu1 }
 0x147   : > { %v542_v40 = vadd.f32 %v541_v38, %v1488_v35  ;;  %v622_v41 = vadd.f32 %v621_v39, %v1488_v35  ;;  %v543_v42 = vpop.f32.mrb[14].mxu0  ;;  %v623_v43 = vpop.f32.mrb[14].mxu1 }
 0x148   : > { %v544_v44 = vadd.f32 %v543_v42, %v1486_v34  ;;  %v624_v45 = vadd.f32 %v623_v43, %v1486_v34  ;;  %v545_v46 = vpop.f32.mrb[15].mxu0  ;;  %v625_v47 = vpop.f32.mrb[15].mxu1 }
 0x149   : > { %v1105_v48 = vpack.c.bf16 %v542_v40, %v540_v36  ;;  %v1121_v49 = vpack.c.bf16 %v622_v41, %v620_v37  ;;  %v546_v50 = vadd.f32 %v545_v46, %v1488_v35  ;;  %v626_v51 = vadd.f32 %v625_v47, %v1488_v35 }
 0x14b   : > { %866 = vst [vmem:[%s1498_s30 + $0x30] sm:$0xff] %v1105_v48  ;;  %882 = vst [vmem:[%s1498_s30 + $0xb0] sm:$0xff] %v1121_v49  ;;  %v1106_v52 = vpack.c.bf16 %v546_v50, %v544_v44  ;;  %v1122_v53 = vpack.c.bf16 %v626_v51, %v624_v45 }
 0x14d   : > { %867 = vst [vmem:[%s1498_s30 + $0x38] sm:$0xff] %v1106_v52  ;;  %883 = vst [vmem:[%s1498_s30 + $0xb8] sm:$0xff] %v1122_v53  ;;  %v549_v54 = vpop.f32.mrb[16].mxu0  ;;  %v629_v55 = vpop.f32.mrb[16].mxu1 }
 0x14e   : > { %v550_v56 = vadd.f32 %v549_v54, %v1486_v34  ;;  %v630_v57 = vadd.f32 %v629_v55, %v1486_v34  ;;  %v551_v58 = vpop.f32.mrb[17].mxu0  ;;  %v631_v59 = vpop.f32.mrb[17].mxu1 }
 0x14f   : > { %v552_v60 = vadd.f32 %v551_v58, %v1488_v35  ;;  %v632_v61 = vadd.f32 %v631_v59, %v1488_v35  ;;  %v553_v62 = vpop.f32.mrb[18].mxu0  ;;  %v633_v63 = vpop.f32.mrb[18].mxu1 }
 0x150   : > { %v554_v0 = vadd.f32 %v553_v62, %v1486_v34  ;;  %v634_v1 = vadd.f32 %v633_v63, %v1486_v34  ;;  %v555_v2 = vpop.f32.mrb[19].mxu0  ;;  %v635_v3 = vpop.f32.mrb[19].mxu1 }
 0x151   : > { %v1107_v4 = vpack.c.bf16 %v552_v60, %v550_v56  ;;  %v1123_v5 = vpack.c.bf16 %v632_v61, %v630_v57  ;;  %v556_v6 = vadd.f32 %v555_v2, %v1488_v35  ;;  %v636_v7 = vadd.f32 %v635_v3, %v1488_v35 }
 0x153   : > { %868 = vst [vmem:[%s1498_s30 + $0x40] sm:$0xff] %v1107_v4  ;;  %884 = vst [vmem:[%s1498_s30 + $0xc0] sm:$0xff] %v1123_v5  ;;  %v1108_v8 = vpack.c.bf16 %v556_v6, %v554_v0  ;;  %v1124_v9 = vpack.c.bf16 %v636_v7, %v634_v1 }
 0x155   : > { %869 = vst [vmem:[%s1498_s30 + $0x48] sm:$0xff] %v1108_v8  ;;  %885 = vst [vmem:[%s1498_s30 + $0xc8] sm:$0xff] %v1124_v9  ;;  %v559_v10 = vpop.f32.mrb[20].mxu0  ;;  %v639_v11 = vpop.f32.mrb[20].mxu1 }
 0x156   : > { %v560_v12 = vadd.f32 %v559_v10, %v1486_v34  ;;  %v640_v13 = vadd.f32 %v639_v11, %v1486_v34  ;;  %v561_v14 = vpop.f32.mrb[21].mxu0  ;;  %v641_v15 = vpop.f32.mrb[21].mxu1 }
 0x157   : > { %v562_v16 = vadd.f32 %v561_v14, %v1488_v35  ;;  %v642_v17 = vadd.f32 %v641_v15, %v1488_v35  ;;  %v563_v18 = vpop.f32.mrb[22].mxu0  ;;  %v643_v19 = vpop.f32.mrb[22].mxu1 }
 0x158   : > { %v564_v20 = vadd.f32 %v563_v18, %v1486_v34  ;;  %v644_v21 = vadd.f32 %v643_v19, %v1486_v34  ;;  %v565_v22 = vpop.f32.mrb[23].mxu0  ;;  %v645_v23 = vpop.f32.mrb[23].mxu1 }
 0x159   : > { %v1109_v24 = vpack.c.bf16 %v562_v16, %v560_v12  ;;  %v1125_v25 = vpack.c.bf16 %v642_v17, %v640_v13  ;;  %v566_v26 = vadd.f32 %v565_v22, %v1488_v35  ;;  %v646_v27 = vadd.f32 %v645_v23, %v1488_v35 }
 0x15b   : > { %870 = vst [vmem:[%s1498_s30 + $0x50] sm:$0xff] %v1109_v24  ;;  %886 = vst [vmem:[%s1498_s30 + $0xd0] sm:$0xff] %v1125_v25  ;;  %v1110_v28 = vpack.c.bf16 %v566_v26, %v564_v20  ;;  %v1126_v29 = vpack.c.bf16 %v646_v27, %v644_v21 }
 0x15d   : > { %871 = vst [vmem:[%s1498_s30 + $0x58] sm:$0xff] %v1110_v28  ;;  %887 = vst [vmem:[%s1498_s30 + $0xd8] sm:$0xff] %v1126_v29  ;;  %v569_v30 = vpop.f32.mrb[24].mxu0  ;;  %v649_v31 = vpop.f32.mrb[24].mxu1 }
 0x15e   : > { %v570_v32 = vadd.f32 %v569_v30, %v1486_v34  ;;  %v650_v33 = vadd.f32 %v649_v31, %v1486_v34  ;;  %v571_v36 = vpop.f32.mrb[25].mxu0  ;;  %v651_v37 = vpop.f32.mrb[25].mxu1 }
 0x15f   : > { %v572_v38 = vadd.f32 %v571_v36, %v1488_v35  ;;  %v652_v39 = vadd.f32 %v651_v37, %v1488_v35  ;;  %v573_v40 = vpop.f32.mrb[26].mxu0  ;;  %v653_v41 = vpop.f32.mrb[26].mxu1 }
 0x160   : > { %v574_v42 = vadd.f32 %v573_v40, %v1486_v34  ;;  %v654_v43 = vadd.f32 %v653_v41, %v1486_v34  ;;  %v575_v44 = vpop.f32.mrb[27].mxu0  ;;  %v655_v45 = vpop.f32.mrb[27].mxu1 }
 0x161   : > { %v1111_v46 = vpack.c.bf16 %v572_v38, %v570_v32  ;;  %v1127_v47 = vpack.c.bf16 %v652_v39, %v650_v33  ;;  %v576_v48 = vadd.f32 %v575_v44, %v1488_v35  ;;  %v656_v49 = vadd.f32 %v655_v45, %v1488_v35 }
 0x163   : > { %872 = vst [vmem:[%s1498_s30 + $0x60] sm:$0xff] %v1111_v46  ;;  %888 = vst [vmem:[%s1498_s30 + $0xe0] sm:$0xff] %v1127_v47  ;;  %v1112_v50 = vpack.c.bf16 %v576_v48, %v574_v42  ;;  %v1128_v51 = vpack.c.bf16 %v656_v49, %v654_v43 }
 0x165   : > { %873 = vst [vmem:[%s1498_s30 + $0x68] sm:$0xff] %v1112_v50  ;;  %889 = vst [vmem:[%s1498_s30 + $0xe8] sm:$0xff] %v1128_v51  ;;  %v579_v52 = vpop.f32.mrb[28].mxu0  ;;  %v659_v53 = vpop.f32.mrb[28].mxu1 }
 0x166   : > { %v580_v54 = vadd.f32 %v579_v52, %v1486_v34  ;;  %v660_v55 = vadd.f32 %v659_v53, %v1486_v34  ;;  %v581_v56 = vpop.f32.mrb[29].mxu0  ;;  %v661_v57 = vpop.f32.mrb[29].mxu1 }
 0x167   : > { %v582_v58 = vadd.f32 %v581_v56, %v1488_v35  ;;  %v662_v59 = vadd.f32 %v661_v57, %v1488_v35  ;;  %v583_v60 = vpop.f32.mrb[30].mxu0  ;;  %v663_v61 = vpop.f32.mrb[30].mxu1 }
 0x168   : > { %v584_v62 = vadd.f32 %v583_v60, %v1486_v34  ;;  %v664_v63 = vadd.f32 %v663_v61, %v1486_v34  ;;  %v585_v0 = vpop.f32.mrb[31].mxu0  ;;  %v665_v1 = vpop.f32.mrb[31].mxu1 }
 0x169   : > { %v1113_v2 = vpack.c.bf16 %v582_v58, %v580_v54  ;;  %v1129_v3 = vpack.c.bf16 %v662_v59, %v660_v55  ;;  %v586_v4 = vadd.f32 %v585_v0, %v1488_v35  ;;  %v666_v5 = vadd.f32 %v665_v1, %v1488_v35 }
 0x16b   : > { %874 = vst [vmem:[%s1498_s30 + $0x70] sm:$0xff] %v1113_v2  ;;  %890 = vst [vmem:[%s1498_s30 + $0xf0] sm:$0xff] %v1129_v3  ;;  %v1114_v6 = vpack.c.bf16 %v586_v4, %v584_v62  ;;  %v1130_v7 = vpack.c.bf16 %v666_v5, %v664_v63 }
 0x16d   : > { %875 = vst [vmem:[%s1498_s30 + $0x78] sm:$0xff] %v1114_v6  ;;  %891 = vst [vmem:[%s1498_s30 + $0xf8] sm:$0xff] %v1130_v7 }
 0x16e PF: > { %s15_s14 = sadd.s32 1, %s1305_s14   ;;  %s1613_s12 = smov %s1301_s13 }
 0x16f   : > { %p12_p6 = scmp.ge.s32.totalorder %s15_s14, 4   ;;  %s1614_s13 = smov %s1616_s16 }
 0x171   :  { %14 = sbr.rel (!%p12_p6) target bundleno = 3 (0x3), region = 71 }
 0x178   :  { %924 = vsyncpa [#allocation3], 1 }
 0x179   :  { %926 = vsyncpa [#allocation3 + $0x1], 1 }
 0x17a   :  { %927 = vsyncpa [#allocation5], 1 }

// kernel: model_forward.4
= control target key start
LH: loop header
LB: loop body
LE: loop exit
PB: predicated region body
PF: predicated region fallthrough
CT: control target
= control target key end

     0   :  { %s12740_s12 = smov 0   ;;  %s12742_s13 = smov 0   ;;  %s15087_s0 = inlined_call_operand.vmem [shape: bf16[2,1648,64], index: 0, kind: input, shape index: {}]   ;;  %s15088_s1 = inlined_call_operand.vmem [shape: bf16[9,64,64], index: 1, kind: input, shape index: {}]   ;;  %s15089_s2 = inlined_call_operand.vmem [shape: f32[1,64], index: 2, kind: input, shape index: {}]   ;;  %s15090_s3 = inlined_call_operand.vmem [shape: bf16[2,1536,64], index: 3, kind: output, shape index: {}]  }
   0x1   :  { %s12744_s14 = smov 0   ;;  %s12746_s15 = smov 0  }
   0x2   :  { %s12748_s16 = smov 0  }
   0x3 LB: > { %s22_s17 = sadd.s32 1, %s12710_s14  ;;  %s25_s18 = sadd.s32 1, %s12714_s15  ;;  %s12718_s16 = sphi %s12748_s16, %s13_s16   ;;  %s12714_s15 = sphi %s12746_s15, %s15125_s15   ;;  %s12710_s14 = sphi %s12744_s14, %s15124_s14   ;;  %s12706_s13 = sphi %s12742_s13, %s15123_s13   ;;  %s12702_s12 = sphi %s12740_s12, %s15122_s12  }
   0x4   : > { %p23_p0 = scmp.ge.s32.totalorder %s22_s17, 2  ;;  %p9239_p1 = scmp.ge.s32.totalorder %s12718_s16, 1 }
   0x5   : > { %p151_p2 = scmp.lt.s32.totalorder %s12718_s16, 5 }
   0x6   : > { %s15127_s17 = smov (%p23_p0, %s22_s17), 0  ;;  %s15129_s18 = smov (!%p23_p0, %s25_s18), %s12714_s15 }
   0x7   : > { %p152_p3 = pnand %p9239_p1, %p151_p2  ;;  %p27_p4 = scmp.ge.s32.totalorder %s15129_s18, 2 }
   0x9   : > { %s15131_s18 = smov (%p27_p4, %s15129_s18), 0  ;;  %155 = sbr.rel (%p152_p3) target bundleno = 1113 (0x459), region = 32 }
  0x10   : > { %v12341_v0 = vld [vmem:[%s15088_s1 + $0x20] sm:$0xff]   ;;  %p179_p5 = scmp.lt.s32.totalorder %s12706_s13, 1  ;;  %s12779_s23 = smul.u32 768, %s12702_s12  ;;  %v12343_v2 = vld [vmem:[%s15088_s1 + $0x28] sm:$0xff]   ;;  %v12345_v4 = vld [vmem:[%s15088_s1 + $0x30] sm:$0xff]   ;;  %vm970_vm0 = vcmask 523264  }
  0x11   : > { %v12342_v1 = vld [vmem:[%s15088_s1 + $0x80] sm:$0xff]   ;;  %10587 = vmatprep.subr.bf16.mxu1 %v12341_v0  ;;  %v12344_v3 = vld [vmem:[%s15088_s1 + $0x88] sm:$0xff]   ;;  %v12346_v5 = vld [vmem:[%s15088_s1 + $0x90] sm:$0xff]   ;;  %vm557_vm1 = vsmask.f32 7424  ;;  %vm2078_vm2 = vcmask 1046528  }
  0x12   : > { %s15133_s13 = smov (!%p179_p5, %s12706_s13), 1  ;;  %11003 = vmatprep.subr.bf16.mxu0 %v12342_v1  ;;  %10588 = vmatpush3.bf16.msra.mxu1 %v12341_v0  ;;  %s196_s28 = sshra.s32 %s12779_s23, 3  ;;  %v12347_v6 = vld [vmem:[%s15088_s1 + $0x38] sm:$0xff]   ;;  %v12354_v15 = vld [vmem:[%s15088_s1] sm:$0xff]   ;;  %vm9048_vm3 = vcmask 519168  }
  0x13   : > { %11004 = vmatpush3.bf16.msra.mxu0 %v12342_v1  ;;  %10589 = vmatprep.subr.bf16.mxu1 %v12343_v2  ;;  %s12299_s4 = smul.u32 824, %s15133_s13  ;;  %s9242_s7 = sshll.u32 %s196_s28, 2  ;;  %v12348_v7 = vld [vmem:[%s15088_s1 + $0x98] sm:$0xff]   ;;  %v12356_v17 = vld [vmem:[%s15088_s1 + $0xa0] sm:$0xff]  }
  0x14   : > { %11005 = vmatprep.subr.bf16.mxu0 %v12344_v3  ;;  %s2857_s24 = sadd.s32 48, %s12779_s23  ;;  %s5709_s11 = sadd.s32 96, %s12779_s23 }
  0x15   : > { %s12803_s19 = scalar_lea.vmem %s15087_s0, %s12299_s4  ;;  %s2858_s25 = sshra.s32 %s2857_s24, 3 }
  0x16   : > { %10590 = vmatpush3.bf16.msra.mxu1 %v12343_v2  ;;  %s12809_s22 = scalar_lea.vmem %s12803_s19, %s9242_s7  ;;  %s9464_s26 = sshll.u32 %s2858_s25, 2 }
  0x17   : > { %11006 = vmatpush3.bf16.msra.mxu0 %v12344_v3  ;;  %10591 = vmatprep.subr.bf16.mxu1 %v12345_v4  ;;  %v12349_v8 = vld [vmem:[%s12809_s22] sm:$0xff]   ;;  %v12350_v9 = vld [vmem:[%s12809_s22 + $0x8] sm:$0xff]   ;;  %v12353_v10 = vld [vmem:[%s12809_s22 + $0x10] sm:$0xff]   ;;  %s12819_s29 = scalar_lea.vmem %s12803_s19, %s9464_s26  ;;  %s5710_s20 = sshra.s32 %s5709_s11, 3 }
  0x18   : > { %11007 = vmatprep.subr.bf16.mxu0 %v12346_v5  ;;  %v559_v11 = vshrl.u32 %v12349_v8, 16  ;;  %v561_v12 = vshll.u32 %v12349_v8, 16  ;;  %v566_v13 = vshll.u32 %v12350_v9, 16  ;;  %v570_v14 = vshrl.u32 %v12350_v9, 16  ;;  %v12825_v20 = vld [vmem:[%s12819_s29] sm:$0xff]   ;;  %v12828_v24 = vld [vmem:[%s12819_s29 + $0x8] sm:$0xff]  }
  0x19   : > { %v574_v16 = vshll.u32 %v12353_v10, 16  ;;  %v578_v25 = vshrl.u32 %v12353_v10, 16  ;;  %v3901_v26 = vshrl.u32 %v12825_v20, 16  ;;  %v3903_v27 = vshll.u32 %v12825_v20, 16  ;;  %v12355_v28 = vld [vmem:[%s12819_s29 + $0x10] sm:$0xff]   ;;  %v12357_v29 = vld [vmem:[%s12809_s22 + $0x18] sm:$0xff]  }
  0x1a   : > { %10592 = vmatpush3.bf16.msra.mxu1 %v12345_v4  ;;  %v563_v18 = vrot.slane %v561_v12, 1  ;;  %v568_v19 = vrot.slane %v566_v13, 1  ;;  %v3907_v31 = vshll.u32 %v12828_v24, 16  ;;  %v3911_v32 = vshrl.u32 %v12828_v24, 16  ;;  %v12840_v38 = vld [vmem:[%s12819_s29 + $0x18] sm:$0xff]   ;;  %v12359_v45 = vld [vmem:[%s12809_s22 + $0x20] sm:$0xff]  }
  0x1b   : > { %11008 = vmatpush3.bf16.msra.mxu0 %v12346_v5  ;;  %10593 = vmatprep.subr.bf16.mxu1 %v12347_v6  ;;  %v576_v21 = vrot.slane %v574_v16, 1  ;;  %v3905_v34 = vrot.slane %v3903_v27, 1  ;;  %v3914_v35 = vshll.u32 %v12355_v28, 16  ;;  %v582_v37 = vshll.u32 %v12357_v29, 16  ;;  %v12360_v48 = vld [vmem:[%s12819_s29 + $0x20] sm:$0xff]   ;;  %v12361_v53 = vld [vmem:[%s12809_s22 + $0x28] sm:$0xff]  }
  0x1c   : > { %11009 = vmatprep.subr.bf16.mxu0 %v12348_v7  ;;  %v564_v22 = vor.u32 %v563_v18, %v559_v11  ;;  %v572_v23 = vor.u32 %v570_v14, %v568_v19  ;;  %v3909_v39 = vrot.slane %v3907_v31, 1  ;;  %v3918_v40 = vshrl.u32 %v12355_v28, 16  ;;  %v12856_v62 = vld [vmem:[%s12819_s29 + $0x28] sm:$0xff]   ;;  %v12363_v5 = vld [vmem:[%s12809_s22 + $0x30] sm:$0xff]   ;;  %v12365_v11 = vld [vmem:[%s12809_s22 + $0x38] sm:$0xff]   ;;  %s9694_s23 = sshll.u32 %s5710_s20, 2 }
  0x1d   : > { %v580_v36 = vor.u32 %v578_v25, %v576_v21  ;;  %v3906_v41 = vor.u32 %v3905_v34, %v3901_v26  ;;  %v3916_v42 = vrot.slane %v3914_v35, 1  ;;  %v584_v43 = vrot.slane %v582_v37, 1  ;;  %v12366_v16 = vld [vmem:[%s12819_s29 + $0x38] sm:$0xff]   ;;  %s13256_s21 = scalar_lea.vmem %s12803_s19, %s9694_s23 }
  0x1e   : > { %10594 = vmatpush3.bf16.msra.mxu1 %v12347_v6  ;;  %v569_v30 = vsel %vm557_vm1, %v564_v22, %v568_v19  ;;  %v577_v33 = vsel %vm557_vm1, %v572_v23, %v576_v21  ;;  %v3921_v44 = vshll.u32 %v12840_v38, 16  ;;  %v3913_v46 = vor.u32 %v3911_v32, %v3909_v39  ;;  %v12367_v22 = vld [vmem:[%s12809_s22 + $0x40] sm:$0xff]  }
  0x1f   : > { %11010 = vmatpush3.bf16.msra.mxu0 %v12348_v7  ;;  %10691 = vmatprep.subr.bf16.mxu1 %v12354_v15  ;;  %v586_v47 = vshrl.u32 %v12357_v29, 16  ;;  %v3910_v49 = vsel %vm557_vm1, %v3906_v41, %v3909_v39  ;;  %v585_v50 = vsel %vm557_vm1, %v580_v36, %v584_v43  ;;  %v3920_v51 = vor.u32 %v3918_v40, %v3916_v42  ;;  %v12364_v7 = vld [vmem:[%s12819_s29 + $0x30] sm:$0xff]   ;;  %v12876_v36 = vld [vmem:[%s12819_s29 + $0x40] sm:$0xff]   ;;  %v12369_v40 = vld [vmem:[%s15088_s1 + $0xa8] sm:$0xff]  }
  0x20   : > { %11107 = vmatprep.subr.bf16.mxu0 %v12356_v17  ;;  %10595 = vmatprep.mubr.msk.bf16.mxu1 %vm970_vm0, %v569_v30  ;;  %v3923_v52 = vrot.slane %v3921_v44, 1  ;;  %v3917_v54 = vsel %vm557_vm1, %v3913_v46, %v3916_v42  ;;  %v590_v56 = vshll.u32 %v12359_v45, 16  ;;  %v3925_v57 = vshrl.u32 %v12840_v38, 16 }
  0x21   : > { %10596 = vmatmul.mubr.msk.bf16.vlgmr.msra.gmra.mrb[0].mxu1 %vm970_vm0, %v577_v33  ;;  %11011 = vmatprep.mubr.msk.bf16.mxu0 %vm970_vm0, %v3910_v49  ;;  %v588_v55 = vor.u32 %v586_v47, %v584_v43  ;;  %v3928_v59 = vshll.u32 %v12360_v48, 16  ;;  %v594_v60 = vshrl.u32 %v12359_v45, 16  ;;  %v598_v61 = vshll.u32 %v12361_v53, 16  ;;  %v12370_v43 = vld [vmem:[%s12809_s22 + $0x48] sm:$0xff]  }
  0x22   : > { %10692 = vmatpush3.bf16.msra.mxu1 %v12354_v15  ;;  %10599 = vmatprep.mubr.msk.bf16.mxu1 %vm970_vm0, %v585_v50  ;;  %v3924_v58 = vsel %vm557_vm1, %v3920_v51, %v3923_v52  ;;  %v592_v63 = vrot.slane %v590_v56, 1  ;;  %v3927_v0 = vor.u32 %v3925_v57, %v3923_v52  ;;  %v3932_v1 = vshrl.u32 %v12360_v48, 16  ;;  %v12885_v45 = vld [vmem:[%s12819_s29 + $0x48] sm:$0xff]   ;;  %v12372_v48 = vld [vmem:[%s12809_s22 + $0x50] sm:$0xff]  }
  0x23   : > { %11012 = vmatmul.mubr.msk.bf16.vlgmr.msra.gmra.mrb[0].mxu0 %vm970_vm0, %v3917_v54  ;;  %v3930_v2 = vrot.slane %v3928_v59, 1  ;;  %v600_v3 = vrot.slane %v598_v61, 1  ;;  %v3935_v4 = vshll.u32 %v12856_v62, 16  ;;  %v602_v6 = vshrl.u32 %v12361_v53, 16 }
  0x24   : > { %11108 = vmatpush3.bf16.msra.mxu0 %v12356_v17  ;;  %11015 = vmatprep.mubr.msk.bf16.mxu0 %vm970_vm0, %v3924_v58  ;;  %v593_v8 = vsel %vm557_vm1, %v588_v55, %v592_v63  ;;  %v596_v9 = vor.u32 %v594_v60, %v592_v63  ;;  %v3939_v10 = vshrl.u32 %v12856_v62, 16  ;;  %v606_v18 = vshll.u32 %v12363_v5, 16  ;;  %v12895_v58 = vld [vmem:[%s12819_s29 + $0x50] sm:$0xff]   ;;  %v12374_v60 = vld [vmem:[%s12809_s22 + $0x58] sm:$0xff]  }
  0x25   : > { %v3931_v12 = vsel %vm557_vm1, %v3927_v0, %v3930_v2  ;;  %v3934_v13 = vor.u32 %v3932_v1, %v3930_v2  ;;  %v3937_v14 = vrot.slane %v3935_v4, 1  ;;  %v604_v15 = vor.u32 %v602_v6, %v600_v3  ;;  %11109 = vmatprep.subr.bf16.mxu0 %v12369_v40  ;;  %v12902_v2 = vld [vmem:[%s12819_s29 + $0x58] sm:$0xff]  }
  0x26   : > { %v601_v17 = vsel %vm557_vm1, %v596_v9, %v600_v3  ;;  %v3942_v19 = vshll.u32 %v12364_v7, 16  ;;  %v610_v21 = vshrl.u32 %v12363_v5, 16  ;;  %v614_v25 = vshll.u32 %v12365_v11, 16 }
  0x27   : > { %v3938_v23 = vsel %vm557_vm1, %v3934_v13, %v3937_v14  ;;  %v3946_v26 = vshrl.u32 %v12364_v7, 16  ;;  %v608_v27 = vrot.slane %v606_v18, 1  ;;  %v3949_v29 = vshll.u32 %v12366_v16, 16 }
  0x28   : > { %v3944_v28 = vrot.slane %v3942_v19, 1  ;;  %v3941_v30 = vor.u32 %v3939_v10, %v3937_v14  ;;  %v616_v31 = vrot.slane %v614_v25, 1  ;;  %v622_v32 = vshll.u32 %v12367_v22, 16  ;;  %11110 = vmatpush3.bf16.msra.mxu0 %v12369_v40  ;;  %v12376_v10 = vld [vmem:[%s12809_s22 + $0x60] sm:$0xff]   ;;  %v12378_v14 = vld [vmem:[%s12809_s22 + $0x68] sm:$0xff]   ;;  %v12383_v40 = vld [vmem:[%s15088_s1 + $0xb0] sm:$0xff]  }
  0x29   : > { %10600 = vmatmul.mubr.msk.bf16.gmra.mrb[4].mxu1 %vm970_vm0, %v593_v8  ;;  %v609_v33 = vsel %vm557_vm1, %v604_v15, %v608_v27  ;;  %v612_v34 = vor.u32 %v610_v21, %v608_v27  ;;  %v618_v35 = vshrl.u32 %v12365_v11, 16  ;;  %v3951_v39 = vrot.slane %v3949_v29, 1  ;;  %v12917_v25 = vld [vmem:[%s12819_s29 + $0x60] sm:$0xff]   ;;  %11111 = vmatprep.subr.bf16.mxu0 %v12383_v40 }
  0x2a   : > { %10603 = vmatprep.mubr.msk.bf16.mxu1 %vm970_vm0, %v601_v17  ;;  %v3948_v37 = vor.u32 %v3946_v26, %v3944_v28  ;;  %v3956_v42 = vshll.u32 %v12876_v36, 16  ;;  %v626_v44 = vshrl.u32 %v12367_v22, 16  ;;  %v3945_v46 = vsel %vm557_vm1, %v3941_v30, %v3944_v28  ;;  %v12381_v26 = vld [vmem:[%s15088_s1 + $0x8] sm:$0xff]  }
  0x2b   : > { %11016 = vmatmul.mubr.msk.bf16.gmra.mrb[4].mxu0 %vm970_vm0, %v3931_v12  ;;  %v617_v41 = vsel %vm557_vm1, %v612_v34, %v616_v31  ;;  %v624_v47 = vrot.slane %v622_v32, 1  ;;  %v620_v49 = vor.u32 %v618_v35, %v616_v31  ;;  %v3953_v50 = vshrl.u32 %v12366_v16, 16  ;;  %v12925_v31 = vld [vmem:[%s12819_s29 + $0x68] sm:$0xff]   ;;  %10693 = vmatprep.subr.bf16.mxu1 %v12381_v26 }
  0x2c   : > { %11019 = vmatprep.mubr.msk.bf16.mxu0 %vm970_vm0, %v3938_v23  ;;  %v630_v51 = vshll.u32 %v12370_v43, 16  ;;  %v3960_v52 = vshrl.u32 %v12876_v36, 16  ;;  %v3952_v53 = vsel %vm557_vm1, %v3948_v37, %v3951_v39  ;;  %v3958_v54 = vrot.slane %v3956_v42, 1  ;;  %10694 = vmatpush3.bf16.msra.mxu1 %v12381_v26 }
  0x2d   : > { %v628_v55 = vor.u32 %v626_v44, %v624_v47  ;;  %v3963_v56 = vshll.u32 %v12885_v45, 16  ;;  %v638_v59 = vshll.u32 %v12372_v48, 16  ;;  %v625_v61 = vsel %vm557_vm1, %v620_v49, %v624_v47  ;;  %v12384_v49 = vld [vmem:[%s12809_s22 + $0x78] sm:$0xff]   ;;  %11112 = vmatpush3.bf16.msra.mxu0 %v12383_v40 }
  0x2e   : > { %v632_v57 = vrot.slane %v630_v51, 1  ;;  %v3955_v63 = vor.u32 %v3953_v50, %v3951_v39  ;;  %v3962_v0 = vor.u32 %v3960_v52, %v3958_v54  ;;  %v634_v1 = vshrl.u32 %v12370_v43, 16  ;;  %v12380_v39 = vld [vmem:[%s12809_s22 + $0x70] sm:$0xff]  }
  0x2f   : > { %v3965_v4 = vrot.slane %v3963_v56, 1  ;;  %v642_v5 = vshrl.u32 %v12372_v48, 16  ;;  %v646_v6 = vshll.u32 %v12374_v60, 16  ;;  %v3970_v7 = vshll.u32 %v12895_v58, 16  ;;  %v12382_v50 = vld [vmem:[%s12819_s29 + $0x70] sm:$0xff]  }
  0x30   : > { %v633_v3 = vsel %vm557_vm1, %v628_v55, %v632_v57  ;;  %v640_v8 = vrot.slane %v638_v59, 1  ;;  %v3967_v9 = vshrl.u32 %v12885_v45, 16  ;;  %v3959_v11 = vsel %vm557_vm1, %v3955_v63, %v3958_v54 }
  0x31   : > { %10604 = vmatmul.mubr.msk.bf16.gmra.mrb[8].mxu1 %vm970_vm0, %v609_v33  ;;  %v636_v12 = vor.u32 %v634_v1, %v632_v57  ;;  %v3977_v13 = vshll.u32 %v12902_v2, 16  ;;  %v3966_v15 = vsel %vm557_vm1, %v3962_v0, %v3965_v4  ;;  %v648_v17 = vrot.slane %v646_v6, 1  ;;  %v12946_v57 = vld [vmem:[%s12819_s29 + $0x78] sm:$0xff]  }
  0x32   : > { %10607 = vmatprep.mubr.msk.bf16.mxu1 %vm970_vm0, %v617_v41  ;;  %v644_v16 = vor.u32 %v642_v5, %v640_v8  ;;  %v3974_v18 = vshrl.u32 %v12895_v58, 16  ;;  %v3972_v19 = vrot.slane %v3970_v7, 1  ;;  %v3969_v21 = vor.u32 %v3967_v9, %v3965_v4  ;;  %v12386_v4 = vld [vmem:[%s12809_s22 + $0x80] sm:$0xff]  }
  0x33   : > { %11020 = vmatmul.mubr.msk.bf16.gmra.mrb[8].mxu0 %vm970_vm0, %v3945_v46  ;;  %v650_v22 = vshrl.u32 %v12374_v60, 16  ;;  %v654_v23 = vshll.u32 %v12376_v10, 16  ;;  %v641_v27 = vsel %vm557_vm1, %v636_v12, %v640_v8  ;;  %v3979_v28 = vrot.slane %v3977_v13, 1  ;;  %v12388_v12 = vld [vmem:[%s12809_s22 + $0x88] sm:$0xff]  }
  0x34   : > { %11023 = vmatprep.mubr.msk.bf16.mxu0 %vm970_vm0, %v3952_v53  ;;  %v658_v29 = vshrl.u32 %v12376_v10, 16  ;;  %v662_v30 = vshll.u32 %v12378_v14, 16  ;;  %v649_v32 = vsel %vm557_vm1, %v644_v16, %v648_v17  ;;  %v3976_v33 = vor.u32 %v3974_v18, %v3972_v19 }
  0x35   : > { %v3981_v34 = vshrl.u32 %v12902_v2, 16  ;;  %v656_v35 = vrot.slane %v654_v23, 1  ;;  %v3984_v37 = vshll.u32 %v12917_v25, 16  ;;  %v3973_v41 = vsel %vm557_vm1, %v3969_v21, %v3972_v19  ;;  %v12964_v21 = vld [vmem:[%s12819_s29 + $0x88] sm:$0xff]  }
  0x36   : > { %v652_v42 = vor.u32 %v650_v22, %v648_v17  ;;  %v3991_v43 = vshll.u32 %v12925_v31, 16  ;;  %v3980_v44 = vsel %vm557_vm1, %v3976_v33, %v3979_v28  ;;  %v664_v47 = vrot.slane %v662_v30, 1  ;;  %v12396_v30 = vld [vmem:[%s15088_s1 + $0xb8] sm:$0xff]   ;;  %v12390_v33 = vld [vmem:[%s12809_s22 + $0x90] sm:$0xff]  }
  0x37   : > { %v660_v46 = vor.u32 %v658_v29, %v656_v35  ;;  %v3988_v48 = vshrl.u32 %v12917_v25, 16  ;;  %v3983_v51 = vor.u32 %v3981_v34, %v3979_v28  ;;  %v3986_v52 = vrot.slane %v3984_v37, 1  ;;  %11113 = vmatprep.subr.bf16.mxu0 %v12396_v30 }
  0x38   : > { %v670_v53 = vshll.u32 %v12380_v39, 16  ;;  %v657_v54 = vsel %vm557_vm1, %v652_v42, %v656_v35  ;;  %v3993_v55 = vrot.slane %v3991_v43, 1  ;;  %v666_v56 = vshrl.u32 %v12378_v14, 16  ;;  %v12958_v14 = vld [vmem:[%s12819_s29 + $0x80] sm:$0xff]   ;;  %v12392_v43 = vld [vmem:[%s12809_s22 + $0x98] sm:$0xff]   ;;  %11114 = vmatpush3.bf16.msra.mxu0 %v12396_v30  ;;  %v12399_v30 = vld [vmem:[%s12809_s22 + $0xb0] sm:$0xff]  }
  0x39   : > { %10608 = vmatmul.mubr.msk.bf16.gmra.mrb[12].mxu1 %vm970_vm0, %v625_v61  ;;  %v665_v59 = vsel %vm557_vm1, %v660_v46, %v664_v47  ;;  %v3990_v60 = vor.u32 %v3988_v48, %v3986_v52  ;;  %v674_v61 = vshrl.u32 %v12380_v39, 16  ;;  %v678_v63 = vshll.u32 %v12384_v49, 16  ;;  %v12982_v48 = vld [vmem:[%s12819_s29 + $0x90] sm:$0xff]  }
  0x3a   : > { %10611 = vmatprep.mubr.msk.bf16.mxu1 %vm970_vm0, %v633_v3  ;;  %v3998_v0 = vshll.u32 %v12382_v50, 16  ;;  %v3987_v1 = vsel %vm557_vm1, %v3983_v51, %v3986_v52  ;;  %v672_v3 = vrot.slane %v670_v53, 1  ;;  %v668_v5 = vor.u32 %v666_v56, %v664_v47  ;;  %v12988_v56 = vld [vmem:[%s12819_s29 + $0x98] sm:$0xff]  }
  0x3b   : > { %11024 = vmatmul.mubr.msk.bf16.gmra.mrb[12].mxu0 %vm970_vm0, %v3959_v11  ;;  %v3995_v6 = vshrl.u32 %v12925_v31, 16  ;;  %v4002_v7 = vshrl.u32 %v12382_v50, 16  ;;  %v4005_v8 = vshll.u32 %v12946_v57, 16  ;;  %v3994_v9 = vsel %vm557_vm1, %v3990_v60, %v3993_v55 }
  0x3c   : > { %11027 = vmatprep.mubr.msk.bf16.mxu0 %vm970_vm0, %v3966_v15  ;;  %v676_v10 = vor.u32 %v674_v61, %v672_v3  ;;  %v680_v11 = vrot.slane %v678_v63, 1  ;;  %v4000_v13 = vrot.slane %v3998_v0, 1  ;;  %v686_v15 = vshll.u32 %v12386_v4, 16  ;;  %v12394_v63 = vld [vmem:[%s12809_s22 + $0xa0] sm:$0xff]  }
  0x3d   : > { %v673_v16 = vsel %vm557_vm1, %v668_v5, %v672_v3  ;;  %v3997_v17 = vor.u32 %v3995_v6, %v3993_v55  ;;  %v682_v19 = vshrl.u32 %v12384_v49, 16  ;;  %v4007_v23 = vrot.slane %v4005_v8, 1 }
  0x3e   : > { %v4004_v18 = vor.u32 %v4002_v7, %v4000_v13  ;;  %v681_v22 = vsel %vm557_vm1, %v676_v10, %v680_v11  ;;  %v690_v26 = vshrl.u32 %v12386_v4, 16  ;;  %v4009_v28 = vshrl.u32 %v12946_v57, 16  ;;  %v12397_v4 = vld [vmem:[%s12809_s22 + $0xa8] sm:$0xff]  }
  0x3f   : > { %v4012_v29 = vshll.u32 %v12958_v14, 16  ;;  %v4001_v34 = vsel %vm557_vm1, %v3997_v17, %v4000_v13  ;;  %v684_v35 = vor.u32 %v682_v19, %v680_v11  ;;  %v4016_v37 = vshrl.u32 %v12958_v14, 16 }
  0x40   : > { %v4019_v39 = vshll.u32 %v12964_v21, 16  ;;  %v4008_v40 = vsel %vm557_vm1, %v4004_v18, %v4007_v23  ;;  %v4011_v46 = vor.u32 %v4009_v28, %v4007_v23  ;;  %v702_v47 = vshll.u32 %v12390_v33, 16  ;;  %v13008_v23 = vld [vmem:[%s12819_s29 + $0xa8] sm:$0xff]  }
  0x41   : > { %10612 = vmatmul.mubr.msk.bf16.gmra.mrb[16].mxu1 %vm970_vm0, %v641_v27  ;;  %v694_v27 = vshll.u32 %v12388_v12, 16  ;;  %v698_v51 = vshrl.u32 %v12388_v12, 16  ;;  %v706_v52 = vshrl.u32 %v12390_v33, 16  ;;  %v710_v55 = vshll.u32 %v12392_v43, 16 }
  0x42   : > { %10615 = vmatprep.mubr.msk.bf16.mxu1 %vm970_vm0, %v649_v32  ;;  %v688_v32 = vrot.slane %v686_v15, 1  ;;  %v4021_v50 = vrot.slane %v4019_v39, 1  ;;  %v4023_v60 = vshrl.u32 %v12964_v21, 16  ;;  %v4026_v61 = vshll.u32 %v12982_v48, 16 }
  0x43   : > { %11028 = vmatmul.mubr.msk.bf16.gmra.mrb[16].mxu0 %vm970_vm0, %v3973_v41  ;;  %v696_v42 = vrot.slane %v694_v27, 1  ;;  %v4030_v3 = vshrl.u32 %v12982_v48, 16  ;;  %v712_v7 = vrot.slane %v710_v55, 1  ;;  %v4033_v8 = vshll.u32 %v12988_v56, 16 }
  0x44   : > { %11031 = vmatprep.mubr.msk.bf16.mxu0 %vm970_vm0, %v3980_v44  ;;  %v692_v41 = vor.u32 %v690_v26, %v688_v32  ;;  %v4014_v44 = vrot.slane %v4012_v29, 1  ;;  %v689_v49 = vsel %vm557_vm1, %v684_v35, %v688_v32  ;;  %v4028_v10 = vrot.slane %v4026_v61, 1  ;;  %v12407_v26 = vld [vmem:[%s15088_s1 + $0x10] sm:$0xff]   ;;  %v13020_v32 = vld [vmem:[%s15088_s1 + $0xc0] sm:$0xff]  }
  0x45   : > { %v718_v11 = vshll.u32 %v12394_v63, 16  ;;  %v4025_v13 = vor.u32 %v4023_v60, %v4021_v50  ;;  %v714_v15 = vshrl.u32 %v12392_v43, 16  ;;  %v4035_v19 = vrot.slane %v4033_v8, 1  ;;  %10695 = vmatprep.subr.bf16.mxu1 %v12407_v26  ;;  %11211 = vmatprep.subr.bf16.mxu0 %v13020_v32 }
  0x46   : > { %v697_v53 = vsel %vm557_vm1, %v692_v41, %v696_v42  ;;  %v4015_v0 = vsel %vm557_vm1, %v4011_v46, %v4014_v44  ;;  %v4032_v18 = vor.u32 %v4030_v3, %v4028_v10  ;;  %v4037_v29 = vshrl.u32 %v12988_v56, 16  ;;  %10696 = vmatpush3.bf16.msra.mxu1 %v12407_v26  ;;  %v13031_v46 = vld [vmem:[%s12819_s29 + $0xb0] sm:$0xff]  }
  0x47   : > { %v720_v28 = vrot.slane %v718_v11, 1  ;;  %v4029_v33 = vsel %vm557_vm1, %v4025_v13, %v4028_v10  ;;  %v4047_v41 = vshll.u32 %v13008_v23, 16  ;;  %v738_v55 = vshrl.u32 %v12399_v30, 16  ;;  %v12405_v10 = vld [vmem:[%s12809_s22 + $0xc8] sm:$0xff]  }
  0x48   : > { %v4036_v39 = vsel %vm557_vm1, %v4032_v18, %v4035_v19  ;;  %v4054_v61 = vshll.u32 %v13031_v46, 16  ;;  %v4051_v3 = vshrl.u32 %v13008_v23, 16  ;;  %v4058_v8 = vshrl.u32 %v13031_v46, 16  ;;  %v13053_v18 = vld [vmem:[%s12819_s29 + $0xc0] sm:$0xff]  }
  0x49   : > { %10616 = vmatmul.mubr.msk.bf16.gmra.mrb[20].mxu1 %vm970_vm0, %v657_v54  ;;  %v4018_v54 = vor.u32 %v4016_v37, %v4014_v44  ;;  %v734_v44 = vshll.u32 %v12399_v30, 16  ;;  %v12406_v30 = vld [vmem:[%s12809_s22 + $0xd0] sm:$0xff]  }
  0x4a   : > { %10619 = vmatprep.mubr.msk.bf16.mxu1 %vm970_vm0, %v665_v59  ;;  %v704_v59 = vrot.slane %v702_v47, 1  ;;  %v4056_v11 = vrot.slane %v4054_v61, 1 }
  0x4b   : > { %11032 = vmatmul.mubr.msk.bf16.gmra.mrb[20].mxu0 %vm970_vm0, %v3987_v1  ;;  %v700_v1 = vor.u32 %v698_v51, %v696_v42  ;;  %v4022_v5 = vsel %vm557_vm1, %v4018_v54, %v4021_v50  ;;  %v12401_v42 = vld [vmem:[%s12809_s22 + $0xb8] sm:$0xff]   ;;  %v730_v51 = vshrl.u32 %v12397_v4, 16  ;;  %v4049_v54 = vrot.slane %v4047_v41, 1 }
  0x4c   : > { %11035 = vmatprep.mubr.msk.bf16.mxu0 %vm970_vm0, %v3994_v9  ;;  %v708_v6 = vor.u32 %v706_v52, %v704_v59  ;;  %v13001_v9 = vld [vmem:[%s12819_s29 + $0xa0] sm:$0xff]   ;;  %v13036_v52 = vld [vmem:[%s12819_s29 + $0xb8] sm:$0xff]   ;;  %v736_v60 = vrot.slane %v734_v44, 1  ;;  %v4931_v44 = vrot.slane %v12825_v20, 1 }
  0x4d   : > { %v705_v12 = vsel %vm557_vm1, %v700_v1, %v704_v59  ;;  %v4040_v27 = vshll.u32 %v13001_v9, 16  ;;  %v4044_v37 = vshrl.u32 %v13001_v9, 16  ;;  %v742_v59 = vshll.u32 %v12401_v42, 16  ;;  %v12409_v41 = vld [vmem:[%s12809_s22 + $0xd8] sm:$0xff]  }
  0x4e   : > { %v713_v17 = vsel %vm557_vm1, %v708_v6, %v712_v7  ;;  %v740_v6 = vor.u32 %v738_v55, %v736_v60  ;;  %v770_v55 = vshrl.u32 %v12406_v30, 16 }
  0x4f   : > { %v4042_v43 = vrot.slane %v4040_v27, 1  ;;  %v758_v27 = vshll.u32 %v12405_v10, 16 }
  0x51   : > { %10620 = vmatmul.mubr.msk.bf16.gmra.mrb[24].mxu1 %vm970_vm0, %v673_v16  ;;  %v726_v16 = vshll.u32 %v12397_v4, 16  ;;  %v4046_v50 = vor.u32 %v4044_v37, %v4042_v43  ;;  %v4061_v4 = vshll.u32 %v13036_v52, 16 }
  0x52   : > { %10623 = vmatprep.mubr.msk.bf16.mxu1 %vm970_vm0, %v681_v22  ;;  %v722_v22 = vshrl.u32 %v12394_v63, 16  ;;  %v12403_v63 = vld [vmem:[%s12809_s22 + $0xc0] sm:$0xff]  }
  0x53   : > { %11036 = vmatmul.mubr.msk.bf16.gmra.mrb[24].mxu0 %vm970_vm0, %v4001_v34  ;;  %v716_v34 = vor.u32 %v714_v15, %v712_v7  ;;  %v728_v35 = vrot.slane %v726_v16, 1  ;;  %v744_v7 = vrot.slane %v742_v59, 1  ;;  %v750_v13 = vshll.u32 %v12403_v63, 16 }
  0x54   : > { %11039 = vmatprep.mubr.msk.bf16.mxu0 %vm970_vm0, %v4008_v40  ;;  %v724_v40 = vor.u32 %v722_v22, %v720_v28  ;;  %v4053_v16 = vor.u32 %v4051_v3, %v4049_v54  ;;  %v4060_v22 = vor.u32 %v4058_v8, %v4056_v11  ;;  %v754_v26 = vshrl.u32 %v12403_v63, 16  ;;  %v12411_v3 = vld [vmem:[%s12809_s22 + $0xe8] sm:$0xff]  }
  0x55   : > { %v721_v47 = vsel %vm557_vm1, %v716_v34, %v720_v28  ;;  %v732_v1 = vor.u32 %v730_v51, %v728_v35  ;;  %v752_v28 = vrot.slane %v750_v13, 1  ;;  %v4932_v51 = vrot.slane %v12828_v24, 1 }
  0x56   : > { %v774_v59 = vshll.u32 %v12409_v41, 16  ;;  %v778_v8 = vshrl.u32 %v12409_v41, 16  ;;  %v790_v13 = vshll.u32 %v12411_v3, 16 }
  0x57   : > { %v737_v15 = vsel %vm557_vm1, %v732_v1, %v736_v60  ;;  %v12410_v60 = vld [vmem:[%s12809_s22 + $0xe0] sm:$0xff]   ;;  %v4933_v24 = vsel %vm2078_vm2, %v4931_v44, %v4932_v51 }
  0x58   : > { %v776_v1 = vrot.slane %v774_v59, 1  ;;  %v12414_v44 = vld [vmem:[%s12809_s22 + $0x100] sm:$0xff]  }
  0x59   : > { %10624 = vmatmul.mubr.msk.bf16.gmra.mrb[28].mxu1 %vm970_vm0, %v689_v49  ;;  %v4039_v49 = vor.u32 %v4037_v29, %v4035_v19  ;;  %v745_v19 = vsel %vm557_vm1, %v740_v6, %v744_v7  ;;  %v4065_v29 = vshrl.u32 %v13036_v52, 16  ;;  %v12524_v6 = vld [vmem:[%s12819_s29 + $0x10] sm:$0xff]  }
  0x5a   : > { %10627 = vmatprep.mubr.msk.bf16.mxu1 %vm970_vm0, %v697_v53  ;;  %v729_v53 = vsel %vm557_vm1, %v724_v40, %v728_v35  ;;  %v4068_v35 = vshll.u32 %v13053_v18, 16  ;;  %v760_v40 = vrot.slane %v758_v27, 1 }
  0x5b   : > { %11040 = vmatmul.mubr.msk.bf16.gmra.mrb[28].mxu0 %vm970_vm0, %v4015_v0  ;;  %v4043_v0 = vsel %vm557_vm1, %v4039_v49, %v4042_v43 }
  0x5c   : > { %11043 = vmatprep.mubr.msk.bf16.mxu0 %vm970_vm0, %v4022_v5  ;;  %v4050_v5 = vsel %vm557_vm1, %v4046_v50, %v4049_v54  ;;  %v13071_v50 = vrot.slane %v4068_v35, 1 }
  0x5e   : > { %15106 = vst [vmem:[#allocation2_spill] sm:$0xff] %v13071_v50 }
  0x61   : > { %10628 = vmatmul.mubr.msk.bf16.gmra.mrb[32].mxu1 %vm970_vm0, %v705_v12  ;;  %v746_v12 = vshrl.u32 %v12401_v42, 16  ;;  %v12421_v42 = vld [vmem:[%s15088_s1 + $0x18] sm:$0xff]  }
  0x62   : > { %10631 = vmatprep.mubr.msk.bf16.mxu1 %vm970_vm0, %v713_v17  ;;  %v4063_v17 = vrot.slane %v4061_v4, 1  ;;  %10697 = vmatprep.subr.bf16.mxu1 %v12421_v42  ;;  %v782_v4 = vshll.u32 %v12410_v60, 16 }
  0x63   : > { %11044 = vmatmul.mubr.msk.bf16.gmra.mrb[32].mxu0 %vm970_vm0, %v4029_v33  ;;  %v4057_v33 = vsel %vm557_vm1, %v4053_v16, %v4056_v11  ;;  %v748_v34 = vor.u32 %v746_v12, %v744_v7  ;;  %10698 = vmatpush3.bf16.msra.mxu1 %v12421_v42  ;;  %v4934_v7 = vrot.slane %v12524_v6, 1  ;;  %v4936_v11 = vrot.slane %v12840_v38, 1  ;;  %v12412_v16 = vld [vmem:[%s12809_s22 + $0xf0] sm:$0xff]  }
  0x64   : > { %11047 = vmatprep.mubr.msk.bf16.mxu0 %vm970_vm0, %v4036_v39  ;;  %v4064_v37 = vsel %vm557_vm1, %v4060_v22, %v4063_v17  ;;  %v756_v39 = vor.u32 %v754_v26, %v752_v28  ;;  %v4067_v43 = vor.u32 %v4065_v29, %v4063_v17  ;;  %v786_v12 = vshrl.u32 %v12410_v60, 16  ;;  %v12413_v22 = vld [vmem:[%s12809_s22 + $0xf8] sm:$0xff]   ;;  %v13096_v26 = vld [vmem:[%s15088_s1 + $0x40] sm:$0xff]   ;;  %v12422_v29 = vld [vmem:[%s15088_s1 + $0xc8] sm:$0xff]  }
  0x65   : > { %v753_v49 = vsel %vm557_vm1, %v748_v34, %v752_v28  ;;  %v4935_v17 = vsel %vm2078_vm2, %v4932_v51, %v4934_v7  ;;  %v4937_v38 = vsel %vm2078_vm2, %v4934_v7, %v4936_v11  ;;  %v792_v28 = vrot.slane %v790_v13, 1  ;;  %10795 = vmatprep.subr.bf16.mxu1 %v13096_v26  ;;  %v12525_v34 = vld [vmem:[%s12819_s29 + $0x20] sm:$0xff]  }
  0x66   : > { %v761_v54 = vsel %vm557_vm1, %v756_v39, %v760_v40  ;;  %v4071_v61 = vsel %vm557_vm1, %v4067_v43, %v13071_v50  ;;  %v4938_v35 = vrot.slane %v12525_v34, 1  ;;  %v802_v41 = vshrl.u32 %v12412_v16, 16 }
  0x67   : > { %v806_v42 = vshll.u32 %v12413_v22, 16 }
  0x69   : > { %10632 = vmatmul.mubr.msk.bf16.gmra.mrb[36].mxu1 %vm970_vm0, %v721_v47  ;;  %v766_v47 = vshll.u32 %v12406_v30, 16  ;;  %v798_v30 = vshll.u32 %v12412_v16, 16 }
  0x6a   : > { %10635 = vmatprep.mubr.msk.bf16.mxu1 %vm970_vm0, %v729_v53  ;;  %v762_v53 = vshrl.u32 %v12405_v10, 16 }
  0x6b   : > { %11048 = vmatmul.mubr.msk.bf16.gmra.mrb[36].mxu0 %vm970_vm0, %v4043_v0  ;;  %v768_v20 = vrot.slane %v766_v47, 1  ;;  %v800_v43 = vrot.slane %v798_v30, 1  ;;  %v4939_v47 = vsel %vm2078_vm2, %v4936_v11, %v4938_v35 }
  0x6c   : > { %11051 = vmatprep.mubr.msk.bf16.mxu0 %vm970_vm0, %v4050_v5  ;;  %v764_v63 = vor.u32 %v762_v53, %v760_v40  ;;  %v4940_v40 = vrot.slane %v12856_v62, 1  ;;  %v808_v53 = vrot.slane %v806_v42, 1 }
  0x6d   : > { %v772_v0 = vor.u32 %v770_v55, %v768_v20  ;;  %v804_v51 = vor.u32 %v802_v41, %v800_v43  ;;  %v12526_v55 = vld [vmem:[%s12819_s29 + $0x30] sm:$0xff]  }
  0x6e   : > { %v769_v5 = vsel %vm557_vm1, %v764_v63, %v768_v20  ;;  %v4941_v62 = vsel %vm2078_vm2, %v4938_v35, %v4940_v40  ;;  %v4942_v59 = vrot.slane %v12526_v55, 1  ;;  %v814_v20 = vshll.u32 %v12414_v44, 16 }
  0x6f   : > { %v777_v10 = vsel %vm557_vm1, %v772_v0, %v776_v1  ;;  %v809_v0 = vsel %vm557_vm1, %v804_v51, %v808_v53  ;;  %v4956_v55 = vrot.slane %v12925_v31, 1 }
  0x70   : > { %v4943_v6 = vsel %vm2078_vm2, %v4940_v40, %v4942_v59 }
  0x71   : > { %10636 = vmatmul.mubr.msk.bf16.gmra.mrb[40].mxu1 %vm970_vm0, %v737_v15  ;;  %v784_v15 = vrot.slane %v782_v4, 1  ;;  %v13126_v4 = vld [vmem:[%s12809_s22 + $0x110] sm:$0xff]  }
  0x72   : > { %10639 = vmatprep.mubr.msk.bf16.mxu1 %vm970_vm0, %v745_v19  ;;  %v780_v19 = vor.u32 %v778_v8, %v776_v1  ;;  %v818_v1 = vshrl.u32 %v12414_v44, 16  ;;  %v4946_v8 = vrot.slane %v12876_v36, 1  ;;  %v12450_v36 = vld [vmem:[%s15088_s1 + $0xd8] sm:$0xff]   ;;  %v13168_v44 = vld [vmem:[%s12809_s22 + $0x130] sm:$0xff]  }
  0x73   : > { %11052 = vmatmul.mubr.msk.bf16.gmra.mrb[40].mxu0 %vm970_vm0, %v4057_v33  ;;  %v788_v27 = vor.u32 %v786_v12, %v784_v15 }
  0x74   : > { %11055 = vmatprep.mubr.msk.bf16.mxu0 %vm970_vm0, %v4064_v37  ;;  %v785_v33 = vsel %vm557_vm1, %v780_v19, %v784_v15  ;;  %v794_v37 = vshrl.u32 %v12411_v3, 16  ;;  %v4948_v15 = vrot.slane %v12885_v45, 1  ;;  %v13139_v19 = vld [vmem:[%s12809_s22 + $0x120] sm:$0xff]  }
  0x75   : > { %v793_v39 = vsel %vm557_vm1, %v788_v27, %v792_v28  ;;  %v834_v27 = vshrl.u32 %v13126_v4, 16 }
  0x79   : > { %10640 = vmatmul.mubr.msk.bf16.gmra.mrb[44].mxu1 %vm970_vm0, %v753_v49  ;;  %v796_v49 = vor.u32 %v794_v37, %v792_v28  ;;  %v846_v37 = vshll.u32 %v13139_v19, 16 }
  0x7a   : > { %10643 = vmatprep.mubr.msk.bf16.mxu1 %vm970_vm0, %v761_v54  ;;  %v12415_v54 = vld [vmem:[%s12809_s22 + $0x108] sm:$0xff]  }
  0x7b   : > { %11056 = vmatmul.mubr.msk.bf16.gmra.mrb[44].mxu0 %vm970_vm0, %v4071_v61  ;;  %v801_v60 = vsel %vm557_vm1, %v796_v49, %v800_v43  ;;  %v12527_v61 = vld [vmem:[%s12819_s29 + $0x38] sm:$0xff]   ;;  %v822_v3 = vshll.u32 %v12415_v54, 16  ;;  %v826_v16 = vshrl.u32 %v12415_v54, 16  ;;  %v850_v43 = vshrl.u32 %v13139_v19, 16 }
  0x7c   : > { %11115 = vmatprep.mubr.msk.bf16.mxu0 %vm970_vm0, %v4933_v24  ;;  %v4944_v63 = vrot.slane %v12527_v61, 1  ;;  %v810_v24 = vshrl.u32 %v12413_v22, 16  ;;  %v4950_v22 = vrot.slane %v12895_v58, 1  ;;  %v4952_v58 = vrot.slane %v12902_v2, 1 }
  0x7d   : > { %v824_v13 = vrot.slane %v822_v3, 1  ;;  %v4954_v49 = vrot.slane %v12917_v25, 1 }
  0x7e   : > { %v812_v7 = vor.u32 %v810_v24, %v808_v53  ;;  %v4945_v11 = vsel %vm2078_vm2, %v4942_v59, %v4944_v63  ;;  %v4951_v51 = vsel %vm2078_vm2, %v4948_v15, %v4950_v22  ;;  %v4953_v59 = vsel %vm2078_vm2, %v4950_v22, %v4952_v58 }
  0x7f   : > { %v828_v34 = vor.u32 %v826_v16, %v824_v13  ;;  %v866_v24 = vshrl.u32 %v13168_v44, 16  ;;  %v4955_v3 = vsel %vm2078_vm2, %v4952_v58, %v4954_v49 }
  0x81   : > { %10644 = vmatmul.mubr.msk.bf16.gmra.mrb[48].mxu1 %vm970_vm0, %v769_v5  ;;  %v816_v5 = vrot.slane %v814_v20, 1 }
  0x82   : > { %10647 = vmatprep.mubr.msk.bf16.mxu1 %vm970_vm0, %v777_v10  ;;  %v13133_v10 = vld [vmem:[%s12809_s22 + $0x118] sm:$0xff]  }
  0x83   : > { %11116 = vmatmul.mubr.msk.bf16.vlgmr.msra.gmra.mrb[0].mxu0 %vm970_vm0, %v4935_v17  ;;  %v820_v12 = vor.u32 %v818_v1, %v816_v5  ;;  %v830_v17 = vshll.u32 %v13126_v4, 16  ;;  %v838_v45 = vshll.u32 %v13133_v10, 16  ;;  %v842_v2 = vshrl.u32 %v13133_v10, 16  ;;  %v13189_v1 = vld [vmem:[%s12809_s22 + $0x140] sm:$0xff]  }
  0x84   : > { %11212 = vmatpush3.bf16.msra.mxu0 %v13020_v32  ;;  %11119 = vmatprep.mubr.msk.bf16.mxu0 %vm970_vm0, %v4937_v38  ;;  %v12436_v32 = vld [vmem:[%s15088_s1 + $0xd0] sm:$0xff]   ;;  %v817_v38 = vsel %vm557_vm1, %v812_v7, %v816_v5 }
  0x85   : > { %11213 = vmatprep.subr.bf16.mxu0 %v12422_v29  ;;  %v825_v28 = vsel %vm557_vm1, %v820_v12, %v824_v13  ;;  %v832_v30 = vrot.slane %v830_v17, 1  ;;  %v840_v35 = vrot.slane %v838_v45, 1  ;;  %v878_v12 = vshll.u32 %v13189_v1, 16 }
  0x87   : > { %v836_v40 = vor.u32 %v834_v27, %v832_v30  ;;  %v833_v42 = vsel %vm557_vm1, %v828_v34, %v832_v30  ;;  %v844_v53 = vor.u32 %v842_v2, %v840_v35  ;;  %v880_v45 = vrot.slane %v878_v12, 1 }
  0x88   : > { %11214 = vmatpush3.bf16.msra.mxu0 %v12422_v29  ;;  %v13152_v29 = vld [vmem:[%s12809_s22 + $0x128] sm:$0xff]  }
  0x89   : > { %10648 = vmatmul.mubr.msk.bf16.gmra.mrb[52].mxu1 %vm970_vm0, %v785_v33  ;;  %11215 = vmatprep.subr.bf16.mxu0 %v12436_v32  ;;  %v4947_v33 = vsel %vm2078_vm2, %v4944_v63, %v4946_v8  ;;  %v854_v41 = vshll.u32 %v13152_v29, 16  ;;  %v858_v25 = vshrl.u32 %v13152_v29, 16 }
  0x8a   : > { %10651 = vmatprep.mubr.msk.bf16.mxu1 %vm970_vm0, %v793_v39  ;;  %v4949_v39 = vsel %vm2078_vm2, %v4946_v8, %v4948_v15  ;;  %v12528_v15 = vld [vmem:[%s12819_s29 + $0x70] sm:$0xff]  }
  0x8b   : > { %11120 = vmatmul.mubr.msk.bf16.gmra.mrb[4].mxu0 %vm970_vm0, %v4939_v47  ;;  %v848_v47 = vrot.slane %v846_v37, 1  ;;  %v856_v54 = vrot.slane %v854_v41, 1  ;;  %v4958_v16 = vrot.slane %v12528_v15, 1 }
  0x8c   : > { %11123 = vmatprep.mubr.msk.bf16.mxu0 %vm970_vm0, %v4941_v62  ;;  %11216 = vmatpush3.bf16.msra.mxu0 %v12436_v32  ;;  %v841_v32 = vsel %vm557_vm1, %v836_v40, %v840_v35  ;;  %v13173_v62 = vld [vmem:[%s12809_s22 + $0x138] sm:$0xff]   ;;  %v4962_v40 = vrot.slane %v12958_v14, 1 }
  0x8d   : > { %11217 = vmatprep.subr.bf16.mxu0 %v12450_v36  ;;  %v852_v20 = vor.u32 %v850_v43, %v848_v47  ;;  %v849_v61 = vsel %vm557_vm1, %v844_v53, %v848_v47  ;;  %v870_v31 = vshll.u32 %v13173_v62, 16  ;;  %v860_v5 = vor.u32 %v858_v25, %v856_v54  ;;  %v13234_v53 = vld [vmem:[%s12809_s22 + $0x168] sm:$0xff]  }
  0x8e   : > { %v874_v17 = vshrl.u32 %v13173_v62, 16  ;;  %v4959_v30 = vsel %vm2078_vm2, %v4956_v55, %v4958_v16  ;;  %v4966_v25 = vrot.slane %v12982_v48, 1  ;;  %v922_v15 = vshrl.u32 %v13234_v53, 16 }
  0x8f   : > { %v857_v63 = vsel %vm557_vm1, %v852_v20, %v856_v54  ;;  %v872_v8 = vrot.slane %v870_v31, 1  ;;  %v4968_v31 = vrot.slane %v12988_v56, 1 }
  0x90   : > { %11218 = vmatpush3.bf16.msra.mxu0 %v12450_v36  ;;  %v4960_v36 = vrot.slane %v12946_v57, 1  ;;  %v13215_v57 = vld [vmem:[%s12809_s22 + $0x158] sm:$0xff]  }
  0x91   : > { %10652 = vmatmul.mubr.msk.bf16.gmra.mrb[56].mxu1 %vm970_vm0, %v801_v60  ;;  %v862_v60 = vshll.u32 %v13168_v44, 16  ;;  %v876_v58 = vor.u32 %v874_v17, %v872_v8  ;;  %v902_v43 = vshll.u32 %v13215_v57, 16  ;;  %v13271_v17 = vld [vmem:[%s15088_s1 + $0xe0] sm:$0xff]  }
  0x92   : > { %10655 = vmatprep.mubr.msk.bf16.mxu1 %vm970_vm0, %v809_v0  ;;  %11315 = vmatprep.subr.bf16.mxu0 %v13271_v17 }
  0x93   : > { %11124 = vmatmul.mubr.msk.bf16.gmra.mrb[8].mxu0 %vm970_vm0, %v4943_v6  ;;  %v864_v0 = vrot.slane %v862_v60, 1  ;;  %v4957_v6 = vsel %vm2078_vm2, %v4954_v49, %v4956_v55  ;;  %v13229_v49 = vld [vmem:[%s12809_s22 + $0x160] sm:$0xff]   ;;  %v904_v55 = vrot.slane %v902_v43, 1  ;;  %v906_v60 = vshrl.u32 %v13215_v57, 16 }
  0x94   : > { %11127 = vmatprep.mubr.msk.bf16.mxu0 %vm970_vm0, %v4945_v11  ;;  %v13195_v11 = vld [vmem:[%s12809_s22 + $0x148] sm:$0xff]  }
  0x95   : > { %v868_v7 = vor.u32 %v866_v24, %v864_v0  ;;  %v865_v13 = vsel %vm557_vm1, %v860_v5, %v864_v0  ;;  %v886_v27 = vshll.u32 %v13195_v11, 16  ;;  %v890_v2 = vshrl.u32 %v13195_v11, 16  ;;  %v13253_v5 = vld [vmem:[%s12809_s22 + $0x178] sm:$0xff]  }
  0x96   : > { %v914_v0 = vshrl.u32 %v13229_v49, 16  ;;  %v908_v56 = vor.u32 %v906_v60, %v904_v55  ;;  %v12448_v60 = vld [vmem:[%s15088_s1 + $0x48] sm:$0xff]  }
  0x97   : > { %v873_v22 = vsel %vm557_vm1, %v868_v7, %v872_v8  ;;  %v888_v35 = vrot.slane %v886_v27, 1 }
  0x99   : > { %10656 = vmatmul.mubr.msk.bf16.gmra.mrb[60].mxu1 %vm970_vm0, %v817_v38  ;;  %v882_v38 = vshrl.u32 %v13189_v1, 16  ;;  %v892_v14 = vor.u32 %v890_v2, %v888_v35 }
  0x9a   : > { %10659 = vmatprep.mubr.msk.bf16.mxu1 %vm970_vm0, %v825_v28  ;;  %v13209_v28 = vld [vmem:[%s12809_s22 + $0x150] sm:$0xff]  }
  0x9b   : > { %11128 = vmatmul.mubr.msk.bf16.gmra.mrb[12].mxu0 %vm970_vm0, %v4947_v33  ;;  %v4961_v33 = vsel %vm2078_vm2, %v4958_v16, %v4960_v36  ;;  %v884_v34 = vor.u32 %v882_v38, %v880_v45  ;;  %v894_v37 = vshll.u32 %v13209_v28, 16  ;;  %v4974_v16 = vrot.slane %v13031_v46, 1 }
  0x9c   : > { %11131 = vmatprep.mubr.msk.bf16.mxu0 %vm970_vm0, %v4949_v39  ;;  %v881_v39 = vsel %vm557_vm1, %v876_v58, %v880_v45  ;;  %v12432_v45 = vld [vmem:[%s12809_s22 + $0x180] ss:$0 sps:$4 sm:$0xff]  }
  0x9d   : > { %v889_v41 = vsel %vm557_vm1, %v884_v34, %v888_v35  ;;  %v896_v47 = vrot.slane %v894_v37, 1  ;;  %v938_v37 = vshrl.u32 %v13253_v5, 16 }
  0x9f   : > { %v897_v20 = vsel %vm557_vm1, %v892_v14, %v896_v47 }
  0xa1   : > { %10660 = vmatmul.mubr.msk.bf16.gmra.mrb[64].mxu1 %vm970_vm0, %v833_v42  ;;  %v4964_v42 = vrot.slane %v12964_v21, 1 }
  0xa2   : > { %10663 = vmatprep.mubr.msk.bf16.mxu1 %vm970_vm0, %v841_v32  ;;  %v898_v32 = vshrl.u32 %v13209_v28, 16 }
  0xa3   : > { %11132 = vmatmul.mubr.msk.bf16.gmra.mrb[16].mxu0 %vm970_vm0, %v4951_v51  ;;  %v4963_v51 = vsel %vm2078_vm2, %v4960_v36, %v4962_v40  ;;  %v4965_v54 = vsel %vm2078_vm2, %v4962_v40, %v4964_v42  ;;  %v4967_v7 = vsel %vm2078_vm2, %v4964_v42, %v4966_v25 }
  0xa4   : > { %11135 = vmatprep.mubr.msk.bf16.mxu0 %vm970_vm0, %v4953_v59  ;;  %v900_v21 = vor.u32 %v898_v32, %v896_v47  ;;  %v910_v59 = vshll.u32 %v13229_v49, 16  ;;  %v12435_v47 = vld [vmem:[%s12819_s29 + $0xd0] sm:$0xff]  }
  0xa6   : > { %v905_v24 = vsel %vm557_vm1, %v900_v21, %v904_v55  ;;  %v912_v48 = vrot.slane %v910_v59, 1  ;;  %v4982_v21 = vrot.slane %v12435_v47, 1  ;;  %v12437_v55 = vld [vmem:[%s12819_s29 + $0xd8] sm:$0xff]   ;;  %v12446_v47 = vld [vmem:[%s12819_s29 + $0x120] sm:$0xff]  }
  0xa9   : > { %10664 = vmatmul.mubr.msk.bf16.gmra.mrb[68].mxu1 %vm970_vm0, %v849_v61  ;;  %v918_v61 = vshll.u32 %v13234_v53, 16 }
  0xaa   : > { %10667 = vmatprep.mubr.msk.bf16.mxu1 %vm970_vm0, %v857_v63  ;;  %v13246_v63 = vld [vmem:[%s12809_s22 + $0x170] sm:$0xff]  }
  0xab   : > { %11136 = vmatmul.mubr.msk.bf16.gmra.mrb[20].mxu0 %vm970_vm0, %v4955_v3  ;;  %v4970_v3 = vrot.slane %v13001_v9, 1  ;;  %v920_v8 = vrot.slane %v918_v61, 1  ;;  %v926_v12 = vshll.u32 %v13246_v63, 16  ;;  %v4969_v9 = vsel %vm2078_vm2, %v4966_v25, %v4968_v31  ;;  %v12438_v61 = vld [vmem:[%s12819_s29 + $0xe0] sm:$0xff]  }
  0xac   : > { %11139 = vmatprep.mubr.msk.bf16.mxu0 %vm970_vm0, %v4957_v6  ;;  %v4972_v6 = vrot.slane %v13008_v23, 1  ;;  %v934_v23 = vshll.u32 %v13253_v5, 16  ;;  %v930_v38 = vshrl.u32 %v13246_v63, 16  ;;  %v4984_v25 = vrot.slane %v12437_v55, 1  ;;  %v13401_v55 = vld [vmem:[%s12809_s22 + $0x58] sm:$0xff]  }
  0xad   : > { %v928_v36 = vrot.slane %v926_v12, 1  ;;  %v4971_v58 = vsel %vm2078_vm2, %v4968_v31, %v4970_v3  ;;  %v12439_v31 = vld [vmem:[%s12819_s29 + $0xe8] sm:$0xff]   ;;  %v13340_v12 = vld [vmem:[%s12809_s22 + $0x20] sm:$0xff]  }
  0xae   : > { %v936_v46 = vrot.slane %v934_v23, 1  ;;  %v4973_v34 = vsel %vm2078_vm2, %v4970_v3, %v4972_v6  ;;  %v4975_v42 = vsel %vm2078_vm2, %v4972_v6, %v4974_v16  ;;  %v4985_v6 = vsel %vm2078_vm2, %v4982_v21, %v4984_v25 }
  0xaf   : > { %v932_v35 = vor.u32 %v930_v38, %v928_v36 }
  0xb0   : > { %v940_v32 = vor.u32 %v938_v37, %v936_v46  ;;  %v13375_v37 = vld [vmem:[%s12809_s22 + $0x40] sm:$0xff]  }
  0xb1   : > { %10668 = vmatmul.mubr.msk.bf16.gmra.mrb[72].mxu1 %vm970_vm0, %v865_v13  ;;  %v916_v13 = vor.u32 %v914_v0, %v912_v48  ;;  %v12462_v0 = vld [vmem:[%s15088_s1 + $0x50] sm:$0xff]  }
  0xb2   : > { %10671 = vmatprep.mubr.msk.bf16.mxu1 %vm970_vm0, %v873_v22  ;;  %v913_v22 = vsel %vm557_vm1, %v908_v56, %v912_v48  ;;  %v13326_v48 = vld [vmem:[%s12809_s22 + $0x10] sm:$0xff]   ;;  %v4988_v56 = vrot.slane %v12439_v31, 1 }
  0xb3   : > { %11140 = vmatmul.mubr.msk.bf16.gmra.mrb[24].mxu0 %vm970_vm0, %v4959_v30  ;;  %v921_v27 = vsel %vm557_vm1, %v916_v13, %v920_v8  ;;  %v4976_v30 = vrot.slane %v13036_v52, 1  ;;  %v937_v52 = vsel %vm557_vm1, %v932_v35, %v936_v46 }
  0xb4   : > { %11143 = vmatprep.mubr.msk.bf16.mxu0 %vm970_vm0, %v4961_v33  ;;  %v924_v33 = vor.u32 %v922_v15, %v920_v8  ;;  %v12441_v15 = vld [vmem:[%s12819_s29 + $0xf8] sm:$0xff]  }
  0xb5   : > { %v4977_v43 = vsel %vm2078_vm2, %v4974_v16, %v4976_v30  ;;  %v4992_v23 = vrot.slane %v12441_v15, 1 }
  0xb6   : > { %v929_v40 = vsel %vm557_vm1, %v924_v33, %v928_v36  ;;  %v12476_v36 = vld [vmem:[%s15088_s1 + $0x58] sm:$0xff]  }
  0xb9   : > { %10672 = vmatmul.mubr.msk.bf16.gmra.mrb[76].mxu1 %vm970_vm0, %v881_v39  ;;  %v942_v39 = vshll.u32 %v12432_v45, 16  ;;  %v12442_v45 = vld [vmem:[%s12819_s29 + $0x100] sm:$0xff]  }
  0xba   : > { %10675 = vmatprep.mubr.msk.bf16.mxu1 %vm970_vm0, %v889_v41  ;;  %v12433_v41 = vld [vmem:[%s12819_s29 + $0xc8] sm:$0xff]  }
  0xbb   : > { %11144 = vmatmul.mubr.msk.bf16.gmra.mrb[28].mxu0 %vm970_vm0, %v4963_v51  ;;  %v944_v2 = vrot.slane %v942_v39, 1  ;;  %v4978_v51 = vrot.slane %v13053_v18, 1  ;;  %v4980_v14 = vrot.slane %v12433_v41, 1  ;;  %v12444_v39 = vld [vmem:[%s12819_s29 + $0x110] sm:$0xff]  }
  0xbc   : > { %11147 = vmatprep.mubr.msk.bf16.mxu0 %vm970_vm0, %v4965_v54 }
  0xbd   : > { %v945_v54 = vsel %vm557_vm1, %v940_v32, %v944_v2  ;;  %v4979_v59 = vsel %vm2078_vm2, %v4976_v30, %v4978_v51  ;;  %v4981_v18 = vsel %vm2078_vm2, %v4978_v51, %v4980_v14  ;;  %v4983_v3 = vsel %vm2078_vm2, %v4980_v14, %v4982_v21  ;;  %v12443_v30 = vld [vmem:[%s12819_s29 + $0x108] sm:$0xff]  }
  0xbe   : > { %v4996_v33 = vrot.slane %v12443_v30, 1  ;;  %v4998_v2 = vrot.slane %v12444_v39, 1  ;;  %v12447_v14 = vld [vmem:[%s12819_s29 + $0x128] sm:$0xff]  }
  0xbf   : > { %v5004_v21 = vrot.slane %v12447_v14, 1 }
  0xc0   : > { %v4999_v32 = vsel %vm2078_vm2, %v4996_v33, %v4998_v2 }
  0xc1   : > { %10676 = vmatmul.mubr.msk.bf16.gmra.mrb[80].mxu1 %vm970_vm0, %v897_v20  ;;  %v13303_v20 = vld [vmem:[%s12809_s22] sm:$0xff]  }
  0xc2   : > { %10679 = vmatprep.mubr.msk.bf16.mxu1 %vm970_vm0, %v905_v24  ;;  %v13315_v24 = vld [vmem:[%s12809_s22 + $0x8] sm:$0xff]  }
  0xc3   : > { %11148 = vmatmul.mubr.msk.bf16.gmra.mrb[32].mxu0 %vm970_vm0, %v4967_v7  ;;  %v4986_v7 = vrot.slane %v12438_v61, 1  ;;  %v12451_v61 = vld [vmem:[%s12819_s29 + $0x138] sm:$0xff]   ;;  %v2080_v50 = vrot.slane %v13315_v24, 1 }
  0xc4   : > { %11151 = vmatprep.mubr.msk.bf16.mxu0 %vm970_vm0, %v4969_v9  ;;  %v12440_v9 = vld [vmem:[%s12819_s29 + $0xf0] sm:$0xff]  }
  0xc5   : > { %v4987_v8 = vsel %vm2078_vm2, %v4984_v25, %v4986_v7  ;;  %v4989_v13 = vsel %vm2078_vm2, %v4986_v7, %v4988_v56  ;;  %v4990_v16 = vrot.slane %v12440_v9, 1  ;;  %v12449_v25 = vld [vmem:[%s12819_s29 + $0x130] sm:$0xff]   ;;  %v12453_v9 = vld [vmem:[%s12819_s29 + $0x148] sm:$0xff]  }
  0xc6   : > { %v5006_v31 = vrot.slane %v12449_v25, 1  ;;  %v13423_v7 = vld [vmem:[%s12809_s22 + $0x70] sm:$0xff]   ;;  %v5012_v15 = vrot.slane %v12453_v9, 1  ;;  %v12459_v25 = vld [vmem:[%s12819_s29 + $0x178] sm:$0xff]  }
  0xc7   : > { %v4991_v38 = vsel %vm2078_vm2, %v4988_v56, %v4990_v16  ;;  %v4993_v46 = vsel %vm2078_vm2, %v4990_v16, %v4992_v23  ;;  %v12452_v56 = vld [vmem:[%s12819_s29 + $0x140] sm:$0xff]   ;;  %v13433_v16 = vld [vmem:[%s12809_s22 + $0x78] sm:$0xff]  }
  0xc9   : > { %10680 = vmatmul.mubr.msk.bf16.gmra.mrb[84].mxu1 %vm970_vm0, %v913_v22  ;;  %v13350_v22 = vld [vmem:[%s12809_s22 + $0x28] sm:$0xff]  }
  0xca   : > { %10683 = vmatprep.mubr.msk.bf16.mxu1 %vm970_vm0, %v921_v27  ;;  %v13359_v27 = vld [vmem:[%s12809_s22 + $0x30] sm:$0xff]  }
  0xcb   : > { %11152 = vmatmul.mubr.msk.bf16.gmra.mrb[36].mxu0 %vm970_vm0, %v4971_v58  ;;  %v4994_v58 = vrot.slane %v12442_v45, 1 }
  0xcc   : > { %11155 = vmatprep.mubr.msk.bf16.mxu0 %vm970_vm0, %v4973_v34  ;;  %v13369_v34 = vld [vmem:[%s12809_s22 + $0x38] sm:$0xff]  }
  0xcd   : > { %v4995_v35 = vsel %vm2078_vm2, %v4992_v23, %v4994_v58 }
  0xd1   : > { %10684 = vmatmul.mubr.msk.bf16.gmra.mrb[88].mxu1 %vm970_vm0, %v929_v40  ;;  %v4997_v40 = vsel %vm2078_vm2, %v4994_v58, %v4996_v33  ;;  %v13449_v33 = vld [vmem:[%s12809_s22 + $0x88] sm:$0xff]  }
  0xd2   : > { %10687 = vmatprep.mubr.msk.bf16.mxu1 %vm970_vm0, %v937_v52  ;;  %v12445_v52 = vld [vmem:[%s12819_s29 + $0x118] sm:$0xff]  }
  0xd3   : > { %11156 = vmatmul.mubr.msk.bf16.gmra.mrb[40].mxu0 %vm970_vm0, %v4975_v42  ;;  %v5000_v41 = vrot.slane %v12445_v52, 1  ;;  %v13385_v42 = vld [vmem:[%s12809_s22 + $0x48] sm:$0xff]   ;;  %v12456_v52 = vld [vmem:[%s12819_s29 + $0x160] sm:$0xff]  }
  0xd4   : > { %11159 = vmatprep.mubr.msk.bf16.mxu0 %vm970_vm0, %v4977_v43  ;;  %v13391_v43 = vld [vmem:[%s12809_s22 + $0x50] sm:$0xff]  }
  0xd5   : > { %v5001_v51 = vsel %vm2078_vm2, %v4998_v2, %v5000_v41 }
  0xd9   : > { %10688 = vmatmul.mubr.msk.bf16.gmra.mrb[92].mxu1 %vm970_vm0, %v945_v54  ;;  %v5002_v54 = vrot.slane %v12446_v47, 1 }
  0xda   : > { %10699 = vmatprep.mubr.msk.bf16.mxu1 %vm970_vm0, %v13303_v20 }
  0xdb   : > { %11160 = vmatmul.mubr.msk.bf16.gmra.mrb[44].mxu0 %vm970_vm0, %v4979_v59  ;;  %v5003_v59 = vsel %vm2078_vm2, %v5000_v41, %v5002_v54  ;;  %v12457_v41 = vld [vmem:[%s12819_s29 + $0x168] sm:$0xff]  }
  0xdc   : > { %11163 = vmatprep.mubr.msk.bf16.mxu0 %vm970_vm0, %v4981_v18  ;;  %v13407_v18 = vld [vmem:[%s12809_s22 + $0x60] sm:$0xff]   ;;  %v5020_v47 = vrot.slane %v12457_v41, 1  ;;  %v13551_v41 = vld [vmem:[%s13256_s21 + $0x18] sm:$0xff]  }
  0xe1   : > { %10700 = vmatmul.mubr.msk.bf16.vlgmr.msra.gmra.mrb[0].mxu1 %vm970_vm0, %v13315_v24  ;;  %v2082_v24 = vrot.slane %v13326_v48, 1 }
  0xe2   : > { %10796 = vmatpush3.bf16.msra.mxu1 %v13096_v26  ;;  %10703 = vmatprep.mubr.msk.bf16.mxu1 %vm970_vm0, %v13326_v48  ;;  %v13334_v26 = vld [vmem:[%s12809_s22 + $0x18] sm:$0xff]   ;;  %v13740_v48 = vld [vmem:[%s13256_s21 + $0xc8] sm:$0xff]  }
  0xe3   : > { %10797 = vmatprep.subr.bf16.mxu1 %v12448_v60  ;;  %11164 = vmatmul.mubr.msk.bf16.gmra.mrb[48].mxu0 %vm970_vm0, %v4983_v3  ;;  %v13417_v3 = vld [vmem:[%s12809_s22 + $0x68] sm:$0xff]  }
  0xe4   : > { %11167 = vmatprep.mubr.msk.bf16.mxu0 %vm970_vm0, %v4985_v6  ;;  %v5007_v6 = vsel %vm2078_vm2, %v5004_v21, %v5006_v31 }
  0xe6   : > { %10798 = vmatpush3.bf16.msra.mxu1 %v12448_v60  ;;  %v5005_v60 = vsel %vm2078_vm2, %v5002_v54, %v5004_v21  ;;  %v13477_v54 = vld [vmem:[%s12809_s22 + $0xa0] sm:$0xff]   ;;  %v12458_v21 = vld [vmem:[%s12819_s29 + $0x170] sm:$0xff]  }
  0xe7   : > { %10799 = vmatprep.subr.bf16.mxu1 %v12462_v0 }
  0xe9   : > { %10704 = vmatmul.mubr.msk.bf16.gmra.mrb[4].mxu1 %vm970_vm0, %v13334_v26 }
  0xea   : > { %10707 = vmatprep.mubr.msk.bf16.mxu1 %vm970_vm0, %v13340_v12  ;;  %10800 = vmatpush3.bf16.msra.mxu1 %v12462_v0  ;;  %v5008_v0 = vrot.slane %v12451_v61, 1  ;;  %v5024_v61 = vrot.slane %v12459_v25, 1  ;;  %v12506_v25 = vld [vmem:[%s15088_s1 + $0xf8] sm:$0xff]  }
  0xeb   : > { %11168 = vmatmul.mubr.msk.bf16.gmra.mrb[52].mxu0 %vm970_vm0, %v4987_v8  ;;  %10801 = vmatprep.subr.bf16.mxu1 %v12476_v36 }
  0xec   : > { %11171 = vmatprep.mubr.msk.bf16.mxu0 %vm970_vm0, %v4989_v13  ;;  %v5009_v8 = vsel %vm2078_vm2, %v5006_v31, %v5008_v0  ;;  %v5010_v13 = vrot.slane %v12452_v56, 1  ;;  %v13487_v31 = vld [vmem:[%s12809_s22 + $0xa8] sm:$0xff]   ;;  %v12460_v56 = vld [vmem:[%s12819_s29 + $0x180] ss:$0 sps:$4 sm:$0xff]  }
  0xed   : > { %v5026_v9 = vrot.slane %v12460_v56, 1  ;;  %v13602_v56 = vld [vmem:[%s13256_s21 + $0x40] sm:$0xff]  }
  0xee   : > { %10802 = vmatpush3.bf16.msra.mxu1 %v12476_v36  ;;  %v5011_v23 = vsel %vm2078_vm2, %v5008_v0, %v5010_v13  ;;  %v13439_v36 = vld [vmem:[%s12809_s22 + $0x80] sm:$0xff]   ;;  %v5013_v45 = vsel %vm2078_vm2, %v5010_v13, %v5012_v15  ;;  %v13502_v13 = vld [vmem:[%s12809_s22 + $0xb8] sm:$0xff]  }
  0xf1   : > { %10708 = vmatmul.mubr.msk.bf16.gmra.mrb[8].mxu1 %vm970_vm0, %v13350_v22 }
  0xf2   : > { %10711 = vmatprep.mubr.msk.bf16.mxu1 %vm970_vm0, %v13359_v27 }
  0xf3   : > { %11172 = vmatmul.mubr.msk.bf16.gmra.mrb[56].mxu0 %vm970_vm0, %v4991_v38  ;;  %v12454_v38 = vld [vmem:[%s12819_s29 + $0x150] sm:$0xff]  }
  0xf4   : > { %11175 = vmatprep.mubr.msk.bf16.mxu0 %vm970_vm0, %v4993_v46  ;;  %v12455_v46 = vld [vmem:[%s12819_s29 + $0x158] sm:$0xff]   ;;  %v5014_v30 = vrot.slane %v12454_v38, 1  ;;  %v13513_v38 = vld [vmem:[%s13256_s21] sm:$0xff]  }
  0xf5   : > { %v5016_v58 = vrot.slane %v12455_v46, 1  ;;  %v13524_v46 = vld [vmem:[%s13256_s21 + $0x8] sm:$0xff]  }
  0xf6   : > { %v5015_v39 = vsel %vm2078_vm2, %v5012_v15, %v5014_v30  ;;  %v5027_v15 = vsel %vm2078_vm2, %v5024_v61, %v5026_v9  ;;  %v13614_v9 = vld [vmem:[%s13256_s21 + $0x48] sm:$0xff]  }
  0xf7   : > { %v5017_v2 = vsel %vm2078_vm2, %v5014_v30, %v5016_v58  ;;  %v13527_v30 = vld [vmem:[%s12809_s22 + $0xd0] sm:$0xff]  }
  0xf9   : > { %10712 = vmatmul.mubr.msk.bf16.gmra.mrb[12].mxu1 %vm970_vm0, %v13369_v34 }
  0xfa   : > { %10715 = vmatprep.mubr.msk.bf16.mxu1 %vm970_vm0, %v13375_v37 }
  0xfb   : > { %11176 = vmatmul.mubr.msk.bf16.gmra.mrb[60].mxu0 %vm970_vm0, %v4995_v35  ;;  %v13456_v35 = vld [vmem:[%s15088_s1 + $0x60] sm:$0xff]  }
  0xfc   : > { %11179 = vmatprep.mubr.msk.bf16.mxu0 %vm970_vm0, %v4997_v40  ;;  %v13460_v40 = vld [vmem:[%s12809_s22 + $0x90] sm:$0xff]   ;;  %10899 = vmatprep.subr.bf16.mxu1 %v13456_v35 }
 0x101   : > { %10716 = vmatmul.mubr.msk.bf16.gmra.mrb[16].mxu1 %vm970_vm0, %v13385_v42 }
 0x102   : > { %10719 = vmatprep.mubr.msk.bf16.mxu1 %vm970_vm0, %v13391_v43 }
 0x103   : > { %11180 = vmatmul.mubr.msk.bf16.gmra.mrb[64].mxu0 %vm970_vm0, %v4999_v32  ;;  %v5018_v32 = vrot.slane %v12456_v52, 1  ;;  %v12492_v52 = vld [vmem:[%s15088_s1 + $0xf0] sm:$0xff]  }
 0x104   : > { %11183 = vmatprep.mubr.msk.bf16.mxu0 %vm970_vm0, %v5001_v51  ;;  %v13471_v51 = vld [vmem:[%s12809_s22 + $0x98] sm:$0xff]  }
 0x105   : > { %v5019_v14 = vsel %vm2078_vm2, %v5016_v58, %v5018_v32  ;;  %v13532_v58 = vld [vmem:[%s13256_s21 + $0x10] sm:$0xff]  }
 0x109   : > { %10720 = vmatmul.mubr.msk.bf16.gmra.mrb[20].mxu1 %vm970_vm0, %v13401_v55 }
 0x10a   : > { %10723 = vmatprep.mubr.msk.bf16.mxu1 %vm970_vm0, %v13407_v18 }
 0x10b   : > { %11184 = vmatmul.mubr.msk.bf16.gmra.mrb[68].mxu0 %vm970_vm0, %v5003_v59  ;;  %v5021_v59 = vsel %vm2078_vm2, %v5018_v32, %v5020_v47  ;;  %v13554_v32 = vld [vmem:[%s12809_s22 + $0xe0] sm:$0xff]  }
 0x10c   : > { %11187 = vmatprep.mubr.msk.bf16.mxu0 %vm970_vm0, %v5005_v60  ;;  %v5022_v60 = vrot.slane %v12458_v21, 1  ;;  %v13574_v21 = vld [vmem:[%s12809_s22 + $0xf0] sm:$0xff]  }
 0x10e   : > { %v5023_v0 = vsel %vm2078_vm2, %v5020_v47, %v5022_v60  ;;  %v13566_v47 = vld [vmem:[%s12809_s22 + $0xe8] sm:$0xff]  }
 0x111   : > { %10724 = vmatmul.mubr.msk.bf16.gmra.mrb[24].mxu1 %vm970_vm0, %v13417_v3 }
 0x112   : > { %10727 = vmatprep.mubr.msk.bf16.mxu1 %vm970_vm0, %v13423_v7 }
 0x113   : > { %11188 = vmatmul.mubr.msk.bf16.gmra.mrb[72].mxu0 %vm970_vm0, %v5007_v6  ;;  %v13493_v6 = vld [vmem:[%s12809_s22 + $0xb0] sm:$0xff]  }
 0x114   : > { %11191 = vmatprep.mubr.msk.bf16.mxu0 %vm970_vm0, %v5009_v8  ;;  %v5025_v8 = vsel %vm2078_vm2, %v5022_v60, %v5024_v61  ;;  %v13589_v60 = vld [vmem:[%s12809_s22 + $0xf8] sm:$0xff]  }
 0x115   : > { %v13594_v61 = vld [vmem:[%s13256_s21 + $0x38] sm:$0xff]  }
 0x119   : > { %10728 = vmatmul.mubr.msk.bf16.gmra.mrb[28].mxu1 %vm970_vm0, %v13433_v16 }
 0x11a   : > { %10731 = vmatprep.mubr.msk.bf16.mxu1 %vm970_vm0, %v13439_v36 }
 0x11b   : > { %11192 = vmatmul.mubr.msk.bf16.gmra.mrb[76].mxu0 %vm970_vm0, %v5011_v23  ;;  %v13508_v23 = vld [vmem:[%s12809_s22 + $0xc0] sm:$0xff]  }
 0x11c   : > { %11195 = vmatprep.mubr.msk.bf16.mxu0 %vm970_vm0, %v5013_v45  ;;  %v13519_v45 = vld [vmem:[%s12809_s22 + $0xc8] sm:$0xff]  }
 0x121   : > { %10732 = vmatmul.mubr.msk.bf16.gmra.mrb[32].mxu1 %vm970_vm0, %v13449_v33 }
 0x122   : > { %10735 = vmatprep.mubr.msk.bf16.mxu1 %vm970_vm0, %v13460_v40 }
 0x123   : > { %11196 = vmatmul.mubr.msk.bf16.gmra.mrb[80].mxu0 %vm970_vm0, %v5015_v39  ;;  %v12478_v39 = vld [vmem:[%s15088_s1 + $0xe8] sm:$0xff]  }
 0x124   : > { %11199 = vmatprep.mubr.msk.bf16.mxu0 %vm970_vm0, %v5017_v2  ;;  %v13546_v2 = vld [vmem:[%s12809_s22 + $0xd8] sm:$0xff]  }
 0x129   : > { %10736 = vmatmul.mubr.msk.bf16.gmra.mrb[36].mxu1 %vm970_vm0, %v13471_v51 }
 0x12a   : > { %10739 = vmatprep.mubr.msk.bf16.mxu1 %vm970_vm0, %v13477_v54 }
 0x12b   : > { %11200 = vmatmul.mubr.msk.bf16.gmra.mrb[84].mxu0 %vm970_vm0, %v5019_v14  ;;  %v13571_v14 = vld [vmem:[%s13256_s21 + $0x28] sm:$0xff]  }
 0x12c   : > { %11203 = vmatprep.mubr.msk.bf16.mxu0 %vm970_vm0, %v5021_v59  ;;  %v13579_v59 = vld [vmem:[%s13256_s21 + $0x30] sm:$0xff]  }
 0x131   : > { %10740 = vmatmul.mubr.msk.bf16.gmra.mrb[40].mxu1 %vm970_vm0, %v13487_v31 }
 0x132   : > { %10743 = vmatprep.mubr.msk.bf16.mxu1 %vm970_vm0, %v13493_v6 }
 0x133   : > { %11204 = vmatmul.mubr.msk.bf16.gmra.mrb[88].mxu0 %vm970_vm0, %v5023_v0  ;;  %v13597_v0 = vld [vmem:[%s12809_s22 + $0x100] sm:$0xff]  }
 0x134   : > { %11207 = vmatprep.mubr.msk.bf16.mxu0 %vm970_vm0, %v5025_v8  ;;  %v13609_v8 = vld [vmem:[%s12809_s22 + $0x108] sm:$0xff]  }
 0x139   : > { %10744 = vmatmul.mubr.msk.bf16.gmra.mrb[44].mxu1 %vm970_vm0, %v13502_v13 }
 0x13a   : > { %10747 = vmatprep.mubr.msk.bf16.mxu1 %vm970_vm0, %v13508_v23 }
 0x13b   : > { %11208 = vmatmul.mubr.msk.bf16.gmra.mrb[92].mxu0 %vm970_vm0, %v5027_v15  ;;  %v13619_v15 = vld [vmem:[%s13256_s21 + $0x50] sm:$0xff]  }
 0x13c   : > { %11219 = vmatprep.mubr.msk.bf16.mxu0 %vm970_vm0, %v13513_v38 }
 0x141   : > { %10748 = vmatmul.mubr.msk.bf16.gmra.mrb[48].mxu1 %vm970_vm0, %v13519_v45 }
 0x142   : > { %10751 = vmatprep.mubr.msk.bf16.mxu1 %vm970_vm0, %v13527_v30 }
 0x143   : > { %11220 = vmatmul.mubr.msk.bf16.vlgmr.msra.gmra.mrb[0].mxu0 %vm970_vm0, %v13524_v46 }
 0x144   : > { %11316 = vmatpush3.bf16.msra.mxu0 %v13271_v17  ;;  %11223 = vmatprep.mubr.msk.bf16.mxu0 %vm970_vm0, %v13532_v58  ;;  %v13559_v17 = vld [vmem:[%s13256_s21 + $0x20] sm:$0xff]  }
 0x145   : > { %11317 = vmatprep.subr.bf16.mxu0 %v12478_v39 }
 0x148   : > { %11318 = vmatpush3.bf16.msra.mxu0 %v12478_v39  ;;  %v13628_v39 = vld [vmem:[%s13256_s21 + $0x58] sm:$0xff]  }
 0x149   : > { %10752 = vmatmul.mubr.msk.bf16.gmra.mrb[52].mxu1 %vm970_vm0, %v13546_v2  ;;  %11319 = vmatprep.subr.bf16.mxu0 %v12492_v52 }
 0x14a   : > { %10755 = vmatprep.mubr.msk.bf16.mxu1 %vm970_vm0, %v13554_v32 }
 0x14b   : > { %11224 = vmatmul.mubr.msk.bf16.gmra.mrb[4].mxu0 %vm970_vm0, %v13551_v41 }
 0x14c   : > { %11227 = vmatprep.mubr.msk.bf16.mxu0 %vm970_vm0, %v13559_v17  ;;  %11320 = vmatpush3.bf16.msra.mxu0 %v12492_v52  ;;  %v13633_v52 = vld [vmem:[%s13256_s21 + $0x60] sm:$0xff]  }
 0x14d   : > { %11321 = vmatprep.subr.bf16.mxu0 %v12506_v25 }
 0x150   : > { %11322 = vmatpush3.bf16.msra.mxu0 %v12506_v25  ;;  %v13704_v25 = vld [vmem:[%s13256_s21 + $0xa8] sm:$0xff]  }
 0x151   : > { %10756 = vmatmul.mubr.msk.bf16.gmra.mrb[56].mxu1 %vm970_vm0, %v13566_v47 }
 0x152   : > { %10759 = vmatprep.mubr.msk.bf16.mxu1 %vm970_vm0, %v13574_v21 }
 0x153   : > { %11228 = vmatmul.mubr.msk.bf16.gmra.mrb[8].mxu0 %vm970_vm0, %v13571_v14 }
 0x154   : > { %11231 = vmatprep.mubr.msk.bf16.mxu0 %vm970_vm0, %v13579_v59 }
 0x159   : > { %10760 = vmatmul.mubr.msk.bf16.gmra.mrb[60].mxu1 %vm970_vm0, %v13589_v60 }
 0x15a   : > { %10763 = vmatprep.mubr.msk.bf16.mxu1 %vm970_vm0, %v13597_v0 }
 0x15b   : > { %11232 = vmatmul.mubr.msk.bf16.gmra.mrb[12].mxu0 %vm970_vm0, %v13594_v61 }
 0x15c   : > { %11235 = vmatprep.mubr.msk.bf16.mxu0 %vm970_vm0, %v13602_v56 }
 0x161   : > { %10764 = vmatmul.mubr.msk.bf16.gmra.mrb[64].mxu1 %vm970_vm0, %v13609_v8 }
 0x162   : > { %10767 = vmatprep.mubr.msk.bf16.mxu1 %vm970_vm0, %v13126_v4  ;;  %v13642_v4 = vld [vmem:[%s13256_s21 + $0x68] sm:$0xff]  }
 0x163   : > { %11236 = vmatmul.mubr.msk.bf16.gmra.mrb[16].mxu0 %vm970_vm0, %v13614_v9 }
 0x164   : > { %11239 = vmatprep.mubr.msk.bf16.mxu0 %vm970_vm0, %v13619_v15 }
 0x169   : > { %10768 = vmatmul.mubr.msk.bf16.gmra.mrb[68].mxu1 %vm970_vm0, %v13133_v10  ;;  %v13647_v10 = vld [vmem:[%s13256_s21 + $0x70] sm:$0xff]  }
 0x16a   : > { %10771 = vmatprep.mubr.msk.bf16.mxu1 %vm970_vm0, %v13139_v19  ;;  %v13656_v19 = vld [vmem:[%s13256_s21 + $0x78] sm:$0xff]  }
 0x16b   : > { %11240 = vmatmul.mubr.msk.bf16.gmra.mrb[20].mxu0 %vm970_vm0, %v13628_v39 }
 0x16c   : > { %11243 = vmatprep.mubr.msk.bf16.mxu0 %vm970_vm0, %v13633_v52 }
 0x171   : > { %10772 = vmatmul.mubr.msk.bf16.gmra.mrb[72].mxu1 %vm970_vm0, %v13152_v29  ;;  %v13661_v29 = vld [vmem:[%s13256_s21 + $0x80] sm:$0xff]  }
 0x172   : > { %10775 = vmatprep.mubr.msk.bf16.mxu1 %vm970_vm0, %v13168_v44  ;;  %v13670_v44 = vld [vmem:[%s13256_s21 + $0x88] sm:$0xff]  }
 0x173   : > { %11244 = vmatmul.mubr.msk.bf16.gmra.mrb[24].mxu0 %vm970_vm0, %v13642_v4 }
 0x174   : > { %11247 = vmatprep.mubr.msk.bf16.mxu0 %vm970_vm0, %v13647_v10 }
 0x179   : > { %10776 = vmatmul.mubr.msk.bf16.gmra.mrb[76].mxu1 %vm970_vm0, %v13173_v62  ;;  %v13675_v62 = vld [vmem:[%s13256_s21 + $0x90] sm:$0xff]  }
 0x17a   : > { %10779 = vmatprep.mubr.msk.bf16.mxu1 %vm970_vm0, %v13189_v1  ;;  %v13682_v1 = vld [vmem:[%s15088_s1 + $0x100] sm:$0xff]  }
 0x17b   : > { %11248 = vmatmul.mubr.msk.bf16.gmra.mrb[28].mxu0 %vm970_vm0, %v13656_v19  ;;  %11419 = vmatprep.subr.bf16.mxu0 %v13682_v1 }
 0x17c   : > { %11251 = vmatprep.mubr.msk.bf16.mxu0 %vm970_vm0, %v13661_v29 }
 0x181   : > { %10780 = vmatmul.mubr.msk.bf16.gmra.mrb[80].mxu1 %vm970_vm0, %v13195_v11  ;;  %v13690_v11 = vld [vmem:[%s13256_s21 + $0x98] sm:$0xff]  }
 0x182   : > { %10783 = vmatprep.mubr.msk.bf16.mxu1 %vm970_vm0, %v13209_v28  ;;  %v13695_v28 = vld [vmem:[%s13256_s21 + $0xa0] sm:$0xff]  }
 0x183   : > { %11252 = vmatmul.mubr.msk.bf16.gmra.mrb[32].mxu0 %vm970_vm0, %v13670_v44  ;;  %15107 = vst [vmem:[#allocation3_spill] sm:$0xff] %v13695_v28 }
 0x184   : > { %11255 = vmatprep.mubr.msk.bf16.mxu0 %vm970_vm0, %v13675_v62 }
 0x189   : > { %10784 = vmatmul.mubr.msk.bf16.gmra.mrb[84].mxu1 %vm970_vm0, %v13215_v57  ;;  %v13709_v57 = vld [vmem:[%s13256_s21 + $0xb0] sm:$0xff]  }
 0x18a   : > { %10787 = vmatprep.mubr.msk.bf16.mxu1 %vm970_vm0, %v13229_v49  ;;  %v2079_v49 = vrot.slane %v13303_v20, 1  ;;  %v13725_v20 = vld [vmem:[%s13256_s21 + $0xc0] sm:$0xff]  }
 0x18b   : > { %11256 = vmatmul.mubr.msk.bf16.gmra.mrb[36].mxu0 %vm970_vm0, %v13690_v11  ;;  %15108 = vst [vmem:[#allocation4_spill] sm:$0xff] %v13725_v20 }
 0x18c   : > { %11259 = vmatprep.mubr.msk.bf16.mxu0 %vm970_vm0, %v13695_v28  ;;  %v2084_v28 = vrot.slane %v13334_v26, 1  ;;  %v13745_v26 = vld [vmem:[%s13256_s21 + $0xd0] sm:$0xff]  }
 0x18d   : > { %15109 = vst [vmem:[#allocation5_spill] sm:$0xff] %v13745_v26 }
 0x191   : > { %10788 = vmatmul.mubr.msk.bf16.gmra.mrb[88].mxu1 %vm970_vm0, %v13234_v53  ;;  %v2081_v53 = vsel %vm2078_vm2, %v2079_v49, %v2080_v50  ;;  %v2083_v49 = vsel %vm2078_vm2, %v2080_v50, %v2082_v24  ;;  %v2086_v50 = vrot.slane %v13340_v12, 1  ;;  %v13760_v12 = vld [vmem:[%s13256_s21 + $0xd8] sm:$0xff]  }
 0x192   : > { %10791 = vmatprep.mubr.msk.bf16.mxu1 %vm970_vm0, %v13246_v63  ;;  %v13721_v63 = vld [vmem:[%s13256_s21 + $0xb8] sm:$0xff]  }
 0x193   : > { %11260 = vmatmul.mubr.msk.bf16.gmra.mrb[40].mxu0 %vm970_vm0, %v13704_v25 }
 0x194   : > { %11263 = vmatprep.mubr.msk.bf16.mxu0 %vm970_vm0, %v13709_v57 }
 0x199   : > { %10792 = vmatmul.mubr.msk.bf16.gmra.mrb[92].mxu1 %vm970_vm0, %v13253_v5  ;;  %v2085_v5 = vsel %vm2078_vm2, %v2082_v24, %v2084_v28  ;;  %v2088_v24 = vrot.slane %v13350_v22, 1  ;;  %v13764_v22 = vld [vmem:[%s13256_s21 + $0xe0] sm:$0xff]  }
 0x19a   : > { %10803 = vmatprep.mubr.msk.bf16.mxu1 %vm970_vm0, %v2081_v53  ;;  %v12504_v53 = vld [vmem:[%s15088_s1 + $0x68] sm:$0xff]  }
 0x19b   : > { %11264 = vmatmul.mubr.msk.bf16.gmra.mrb[44].mxu0 %vm970_vm0, %v13721_v63 }
 0x19c   : > { %11267 = vmatprep.mubr.msk.bf16.mxu0 %vm970_vm0, %v13725_v20  ;;  %v12517_v20 = vld [vmem:[%s15088_s1 + $0x70] sm:$0xff]  }
 0x1a1   : > { %10804 = vmatmul.mubr.msk.bf16.vlgmr.msra.gmra.mrb[0].mxu1 %vm970_vm0, %v2083_v49  ;;  %v2089_v49 = vsel %vm2078_vm2, %v2086_v50, %v2088_v24 }
 0x1a2   : > { %10900 = vmatpush3.bf16.msra.mxu1 %v13456_v35  ;;  %10807 = vmatprep.mubr.msk.bf16.mxu1 %vm970_vm0, %v2085_v5  ;;  %v2087_v35 = vsel %vm2078_vm2, %v2084_v28, %v2086_v50  ;;  %v2090_v5 = vrot.slane %v13359_v27, 1  ;;  %v13776_v50 = vld [vmem:[%s13256_s21 + $0xe8] sm:$0xff]   ;;  %v12519_v27 = vld [vmem:[%s15088_s1 + $0x78] sm:$0xff]  }
 0x1a3   : > { %10901 = vmatprep.subr.bf16.mxu1 %v12504_v53  ;;  %11268 = vmatmul.mubr.msk.bf16.gmra.mrb[48].mxu0 %vm970_vm0, %v13740_v48 }
 0x1a4   : > { %11271 = vmatprep.mubr.msk.bf16.mxu0 %vm970_vm0, %v13745_v26  ;;  %v2092_v26 = vrot.slane %v13369_v34, 1  ;;  %v2091_v28 = vsel %vm2078_vm2, %v2088_v24, %v2090_v5  ;;  %v13783_v34 = vld [vmem:[%s13256_s21 + $0xf0] sm:$0xff]   ;;  %v2096_v24 = vrot.slane %v13385_v42, 1 }
 0x1a6   : > { %10902 = vmatpush3.bf16.msra.mxu1 %v12504_v53  ;;  %v2093_v53 = vsel %vm2078_vm2, %v2090_v5, %v2092_v26  ;;  %v13805_v5 = vld [vmem:[%s13256_s21 + $0x100] sm:$0xff]  }
 0x1a7   : > { %10903 = vmatprep.subr.bf16.mxu1 %v12517_v20 }
 0x1a9   : > { %10808 = vmatmul.mubr.msk.bf16.gmra.mrb[4].mxu1 %vm970_vm0, %v2087_v35  ;;  %v13792_v35 = vld [vmem:[%s15088_s1 + $0x80] sm:$0xff]  }
 0x1aa   : > { %10811 = vmatprep.mubr.msk.bf16.mxu1 %vm970_vm0, %v2089_v49  ;;  %10904 = vmatpush3.bf16.msra.mxu1 %v12517_v20  ;;  %v2094_v20 = vrot.slane %v13375_v37, 1  ;;  %v13801_v49 = vld [vmem:[%s13256_s21 + $0xf8] sm:$0xff]  }
 0x1ab   : > { %11272 = vmatmul.mubr.msk.bf16.gmra.mrb[52].mxu0 %vm970_vm0, %v13760_v12  ;;  %10905 = vmatprep.subr.bf16.mxu1 %v12519_v27 }
 0x1ac   : > { %11275 = vmatprep.mubr.msk.bf16.mxu0 %vm970_vm0, %v13764_v22  ;;  %v2095_v37 = vsel %vm2078_vm2, %v2092_v26, %v2094_v20  ;;  %v2097_v42 = vsel %vm2078_vm2, %v2094_v20, %v2096_v24  ;;  %v13817_v20 = vld [vmem:[%s13256_s21 + $0x108] sm:$0xff]  }
 0x1ae   : > { %10906 = vmatpush3.bf16.msra.mxu1 %v12519_v27 }
 0x1af   : > { %11523 = vmatprep.subr.bf16.mxu1 %v13792_v35 }
 0x1b1   : > { %10812 = vmatmul.mubr.msk.bf16.gmra.mrb[8].mxu1 %vm970_vm0, %v2091_v28  ;;  %v2098_v28 = vrot.slane %v13391_v43, 1  ;;  %v13821_v43 = vld [vmem:[%s13256_s21 + $0x110] sm:$0xff]  }
 0x1b2   : > { %10815 = vmatprep.mubr.msk.bf16.mxu1 %vm970_vm0, %v2093_v53  ;;  %v2100_v53 = vrot.slane %v13401_v55, 1  ;;  %v2102_v55 = vrot.slane %v13407_v18, 1  ;;  %v13837_v18 = vld [vmem:[%s13256_s21 + $0x120] sm:$0xff]  }
 0x1b3   : > { %11276 = vmatmul.mubr.msk.bf16.gmra.mrb[56].mxu0 %vm970_vm0, %v13776_v50  ;;  %v2099_v26 = vsel %vm2078_vm2, %v2096_v24, %v2098_v28 }
 0x1b4   : > { %11279 = vmatprep.mubr.msk.bf16.mxu0 %vm970_vm0, %v13783_v34  ;;  %v2101_v27 = vsel %vm2078_vm2, %v2098_v28, %v2100_v53  ;;  %v2103_v24 = vsel %vm2078_vm2, %v2100_v53, %v2102_v55  ;;  %v13833_v28 = vld [vmem:[%s13256_s21 + $0x118] sm:$0xff]  }
 0x1b9   : > { %10816 = vmatmul.mubr.msk.bf16.gmra.mrb[12].mxu1 %vm970_vm0, %v2095_v37  ;;  %v2104_v37 = vrot.slane %v13417_v3, 1  ;;  %v2106_v3 = vrot.slane %v13423_v7, 1  ;;  %v13853_v7 = vld [vmem:[%s13256_s21 + $0x130] sm:$0xff]  }
 0x1ba   : > { %10819 = vmatprep.mubr.msk.bf16.mxu1 %vm970_vm0, %v2097_v42 }
 0x1bb   : > { %11280 = vmatmul.mubr.msk.bf16.gmra.mrb[60].mxu0 %vm970_vm0, %v13801_v49  ;;  %v2105_v42 = vsel %vm2078_vm2, %v2102_v55, %v2104_v37  ;;  %v2107_v53 = vsel %vm2078_vm2, %v2104_v37, %v2106_v3  ;;  %v13849_v55 = vld [vmem:[%s13256_s21 + $0x128] sm:$0xff]  }
 0x1bc   : > { %11283 = vmatprep.mubr.msk.bf16.mxu0 %vm970_vm0, %v13805_v5 }
 0x1c1   : > { %10820 = vmatmul.mubr.msk.bf16.gmra.mrb[16].mxu1 %vm970_vm0, %v2099_v26  ;;  %v2108_v26 = vrot.slane %v13433_v16, 1  ;;  %v2110_v16 = vrot.slane %v13439_v36, 1  ;;  %v13869_v36 = vld [vmem:[%s13256_s21 + $0x140] sm:$0xff]  }
 0x1c2   : > { %10823 = vmatprep.mubr.msk.bf16.mxu1 %vm970_vm0, %v2101_v27 }
 0x1c3   : > { %11284 = vmatmul.mubr.msk.bf16.gmra.mrb[64].mxu0 %vm970_vm0, %v13817_v20  ;;  %v2109_v27 = vsel %vm2078_vm2, %v2106_v3, %v2108_v26  ;;  %v2111_v37 = vsel %vm2078_vm2, %v2108_v26, %v2110_v16  ;;  %v13865_v3 = vld [vmem:[%s13256_s21 + $0x138] sm:$0xff]  }
 0x1c4   : > { %11287 = vmatprep.mubr.msk.bf16.mxu0 %vm970_vm0, %v13821_v43 }
 0x1c9   : > { %10824 = vmatmul.mubr.msk.bf16.gmra.mrb[20].mxu1 %vm970_vm0, %v2103_v24  ;;  %v2112_v24 = vrot.slane %v13449_v33, 1  ;;  %v2114_v33 = vrot.slane %v13460_v40, 1  ;;  %v13885_v40 = vld [vmem:[%s13256_s21 + $0x150] sm:$0xff]  }
 0x1ca   : > { %10827 = vmatprep.mubr.msk.bf16.mxu1 %vm970_vm0, %v2105_v42  ;;  %15110 = vst [vmem:[#allocation6_spill] sm:$0xff] %v13885_v40 }
 0x1cb   : > { %11288 = vmatmul.mubr.msk.bf16.gmra.mrb[68].mxu0 %vm970_vm0, %v13833_v28  ;;  %v2113_v42 = vsel %vm2078_vm2, %v2110_v16, %v2112_v24  ;;  %v2115_v26 = vsel %vm2078_vm2, %v2112_v24, %v2114_v33  ;;  %v13881_v16 = vld [vmem:[%s13256_s21 + $0x148] sm:$0xff]  }
 0x1cc   : > { %11291 = vmatprep.mubr.msk.bf16.mxu0 %vm970_vm0, %v13837_v18 }
 0x1d1   : > { %10828 = vmatmul.mubr.msk.bf16.gmra.mrb[24].mxu1 %vm970_vm0, %v2107_v53  ;;  %v2116_v53 = vrot.slane %v13471_v51, 1  ;;  %v2118_v51 = vrot.slane %v13477_v54, 1  ;;  %v13901_v54 = vld [vmem:[%s13256_s21 + $0x160] sm:$0xff]  }
 0x1d2   : > { %10831 = vmatprep.mubr.msk.bf16.mxu1 %vm970_vm0, %v2109_v27  ;;  %15112 = vst [vmem:[#allocation8_spill] sm:$0xff] %v13901_v54 }
 0x1d3   : > { %11292 = vmatmul.mubr.msk.bf16.gmra.mrb[72].mxu0 %vm970_vm0, %v13849_v55  ;;  %v2117_v27 = vsel %vm2078_vm2, %v2114_v33, %v2116_v53  ;;  %v2119_v24 = vsel %vm2078_vm2, %v2116_v53, %v2118_v51  ;;  %v13897_v33 = vld [vmem:[%s13256_s21 + $0x158] sm:$0xff]  }
 0x1d4   : > { %11295 = vmatprep.mubr.msk.bf16.mxu0 %vm970_vm0, %v13853_v7  ;;  %15111 = vst [vmem:[#allocation7_spill] sm:$0xff] %v13897_v33 }
 0x1d9   : > { %10832 = vmatmul.mubr.msk.bf16.gmra.mrb[28].mxu1 %vm970_vm0, %v2111_v37  ;;  %v2120_v37 = vrot.slane %v13487_v31, 1  ;;  %v2122_v31 = vrot.slane %v13493_v6, 1  ;;  %v13918_v6 = vld [vmem:[%s13256_s21 + $0x170] sm:$0xff]  }
 0x1da   : > { %10835 = vmatprep.mubr.msk.bf16.mxu1 %vm970_vm0, %v2113_v42  ;;  %15113 = vst [vmem:[#allocation9_spill] sm:$0xff] %v13918_v6 }
 0x1db   : > { %11296 = vmatmul.mubr.msk.bf16.gmra.mrb[76].mxu0 %vm970_vm0, %v13865_v3  ;;  %v2121_v42 = vsel %vm2078_vm2, %v2118_v51, %v2120_v37  ;;  %v2123_v53 = vsel %vm2078_vm2, %v2120_v37, %v2122_v31  ;;  %v6755_v51 = vshll.u32 %v13513_v38, 16 }
 0x1dc   : > { %11299 = vmatprep.mubr.msk.bf16.mxu0 %vm970_vm0, %v13869_v36 }
 0x1dd   : > { %v6757_v37 = vrot.slane %v6755_v51, 1  ;;  %v2130_v51 = vrot.slane %v13527_v30, 1 }
 0x1e1   : > { %10836 = vmatmul.mubr.msk.bf16.gmra.mrb[32].mxu1 %vm970_vm0, %v2115_v26  ;;  %v2124_v26 = vrot.slane %v13502_v13, 1  ;;  %v2126_v13 = vrot.slane %v13508_v23, 1  ;;  %v13932_v23 = vld [vmem:[%s13256_s21 + $0x178] sm:$0xff]  }
 0x1e2   : > { %10839 = vmatprep.mubr.msk.bf16.mxu1 %vm970_vm0, %v2117_v27 }
 0x1e3   : > { %11300 = vmatmul.mubr.msk.bf16.gmra.mrb[80].mxu0 %vm970_vm0, %v13881_v16  ;;  %v2125_v27 = vsel %vm2078_vm2, %v2122_v31, %v2124_v26  ;;  %v6759_v31 = vshll.u32 %v13524_v46, 16 }
 0x1e4   : > { %11303 = vmatprep.mubr.msk.bf16.mxu0 %vm970_vm0, %v13885_v40 }
 0x1e5   : > { %v6761_v40 = vrot.slane %v6759_v31, 1 }
 0x1e9   : > { %10840 = vmatmul.mubr.msk.bf16.gmra.mrb[36].mxu1 %vm970_vm0, %v2119_v24  ;;  %v13914_v24 = vld [vmem:[%s13256_s21 + $0x168] sm:$0xff]  }
 0x1ea   : > { %10843 = vmatprep.mubr.msk.bf16.mxu1 %vm970_vm0, %v2121_v42  ;;  %v2128_v42 = vrot.slane %v13519_v45, 1  ;;  %v6763_v45 = vshrl.u32 %v13524_v46, 16 }
 0x1eb   : > { %11304 = vmatmul.mubr.msk.bf16.gmra.mrb[84].mxu0 %vm970_vm0, %v13897_v33 }
 0x1ec   : > { %11307 = vmatprep.mubr.msk.bf16.mxu0 %vm970_vm0, %v13901_v54  ;;  %v6753_v54 = vshrl.u32 %v13513_v38, 16  ;;  %v6766_v38 = vshll.u32 %v13532_v58, 16  ;;  %v6765_v31 = vor.u32 %v6763_v45, %v6761_v40  ;;  %v6787_v45 = vshll.u32 %v13571_v14, 16 }
 0x1ee   : > { %v6758_v33 = vor.u32 %v6757_v37, %v6753_v54  ;;  %v6773_v54 = vshll.u32 %v13551_v41, 16  ;;  %v6768_v37 = vrot.slane %v6766_v38, 1  ;;  %v6784_v38 = vshrl.u32 %v13559_v17, 16 }
 0x1f1   : > { %10844 = vmatmul.mubr.msk.bf16.gmra.mrb[40].mxu1 %vm970_vm0, %v2123_v53  ;;  %v2127_v53 = vsel %vm2078_vm2, %v2124_v26, %v2126_v13  ;;  %v2132_v26 = vrot.slane %v13546_v2, 1  ;;  %v6780_v2 = vshll.u32 %v13559_v17, 16  ;;  %v6789_v17 = vrot.slane %v6787_v45, 1 }
 0x1f2   : > { %10847 = vmatprep.mubr.msk.bf16.mxu1 %vm970_vm0, %v2125_v27  ;;  %v2129_v27 = vsel %vm2078_vm2, %v2126_v13, %v2128_v42  ;;  %v6770_v13 = vshrl.u32 %v13532_v58, 16  ;;  %v6769_v58 = vsel %vm557_vm1, %v6765_v31, %v6768_v37  ;;  %v6794_v31 = vshll.u32 %v13579_v59, 16 }
 0x1f3   : > { %11308 = vmatmul.mubr.msk.bf16.gmra.mrb[88].mxu0 %vm970_vm0, %v13914_v24  ;;  %v2133_v46 = vsel %vm2078_vm2, %v2130_v51, %v2132_v26  ;;  %v6805_v45 = vshrl.u32 %v13594_v61, 16 }
 0x1f4   : > { %11311 = vmatprep.mubr.msk.bf16.mxu0 %vm970_vm0, %v13918_v6  ;;  %v6762_v6 = vsel %vm557_vm1, %v6758_v33, %v6761_v40  ;;  %v6772_v30 = vor.u32 %v6770_v13, %v6768_v37  ;;  %v2134_v33 = vrot.slane %v13554_v32, 1  ;;  %v6777_v40 = vshrl.u32 %v13551_v41, 16  ;;  %v12521_v37 = vld [vmem:[%s15088_s1 + $0x110] sm:$0xff]  }
 0x1f5   : > { %v6782_v13 = vrot.slane %v6780_v2, 1  ;;  %v6801_v2 = vshll.u32 %v13594_v61, 16 }
 0x1f6   : > { %v2135_v41 = vsel %vm2078_vm2, %v2132_v26, %v2134_v33  ;;  %v2138_v26 = vrot.slane %v13574_v21, 1 }
 0x1f9   : > { %10848 = vmatmul.mubr.msk.bf16.gmra.mrb[44].mxu1 %vm970_vm0, %v2127_v53  ;;  %v2131_v53 = vsel %vm2078_vm2, %v2128_v42, %v2130_v51  ;;  %v2136_v42 = vrot.slane %v13566_v47, 1  ;;  %v12520_v51 = vld [vmem:[%s15088_s1 + $0x108] sm:$0xff]  }
 0x1fa   : > { %10851 = vmatprep.mubr.msk.bf16.mxu1 %vm970_vm0, %v2129_v27  ;;  %v6775_v27 = vrot.slane %v6773_v54, 1  ;;  %v6786_v54 = vor.u32 %v6784_v38, %v6782_v13  ;;  %v2142_v38 = vrot.slane %v13597_v0, 1 }
 0x1fb   : > { %11312 = vmatmul.mubr.msk.bf16.gmra.mrb[92].mxu0 %vm970_vm0, %v13932_v23  ;;  %v2137_v47 = vsel %vm2078_vm2, %v2134_v33, %v2136_v42  ;;  %v2139_v33 = vsel %vm2078_vm2, %v2136_v42, %v2138_v26 }
 0x1fc   : > { %11323 = vmatprep.mubr.msk.bf16.mxu0 %vm970_vm0, %v6762_v6  ;;  %v6776_v6 = vsel %vm557_vm1, %v6772_v30, %v6775_v27  ;;  %v6779_v32 = vor.u32 %v6777_v40, %v6775_v27  ;;  %v2140_v30 = vrot.slane %v13589_v60, 1  ;;  %v6798_v27 = vshrl.u32 %v13579_v59, 16 }
 0x1fd   : > { %v6808_v59 = vshll.u32 %v13602_v56, 16 }
 0x1fe   : > { %v2143_v61 = vsel %vm2078_vm2, %v2140_v30, %v2142_v38 }
 0x201   : > { %10852 = vmatmul.mubr.msk.bf16.gmra.mrb[48].mxu1 %vm970_vm0, %v2131_v53  ;;  %v6791_v53 = vshrl.u32 %v13571_v14, 16  ;;  %v2141_v14 = vsel %vm2078_vm2, %v2138_v26, %v2140_v30  ;;  %v6819_v26 = vshrl.u32 %v13614_v9, 16 }
 0x202   : > { %10855 = vmatprep.mubr.msk.bf16.mxu1 %vm970_vm0, %v2133_v46  ;;  %v6790_v46 = vsel %vm557_vm1, %v6786_v54, %v6789_v17 }
 0x203   : > { %11324 = vmatmul.mubr.msk.bf16.vlgmr.msra.gmra.mrb[0].mxu0 %vm970_vm0, %v6769_v58  ;;  %v6796_v58 = vrot.slane %v6794_v31, 1  ;;  %v6793_v21 = vor.u32 %v6791_v53, %v6789_v17  ;;  %v6822_v17 = vshll.u32 %v13619_v15, 16  ;;  %v12564_v31 = vld [vmem:[%s12809_s22 + $0x110] sm:$0xff]  }
 0x204   : > { %11420 = vmatpush3.bf16.msra.mxu0 %v13682_v1  ;;  %11327 = vmatprep.mubr.msk.bf16.mxu0 %vm970_vm0, %v6776_v6  ;;  %v6783_v1 = vsel %vm557_vm1, %v6779_v32, %v6782_v13  ;;  %v6803_v6 = vrot.slane %v6801_v2, 1  ;;  %v6812_v13 = vshrl.u32 %v13602_v56, 16  ;;  %v6810_v32 = vrot.slane %v6808_v59, 1  ;;  %v12566_v59 = vld [vmem:[%s12809_s22 + $0x120] sm:$0xff]  }
 0x205   : > { %11421 = vmatprep.subr.bf16.mxu0 %v12520_v51  ;;  %v6800_v40 = vor.u32 %v6798_v27, %v6796_v58  ;;  %v6797_v60 = vsel %vm557_vm1, %v6793_v21, %v6796_v58  ;;  %v6826_v27 = vshrl.u32 %v13619_v15, 16  ;;  %v6829_v2 = vshll.u32 %v13628_v39, 16 }
 0x206   : > { %v6807_v0 = vor.u32 %v6805_v45, %v6803_v6  ;;  %v6814_v54 = vor.u32 %v6812_v13, %v6810_v32  ;;  %v6824_v58 = vrot.slane %v6822_v17, 1  ;;  %v6840_v13 = vshrl.u32 %v13633_v52, 16 }
 0x207   : > { %v6804_v42 = vsel %vm557_vm1, %v6800_v40, %v6803_v6  ;;  %v6831_v40 = vrot.slane %v6829_v2, 1  ;;  %v6836_v6 = vshll.u32 %v13633_v52, 16 }
 0x208   : > { %11422 = vmatpush3.bf16.msra.mxu0 %v12520_v51  ;;  %v2144_v51 = vrot.slane %v13609_v8, 1 }
 0x209   : > { %10856 = vmatmul.mubr.msk.bf16.gmra.mrb[52].mxu1 %vm970_vm0, %v2135_v41  ;;  %11423 = vmatprep.subr.bf16.mxu0 %v12521_v37  ;;  %v6815_v41 = vshll.u32 %v13614_v9, 16 }
 0x20a   : > { %10859 = vmatprep.mubr.msk.bf16.mxu1 %vm970_vm0, %v2137_v47  ;;  %v12522_v47 = vld [vmem:[%s15088_s1 + $0x118] sm:$0xff]   ;;  %v2145_v8 = vsel %vm2078_vm2, %v2142_v38, %v2144_v51  ;;  %v6833_v38 = vshrl.u32 %v13628_v39, 16 }
 0x20b   : > { %11328 = vmatmul.mubr.msk.bf16.gmra.mrb[4].mxu0 %vm970_vm0, %v6783_v1  ;;  %v6817_v56 = vrot.slane %v6815_v41, 1  ;;  %v2146_v1 = vrot.slane %v12564_v31, 1  ;;  %v6843_v41 = vshll.u32 %v13642_v4, 16 }
 0x20c   : > { %11331 = vmatprep.mubr.msk.bf16.mxu0 %vm970_vm0, %v6790_v46  ;;  %11424 = vmatpush3.bf16.msra.mxu0 %v12521_v37  ;;  %v6811_v37 = vsel %vm557_vm1, %v6807_v0, %v6810_v32  ;;  %v12565_v46 = vld [vmem:[%s12809_s22 + $0x118] sm:$0xff]   ;;  %v6838_v32 = vrot.slane %v6836_v6, 1 }
 0x20d   : > { %11425 = vmatprep.subr.bf16.mxu0 %v12522_v47  ;;  %v6818_v53 = vsel %vm557_vm1, %v6814_v54, %v6817_v56  ;;  %v2148_v30 = vrot.slane %v12565_v46, 1  ;;  %v6821_v21 = vor.u32 %v6819_v26, %v6817_v56  ;;  %v6850_v54 = vshll.u32 %v13647_v10, 16  ;;  %v12568_v56 = vld [vmem:[%s12809_s22 + $0x130] sm:$0xff]  }
 0x20e   : > { %v6842_v0 = vor.u32 %v6840_v13, %v6838_v32  ;;  %v2154_v17 = vrot.slane %v12568_v56, 1  ;;  %v6857_v46 = vshll.u32 %v13656_v19, 16  ;;  %v6885_v56 = vshll.u32 %v13690_v11, 16 }
 0x20f   : > { %v2149_v9 = vsel %vm2078_vm2, %v2146_v1, %v2148_v30  ;;  %v6825_v15 = vsel %vm557_vm1, %v6821_v21, %v6824_v58  ;;  %v6864_v21 = vshll.u32 %v13661_v29, 16 }
 0x210   : > { %11426 = vmatpush3.bf16.msra.mxu0 %v12522_v47 }
 0x211   : > { %10860 = vmatmul.mubr.msk.bf16.gmra.mrb[56].mxu1 %vm970_vm0, %v2139_v33  ;;  %v2147_v33 = vsel %vm2078_vm2, %v2144_v51, %v2146_v1  ;;  %v12569_v1 = vld [vmem:[%s12809_s22 + $0x138] sm:$0xff]  }
 0x212   : > { %10863 = vmatprep.mubr.msk.bf16.mxu1 %vm970_vm0, %v2141_v14  ;;  %v6828_v14 = vor.u32 %v6826_v27, %v6824_v58  ;;  %v2156_v26 = vrot.slane %v12569_v1, 1 }
 0x213   : > { %11332 = vmatmul.mubr.msk.bf16.gmra.mrb[8].mxu0 %vm970_vm0, %v6797_v60  ;;  %v2150_v60 = vrot.slane %v12566_v59, 1 }
 0x214   : > { %11335 = vmatprep.mubr.msk.bf16.mxu0 %vm970_vm0, %v6804_v42  ;;  %v6832_v45 = vsel %vm557_vm1, %v6828_v14, %v6831_v40  ;;  %v12567_v42 = vld [vmem:[%s12809_s22 + $0x128] sm:$0xff]  }
 0x215   : > { %v2152_v51 = vrot.slane %v12567_v42, 1  ;;  %v2151_v47 = vsel %vm2078_vm2, %v2148_v30, %v2150_v60  ;;  %v6852_v30 = vrot.slane %v6850_v54, 1 }
 0x217   : > { %v2153_v39 = vsel %vm2078_vm2, %v2150_v60, %v2152_v51  ;;  %v2155_v27 = vsel %vm2078_vm2, %v2152_v51, %v2154_v17  ;;  %v6868_v60 = vshrl.u32 %v13661_v29, 16 }
 0x219   : > { %10864 = vmatmul.mubr.msk.bf16.gmra.mrb[60].mxu1 %vm970_vm0, %v2143_v61  ;;  %v6835_v61 = vor.u32 %v6833_v38, %v6831_v40  ;;  %v6861_v40 = vshrl.u32 %v13656_v19, 16  ;;  %v6871_v38 = vshll.u32 %v13670_v44, 16 }
 0x21a   : > { %10867 = vmatprep.mubr.msk.bf16.mxu1 %vm970_vm0, %v2145_v8  ;;  %v6845_v8 = vrot.slane %v6843_v41, 1 }
 0x21b   : > { %11336 = vmatmul.mubr.msk.bf16.gmra.mrb[12].mxu0 %vm970_vm0, %v6811_v37  ;;  %v6839_v52 = vsel %vm557_vm1, %v6835_v61, %v6838_v32  ;;  %v6847_v37 = vshrl.u32 %v13642_v4, 16  ;;  %v2157_v4 = vsel %vm2078_vm2, %v2154_v17, %v2156_v26  ;;  %v6873_v41 = vrot.slane %v6871_v38, 1  ;;  %v12576_v38 = vld [vmem:[%s12809_s22 + $0x170] sm:$0xff]  }
 0x21c   : > { %11339 = vmatprep.mubr.msk.bf16.mxu0 %vm970_vm0, %v6818_v53  ;;  %v6846_v31 = vsel %vm557_vm1, %v6842_v0, %v6845_v8  ;;  %v6854_v53 = vshrl.u32 %v13647_v10, 16  ;;  %v6878_v32 = vshll.u32 %v13675_v62, 16 }
 0x21d   : > { %v6849_v2 = vor.u32 %v6847_v37, %v6845_v8  ;;  %v12573_v8 = vld [vmem:[%s12809_s22 + $0x158] sm:$0xff]  }
 0x21e   : > { %v6856_v58 = vor.u32 %v6854_v53, %v6852_v30  ;;  %v2164_v54 = vrot.slane %v12573_v8, 1  ;;  %v6880_v17 = vrot.slane %v6878_v32, 1  ;;  %v15114_v53 = vld [vmem:[#allocation3_spill] sm:$0xff]  ;;  %v6913_v32 = vshll.u32 %v13721_v63, 16  ;;  %v15115_v8 = vld [vmem:[#allocation4_spill] sm:$0xff] }
 0x21f   : > { %v6853_v10 = vsel %vm557_vm1, %v6849_v2, %v6852_v30  ;;  %v12574_v30 = vld [vmem:[%s12809_s22 + $0x160] sm:$0xff]   ;;  %v6889_v2 = vshrl.u32 %v13690_v11, 16 }
 0x221   : > { %10868 = vmatmul.mubr.msk.bf16.gmra.mrb[64].mxu1 %vm970_vm0, %v2147_v33  ;;  %v6859_v33 = vrot.slane %v6857_v46, 1  ;;  %v6892_v46 = vshll.u32 %v15114_v53, 16 }
 0x222   : > { %10871 = vmatprep.mubr.msk.bf16.mxu1 %vm970_vm0, %v2149_v9  ;;  %v12570_v9 = vld [vmem:[%s12809_s22 + $0x140] sm:$0xff]  }
 0x223   : > { %11340 = vmatmul.mubr.msk.bf16.gmra.mrb[16].mxu0 %vm970_vm0, %v6825_v15  ;;  %v2158_v14 = vrot.slane %v12570_v9, 1  ;;  %v6860_v6 = vsel %vm557_vm1, %v6856_v58, %v6859_v33  ;;  %v12571_v15 = vld [vmem:[%s12809_s22 + $0x148] sm:$0xff]   ;;  %v6863_v51 = vor.u32 %v6861_v40, %v6859_v33  ;;  %v6894_v9 = vrot.slane %v6892_v46, 1 }
 0x224   : > { %11343 = vmatprep.mubr.msk.bf16.mxu0 %vm970_vm0, %v6832_v45  ;;  %v2160_v59 = vrot.slane %v12571_v15, 1  ;;  %v6866_v45 = vrot.slane %v6864_v21, 1  ;;  %v12575_v58 = vld [vmem:[%s12809_s22 + $0x168] sm:$0xff]   ;;  %v6896_v21 = vshrl.u32 %v15114_v53, 16 }
 0x225   : > { %v2159_v42 = vsel %vm2078_vm2, %v2156_v26, %v2158_v14  ;;  %v6887_v26 = vrot.slane %v6885_v56, 1  ;;  %v2168_v33 = vrot.slane %v12575_v58, 1 }
 0x226   : > { %v2161_v19 = vsel %vm2078_vm2, %v2158_v14, %v2160_v59  ;;  %v6870_v13 = vor.u32 %v6868_v60, %v6866_v45  ;;  %v6867_v29 = vsel %vm557_vm1, %v6863_v51, %v6866_v45  ;;  %v2170_v45 = vrot.slane %v12576_v38, 1 }
 0x227   : > { %v6891_v40 = vor.u32 %v6889_v2, %v6887_v26  ;;  %v12579_v2 = vld [vmem:[%s12819_s29] sm:$0xff]   ;;  %v6952_v38 = vshrl.u32 %v13764_v22, 16 }
 0x228   : > { %v6874_v0 = vsel %vm557_vm1, %v6870_v13, %v6873_v41 }
 0x229   : > { %10872 = vmatmul.mubr.msk.bf16.gmra.mrb[68].mxu1 %vm970_vm0, %v2151_v47  ;;  %v12572_v47 = vld [vmem:[%s12809_s22 + $0x150] sm:$0xff]   ;;  %v6895_v60 = vsel %vm557_vm1, %v6891_v40, %v6894_v9 }
 0x22a   : > { %10875 = vmatprep.mubr.msk.bf16.mxu1 %vm970_vm0, %v2153_v39  ;;  %v2162_v61 = vrot.slane %v12572_v47, 1  ;;  %v6875_v39 = vshrl.u32 %v13670_v44, 16  ;;  %v2171_v47 = vsel %vm2078_vm2, %v2168_v33, %v2170_v45 }
 0x22b   : > { %11344 = vmatmul.mubr.msk.bf16.gmra.mrb[20].mxu0 %vm970_vm0, %v6839_v52  ;;  %v6882_v52 = vshrl.u32 %v13675_v62, 16 }
 0x22c   : > { %11347 = vmatprep.mubr.msk.bf16.mxu0 %vm970_vm0, %v6846_v31  ;;  %v2163_v37 = vsel %vm2078_vm2, %v2160_v59, %v2162_v61  ;;  %v6877_v31 = vor.u32 %v6875_v39, %v6873_v41  ;;  %v2165_v44 = vsel %vm2078_vm2, %v2162_v61, %v2164_v54  ;;  %v6906_v59 = vshll.u32 %v13709_v57, 16 }
 0x22d   : > { %v6884_v1 = vor.u32 %v6882_v52, %v6880_v17  ;;  %v6910_v41 = vshrl.u32 %v13709_v57, 16  ;;  %v12578_v52 = vld [vmem:[%s12809_s22 + $0x180] ss:$0 sps:$4 sm:$0xff]  }
 0x22e   : > { %v6881_v62 = vsel %vm557_vm1, %v6877_v31, %v6880_v17  ;;  %v2174_v56 = vrot.slane %v12578_v52, 1  ;;  %v6917_v17 = vshrl.u32 %v13721_v63, 16  ;;  %v6924_v31 = vshrl.u32 %v15115_v8, 16  ;;  %v15116_v63 = vld [vmem:[#allocation5_spill] sm:$0xff]  ;;  %v12587_v52 = vld [vmem:[%s12819_s29 + $0x28] sm:$0xff]  }
 0x231   : > { %10876 = vmatmul.mubr.msk.bf16.gmra.mrb[72].mxu1 %vm970_vm0, %v2155_v27  ;;  %v2166_v27 = vrot.slane %v12574_v30, 1  ;;  %v6934_v30 = vshll.u32 %v15116_v63, 16 }
 0x232   : > { %10879 = vmatprep.mubr.msk.bf16.mxu1 %vm970_vm0, %v2157_v4  ;;  %v6888_v4 = vsel %vm557_vm1, %v6884_v1, %v6887_v26 }
 0x233   : > { %11348 = vmatmul.mubr.msk.bf16.gmra.mrb[24].mxu0 %vm970_vm0, %v6853_v10  ;;  %v6899_v10 = vshll.u32 %v13704_v25, 16  ;;  %v2167_v14 = vsel %vm2078_vm2, %v2164_v54, %v2166_v27  ;;  %v2169_v11 = vsel %vm2078_vm2, %v2166_v27, %v2168_v33  ;;  %v6920_v54 = vshll.u32 %v15115_v8, 16 }
 0x234   : > { %11351 = vmatprep.mubr.msk.bf16.mxu0 %vm970_vm0, %v6860_v6  ;;  %v6898_v6 = vor.u32 %v6896_v21, %v6894_v9  ;;  %v6938_v33 = vshrl.u32 %v15116_v63, 16  ;;  %v6941_v21 = vshll.u32 %v13760_v12, 16  ;;  %v12589_v63 = vld [vmem:[%s12819_s29 + $0x38] sm:$0xff]  }
 0x235   : > { %v6901_v15 = vrot.slane %v6899_v10, 1  ;;  %v6922_v1 = vrot.slane %v6920_v54, 1  ;;  %v6936_v10 = vrot.slane %v6934_v30, 1 }
 0x236   : > { %v6943_v40 = vrot.slane %v6941_v21, 1 }
 0x237   : > { %v6902_v51 = vsel %vm557_vm1, %v6898_v6, %v6901_v15  ;;  %v6926_v46 = vor.u32 %v6924_v31, %v6922_v1  ;;  %v6948_v6 = vshll.u32 %v13764_v22, 16  ;;  %v12583_v22 = vld [vmem:[%s15088_s1 + $0x90] sm:$0xff]  }
 0x239   : > { %10880 = vmatmul.mubr.msk.bf16.gmra.mrb[76].mxu1 %vm970_vm0, %v2159_v42  ;;  %v6903_v42 = vshrl.u32 %v13704_v25, 16 }
 0x23a   : > { %10883 = vmatprep.mubr.msk.bf16.mxu1 %vm970_vm0, %v2161_v19  ;;  %v12577_v19 = vld [vmem:[%s12809_s22 + $0x178] sm:$0xff]  }
 0x23b   : > { %11352 = vmatmul.mubr.msk.bf16.gmra.mrb[28].mxu0 %vm970_vm0, %v6867_v29  ;;  %v2172_v13 = vrot.slane %v12577_v19, 1  ;;  %v6908_v29 = vrot.slane %v6906_v59, 1  ;;  %v6905_v61 = vor.u32 %v6903_v42, %v6901_v15  ;;  %v12581_v15 = vld [vmem:[%s12819_s29 + $0x10] sm:$0xff]   ;;  %v6945_v59 = vshrl.u32 %v13760_v12, 16  ;;  %v12582_v42 = vld [vmem:[%s15088_s1 + $0x88] sm:$0xff]  }
 0x23c   : > { %11355 = vmatprep.mubr.msk.bf16.mxu0 %vm970_vm0, %v6874_v0  ;;  %v6915_v0 = vrot.slane %v6913_v32, 1 }
 0x23d   : > { %v2173_v39 = vsel %vm2078_vm2, %v2170_v45, %v2172_v13  ;;  %v6912_v25 = vor.u32 %v6910_v41, %v6908_v29  ;;  %v6909_v57 = vsel %vm557_vm1, %v6905_v61, %v6908_v29  ;;  %v2175_v26 = vsel %vm2078_vm2, %v2172_v13, %v2174_v56  ;;  %v12584_v13 = vld [vmem:[%s12819_s29 + $0x18] sm:$0xff]   ;;  %v12585_v29 = vld [vmem:[%s12819_s29 + $0x20] sm:$0xff]  }
 0x23e   : > { %v6919_v53 = vor.u32 %v6917_v17, %v6915_v0  ;;  %v6955_v45 = vshll.u32 %v13776_v50, 16  ;;  %v6962_v41 = vshll.u32 %v13783_v34, 16  ;;  %v12588_v17 = vld [vmem:[%s12819_s29 + $0x30] sm:$0xff]  }
 0x240   : > { %v6923_v27 = vsel %vm557_vm1, %v6919_v53, %v6922_v1  ;;  %v6957_v19 = vrot.slane %v6955_v45, 1  ;;  %v6964_v8 = vrot.slane %v6962_v41, 1  ;;  %v6983_v1 = vshll.u32 %v13817_v20, 16 }
 0x241   : > { %10884 = vmatmul.mubr.msk.bf16.gmra.mrb[80].mxu1 %vm970_vm0, %v2163_v37  ;;  %v6916_v37 = vsel %vm557_vm1, %v6912_v25, %v6915_v0  ;;  %v6969_v25 = vshll.u32 %v13801_v49, 16  ;;  %v12586_v0 = vld [vmem:[%s15088_s1 + $0x98] sm:$0xff]  }
 0x242   : > { %10887 = vmatprep.mubr.msk.bf16.mxu1 %vm970_vm0, %v2165_v44  ;;  %v6927_v44 = vshll.u32 %v13740_v48, 16 }
 0x243   : > { %11356 = vmatmul.mubr.msk.bf16.gmra.mrb[32].mxu0 %vm970_vm0, %v6881_v62 }
 0x244   : > { %11359 = vmatprep.mubr.msk.bf16.mxu0 %vm970_vm0, %v6888_v4  ;;  %v6929_v62 = vrot.slane %v6927_v44, 1  ;;  %v6931_v4 = vshrl.u32 %v13740_v48, 16  ;;  %v6980_v44 = vshrl.u32 %v13805_v5, 16 }
 0x246   : > { %v6930_v58 = vsel %vm557_vm1, %v6926_v46, %v6929_v62  ;;  %v6933_v9 = vor.u32 %v6931_v4, %v6929_v62  ;;  %v6985_v62 = vrot.slane %v6983_v1, 1  ;;  %v6994_v4 = vshrl.u32 %v13821_v43, 16  ;;  %v15118_v1 = vld [vmem:[#allocation7_spill] sm:$0xff] }
 0x248   : > { %v6937_v48 = vsel %vm557_vm1, %v6933_v9, %v6936_v10 }
 0x249   : > { %10888 = vmatmul.mubr.msk.bf16.gmra.mrb[84].mxu1 %vm970_vm0, %v2167_v14  ;;  %v6940_v14 = vor.u32 %v6938_v33, %v6936_v10 }
 0x24a   : > { %10891 = vmatprep.mubr.msk.bf16.mxu1 %vm970_vm0, %v2169_v11  ;;  %v12580_v11 = vld [vmem:[%s12819_s29 + $0x8] sm:$0xff]  }
 0x24b   : > { %11360 = vmatmul.mubr.msk.bf16.gmra.mrb[36].mxu0 %vm970_vm0, %v6895_v60  ;;  %v6944_v60 = vsel %vm557_vm1, %v6940_v14, %v6943_v40  ;;  %v12591_v14 = vld [vmem:[%s12819_s29 + $0x48] sm:$0xff]  }
 0x24c   : > { %11363 = vmatprep.mubr.msk.bf16.mxu0 %vm970_vm0, %v6902_v51  ;;  %v6947_v51 = vor.u32 %v6945_v59, %v6943_v40 }
 0x251   : > { %10892 = vmatmul.mubr.msk.bf16.gmra.mrb[88].mxu1 %vm970_vm0, %v2171_v47  ;;  %v6959_v47 = vshrl.u32 %v13776_v50, 16 }
 0x252   : > { %10895 = vmatprep.mubr.msk.bf16.mxu1 %vm970_vm0, %v2173_v39  ;;  %v6966_v39 = vshrl.u32 %v13783_v34, 16  ;;  %v6976_v34 = vshll.u32 %v13805_v5, 16  ;;  %v6987_v5 = vshrl.u32 %v13817_v20, 16  ;;  %v7004_v20 = vshll.u32 %v13837_v18, 16 }
 0x253   : > { %11364 = vmatmul.mubr.msk.bf16.gmra.mrb[40].mxu0 %vm970_vm0, %v6909_v57  ;;  %v6961_v54 = vor.u32 %v6959_v47, %v6957_v19  ;;  %v6971_v57 = vrot.slane %v6969_v25, 1  ;;  %v12595_v47 = vld [vmem:[%s12819_s29 + $0x68] sm:$0xff]  }
 0x254   : > { %11367 = vmatprep.mubr.msk.bf16.mxu0 %vm970_vm0, %v6916_v37  ;;  %v6968_v50 = vor.u32 %v6966_v39, %v6964_v8  ;;  %v6973_v37 = vshrl.u32 %v13801_v49, 16  ;;  %v6990_v49 = vshll.u32 %v13821_v43, 16  ;;  %v6989_v21 = vor.u32 %v6987_v5, %v6985_v62  ;;  %v12596_v39 = vld [vmem:[%s12819_s29 + $0x70] sm:$0xff]  }
 0x255   : > { %v6965_v56 = vsel %vm557_vm1, %v6961_v54, %v6964_v8  ;;  %v7001_v43 = vshrl.u32 %v13833_v28, 16  ;;  %v7006_v59 = vrot.slane %v7004_v20, 1  ;;  %v7039_v8 = vshll.u32 %v13881_v16, 16  ;;  %v12600_v5 = vld [vmem:[%s12819_s29 + $0x90] sm:$0xff]   ;;  %v12601_v20 = vld [vmem:[%s12819_s29 + $0x98] sm:$0xff]  }
 0x256   : > { %v6972_v31 = vsel %vm557_vm1, %v6968_v50, %v6971_v57  ;;  %v6975_v53 = vor.u32 %v6973_v37, %v6971_v57  ;;  %v6992_v33 = vrot.slane %v6990_v49, 1  ;;  %v12598_v37 = vld [vmem:[%s12819_s29 + $0x80] sm:$0xff]   ;;  %v12599_v49 = vld [vmem:[%s12819_s29 + $0x88] sm:$0xff]  }
 0x258   : > { %v6996_v10 = vor.u32 %v6994_v4, %v6992_v33  ;;  %v6993_v40 = vsel %vm557_vm1, %v6989_v21, %v6992_v33  ;;  %v7067_v33 = vshll.u32 %v13914_v24, 16 }
 0x259   : > { %10896 = vmatmul.mubr.msk.bf16.gmra.mrb[92].mxu1 %vm970_vm0, %v2175_v26  ;;  %v6978_v26 = vrot.slane %v6976_v34, 1  ;;  %v12597_v34 = vld [vmem:[%s12819_s29 + $0x78] sm:$0xff]  }
 0x25a   : > { %10907 = vmatprep.mubr.msk.bf16.mxu1 %vm970_vm0, %v12579_v2 }
 0x25b   : > { %11368 = vmatmul.mubr.msk.bf16.gmra.mrb[44].mxu0 %vm970_vm0, %v6923_v27  ;;  %v6982_v46 = vor.u32 %v6980_v44, %v6978_v26  ;;  %v6979_v30 = vsel %vm557_vm1, %v6975_v53, %v6978_v26  ;;  %v12590_v27 = vld [vmem:[%s12819_s29 + $0x40] sm:$0xff]   ;;  %v7053_v26 = vshll.u32 %v15118_v1, 16 }
 0x25c   : > { %11371 = vmatprep.mubr.msk.bf16.mxu0 %vm970_vm0, %v6930_v58  ;;  %v6997_v58 = vshll.u32 %v13833_v28, 16  ;;  %v7018_v28 = vshll.u32 %v13853_v7, 16 }
 0x25d   : > { %v6986_v2 = vsel %vm557_vm1, %v6982_v46, %v6985_v62 }
 0x25e   : > { %v6999_v9 = vrot.slane %v6997_v58, 1 }
 0x261   : > { %10908 = vmatmul.mubr.msk.bf16.vlgmr.msra.gmra.mrb[0].mxu1 %vm970_vm0, %v12580_v11  ;;  %v12592_v11 = vld [vmem:[%s12819_s29 + $0x50] sm:$0xff]  }
 0x262   : > { %11527 = vmatpush3.bf16.msra.mxu1 %v13792_v35  ;;  %10911 = vmatprep.mubr.msk.bf16.mxu1 %vm970_vm0, %v12581_v15  ;;  %v6950_v35 = vrot.slane %v6948_v6, 1  ;;  %v7000_v6 = vsel %vm557_vm1, %v6996_v10, %v6999_v9  ;;  %v7011_v15 = vshll.u32 %v13849_v55, 16 }
 0x263   : > { %11524 = vmatprep.subr.bf16.mxu1 %v12582_v42  ;;  %11372 = vmatmul.mubr.msk.bf16.gmra.mrb[48].mxu0 %vm970_vm0, %v6937_v48  ;;  %v7008_v48 = vshrl.u32 %v13837_v18, 16  ;;  %v7015_v18 = vshrl.u32 %v13849_v55, 16  ;;  %v7032_v55 = vshll.u32 %v13869_v36, 16 }
 0x264   : > { %11375 = vmatprep.mubr.msk.bf16.mxu0 %vm970_vm0, %v6944_v60  ;;  %v6954_v12 = vor.u32 %v6952_v38, %v6950_v35  ;;  %v6951_v32 = vsel %vm557_vm1, %v6947_v51, %v6950_v35  ;;  %v7003_v60 = vor.u32 %v7001_v43, %v6999_v9  ;;  %v7013_v45 = vrot.slane %v7011_v15, 1  ;;  %v12594_v51 = vld [vmem:[%s12819_s29 + $0x60] sm:$0xff]  }
 0x265   : > { %v7010_v38 = vor.u32 %v7008_v48, %v7006_v59  ;;  %v7034_v54 = vrot.slane %v7032_v55, 1  ;;  %v7071_v48 = vshrl.u32 %v13914_v24, 16 }
 0x266   : > { %11528 = vmatpush3.bf16.msra.mxu1 %v12582_v42  ;;  %v6958_v61 = vsel %vm557_vm1, %v6954_v12, %v6957_v19  ;;  %v12593_v42 = vld [vmem:[%s12819_s29 + $0x58] sm:$0xff]   ;;  %v7007_v35 = vsel %vm557_vm1, %v7003_v60, %v7006_v59  ;;  %v7022_v19 = vshrl.u32 %v13853_v7, 16  ;;  %v7017_v41 = vor.u32 %v7015_v18, %v7013_v45  ;;  %v12604_v18 = vld [vmem:[%s12819_s29 + $0xb0] sm:$0xff]  }
 0x267   : > { %11525 = vmatprep.subr.bf16.mxu1 %v12583_v22  ;;  %v7014_v12 = vsel %vm557_vm1, %v7010_v38, %v7013_v45  ;;  %v7029_v7 = vshrl.u32 %v13865_v3, 16  ;;  %v7081_v60 = vshll.u32 %v13932_v23, 16 }
 0x269   : > { %10912 = vmatmul.mubr.msk.bf16.gmra.mrb[4].mxu1 %vm970_vm0, %v12584_v13  ;;  %v7020_v13 = vrot.slane %v7018_v28, 1 }
 0x26a   : > { %10915 = vmatprep.mubr.msk.bf16.mxu1 %vm970_vm0, %v12585_v29  ;;  %11529 = vmatpush3.bf16.msra.mxu1 %v12583_v22  ;;  %v7025_v22 = vshll.u32 %v13865_v3, 16 }
 0x26b   : > { %11526 = vmatprep.subr.bf16.mxu1 %v12586_v0  ;;  %11376 = vmatmul.mubr.msk.bf16.gmra.mrb[52].mxu0 %vm970_vm0, %v6951_v32  ;;  %v7024_v32 = vor.u32 %v7022_v19, %v7020_v13 }
 0x26c   : > { %11379 = vmatprep.mubr.msk.bf16.mxu0 %vm970_vm0, %v6958_v61  ;;  %v7027_v29 = vrot.slane %v7025_v22, 1  ;;  %v7021_v61 = vsel %vm557_vm1, %v7017_v41, %v7020_v13 }
 0x26e   : > { %11530 = vmatpush3.bf16.msra.mxu1 %v12586_v0  ;;  %v7028_v25 = vsel %vm557_vm1, %v7024_v32, %v7027_v29  ;;  %v7036_v0 = vshrl.u32 %v13869_v36, 16  ;;  %v7031_v50 = vor.u32 %v7029_v7, %v7027_v29  ;;  %v7043_v36 = vshrl.u32 %v13881_v16, 16  ;;  %v12605_v32 = vld [vmem:[%s13256_s21] sm:$0xff]  }
 0x26f   : > { %v7783_v29 = vrot.slane %v12605_v32, 1 }
 0x270   : > { %v7038_v57 = vor.u32 %v7036_v0, %v7034_v54 }
 0x271   : > { %10916 = vmatmul.mubr.msk.bf16.gmra.mrb[8].mxu1 %vm970_vm0, %v12587_v52  ;;  %v7041_v52 = vrot.slane %v7039_v8, 1  ;;  %v12610_v8 = vld [vmem:[%s13256_s21 + $0x18] sm:$0xff]  }
 0x272   : > { %10919 = vmatprep.mubr.msk.bf16.mxu1 %vm970_vm0, %v12588_v17  ;;  %v7035_v17 = vsel %vm557_vm1, %v7031_v50, %v7034_v54  ;;  %v7788_v54 = vrot.slane %v12610_v8, 1  ;;  %v14279_v50 = vld [vmem:[%s12819_s29 + $0xc8] sm:$0xff]   ;;  %v12641_v8 = vld [vmem:[%s13256_s21 + $0x90] sm:$0xff]  }
 0x273   : > { %11380 = vmatmul.mubr.msk.bf16.gmra.mrb[56].mxu0 %vm970_vm0, %v6965_v56  ;;  %v15117_v56 = vld [vmem:[#allocation6_spill] sm:$0xff]  ;;  %v7045_v46 = vor.u32 %v7043_v36, %v7041_v52  ;;  %v14295_v36 = vld [vmem:[%s12819_s29 + $0xd8] sm:$0xff]  }
 0x274   : > { %11383 = vmatprep.mubr.msk.bf16.mxu0 %vm970_vm0, %v6972_v31  ;;  %v7046_v3 = vshll.u32 %v15117_v56, 16  ;;  %v7042_v31 = vsel %vm557_vm1, %v7038_v57, %v7041_v52  ;;  %v7050_v44 = vshrl.u32 %v15117_v56, 16  ;;  %v14285_v52 = vld [vmem:[%s12819_s29 + $0xd0] sm:$0xff]   ;;  %v12613_v56 = vld [vmem:[%s13256_s21 + $0x20] sm:$0xff]  }
 0x276   : > { %v7048_v53 = vrot.slane %v7046_v3, 1  ;;  %v7790_v3 = vrot.slane %v12613_v56, 1  ;;  %v14407_v56 = vld [vmem:[%s12819_s29 + $0x148] sm:$0xff]  }
 0x278   : > { %v7052_v62 = vor.u32 %v7050_v44, %v7048_v53  ;;  %v14301_v44 = vld [vmem:[%s12819_s29 + $0xe0] sm:$0xff]  }
 0x279   : > { %10920 = vmatmul.mubr.msk.bf16.gmra.mrb[12].mxu1 %vm970_vm0, %v12589_v63  ;;  %v7055_v63 = vrot.slane %v7053_v26, 1  ;;  %v12617_v26 = vld [vmem:[%s13256_s21 + $0x30] sm:$0xff]  }
 0x27a   : > { %10923 = vmatprep.mubr.msk.bf16.mxu1 %vm970_vm0, %v12590_v27  ;;  %v7049_v27 = vsel %vm557_vm1, %v7045_v46, %v7048_v53  ;;  %v7794_v53 = vrot.slane %v12617_v26, 1  ;;  %v12618_v46 = vld [vmem:[%s13256_s21 + $0x38] sm:$0xff]   ;;  %v12646_v26 = vld [vmem:[%s13256_s21 + $0xa8] sm:$0xff]  }
 0x27b   : > { %11384 = vmatmul.mubr.msk.bf16.gmra.mrb[60].mxu0 %vm970_vm0, %v6979_v30  ;;  %v15119_v30 = vld [vmem:[#allocation8_spill] sm:$0xff]  ;;  %v7056_v4 = vsel %vm557_vm1, %v7052_v62, %v7055_v63  ;;  %v7796_v62 = vrot.slane %v12618_v46, 1  ;;  %v14423_v46 = vld [vmem:[%s12819_s29 + $0x158] sm:$0xff]  }
 0x27c   : > { %11387 = vmatprep.mubr.msk.bf16.mxu0 %vm970_vm0, %v6986_v2  ;;  %v7060_v16 = vshll.u32 %v15119_v30, 16  ;;  %v7057_v2 = vshrl.u32 %v15118_v1, 16  ;;  %v7064_v58 = vshrl.u32 %v15119_v30, 16  ;;  %v14317_v30 = vld [vmem:[%s12819_s29 + $0xf0] sm:$0xff]  }
 0x27e   : > { %v7062_v21 = vrot.slane %v7060_v16, 1  ;;  %v7059_v10 = vor.u32 %v7057_v2, %v7055_v63  ;;  %v14311_v63 = vld [vmem:[%s12819_s29 + $0xe8] sm:$0xff]   ;;  %v7797_v16 = vsel %vm2078_vm2, %v7794_v53, %v7796_v62 }
 0x27f   : > { %v12622_v2 = vld [vmem:[%s13256_s21 + $0x48] sm:$0xff]  }
 0x280   : > { %v7066_v9 = vor.u32 %v7064_v58, %v7062_v21  ;;  %v7063_v43 = vsel %vm557_vm1, %v7059_v10, %v7062_v21  ;;  %v14327_v58 = vld [vmem:[%s12819_s29 + $0xf8] sm:$0xff]   ;;  %v14333_v21 = vld [vmem:[%s12819_s29 + $0x100] sm:$0xff]  }
 0x281   : > { %10924 = vmatmul.mubr.msk.bf16.gmra.mrb[16].mxu1 %vm970_vm0, %v12591_v14  ;;  %v7069_v14 = vrot.slane %v7067_v33, 1 }
 0x282   : > { %10927 = vmatprep.mubr.msk.bf16.mxu1 %vm970_vm0, %v12592_v11 }
 0x283   : > { %11388 = vmatmul.mubr.msk.bf16.gmra.mrb[64].mxu0 %vm970_vm0, %v6993_v40  ;;  %v15120_v40 = vld [vmem:[#allocation9_spill] sm:$0xff]  ;;  %v7070_v15 = vsel %vm557_vm1, %v7066_v9, %v7069_v14  ;;  %v7073_v45 = vor.u32 %v7071_v48, %v7069_v14  ;;  %v12625_v9 = vld [vmem:[%s13256_s21 + $0x50] sm:$0xff]  }
 0x284   : > { %11391 = vmatprep.mubr.msk.bf16.mxu0 %vm970_vm0, %v7000_v6  ;;  %v7074_v11 = vshll.u32 %v15120_v40, 16  ;;  %v12602_v6 = vld [vmem:[%s12819_s29 + $0xa0] sm:$0xff]   ;;  %v7078_v59 = vshrl.u32 %v15120_v40, 16  ;;  %v7802_v14 = vrot.slane %v12625_v9, 1  ;;  %v14441_v9 = vld [vmem:[%s12819_s29 + $0x168] sm:$0xff]  }
 0x286   : > { %v7076_v38 = vrot.slane %v7074_v11, 1  ;;  %v14343_v11 = vld [vmem:[%s12819_s29 + $0x108] sm:$0xff]  }
 0x288   : > { %v7080_v28 = vor.u32 %v7078_v59, %v7076_v38  ;;  %v7077_v24 = vsel %vm557_vm1, %v7073_v45, %v7076_v38  ;;  %v14359_v45 = vld [vmem:[%s12819_s29 + $0x118] sm:$0xff]  }
 0x289   : > { %10928 = vmatmul.mubr.msk.bf16.gmra.mrb[20].mxu1 %vm970_vm0, %v12593_v42  ;;  %v14251_v42 = vld [vmem:[%s13256_s21 + $0x180] ss:$0 sps:$4 sm:$0xff]  }
 0x28a   : > { %10931 = vmatprep.mubr.msk.bf16.mxu1 %vm970_vm0, %v12594_v51  ;;  %v12603_v51 = vld [vmem:[%s12819_s29 + $0xa8] sm:$0xff]   ;;  %v7089_v19 = vshll.u32 %v14251_v42, 16 }
 0x28b   : > { %11392 = vmatmul.mubr.msk.bf16.gmra.mrb[68].mxu0 %vm970_vm0, %v7007_v35  ;;  %v7083_v35 = vrot.slane %v7081_v60, 1  ;;  %v12630_v60 = vld [vmem:[%s13256_s21 + $0x68] sm:$0xff]  }
 0x28c   : > { %11395 = vmatprep.mubr.msk.bf16.mxu0 %vm970_vm0, %v7014_v12  ;;  %v7085_v12 = vshrl.u32 %v13932_v23, 16  ;;  %v7091_v41 = vrot.slane %v7089_v19, 1  ;;  %v7808_v38 = vrot.slane %v12630_v60, 1 }
 0x28d   : > { %v7084_v22 = vsel %vm557_vm1, %v7080_v28, %v7083_v35 }
 0x28e   : > { %v7087_v13 = vor.u32 %v7085_v12, %v7083_v35  ;;  %v14365_v35 = vld [vmem:[%s12819_s29 + $0x120] sm:$0xff]   ;;  %v12634_v12 = vld [vmem:[%s13256_s21 + $0x78] sm:$0xff]  }
 0x28f   : > { %v7812_v19 = vrot.slane %v12634_v12, 1  ;;  %v4089_v12 = vshll.u32 %v14295_v36, 16 }
 0x290   : > { %v7092_v23 = vsel %vm557_vm1, %v7087_v13, %v7091_v41  ;;  %v14381_v41 = vld [vmem:[%s12819_s29 + $0x130] sm:$0xff]  }
 0x291   : > { %10932 = vmatmul.mubr.msk.bf16.gmra.mrb[24].mxu1 %vm970_vm0, %v12595_v47  ;;  %v12606_v47 = vld [vmem:[%s13256_s21 + $0x8] sm:$0xff]  }
 0x292   : > { %10935 = vmatprep.mubr.msk.bf16.mxu1 %vm970_vm0, %v12596_v39  ;;  %v7784_v55 = vrot.slane %v12606_v47, 1  ;;  %v14269_v39 = vld [vmem:[%s12819_s29 + $0xc0] sm:$0xff]  }
 0x293   : > { %11396 = vmatmul.mubr.msk.bf16.gmra.mrb[72].mxu0 %vm970_vm0, %v7021_v61  ;;  %v12607_v61 = vld [vmem:[%s12819_s29 + $0xb8] sm:$0xff]  }
 0x294   : > { %11399 = vmatprep.mubr.msk.bf16.mxu0 %vm970_vm0, %v7028_v25  ;;  %v7785_v7 = vsel %vm2078_vm2, %v7783_v29, %v7784_v55  ;;  %v12609_v25 = vld [vmem:[%s13256_s21 + $0x10] sm:$0xff]   ;;  %v12637_v29 = vld [vmem:[%s13256_s21 + $0x80] sm:$0xff]  }
 0x295   : > { %v7786_v0 = vrot.slane %v12609_v25, 1  ;;  %v7814_v47 = vrot.slane %v12637_v29, 1  ;;  %v14397_v25 = vld [vmem:[%s12819_s29 + $0x140] sm:$0xff]  }
 0x297   : > { %v7787_v57 = vsel %vm2078_vm2, %v7784_v55, %v7786_v0  ;;  %v12638_v55 = vld [vmem:[%s13256_s21 + $0x88] sm:$0xff]  }
 0x299   : > { %10936 = vmatmul.mubr.msk.bf16.gmra.mrb[28].mxu1 %vm970_vm0, %v12597_v34  ;;  %v7789_v34 = vsel %vm2078_vm2, %v7786_v0, %v7788_v54 }
 0x29a   : > { %10939 = vmatprep.mubr.msk.bf16.mxu1 %vm970_vm0, %v12598_v37 }
 0x29b   : > { %11400 = vmatmul.mubr.msk.bf16.gmra.mrb[76].mxu0 %vm970_vm0, %v7035_v17  ;;  %v12614_v17 = vld [vmem:[%s13256_s21 + $0x28] sm:$0xff]  }
 0x29c   : > { %11403 = vmatprep.mubr.msk.bf16.mxu0 %vm970_vm0, %v7042_v31  ;;  %v7792_v37 = vrot.slane %v12614_v17, 1  ;;  %v7791_v31 = vsel %vm2078_vm2, %v7788_v54, %v7790_v3  ;;  %v7818_v54 = vrot.slane %v12641_v8, 1  ;;  %v14413_v17 = vld [vmem:[%s12819_s29 + $0x150] sm:$0xff]   ;;  %v4093_v8 = vshrl.u32 %v14295_v36, 16 }
 0x29e   : > { %v7793_v1 = vsel %vm2078_vm2, %v7790_v3, %v7792_v37 }
 0x2a1   : > { %10940 = vmatmul.mubr.msk.bf16.gmra.mrb[32].mxu1 %vm970_vm0, %v12599_v49  ;;  %v7795_v49 = vsel %vm2078_vm2, %v7792_v37, %v7794_v53  ;;  %v7824_v53 = vrot.slane %v12646_v26, 1 }
 0x2a2   : > { %10943 = vmatprep.mubr.msk.bf16.mxu1 %vm970_vm0, %v12600_v5 }
 0x2a3   : > { %11404 = vmatmul.mubr.msk.bf16.gmra.mrb[80].mxu0 %vm970_vm0, %v7049_v27  ;;  %v12621_v27 = vld [vmem:[%s13256_s21 + $0x40] sm:$0xff]  }
 0x2a4   : > { %11407 = vmatprep.mubr.msk.bf16.mxu0 %vm970_vm0, %v7056_v4  ;;  %v7798_v5 = vrot.slane %v12621_v27, 1  ;;  %v7800_v4 = vrot.slane %v12622_v2, 1  ;;  %v12649_v27 = vld [vmem:[%s13256_s21 + $0xb0] sm:$0xff]   ;;  %v12650_v2 = vld [vmem:[%s13256_s21 + $0xb8] sm:$0xff]  }
 0x2a6   : > { %v7799_v33 = vsel %vm2078_vm2, %v7796_v62, %v7798_v5  ;;  %v7801_v10 = vsel %vm2078_vm2, %v7798_v5, %v7800_v4  ;;  %v7826_v5 = vrot.slane %v12649_v27, 1  ;;  %v12658_v27 = vld [vmem:[%s13256_s21 + $0xe0] sm:$0xff]  }
 0x2a9   : > { %10944 = vmatmul.mubr.msk.bf16.gmra.mrb[36].mxu1 %vm970_vm0, %v12601_v20  ;;  %v12626_v20 = vld [vmem:[%s13256_s21 + $0x58] sm:$0xff]  }
 0x2aa   : > { %10947 = vmatprep.mubr.msk.bf16.mxu1 %vm970_vm0, %v12602_v6  ;;  %v7804_v40 = vrot.slane %v12626_v20, 1  ;;  %v14349_v6 = vld [vmem:[%s12819_s29 + $0x110] sm:$0xff]  }
 0x2ab   : > { %11408 = vmatmul.mubr.msk.bf16.gmra.mrb[84].mxu0 %vm970_vm0, %v7063_v43  ;;  %v7803_v43 = vsel %vm2078_vm2, %v7800_v4, %v7802_v14  ;;  %v7828_v4 = vrot.slane %v12650_v2, 1  ;;  %v14447_v20 = vld [vmem:[%s12819_s29 + $0x170] sm:$0xff]   ;;  %v4107_v2 = vshrl.u32 %v14311_v63, 16 }
 0x2ac   : > { %11411 = vmatprep.mubr.msk.bf16.mxu0 %vm970_vm0, %v7070_v15  ;;  %v7805_v48 = vsel %vm2078_vm2, %v7802_v14, %v7804_v40  ;;  %v12629_v15 = vld [vmem:[%s13256_s21 + $0x60] sm:$0xff]   ;;  %v7827_v14 = vsel %vm2078_vm2, %v7824_v53, %v7826_v5 }
 0x2ad   : > { %v7806_v59 = vrot.slane %v12629_v15, 1  ;;  %v4082_v15 = vshll.u32 %v14285_v52, 16 }
 0x2af   : > { %v7807_v28 = vsel %vm2078_vm2, %v7804_v40, %v7806_v59  ;;  %v7829_v40 = vsel %vm2078_vm2, %v7826_v5, %v7828_v4  ;;  %v7838_v5 = vrot.slane %v12658_v27, 1 }
 0x2b1   : > { %10948 = vmatmul.mubr.msk.bf16.gmra.mrb[40].mxu1 %vm970_vm0, %v12603_v51  ;;  %v7809_v51 = vsel %vm2078_vm2, %v7806_v59, %v7808_v38  ;;  %v12653_v59 = vld [vmem:[%s13256_s21 + $0xc0] sm:$0xff]  }
 0x2b2   : > { %10951 = vmatprep.mubr.msk.bf16.mxu1 %vm970_vm0, %v12604_v18  ;;  %v7830_v60 = vrot.slane %v12653_v59, 1 }
 0x2b3   : > { %11412 = vmatmul.mubr.msk.bf16.gmra.mrb[88].mxu0 %vm970_vm0, %v7077_v24  ;;  %v12633_v24 = vld [vmem:[%s13256_s21 + $0x70] sm:$0xff]  }
 0x2b4   : > { %11415 = vmatprep.mubr.msk.bf16.mxu0 %vm970_vm0, %v7084_v22  ;;  %v7810_v18 = vrot.slane %v12633_v24, 1  ;;  %v14375_v22 = vld [vmem:[%s12819_s29 + $0x128] sm:$0xff]  }
 0x2b6   : > { %v7811_v13 = vsel %vm2078_vm2, %v7808_v38, %v7810_v18  ;;  %v7813_v32 = vsel %vm2078_vm2, %v7810_v18, %v7812_v19  ;;  %v4079_v38 = vshrl.u32 %v14279_v50, 16  ;;  %v4086_v18 = vshrl.u32 %v14285_v52, 16 }
 0x2b9   : > { %10952 = vmatmul.mubr.msk.bf16.gmra.mrb[44].mxu1 %vm970_vm0, %v12607_v61  ;;  %v7816_v61 = vrot.slane %v12638_v55, 1  ;;  %v4091_v55 = vrot.slane %v4089_v12, 1 }
 0x2ba   : > { %10955 = vmatprep.mubr.msk.bf16.mxu1 %vm970_vm0, %v14269_v39 }
 0x2bb   : > { %11416 = vmatmul.mubr.msk.bf16.gmra.mrb[92].mxu0 %vm970_vm0, %v7092_v23  ;;  %v14391_v23 = vld [vmem:[%s12819_s29 + $0x138] sm:$0xff]   ;;  %v7817_v0 = vsel %vm2078_vm2, %v7814_v47, %v7816_v61  ;;  %v7819_v3 = vsel %vm2078_vm2, %v7816_v61, %v7818_v54  ;;  %v4095_v26 = vor.u32 %v4093_v8, %v4091_v55 }
 0x2bc   : > { %11427 = vmatprep.mubr.msk.bf16.mxu0 %vm970_vm0, %v7785_v7  ;;  %v7815_v7 = vsel %vm2078_vm2, %v7812_v19, %v7814_v47  ;;  %v14463_v19 = vld [vmem:[%s12819_s29 + $0x178] sm:$0xff]  }
 0x2c1   : > { %10956 = vmatmul.mubr.msk.bf16.gmra.mrb[48].mxu1 %vm970_vm0, %v14279_v50 }
 0x2c2   : > { %10959 = vmatprep.mubr.msk.bf16.mxu1 %vm970_vm0, %v14285_v52  ;;  %v4096_v52 = vshll.u32 %v14301_v44, 16 }
 0x2c3   : > { %11428 = vmatmul.mubr.msk.bf16.vlgmr.msra.gmra.mrb[0].mxu0 %vm970_vm0, %v7787_v57  ;;  %v12642_v57 = vld [vmem:[%s13256_s21 + $0x98] sm:$0xff]  }
 0x2c4   : > { %11431 = vmatprep.mubr.msk.bf16.mxu0 %vm970_vm0, %v7789_v34  ;;  %v7820_v34 = vrot.slane %v12642_v57, 1  ;;  %v12657_v57 = vld [vmem:[%s13256_s21 + $0xd8] sm:$0xff]  }
 0x2c6   : > { %v7821_v37 = vsel %vm2078_vm2, %v7818_v54, %v7820_v34 }
 0x2c9   : > { %10960 = vmatmul.mubr.msk.bf16.gmra.mrb[52].mxu1 %vm970_vm0, %v14295_v36 }
 0x2ca   : > { %10963 = vmatprep.mubr.msk.bf16.mxu1 %vm970_vm0, %v14301_v44 }
 0x2cb   : > { %11432 = vmatmul.mubr.msk.bf16.gmra.mrb[4].mxu0 %vm970_vm0, %v7791_v31  ;;  %v12645_v31 = vld [vmem:[%s13256_s21 + $0xa0] sm:$0xff]  }
 0x2cc   : > { %11435 = vmatprep.mubr.msk.bf16.mxu0 %vm970_vm0, %v7793_v1  ;;  %v7822_v1 = vrot.slane %v12645_v31, 1  ;;  %v4098_v31 = vrot.slane %v4096_v52, 1 }
 0x2ce   : > { %v7823_v62 = vsel %vm2078_vm2, %v7820_v34, %v7822_v1  ;;  %v7836_v34 = vrot.slane %v12657_v57, 1 }
 0x2d1   : > { %10964 = vmatmul.mubr.msk.bf16.gmra.mrb[56].mxu1 %vm970_vm0, %v14311_v63 }
 0x2d2   : > { %10967 = vmatprep.mubr.msk.bf16.mxu1 %vm970_vm0, %v14317_v30 }
 0x2d3   : > { %11436 = vmatmul.mubr.msk.bf16.gmra.mrb[8].mxu0 %vm970_vm0, %v7795_v49  ;;  %v14429_v49 = vld [vmem:[%s12819_s29 + $0x160] sm:$0xff]  }
 0x2d4   : > { %11439 = vmatprep.mubr.msk.bf16.mxu0 %vm970_vm0, %v7797_v16  ;;  %v7825_v16 = vsel %vm2078_vm2, %v7822_v1, %v7824_v53 }
 0x2d9   : > { %10968 = vmatmul.mubr.msk.bf16.gmra.mrb[60].mxu1 %vm970_vm0, %v14327_v58 }
 0x2da   : > { %10971 = vmatprep.mubr.msk.bf16.mxu1 %vm970_vm0, %v14333_v21 }
 0x2db   : > { %11440 = vmatmul.mubr.msk.bf16.gmra.mrb[12].mxu0 %vm970_vm0, %v7799_v33  ;;  %v4072_v33 = vshrl.u32 %v14269_v39, 16 }
 0x2dc   : > { %11443 = vmatprep.mubr.msk.bf16.mxu0 %vm970_vm0, %v7801_v10  ;;  %v4075_v10 = vshll.u32 %v14279_v50, 16 }
 0x2e1   : > { %10972 = vmatmul.mubr.msk.bf16.gmra.mrb[64].mxu1 %vm970_vm0, %v14343_v11 }
 0x2e2   : > { %10975 = vmatprep.mubr.msk.bf16.mxu1 %vm970_vm0, %v14349_v6 }
 0x2e3   : > { %11444 = vmatmul.mubr.msk.bf16.gmra.mrb[16].mxu0 %vm970_vm0, %v7803_v43  ;;  %v15121_v43 = vld [vmem:[#allocation2_spill] sm:$0xff] }
 0x2e4   : > { %11447 = vmatprep.mubr.msk.bf16.mxu0 %vm970_vm0, %v7805_v48  ;;  %v4074_v39 = vor.u32 %v4072_v33, %v15121_v43  ;;  %v4077_v48 = vrot.slane %v4075_v10, 1  ;;  %v12659_v33 = vld [vmem:[%s13256_s21 + $0xe8] sm:$0xff]  }
 0x2e5   : > { %v7840_v10 = vrot.slane %v12659_v33, 1 }
 0x2e6   : > { %v4081_v29 = vor.u32 %v4079_v38, %v4077_v48  ;;  %v12660_v38 = vld [vmem:[%s13256_s21 + $0xf0] sm:$0xff]  }
 0x2e9   : > { %10976 = vmatmul.mubr.msk.bf16.gmra.mrb[68].mxu1 %vm970_vm0, %v14359_v45 }
 0x2ea   : > { %10979 = vmatprep.mubr.msk.bf16.mxu1 %vm970_vm0, %v14365_v35 }
 0x2eb   : > { %11448 = vmatmul.mubr.msk.bf16.gmra.mrb[20].mxu0 %vm970_vm0, %v7807_v28  ;;  %v4078_v28 = vsel %vm557_vm1, %v4074_v39, %v4077_v48  ;;  %v7839_v39 = vsel %vm2078_vm2, %v7836_v34, %v7838_v5 }
 0x2ec   : > { %11451 = vmatprep.mubr.msk.bf16.mxu0 %vm970_vm0, %v7809_v51  ;;  %v12654_v51 = vld [vmem:[%s13256_s21 + $0xc8] sm:$0xff]  }
 0x2ed   : > { %v7832_v24 = vrot.slane %v12654_v51, 1  ;;  %v4121_v51 = vshrl.u32 %v14327_v58, 16 }
 0x2ef   : > { %v7833_v50 = vsel %vm2078_vm2, %v7830_v60, %v7832_v24 }
 0x2f1   : > { %10980 = vmatmul.mubr.msk.bf16.gmra.mrb[72].mxu1 %vm970_vm0, %v14375_v22 }
 0x2f2   : > { %10983 = vmatprep.mubr.msk.bf16.mxu1 %vm970_vm0, %v14381_v41 }
 0x2f3   : > { %11452 = vmatmul.mubr.msk.bf16.gmra.mrb[24].mxu0 %vm970_vm0, %v7811_v13  ;;  %v4084_v13 = vrot.slane %v4082_v15, 1 }
 0x2f4   : > { %11455 = vmatprep.mubr.msk.bf16.mxu0 %vm970_vm0, %v7813_v32  ;;  %v7831_v32 = vsel %vm2078_vm2, %v7828_v4, %v7830_v60  ;;  %v4124_v60 = vshll.u32 %v14333_v21, 16 }
 0x2f5   : > { %v4088_v47 = vor.u32 %v4086_v18, %v4084_v13  ;;  %v4085_v61 = vsel %vm557_vm1, %v4081_v29, %v4084_v13  ;;  %v12661_v18 = vld [vmem:[%s13256_s21 + $0xf8] sm:$0xff]   ;;  %v4128_v13 = vshrl.u32 %v14333_v21, 16 }
 0x2f6   : > { %v7844_v12 = vrot.slane %v12661_v18, 1  ;;  %v4126_v29 = vrot.slane %v4124_v60, 1  ;;  %v4166_v18 = vshll.u32 %v14381_v41, 16 }
 0x2f7   : > { %v4092_v54 = vsel %vm557_vm1, %v4088_v47, %v4091_v55 }
 0x2f8   : > { %v4130_v55 = vor.u32 %v4128_v13, %v4126_v29 }
 0x2f9   : > { %10984 = vmatmul.mubr.msk.bf16.gmra.mrb[76].mxu1 %vm970_vm0, %v14391_v23 }
 0x2fa   : > { %10987 = vmatprep.mubr.msk.bf16.mxu1 %vm970_vm0, %v14397_v25 }
 0x2fb   : > { %11456 = vmatmul.mubr.msk.bf16.gmra.mrb[28].mxu0 %vm970_vm0, %v7815_v7  ;;  %v12656_v7 = vld [vmem:[%s13256_s21 + $0xd0] sm:$0xff]  }
 0x2fc   : > { %11459 = vmatprep.mubr.msk.bf16.mxu0 %vm970_vm0, %v7817_v0  ;;  %v7834_v0 = vrot.slane %v12656_v7, 1  ;;  %v4138_v7 = vshll.u32 %v14349_v6, 16 }
 0x2fe   : > { %v7835_v1 = vsel %vm2078_vm2, %v7832_v24, %v7834_v0  ;;  %v7837_v36 = vsel %vm2078_vm2, %v7834_v0, %v7836_v34  ;;  %v4135_v34 = vshrl.u32 %v14343_v11, 16 }
 0x301   : > { %10988 = vmatmul.mubr.msk.bf16.gmra.mrb[80].mxu1 %vm970_vm0, %v14407_v56 }
 0x302   : > { %10991 = vmatprep.mubr.msk.bf16.mxu1 %vm970_vm0, %v14413_v17 }
 0x303   : > { %11460 = vmatmul.mubr.msk.bf16.gmra.mrb[32].mxu0 %vm970_vm0, %v7819_v3  ;;  %v4100_v3 = vshrl.u32 %v14301_v44, 16  ;;  %v4099_v44 = vsel %vm557_vm1, %v4095_v26, %v4098_v31  ;;  %v4142_v26 = vshrl.u32 %v14349_v6, 16 }
 0x304   : > { %11463 = vmatprep.mubr.msk.bf16.mxu0 %vm970_vm0, %v7821_v37  ;;  %v4103_v37 = vshll.u32 %v14311_v63, 16  ;;  %v7841_v63 = vsel %vm2078_vm2, %v7838_v5, %v7840_v10 }
 0x305   : > { %v4102_v53 = vor.u32 %v4100_v3, %v4098_v31  ;;  %v12663_v31 = vld [vmem:[%s13256_s21 + $0x108] sm:$0xff]  }
 0x309   : > { %10992 = vmatmul.mubr.msk.bf16.gmra.mrb[84].mxu1 %vm970_vm0, %v14423_v46 }
 0x30a   : > { %10995 = vmatprep.mubr.msk.bf16.mxu1 %vm970_vm0, %v14429_v49 }
 0x30b   : > { %11464 = vmatmul.mubr.msk.bf16.gmra.mrb[36].mxu0 %vm970_vm0, %v7823_v62  ;;  %v4105_v62 = vrot.slane %v4103_v37, 1 }
 0x30c   : > { %11467 = vmatprep.mubr.msk.bf16.mxu0 %vm970_vm0, %v7825_v16  ;;  %v4110_v16 = vshll.u32 %v14317_v30, 16 }
 0x30d   : > { %v4106_v4 = vsel %vm557_vm1, %v4102_v53, %v4105_v62  ;;  %v4109_v48 = vor.u32 %v4107_v2, %v4105_v62  ;;  %v4140_v53 = vrot.slane %v4138_v7, 1  ;;  %v4152_v2 = vshll.u32 %v14365_v35, 16 }
 0x30e   : > { %v4112_v43 = vrot.slane %v4110_v16, 1  ;;  %v4170_v7 = vshrl.u32 %v14381_v41, 16 }
 0x30f   : > { %v4154_v60 = vrot.slane %v4152_v2, 1  ;;  %v12669_v2 = vld [vmem:[%s13256_s21 + $0x138] sm:$0xff]  }
 0x311   : > { %10996 = vmatmul.mubr.msk.bf16.gmra.mrb[88].mxu1 %vm970_vm0, %v14441_v9 }
 0x312   : > { %10999 = vmatprep.mubr.msk.bf16.mxu1 %vm970_vm0, %v14447_v20 }
 0x313   : > { %11468 = vmatmul.mubr.msk.bf16.gmra.mrb[40].mxu0 %vm970_vm0, %v7827_v14  ;;  %v4114_v14 = vshrl.u32 %v14317_v30, 16  ;;  %v4113_v30 = vsel %vm557_vm1, %v4109_v48, %v4112_v43  ;;  %v12665_v48 = vld [vmem:[%s13256_s21 + $0x118] sm:$0xff]  }
 0x314   : > { %11471 = vmatprep.mubr.msk.bf16.mxu0 %vm970_vm0, %v7829_v40  ;;  %v4117_v40 = vshll.u32 %v14327_v58, 16 }
 0x315   : > { %v4116_v15 = vor.u32 %v4114_v14, %v4112_v43 }
 0x316   : > { %v4119_v59 = vrot.slane %v4117_v40, 1  ;;  %v4149_v40 = vshrl.u32 %v14359_v45, 16 }
 0x318   : > { %v4120_v24 = vsel %vm557_vm1, %v4116_v15, %v4119_v59  ;;  %v4123_v47 = vor.u32 %v4121_v51, %v4119_v59  ;;  %v4156_v15 = vshrl.u32 %v14365_v35, 16  ;;  %v4159_v59 = vshll.u32 %v14375_v22, 16 }
 0x319   : > { %11000 = vmatmul.mubr.msk.bf16.gmra.mrb[92].mxu1 %vm970_vm0, %v14463_v19 }
 0x31a   : > { %11059 = vmatprep.mubr.msk.bf16.mxu1 %vm970_vm0, %v4078_v28  ;;  %v7842_v28 = vrot.slane %v12660_v38, 1  ;;  %v4127_v8 = vsel %vm557_vm1, %v4123_v47, %v4126_v29  ;;  %v4161_v51 = vrot.slane %v4159_v59, 1 }
 0x31b   : > { %11472 = vmatmul.mubr.msk.bf16.gmra.mrb[44].mxu0 %vm970_vm0, %v7831_v32  ;;  %v4131_v32 = vshll.u32 %v14343_v11, 16 }
 0x31c   : > { %11475 = vmatprep.mubr.msk.bf16.mxu0 %vm970_vm0, %v7833_v50  ;;  %v7843_v50 = vsel %vm2078_vm2, %v7840_v10, %v7842_v28  ;;  %v7845_v58 = vsel %vm2078_vm2, %v7842_v28, %v7844_v12  ;;  %v12664_v10 = vld [vmem:[%s13256_s21 + $0x110] sm:$0xff]   ;;  %v4158_v28 = vor.u32 %v4156_v15, %v4154_v60 }
 0x31d   : > { %v4133_v52 = vrot.slane %v4131_v32, 1  ;;  %v7850_v14 = vrot.slane %v12664_v10, 1  ;;  %v12666_v32 = vld [vmem:[%s13256_s21 + $0x120] sm:$0xff]   ;;  %v4184_v10 = vshrl.u32 %v14397_v25, 16 }
 0x31e   : > { %v7854_v29 = vrot.slane %v12666_v32, 1  ;;  %v12671_v32 = vld [vmem:[%s13256_s21 + $0x148] sm:$0xff]  }
 0x31f   : > { %v4134_v37 = vsel %vm557_vm1, %v4130_v55, %v4133_v52  ;;  %v4137_v16 = vor.u32 %v4135_v34, %v4133_v52  ;;  %v12667_v55 = vld [vmem:[%s13256_s21 + $0x128] sm:$0xff]  }
 0x320   : > { %v7856_v52 = vrot.slane %v12667_v55, 1 }
 0x321   : > { %11060 = vmatmul.mubr.msk.bf16.vlgmr.msra.gmra.mrb[48].mxu1 %vm970_vm0, %v4085_v61  ;;  %v4141_v33 = vsel %vm557_vm1, %v4137_v16, %v4140_v53 }
 0x322   : > { %11063 = vmatprep.mubr.msk.bf16.mxu1 %vm970_vm0, %v4092_v54  ;;  %v12662_v54 = vld [vmem:[%s13256_s21 + $0x100] sm:$0xff]  }
 0x323   : > { %11476 = vmatmul.mubr.msk.bf16.gmra.mrb[48].mxu0 %vm970_vm0, %v7835_v1  ;;  %v7846_v57 = vrot.slane %v12662_v54, 1  ;;  %v7848_v1 = vrot.slane %v12663_v31, 1  ;;  %v4168_v54 = vrot.slane %v4166_v18, 1 }
 0x324   : > { %11479 = vmatprep.mubr.msk.bf16.mxu0 %vm970_vm0, %v7837_v36  ;;  %v4145_v36 = vshll.u32 %v14359_v45, 16 }
 0x325   : > { %v7847_v62 = vsel %vm2078_vm2, %v7844_v12, %v7846_v57  ;;  %v7849_v11 = vsel %vm2078_vm2, %v7846_v57, %v7848_v1 }
 0x326   : > { %v4147_v27 = vrot.slane %v4145_v36, 1 }
 0x328   : > { %v4151_v38 = vor.u32 %v4149_v40, %v4147_v27 }
 0x329   : > { %11064 = vmatmul.mubr.msk.bf16.gmra.mrb[52].mxu1 %vm970_vm0, %v4099_v44  ;;  %v4144_v44 = vor.u32 %v4142_v26, %v4140_v53  ;;  %v4180_v26 = vshll.u32 %v14397_v25, 16 }
 0x32a   : > { %11067 = vmatprep.mubr.msk.bf16.mxu1 %vm970_vm0, %v4106_v4  ;;  %v4155_v13 = vsel %vm557_vm1, %v4151_v38, %v4154_v60  ;;  %v4194_v60 = vshll.u32 %v14413_v17, 16 }
 0x32b   : > { %11480 = vmatmul.mubr.msk.bf16.gmra.mrb[52].mxu0 %vm970_vm0, %v7839_v39  ;;  %v4148_v39 = vsel %vm557_vm1, %v4144_v44, %v4147_v27  ;;  %v4182_v40 = vrot.slane %v4180_v26, 1 }
 0x32c   : > { %11483 = vmatprep.mubr.msk.bf16.mxu0 %vm970_vm0, %v7841_v63  ;;  %v7852_v63 = vrot.slane %v12665_v48, 1  ;;  %v4196_v55 = vrot.slane %v4194_v60, 1 }
 0x32e   : > { %v7853_v45 = vsel %vm2078_vm2, %v7850_v14, %v7852_v63  ;;  %v7855_v57 = vsel %vm2078_vm2, %v7852_v63, %v7854_v29  ;;  %v4186_v63 = vor.u32 %v4184_v10, %v4182_v40 }
 0x331   : > { %11068 = vmatmul.mubr.msk.bf16.gmra.mrb[56].mxu1 %vm970_vm0, %v4113_v30  ;;  %v7851_v30 = vsel %vm2078_vm2, %v7848_v1, %v7850_v14  ;;  %v4187_v14 = vshll.u32 %v14407_v56, 16 }
 0x332   : > { %11071 = vmatprep.mubr.msk.bf16.mxu1 %vm970_vm0, %v4120_v24 }
 0x333   : > { %11484 = vmatmul.mubr.msk.bf16.gmra.mrb[56].mxu0 %vm970_vm0, %v7843_v50  ;;  %v4163_v50 = vshrl.u32 %v14375_v22, 16  ;;  %v7857_v22 = vsel %vm2078_vm2, %v7854_v29, %v7856_v52  ;;  %v4189_v15 = vrot.slane %v4187_v14, 1  ;;  %v7864_v29 = vrot.slane %v12671_v32, 1  ;;  %v12675_v32 = vld [vmem:[%s13256_s21 + $0x168] sm:$0xff]  }
 0x334   : > { %v14512_v61 = vpop.f32.mrb[0].mxu1  ;;  %11487 = vmatprep.mubr.msk.bf16.mxu0 %vm970_vm0, %v7845_v58  ;;  %v4162_v58 = vsel %vm557_vm1, %v4158_v28, %v4161_v51 }
 0x335   : > { %v14515_v21 = vpop.f32.mrb[1].mxu1  ;;  %v4165_v34 = vor.u32 %v4163_v50, %v4161_v51  ;;  %v4191_v51 = vshrl.u32 %v14407_v56, 16  ;;  %v4198_v50 = vshrl.u32 %v14413_v17, 16 }
 0x336   : > { %v14518_v0 = vpop.f32.mrb[2].mxu1 }
 0x337   : > { %v14524_v3 = vpop.f32.mrb[3].mxu1  ;;  %v4169_v53 = vsel %vm557_vm1, %v4165_v34, %v4168_v54  ;;  %v4208_v34 = vshll.u32 %v14429_v49, 16 }
 0x339   : > { %11072 = vmatmul.mubr.msk.bf16.gmra.mrb[60].mxu1 %vm970_vm0, %v4127_v8  ;;  %v4173_v8 = vshll.u32 %v14391_v23, 16  ;;  %v4210_v10 = vrot.slane %v4208_v34, 1 }
 0x33a   : > { %11075 = vmatprep.mubr.msk.bf16.mxu1 %vm970_vm0, %v4134_v37  ;;  %v4172_v37 = vor.u32 %v4170_v7, %v4168_v54  ;;  %v4193_v7 = vor.u32 %v4191_v51, %v4189_v15 }
 0x33b   : > { %11488 = vmatmul.mubr.msk.bf16.gmra.mrb[60].mxu0 %vm970_vm0, %v7847_v62  ;;  %v4175_v31 = vrot.slane %v4173_v8, 1  ;;  %v12668_v62 = vld [vmem:[%s13256_s21 + $0x130] sm:$0xff]   ;;  %v4200_v8 = vor.u32 %v4198_v50, %v4196_v55  ;;  %v4226_v50 = vshrl.u32 %v14447_v20, 16 }
 0x33c   : > { %v14534_v5 = vpop.f32.mrb[4].mxu1  ;;  %11491 = vmatprep.mubr.msk.bf16.mxu0 %vm970_vm0, %v7849_v11  ;;  %v7858_v16 = vrot.slane %v12668_v62, 1  ;;  %v4177_v11 = vshrl.u32 %v14391_v23, 16 }
 0x33d   : > { %v14537_v6 = vpop.f32.mrb[5].mxu1  ;;  %v4176_v27 = vsel %vm557_vm1, %v4172_v37, %v4175_v31  ;;  %v4197_v37 = vsel %vm557_vm1, %v4193_v7, %v4196_v55 }
 0x33e   : > { %v14540_v4 = vpop.f32.mrb[6].mxu1  ;;  %v4179_v48 = vor.u32 %v4177_v11, %v4175_v31  ;;  %v12672_v31 = vld [vmem:[%s13256_s21 + $0x150] sm:$0xff]   ;;  %v12673_v11 = vld [vmem:[%s13256_s21 + $0x158] sm:$0xff]  }
 0x33f   : > { %v14546_v43 = vpop.f32.mrb[7].mxu1  ;;  %v7866_v26 = vrot.slane %v12672_v31, 1  ;;  %v12676_v31 = vld [vmem:[%s13256_s21 + $0x170] sm:$0xff]  }
 0x340   : > { %v4183_v38 = vsel %vm557_vm1, %v4179_v48, %v4182_v40 }
 0x341   : > { %11076 = vmatmul.mubr.msk.bf16.gmra.mrb[64].mxu1 %vm970_vm0, %v4141_v33  ;;  %v7860_v33 = vrot.slane %v12669_v2, 1  ;;  %v4212_v2 = vshrl.u32 %v14429_v49, 16  ;;  %v7867_v14 = vsel %vm2078_vm2, %v7864_v29, %v7866_v26 }
 0x342   : > { %11079 = vmatprep.mubr.msk.bf16.mxu1 %vm970_vm0, %v4148_v39  ;;  %v7859_v39 = vsel %vm2078_vm2, %v7856_v52, %v7858_v16 }
 0x343   : > { %11492 = vmatmul.mubr.msk.bf16.gmra.mrb[64].mxu0 %vm970_vm0, %v7851_v30  ;;  %v7861_v23 = vsel %vm2078_vm2, %v7858_v16, %v7860_v33 }
 0x344   : > { %v14556_v24 = vpop.f32.mrb[8].mxu1  ;;  %11495 = vmatprep.mubr.msk.bf16.mxu0 %vm970_vm0, %v7853_v45  ;;  %v12670_v45 = vld [vmem:[%s13256_s21 + $0x140] sm:$0xff]  }
 0x345   : > { %v14559_v35 = vpop.f32.mrb[9].mxu1  ;;  %v7862_v28 = vrot.slane %v12670_v45, 1 }
 0x346   : > { %v14562_v12 = vpop.f32.mrb[10].mxu1 }
 0x347   : > { %v14568_v47 = vpop.f32.mrb[11].mxu1  ;;  %v7863_v52 = vsel %vm2078_vm2, %v7860_v33, %v7862_v28  ;;  %v7865_v56 = vsel %vm2078_vm2, %v7862_v28, %v7864_v29  ;;  %v4215_v33 = vshll.u32 %v14441_v9, 16  ;;  %v4219_v28 = vshrl.u32 %v14441_v9, 16 }
 0x348   : > { %v7872_v29 = vrot.slane %v12675_v32, 1 }
 0x349   : > { %11080 = vmatmul.mubr.msk.bf16.gmra.mrb[68].mxu1 %vm970_vm0, %v4155_v13  ;;  %v4190_v13 = vsel %vm557_vm1, %v4186_v63, %v4189_v15  ;;  %v4217_v48 = vrot.slane %v4215_v33, 1  ;;  %v4222_v63 = vshll.u32 %v14447_v20, 16  ;;  %v12678_v33 = vld [vmem:[%s13256_s21 + $0x178] sm:$0xff]  }
 0x34a   : > { %11083 = vmatprep.mubr.msk.bf16.mxu1 %vm970_vm0, %v4162_v58  ;;  %v4201_v58 = vshll.u32 %v14423_v46, 16 }
 0x34b   : > { %11496 = vmatmul.mubr.msk.bf16.gmra.mrb[68].mxu0 %vm970_vm0, %v7855_v57  ;;  %v4224_v55 = vrot.slane %v4222_v63, 1  ;;  %v4221_v9 = vor.u32 %v4219_v28, %v4217_v48 }
 0x34c   : > { %v14578_v1 = vpop.f32.mrb[12].mxu1  ;;  %11499 = vmatprep.mubr.msk.bf16.mxu0 %vm970_vm0, %v7857_v22  ;;  %v4203_v54 = vrot.slane %v4201_v58, 1  ;;  %v4229_v58 = vshll.u32 %v14463_v19, 16 }
 0x34d   : > { %v14581_v41 = vpop.f32.mrb[13].mxu1 }
 0x34e   : > { %v14584_v36 = vpop.f32.mrb[14].mxu1  ;;  %v4204_v16 = vsel %vm557_vm1, %v4200_v8, %v4203_v54  ;;  %v4231_v8 = vrot.slane %v4229_v58, 1 }
 0x34f   : > { %v14590_v44 = vpop.f32.mrb[15].mxu1 }
 0x351   : > { %11084 = vmatmul.mubr.msk.bf16.gmra.mrb[72].mxu1 %vm970_vm0, %v4169_v53  ;;  %v4205_v53 = vshrl.u32 %v14423_v46, 16 }
 0x352   : > { %11087 = vmatprep.mubr.msk.bf16.mxu1 %vm970_vm0, %v4176_v27  ;;  %v7868_v27 = vrot.slane %v12673_v11, 1 }
 0x353   : > { %11500 = vmatmul.mubr.msk.bf16.gmra.mrb[72].mxu0 %vm970_vm0, %v7859_v39  ;;  %v4207_v40 = vor.u32 %v4205_v53, %v4203_v54  ;;  %v4214_v39 = vor.u32 %v4212_v2, %v4210_v10  ;;  %v4233_v53 = vshrl.u32 %v14463_v19, 16 }
 0x354   : > { %v14600_v59 = vpop.f32.mrb[16].mxu1  ;;  %11503 = vmatprep.mubr.msk.bf16.mxu0 %vm970_vm0, %v7861_v23  ;;  %v7869_v46 = vsel %vm2078_vm2, %v7866_v26, %v7868_v27  ;;  %v7874_v26 = vrot.slane %v12676_v31, 1  ;;  %v14730_v31 = vld [vmem:[%s15089_s2] ss:$0 sm:$0xff] }
 0x355   : > { %v14603_v25 = vpop.f32.mrb[17].mxu1  ;;  %v4211_v60 = vsel %vm557_vm1, %v4207_v40, %v4210_v10  ;;  %v7876_v10 = vrot.slane %v12678_v33, 1  ;;  %v4235_v40 = vor.u32 %v4233_v53, %v4231_v8 }
 0x356   : > { %v14606_v30 = vpop.f32.mrb[18].mxu1 }
 0x357   : > { %v14612_v18 = vpop.f32.mrb[19].mxu1 }
 0x359   : > { %11088 = vmatmul.mubr.msk.bf16.gmra.mrb[76].mxu1 %vm970_vm0, %v4183_v38  ;;  %v12674_v38 = vld [vmem:[%s13256_s21 + $0x160] sm:$0xff]   ;;  %s12300_s21 = smul.u32 192, %s15133_s13 }
 0x35a   : > { %11091 = vmatprep.mubr.msk.bf16.mxu1 %vm970_vm0, %v4190_v13  ;;  %v7870_v45 = vrot.slane %v12674_v38, 1  ;;  %v4218_v13 = vsel %vm557_vm1, %v4214_v39, %v4217_v48  ;;  %v7877_v39 = vsel %vm2078_vm2, %v7874_v26, %v7876_v10  ;;  %v7878_v38 = vrot.slane %v14251_v42, 1 }
 0x35b   : > { %11504 = vmatmul.mubr.msk.bf16.gmra.mrb[76].mxu0 %vm970_vm0, %v7863_v52 }
 0x35c   : > { %v14622_v57 = vpop.f32.mrb[20].mxu1  ;;  %11507 = vmatprep.mubr.msk.bf16.mxu0 %vm970_vm0, %v7865_v56  ;;  %v7871_v52 = vsel %vm2078_vm2, %v7868_v27, %v7870_v45  ;;  %v7873_v7 = vsel %vm2078_vm2, %v7870_v45, %v7872_v29  ;;  %v4228_v56 = vor.u32 %v4226_v50, %v4224_v55  ;;  %v7879_v28 = vsel %vm2078_vm2, %v7876_v10, %v7878_v38 }
 0x35d   : > { %v14625_v17 = vpop.f32.mrb[21].mxu1 }
 0x35e   : > { %v14628_v22 = vpop.f32.mrb[22].mxu1  ;;  %v4232_v2 = vsel %vm557_vm1, %v4228_v56, %v4231_v8 }
 0x35f   : > { %v14634_v62 = vpop.f32.mrb[23].mxu1 }
 0x361   : > { %11092 = vmatmul.mubr.msk.bf16.gmra.mrb[80].mxu1 %vm970_vm0, %v4197_v37  ;;  %v4225_v37 = vsel %vm557_vm1, %v4221_v9, %v4224_v55 }
 0x362   : > { %11095 = vmatprep.mubr.msk.bf16.mxu1 %vm970_vm0, %v4204_v16  ;;  %v12677_v16 = vld [vmem:[%s12819_s29 + $0x180] ss:$0 sps:$4 sm:$0xff]   ;;  %s184_s29 = smul.u32 96, %s12702_s12 }
 0x363   : > { %11508 = vmatmul.mubr.msk.bf16.gmra.mrb[80].mxu0 %vm970_vm0, %v7867_v14  ;;  %v4237_v11 = vshll.u32 %v12677_v16, 16  ;;  %v7875_v14 = vsel %vm2078_vm2, %v7872_v29, %v7874_v26 }
 0x364   : > { %v14644_v23 = vpop.f32.mrb[24].mxu1  ;;  %11511 = vmatprep.mubr.msk.bf16.mxu0 %vm970_vm0, %v7869_v46  ;;  %p187_p6 = scmp.lt.s32.totalorder %s184_s29, 191 }
 0x365   : > { %v14647_v49 = vpop.f32.mrb[25].mxu1  ;;  %v4239_v46 = vrot.slane %v4237_v11, 1 }
 0x366   : > { %v14650_v15 = vpop.f32.mrb[26].mxu1  ;;  %s15135_s29 = smov (!%p187_p6, %s184_s29), 191 }
 0x367   : > { %v14656_v51 = vpop.f32.mrb[27].mxu1  ;;  %s190_s26 = sadd.s32 %s12300_s21, %s15135_s29 }
 0x368   : > { %s9241_s30 = sshll.u32 %s190_s26, 2 }
 0x369   : > { %11096 = vmatmul.mubr.msk.bf16.gmra.mrb[84].mxu1 %vm970_vm0, %v4211_v60  ;;  %v4240_v60 = vsel %vm557_vm1, %v4235_v40, %v4239_v46  ;;  %s14739_s4 = scalar_lea.vmem %s15090_s3, %s9241_s30 }
 0x36a   : > { %11099 = vmatprep.mubr.msk.bf16.mxu1 %vm970_vm0, %v4218_v13 }
 0x36b   : > { %11512 = vmatmul.mubr.msk.bf16.gmra.mrb[84].mxu0 %vm970_vm0, %v7871_v52 }
 0x36c   : > { %v14666_v54 = vpop.f32.mrb[28].mxu1  ;;  %11515 = vmatprep.mubr.msk.bf16.mxu0 %vm970_vm0, %v7873_v7 }
 0x36d   : > { %v14669_v20 = vpop.f32.mrb[29].mxu1 }
 0x36e   : > { %v14671_v34 = vpop.f32.mrb[30].mxu1 }
 0x36f   : > { %v14678_v27 = vpop.f32.mrb[31].mxu1 }
 0x371   : > { %11100 = vmatmul.mubr.msk.bf16.gmra.mrb[88].mxu1 %vm970_vm0, %v4225_v37 }
 0x372   : > { %11103 = vmatprep.mubr.msk.bf16.mxu1 %vm970_vm0, %v4232_v2 }
 0x373   : > { %11516 = vmatmul.mubr.msk.bf16.gmra.mrb[88].mxu0 %vm970_vm0, %v7875_v14 }
 0x374   : > { %v14686_v48 = vpop.f32.mrb[32].mxu1  ;;  %11519 = vmatprep.mubr.msk.bf16.mxu0 %vm970_vm0, %v7877_v39 }
 0x375   : > { %v14689_v19 = vpop.f32.mrb[33].mxu1 }
 0x376   : > { %v14691_v63 = vpop.f32.mrb[34].mxu1 }
 0x377   : > { %v14696_v45 = vpop.f32.mrb[35].mxu1 }
 0x379   : > { %11104 = vmatmul.mubr.msk.bf16.gmra.mrb[92].mxu1 %vm970_vm0, %v4240_v60 }
 0x37b   : > { %11520 = vmatmul.mubr.msk.bf16.gmra.mrb[92].mxu0 %vm970_vm0, %v7879_v28 }
 0x37c   : > { %v14700_v13 = vpop.f32.mrb[36].mxu1 }
 0x37d   : > { %v14703_v32 = vpop.f32.mrb[37].mxu1 }
 0x37e   : > { %v14705_v29 = vpop.f32.mrb[38].mxu1 }
 0x37f   : > { %v14707_v50 = vpop.f32.mrb[39].mxu1 }
 0x384   : > { %v14709_v58 = vpop.f32.mrb[40].mxu1 }
 0x385   : > { %v14711_v42 = vpop.f32.mrb[41].mxu1 }
 0x386   : > { %v14713_v55 = vpop.f32.mrb[42].mxu1 }
 0x387   : > { %v14715_v52 = vpop.f32.mrb[43].mxu1 }
 0x38c   : > { %v14718_v9 = vpop.f32.mrb[44].mxu1 }
 0x38d   : > { %v14720_v7 = vpop.f32.mrb[45].mxu1 }
 0x38e   : > { %v14722_v56 = vpop.f32.mrb[46].mxu1 }
 0x38f   : > { %v14724_v8 = vpop.f32.mrb[47].mxu1 }
 0x396   : > { %v11429_v37 = vpop.f32.mrb[0].mxu0 }
 0x397   : > { %v11531_v26 = vadd.f32 %v11429_v37, %v14512_v61  ;;  %v8082_v53 = vpop.f32.mrb[1].mxu0 }
 0x398   : > { %v11532_v16 = vadd.f32 %v8082_v53, %v14515_v21  ;;  %v11430_v11 = vpop.f32.mrb[2].mxu0 }
 0x399   : > { %v8570_v2 = vadd.f32 %v11531_v26, %v14730_v31  ;;  %v11533_v33 = vadd.f32 %v11430_v11, %v14518_v0  ;;  %v8085_v10 = vpop.f32.mrb[3].mxu0 }
 0x39a   : > { %v8568_v61 = vadd.f32 %v11532_v16, %v14730_v31  ;;  %v11534_v21 = vadd.f32 %v8085_v10, %v14524_v3 }
 0x39b   : > { %v10025_v14 = vpack.c.bf16 %v8570_v2, %v8570_v2  ;;  %v8571_v40 = vadd.f32 %v11533_v33, %v14730_v31 }
 0x39c   : > { %v10023_v46 = vpack.c.bf16 %v8568_v61, %v8568_v61  ;;  %v8569_v0 = vadd.f32 %v11534_v21, %v14730_v31 }
 0x39d   : > { %9051 = vst.msk [vmem:[%s14739_s4 + $0x8] sm:$0xf] %vm9048_vm3, %v10025_v14  ;;  %v10026_v39 = vpack.c.bf16 %v8571_v40, %v8571_v40 }
 0x39e   : > { %9049 = vst.msk [vmem:[%s14739_s4] sm:$0xf] %vm9048_vm3, %v10023_v46  ;;  %v10024_v60 = vpack.c.bf16 %v8569_v0, %v8569_v0  ;;  %v11433_v38 = vpop.f32.mrb[4].mxu0 }
 0x39f   : > { %9052 = vst.msk [vmem:[%s14739_s4 + $0xc] sm:$0xf] %vm9048_vm3, %v10026_v39  ;;  %v11535_v28 = vadd.f32 %v11433_v38, %v14534_v5  ;;  %v8098_v3 = vpop.f32.mrb[5].mxu0 }
 0x3a0   : > { %9050 = vst.msk [vmem:[%s14739_s4 + $0x4] sm:$0xf] %vm9048_vm3, %v10024_v60  ;;  %v11536_v37 = vadd.f32 %v8098_v3, %v14537_v6  ;;  %v11434_v26 = vpop.f32.mrb[6].mxu0 }
 0x3a1   : > { %v8574_v53 = vadd.f32 %v11535_v28, %v14730_v31  ;;  %v11537_v16 = vadd.f32 %v11434_v26, %v14540_v4  ;;  %v8101_v11 = vpop.f32.mrb[7].mxu0 }
 0x3a2   : > { %v8572_v2 = vadd.f32 %v11536_v37, %v14730_v31  ;;  %v11538_v33 = vadd.f32 %v8101_v11, %v14546_v43 }
 0x3a3   : > { %v10029_v10 = vpack.c.bf16 %v8574_v53, %v8574_v53  ;;  %v8575_v5 = vadd.f32 %v11537_v16, %v14730_v31 }
 0x3a4   : > { %v10027_v61 = vpack.c.bf16 %v8572_v2, %v8572_v2  ;;  %v8573_v21 = vadd.f32 %v11538_v33, %v14730_v31 }
 0x3a5   : > { %9055 = vst.msk [vmem:[%s14739_s4 + $0x18] sm:$0xf] %vm9048_vm3, %v10029_v10  ;;  %v10030_v6 = vpack.c.bf16 %v8575_v5, %v8575_v5 }
 0x3a6   : > { %9053 = vst.msk [vmem:[%s14739_s4 + $0x10] sm:$0xf] %vm9048_vm3, %v10027_v61  ;;  %v10028_v14 = vpack.c.bf16 %v8573_v21, %v8573_v21  ;;  %v11437_v40 = vpop.f32.mrb[8].mxu0 }
 0x3a7   : > { %9056 = vst.msk [vmem:[%s14739_s4 + $0x1c] sm:$0xf] %vm9048_vm3, %v10030_v6  ;;  %v11539_v4 = vadd.f32 %v11437_v40, %v14556_v24  ;;  %v8114_v43 = vpop.f32.mrb[9].mxu0 }
 0x3a8   : > { %9054 = vst.msk [vmem:[%s14739_s4 + $0x14] sm:$0xf] %vm9048_vm3, %v10028_v14  ;;  %v11540_v46 = vadd.f32 %v8114_v43, %v14559_v35  ;;  %v11438_v0 = vpop.f32.mrb[10].mxu0 }
 0x3a9   : > { %v8578_v39 = vadd.f32 %v11539_v4, %v14730_v31  ;;  %v11541_v60 = vadd.f32 %v11438_v0, %v14562_v12  ;;  %v8117_v38 = vpop.f32.mrb[11].mxu0 }
 0x3aa   : > { %v8576_v28 = vadd.f32 %v11540_v46, %v14730_v31  ;;  %v11542_v3 = vadd.f32 %v8117_v38, %v14568_v47 }
 0x3ab   : > { %v10033_v37 = vpack.c.bf16 %v8578_v39, %v8578_v39  ;;  %v8579_v24 = vadd.f32 %v11541_v60, %v14730_v31 }
 0x3ac   : > { %v10031_v26 = vpack.c.bf16 %v8576_v28, %v8576_v28  ;;  %v8577_v53 = vadd.f32 %v11542_v3, %v14730_v31 }
 0x3ad   : > { %9059 = vst.msk [vmem:[%s14739_s4 + $0x28] sm:$0xf] %vm9048_vm3, %v10033_v37  ;;  %v10034_v35 = vpack.c.bf16 %v8579_v24, %v8579_v24 }
 0x3ae   : > { %9057 = vst.msk [vmem:[%s14739_s4 + $0x20] sm:$0xf] %vm9048_vm3, %v10031_v26  ;;  %v10032_v16 = vpack.c.bf16 %v8577_v53, %v8577_v53  ;;  %v11441_v11 = vpop.f32.mrb[12].mxu0 }
 0x3af   : > { %9060 = vst.msk [vmem:[%s14739_s4 + $0x2c] sm:$0xf] %vm9048_vm3, %v10034_v35  ;;  %v11543_v12 = vadd.f32 %v11441_v11, %v14578_v1  ;;  %v8130_v47 = vpop.f32.mrb[13].mxu0 }
 0x3b0   : > { %9058 = vst.msk [vmem:[%s14739_s4 + $0x24] sm:$0xf] %vm9048_vm3, %v10032_v16  ;;  %v11544_v2 = vadd.f32 %v8130_v47, %v14581_v41  ;;  %v11442_v33 = vpop.f32.mrb[14].mxu0 }
 0x3b1   : > { %v8582_v10 = vadd.f32 %v11543_v12, %v14730_v31  ;;  %v11545_v5 = vadd.f32 %v11442_v33, %v14584_v36  ;;  %v8133_v61 = vpop.f32.mrb[15].mxu0 }
 0x3b2   : > { %v8580_v21 = vadd.f32 %v11544_v2, %v14730_v31  ;;  %v11546_v6 = vadd.f32 %v8133_v61, %v14590_v44 }
 0x3b3   : > { %v10037_v14 = vpack.c.bf16 %v8582_v10, %v8582_v10  ;;  %v8583_v1 = vadd.f32 %v11545_v5, %v14730_v31 }
 0x3b4   : > { %v10035_v40 = vpack.c.bf16 %v8580_v21, %v8580_v21  ;;  %v8581_v4 = vadd.f32 %v11546_v6, %v14730_v31 }
 0x3b5   : > { %9063 = vst.msk [vmem:[%s14739_s4 + $0x38] sm:$0xf] %vm9048_vm3, %v10037_v14  ;;  %v10038_v41 = vpack.c.bf16 %v8583_v1, %v8583_v1 }
 0x3b6   : > { %9061 = vst.msk [vmem:[%s14739_s4 + $0x30] sm:$0xf] %vm9048_vm3, %v10035_v40  ;;  %v10036_v43 = vpack.c.bf16 %v8581_v4, %v8581_v4  ;;  %v11445_v46 = vpop.f32.mrb[16].mxu0 }
 0x3b7   : > { %9064 = vst.msk [vmem:[%s14739_s4 + $0x3c] sm:$0xf] %vm9048_vm3, %v10038_v41  ;;  %v11547_v36 = vadd.f32 %v11445_v46, %v14600_v59  ;;  %v8146_v44 = vpop.f32.mrb[17].mxu0 }
 0x3b8   : > { %9062 = vst.msk [vmem:[%s14739_s4 + $0x34] sm:$0xf] %vm9048_vm3, %v10036_v43  ;;  %v11548_v0 = vadd.f32 %v8146_v44, %v14603_v25  ;;  %v11446_v39 = vpop.f32.mrb[18].mxu0 }
 0x3b9   : > { %v8586_v60 = vadd.f32 %v11547_v36, %v14730_v31  ;;  %v11549_v38 = vadd.f32 %v11446_v39, %v14606_v30  ;;  %v8149_v28 = vpop.f32.mrb[19].mxu0 }
 0x3ba   : > { %v8584_v3 = vadd.f32 %v11548_v0, %v14730_v31  ;;  %v11550_v37 = vadd.f32 %v8149_v28, %v14612_v18 }
 0x3bb   : > { %v10041_v24 = vpack.c.bf16 %v8586_v60, %v8586_v60  ;;  %v8587_v59 = vadd.f32 %v11549_v38, %v14730_v31 }
 0x3bc   : > { %v10039_v26 = vpack.c.bf16 %v8584_v3, %v8584_v3  ;;  %v8585_v53 = vadd.f32 %v11550_v37, %v14730_v31 }
 0x3bd   : > { %9067 = vst.msk [vmem:[%s14739_s4 + $0x48] sm:$0xf] %vm9048_vm3, %v10041_v24  ;;  %v10042_v25 = vpack.c.bf16 %v8587_v59, %v8587_v59 }
 0x3be   : > { %9065 = vst.msk [vmem:[%s14739_s4 + $0x40] sm:$0xf] %vm9048_vm3, %v10039_v26  ;;  %v10040_v35 = vpack.c.bf16 %v8585_v53, %v8585_v53  ;;  %v11449_v16 = vpop.f32.mrb[20].mxu0 }
 0x3bf   : > { %9068 = vst.msk [vmem:[%s14739_s4 + $0x4c] sm:$0xf] %vm9048_vm3, %v10042_v25  ;;  %v11551_v30 = vadd.f32 %v11449_v16, %v14622_v57  ;;  %v8162_v18 = vpop.f32.mrb[21].mxu0 }
 0x3c0   : > { %9066 = vst.msk [vmem:[%s14739_s4 + $0x44] sm:$0xf] %vm9048_vm3, %v10040_v35  ;;  %v11552_v11 = vadd.f32 %v8162_v18, %v14625_v17  ;;  %v11450_v12 = vpop.f32.mrb[22].mxu0 }
 0x3c1   : > { %v8590_v47 = vadd.f32 %v11551_v30, %v14730_v31  ;;  %v11553_v2 = vadd.f32 %v11450_v12, %v14628_v22  ;;  %v8165_v33 = vpop.f32.mrb[23].mxu0 }
 0x3c2   : > { %v8588_v10 = vadd.f32 %v11552_v11, %v14730_v31  ;;  %v11554_v5 = vadd.f32 %v8165_v33, %v14634_v62 }
 0x3c3   : > { %v10045_v61 = vpack.c.bf16 %v8590_v47, %v8590_v47  ;;  %v8591_v57 = vadd.f32 %v11553_v2, %v14730_v31 }
 0x3c4   : > { %v10043_v21 = vpack.c.bf16 %v8588_v10, %v8588_v10  ;;  %v8589_v6 = vadd.f32 %v11554_v5, %v14730_v31 }
 0x3c5   : > { %9071 = vst.msk [vmem:[%s14739_s4 + $0x58] sm:$0xf] %vm9048_vm3, %v10045_v61  ;;  %v10046_v17 = vpack.c.bf16 %v8591_v57, %v8591_v57 }
 0x3c6   : > { %9069 = vst.msk [vmem:[%s14739_s4 + $0x50] sm:$0xf] %vm9048_vm3, %v10043_v21  ;;  %v10044_v14 = vpack.c.bf16 %v8589_v6, %v8589_v6  ;;  %v11453_v1 = vpop.f32.mrb[24].mxu0 }
 0x3c7   : > { %9072 = vst.msk [vmem:[%s14739_s4 + $0x5c] sm:$0xf] %vm9048_vm3, %v10046_v17  ;;  %v11555_v22 = vadd.f32 %v11453_v1, %v14644_v23  ;;  %v8178_v62 = vpop.f32.mrb[25].mxu0 }
 0x3c8   : > { %9070 = vst.msk [vmem:[%s14739_s4 + $0x54] sm:$0xf] %vm9048_vm3, %v10044_v14  ;;  %v11556_v40 = vadd.f32 %v8178_v62, %v14647_v49  ;;  %v11454_v4 = vpop.f32.mrb[26].mxu0 }
 0x3c9   : > { %v8594_v41 = vadd.f32 %v11555_v22, %v14730_v31  ;;  %v11557_v43 = vadd.f32 %v11454_v4, %v14650_v15  ;;  %v8181_v46 = vpop.f32.mrb[27].mxu0 }
 0x3ca   : > { %v8592_v36 = vadd.f32 %v11556_v40, %v14730_v31  ;;  %v11558_v44 = vadd.f32 %v8181_v46, %v14656_v51 }
 0x3cb   : > { %v10049_v0 = vpack.c.bf16 %v8594_v41, %v8594_v41  ;;  %v8595_v23 = vadd.f32 %v11557_v43, %v14730_v31 }
 0x3cc   : > { %v10047_v39 = vpack.c.bf16 %v8592_v36, %v8592_v36  ;;  %v8593_v60 = vadd.f32 %v11558_v44, %v14730_v31 }
 0x3cd   : > { %9075 = vst.msk [vmem:[%s14739_s4 + $0x68] sm:$0xf] %vm9048_vm3, %v10049_v0  ;;  %v10050_v49 = vpack.c.bf16 %v8595_v23, %v8595_v23 }
 0x3ce   : > { %9073 = vst.msk [vmem:[%s14739_s4 + $0x60] sm:$0xf] %vm9048_vm3, %v10047_v39  ;;  %v10048_v38 = vpack.c.bf16 %v8593_v60, %v8593_v60  ;;  %v11457_v28 = vpop.f32.mrb[28].mxu0 }
 0x3cf   : > { %9076 = vst.msk [vmem:[%s14739_s4 + $0x6c] sm:$0xf] %vm9048_vm3, %v10050_v49  ;;  %v11559_v15 = vadd.f32 %v11457_v28, %v14666_v54  ;;  %v8194_v51 = vpop.f32.mrb[29].mxu0 }
 0x3d0   : > { %9074 = vst.msk [vmem:[%s14739_s4 + $0x64] sm:$0xf] %vm9048_vm3, %v10048_v38  ;;  %v11560_v3 = vadd.f32 %v8194_v51, %v14669_v20  ;;  %v11458_v37 = vpop.f32.mrb[30].mxu0 }
 0x3d1   : > { %v8598_v24 = vadd.f32 %v11559_v15, %v14730_v31  ;;  %v11561_v59 = vadd.f32 %v11458_v37, %v14671_v34  ;;  %v8197_v26 = vpop.f32.mrb[31].mxu0 }
 0x3d2   : > { %v8596_v53 = vadd.f32 %v11560_v3, %v14730_v31  ;;  %v11562_v25 = vadd.f32 %v8197_v26, %v14678_v27 }
 0x3d3   : > { %v10053_v35 = vpack.c.bf16 %v8598_v24, %v8598_v24  ;;  %v8599_v54 = vadd.f32 %v11561_v59, %v14730_v31 }
 0x3d4   : > { %v10051_v16 = vpack.c.bf16 %v8596_v53, %v8596_v53  ;;  %v8597_v30 = vadd.f32 %v11562_v25, %v14730_v31 }
 0x3d5   : > { %9079 = vst.msk [vmem:[%s14739_s4 + $0x78] sm:$0xf] %vm9048_vm3, %v10053_v35  ;;  %v10054_v20 = vpack.c.bf16 %v8599_v54, %v8599_v54 }
 0x3d6   : > { %9077 = vst.msk [vmem:[%s14739_s4 + $0x70] sm:$0xf] %vm9048_vm3, %v10051_v16  ;;  %v10052_v18 = vpack.c.bf16 %v8597_v30, %v8597_v30  ;;  %v11461_v11 = vpop.f32.mrb[32].mxu0 }
 0x3d7   : > { %9080 = vst.msk [vmem:[%s14739_s4 + $0x7c] sm:$0xf] %vm9048_vm3, %v10054_v20  ;;  %v11563_v34 = vadd.f32 %v11461_v11, %v14686_v48  ;;  %v8210_v27 = vpop.f32.mrb[33].mxu0 }
 0x3d8   : > { %9078 = vst.msk [vmem:[%s14739_s4 + $0x74] sm:$0xf] %vm9048_vm3, %v10052_v18  ;;  %v11564_v12 = vadd.f32 %v8210_v27, %v14689_v19  ;;  %v11462_v47 = vpop.f32.mrb[34].mxu0 }
 0x3d9   : > { %v8602_v2 = vadd.f32 %v11563_v34, %v14730_v31  ;;  %v11565_v33 = vadd.f32 %v11462_v47, %v14691_v63  ;;  %v8213_v10 = vpop.f32.mrb[35].mxu0 }
 0x3da   : > { %v8600_v5 = vadd.f32 %v11564_v12, %v14730_v31  ;;  %v11566_v61 = vadd.f32 %v8213_v10, %v14696_v45 }
 0x3db   : > { %v10057_v57 = vpack.c.bf16 %v8602_v2, %v8602_v2  ;;  %v8603_v48 = vadd.f32 %v11565_v33, %v14730_v31 }
 0x3dc   : > { %v10055_v21 = vpack.c.bf16 %v8600_v5, %v8600_v5  ;;  %v8601_v6 = vadd.f32 %v11566_v61, %v14730_v31 }
 0x3dd   : > { %9083 = vst.msk [vmem:[%s14739_s4 + $0x88] sm:$0xf] %vm9048_vm3, %v10057_v57  ;;  %v10058_v19 = vpack.c.bf16 %v8603_v48, %v8603_v48 }
 0x3de   : > { %9081 = vst.msk [vmem:[%s14739_s4 + $0x80] sm:$0xf] %vm9048_vm3, %v10055_v21  ;;  %v10056_v17 = vpack.c.bf16 %v8601_v6, %v8601_v6  ;;  %v11465_v14 = vpop.f32.mrb[36].mxu0 }
 0x3df   : > { %9084 = vst.msk [vmem:[%s14739_s4 + $0x8c] sm:$0xf] %vm9048_vm3, %v10058_v19  ;;  %v11567_v63 = vadd.f32 %v11465_v14, %v14700_v13  ;;  %v8226_v45 = vpop.f32.mrb[37].mxu0 }
 0x3e0   : > { %9082 = vst.msk [vmem:[%s14739_s4 + $0x84] sm:$0xf] %vm9048_vm3, %v10056_v17  ;;  %v11568_v1 = vadd.f32 %v8226_v45, %v14703_v32  ;;  %v11466_v22 = vpop.f32.mrb[38].mxu0 }
 0x3e1   : > { %v8606_v62 = vadd.f32 %v11567_v63, %v14730_v31  ;;  %v11569_v40 = vadd.f32 %v11466_v22, %v14705_v29  ;;  %v8229_v4 = vpop.f32.mrb[39].mxu0 }
 0x3e2   : > { %v8604_v41 = vadd.f32 %v11568_v1, %v14730_v31  ;;  %v11570_v43 = vadd.f32 %v8229_v4, %v14707_v50 }
 0x3e3   : > { %v10061_v46 = vpack.c.bf16 %v8606_v62, %v8606_v62  ;;  %v8607_v13 = vadd.f32 %v11569_v40, %v14730_v31 }
 0x3e4   : > { %v10059_v36 = vpack.c.bf16 %v8604_v41, %v8604_v41  ;;  %v8605_v44 = vadd.f32 %v11570_v43, %v14730_v31 }
 0x3e5   : > { %9087 = vst.msk [vmem:[%s14739_s4 + $0x98] sm:$0xf] %vm9048_vm3, %v10061_v46  ;;  %v10062_v32 = vpack.c.bf16 %v8607_v13, %v8607_v13 }
 0x3e6   : > { %9085 = vst.msk [vmem:[%s14739_s4 + $0x90] sm:$0xf] %vm9048_vm3, %v10059_v36  ;;  %v10060_v0 = vpack.c.bf16 %v8605_v44, %v8605_v44  ;;  %v11469_v23 = vpop.f32.mrb[40].mxu0 }
 0x3e7   : > { %9088 = vst.msk [vmem:[%s14739_s4 + $0x9c] sm:$0xf] %vm9048_vm3, %v10062_v32  ;;  %v11571_v29 = vadd.f32 %v11469_v23, %v14709_v58  ;;  %v8242_v50 = vpop.f32.mrb[41].mxu0 }
 0x3e8   : > { %9086 = vst.msk [vmem:[%s14739_s4 + $0x94] sm:$0xf] %vm9048_vm3, %v10060_v0  ;;  %v11572_v39 = vadd.f32 %v8242_v50, %v14711_v42  ;;  %v11470_v60 = vpop.f32.mrb[42].mxu0 }
 0x3e9   : > { %v8610_v49 = vadd.f32 %v11571_v29, %v14730_v31  ;;  %v11573_v38 = vadd.f32 %v11470_v60, %v14713_v55  ;;  %v8245_v28 = vpop.f32.mrb[43].mxu0 }
 0x3ea   : > { %v8608_v15 = vadd.f32 %v11572_v39, %v14730_v31  ;;  %v11574_v51 = vadd.f32 %v8245_v28, %v14715_v52 }
 0x3eb   : > { %v10065_v3 = vpack.c.bf16 %v8610_v49, %v8610_v49  ;;  %v8611_v58 = vadd.f32 %v11573_v38, %v14730_v31 }
 0x3ec   : > { %v10063_v37 = vpack.c.bf16 %v8608_v15, %v8608_v15  ;;  %v8609_v24 = vadd.f32 %v11574_v51, %v14730_v31 }
 0x3ed   : > { %9091 = vst.msk [vmem:[%s14739_s4 + $0xa8] sm:$0xf] %vm9048_vm3, %v10065_v3  ;;  %v10066_v42 = vpack.c.bf16 %v8611_v58, %v8611_v58 }
 0x3ee   : > { %9089 = vst.msk [vmem:[%s14739_s4 + $0xa0] sm:$0xf] %vm9048_vm3, %v10063_v37  ;;  %v10064_v59 = vpack.c.bf16 %v8609_v24, %v8609_v24  ;;  %v11473_v26 = vpop.f32.mrb[44].mxu0 }
 0x3ef   : > { %9092 = vst.msk [vmem:[%s14739_s4 + $0xac] sm:$0xf] %vm9048_vm3, %v10066_v42  ;;  %v11575_v55 = vadd.f32 %v11473_v26, %v14718_v9  ;;  %v8258_v53 = vpop.f32.mrb[45].mxu0 }
 0x3f0   : > { %9090 = vst.msk [vmem:[%s14739_s4 + $0xa4] sm:$0xf] %vm9048_vm3, %v10064_v59  ;;  %v11576_v52 = vadd.f32 %v8258_v53, %v14720_v7  ;;  %v11474_v25 = vpop.f32.mrb[46].mxu0 }
 0x3f1   : > { %v8614_v35 = vadd.f32 %v11575_v55, %v14730_v31  ;;  %v11577_v54 = vadd.f32 %v11474_v25, %v14722_v56  ;;  %v8261_v16 = vpop.f32.mrb[47].mxu0 }
 0x3f2   : > { %v8612_v30 = vadd.f32 %v11576_v52, %v14730_v31  ;;  %v11578_v20 = vadd.f32 %v8261_v16, %v14724_v8 }
 0x3f3   : > { %v10069_v9 = vpack.c.bf16 %v8614_v35, %v8614_v35  ;;  %v8615_v11 = vadd.f32 %v11577_v54, %v14730_v31 }
 0x3f4   : > { %v11061_v18 = vpop.f32.mrb[48].mxu1  ;;  %v10067_v27 = vpack.c.bf16 %v8612_v30, %v8612_v30  ;;  %v8613_v7 = vadd.f32 %v11578_v20, %v14730_v31 }
 0x3f5   : > { %v4635_v34 = vpop.f32.mrb[49].mxu1  ;;  %9095 = vst.msk [vmem:[%s14739_s4 + $0xb8] sm:$0xf] %vm9048_vm3, %v10069_v9  ;;  %v10070_v47 = vpack.c.bf16 %v8615_v11, %v8615_v11 }
 0x3f6   : > { %v11062_v12 = vpop.f32.mrb[50].mxu1  ;;  %9093 = vst.msk [vmem:[%s14739_s4 + $0xb0] sm:$0xf] %vm9048_vm3, %v10067_v27  ;;  %v10068_v2 = vpack.c.bf16 %v8613_v7, %v8613_v7  ;;  %v11477_v33 = vpop.f32.mrb[48].mxu0 }
 0x3f7   : > { %v4638_v56 = vpop.f32.mrb[51].mxu1  ;;  %9096 = vst.msk [vmem:[%s14739_s4 + $0xbc] sm:$0xf] %vm9048_vm3, %v10070_v47  ;;  %v11579_v8 = vadd.f32 %v11477_v33, %v11061_v18  ;;  %v8274_v10 = vpop.f32.mrb[49].mxu0 }
 0x3f8   : > { %9094 = vst.msk [vmem:[%s14739_s4 + $0xb4] sm:$0xf] %vm9048_vm3, %v10068_v2  ;;  %v11580_v5 = vadd.f32 %v8274_v10, %v4635_v34  ;;  %v11478_v61 = vpop.f32.mrb[50].mxu0 }
 0x3f9   : > { %v8618_v57 = vadd.f32 %v11579_v8, %v14730_v31  ;;  %v11581_v48 = vadd.f32 %v11478_v61, %v11062_v12  ;;  %v8277_v21 = vpop.f32.mrb[51].mxu0 }
 0x3fa   : > { %v8616_v6 = vadd.f32 %v11580_v5, %v14730_v31  ;;  %v11582_v19 = vadd.f32 %v8277_v21, %v4638_v56 }
 0x3fb   : > { %v10073_v14 = vpack.c.bf16 %v8618_v57, %v8618_v57  ;;  %v8619_v63 = vadd.f32 %v11581_v48, %v14730_v31 }
 0x3fc   : > { %v11065_v17 = vpop.f32.mrb[52].mxu1  ;;  %v10071_v1 = vpack.c.bf16 %v8616_v6, %v8616_v6  ;;  %v8617_v22 = vadd.f32 %v11582_v19, %v14730_v31 }
 0x3fd   : > { %v4651_v45 = vpop.f32.mrb[53].mxu1  ;;  %9099 = vst.msk [vmem:[%s14739_s4 + $0xc8] sm:$0xf] %vm9048_vm3, %v10073_v14  ;;  %v10074_v40 = vpack.c.bf16 %v8619_v63, %v8619_v63 }
 0x3fe   : > { %v11066_v62 = vpop.f32.mrb[54].mxu1  ;;  %9097 = vst.msk [vmem:[%s14739_s4 + $0xc0] sm:$0xf] %vm9048_vm3, %v10071_v1  ;;  %v10072_v41 = vpack.c.bf16 %v8617_v22, %v8617_v22  ;;  %v11481_v43 = vpop.f32.mrb[52].mxu0 }
 0x3ff   : > { %v4654_v4 = vpop.f32.mrb[55].mxu1  ;;  %9100 = vst.msk [vmem:[%s14739_s4 + $0xcc] sm:$0xf] %vm9048_vm3, %v10074_v40  ;;  %v11583_v46 = vadd.f32 %v11481_v43, %v11065_v17  ;;  %v8290_v13 = vpop.f32.mrb[53].mxu0 }
 0x400   : > { %9098 = vst.msk [vmem:[%s14739_s4 + $0xc4] sm:$0xf] %vm9048_vm3, %v10072_v41  ;;  %v11584_v36 = vadd.f32 %v8290_v13, %v4651_v45  ;;  %v11482_v44 = vpop.f32.mrb[54].mxu0 }
 0x401   : > { %v8622_v32 = vadd.f32 %v11583_v46, %v14730_v31  ;;  %v11585_v0 = vadd.f32 %v11482_v44, %v11066_v62  ;;  %v8293_v23 = vpop.f32.mrb[55].mxu0 }
 0x402   : > { %v8620_v29 = vadd.f32 %v11584_v36, %v14730_v31  ;;  %v11586_v50 = vadd.f32 %v8293_v23, %v4654_v4 }
 0x403   : > { %v10077_v60 = vpack.c.bf16 %v8622_v32, %v8622_v32  ;;  %v8623_v49 = vadd.f32 %v11585_v0, %v14730_v31 }
 0x404   : > { %v11069_v39 = vpop.f32.mrb[56].mxu1  ;;  %v10075_v28 = vpack.c.bf16 %v8620_v29, %v8620_v29  ;;  %v8621_v15 = vadd.f32 %v11586_v50, %v14730_v31 }
 0x405   : > { %v4667_v38 = vpop.f32.mrb[57].mxu1  ;;  %9103 = vst.msk [vmem:[%s14739_s4 + $0xd8] sm:$0xf] %vm9048_vm3, %v10077_v60  ;;  %v10078_v3 = vpack.c.bf16 %v8623_v49, %v8623_v49 }
 0x406   : > { %v11070_v51 = vpop.f32.mrb[58].mxu1  ;;  %9101 = vst.msk [vmem:[%s14739_s4 + $0xd0] sm:$0xf] %vm9048_vm3, %v10075_v28  ;;  %v10076_v37 = vpack.c.bf16 %v8621_v15, %v8621_v15  ;;  %v11485_v24 = vpop.f32.mrb[56].mxu0 }
 0x407   : > { %v4670_v58 = vpop.f32.mrb[59].mxu1  ;;  %9104 = vst.msk [vmem:[%s14739_s4 + $0xdc] sm:$0xf] %vm9048_vm3, %v10078_v3  ;;  %v11587_v42 = vadd.f32 %v11485_v24, %v11069_v39  ;;  %v8306_v59 = vpop.f32.mrb[57].mxu0 }
 0x408   : > { %9102 = vst.msk [vmem:[%s14739_s4 + $0xd4] sm:$0xf] %vm9048_vm3, %v10076_v37  ;;  %v11588_v26 = vadd.f32 %v8306_v59, %v4667_v38  ;;  %v11486_v55 = vpop.f32.mrb[58].mxu0 }
 0x409   : > { %v8626_v53 = vadd.f32 %v11587_v42, %v14730_v31  ;;  %v11589_v52 = vadd.f32 %v11486_v55, %v11070_v51  ;;  %v8309_v25 = vpop.f32.mrb[59].mxu0 }
 0x40a   : > { %v8624_v35 = vadd.f32 %v11588_v26, %v14730_v31  ;;  %v11590_v54 = vadd.f32 %v8309_v25, %v4670_v58 }
 0x40b   : > { %v10081_v30 = vpack.c.bf16 %v8626_v53, %v8626_v53  ;;  %v8627_v20 = vadd.f32 %v11589_v52, %v14730_v31 }
 0x40c   : > { %v11073_v16 = vpop.f32.mrb[60].mxu1  ;;  %v10079_v9 = vpack.c.bf16 %v8624_v35, %v8624_v35  ;;  %v8625_v11 = vadd.f32 %v11590_v54, %v14730_v31 }
 0x40d   : > { %v4683_v18 = vpop.f32.mrb[61].mxu1  ;;  %9107 = vst.msk [vmem:[%s14739_s4 + $0xe8] sm:$0xf] %vm9048_vm3, %v10081_v30  ;;  %v10082_v27 = vpack.c.bf16 %v8627_v20, %v8627_v20 }
 0x40e   : > { %v11074_v34 = vpop.f32.mrb[62].mxu1  ;;  %9105 = vst.msk [vmem:[%s14739_s4 + $0xe0] sm:$0xf] %vm9048_vm3, %v10079_v9  ;;  %v10080_v12 = vpack.c.bf16 %v8625_v11, %v8625_v11  ;;  %v11489_v47 = vpop.f32.mrb[60].mxu0 }
 0x40f   : > { %v4686_v7 = vpop.f32.mrb[63].mxu1  ;;  %9108 = vst.msk [vmem:[%s14739_s4 + $0xec] sm:$0xf] %vm9048_vm3, %v10082_v27  ;;  %v11591_v56 = vadd.f32 %v11489_v47, %v11073_v16  ;;  %v8322_v2 = vpop.f32.mrb[61].mxu0 }
 0x410   : > { %9106 = vst.msk [vmem:[%s14739_s4 + $0xe4] sm:$0xf] %vm9048_vm3, %v10080_v12  ;;  %v11592_v33 = vadd.f32 %v8322_v2, %v4683_v18  ;;  %v11490_v8 = vpop.f32.mrb[62].mxu0 }
 0x411   : > { %v8630_v10 = vadd.f32 %v11591_v56, %v14730_v31  ;;  %v11593_v5 = vadd.f32 %v11490_v8, %v11074_v34  ;;  %v8325_v61 = vpop.f32.mrb[63].mxu0 }
 0x412   : > { %v8628_v57 = vadd.f32 %v11592_v33, %v14730_v31  ;;  %v11594_v48 = vadd.f32 %v8325_v61, %v4686_v7 }
 0x413   : > { %v10085_v6 = vpack.c.bf16 %v8630_v10, %v8630_v10  ;;  %v8631_v19 = vadd.f32 %v11593_v5, %v14730_v31 }
 0x414   : > { %v11077_v21 = vpop.f32.mrb[64].mxu1  ;;  %v10083_v14 = vpack.c.bf16 %v8628_v57, %v8628_v57  ;;  %v8629_v63 = vadd.f32 %v11594_v48, %v14730_v31 }
 0x415   : > { %v4699_v17 = vpop.f32.mrb[65].mxu1  ;;  %9111 = vst.msk [vmem:[%s14739_s4 + $0xf8] sm:$0xf] %vm9048_vm3, %v10085_v6  ;;  %v10086_v1 = vpack.c.bf16 %v8631_v19, %v8631_v19 }
 0x416   : > { %v11078_v45 = vpop.f32.mrb[66].mxu1  ;;  %9109 = vst.msk [vmem:[%s14739_s4 + $0xf0] sm:$0xf] %vm9048_vm3, %v10083_v14  ;;  %v10084_v62 = vpack.c.bf16 %v8629_v63, %v8629_v63  ;;  %v11493_v40 = vpop.f32.mrb[64].mxu0 }
 0x417   : > { %v4702_v22 = vpop.f32.mrb[67].mxu1  ;;  %9112 = vst.msk [vmem:[%s14739_s4 + $0xfc] sm:$0xf] %vm9048_vm3, %v10086_v1  ;;  %v11595_v4 = vadd.f32 %v11493_v40, %v11077_v21  ;;  %v8338_v41 = vpop.f32.mrb[65].mxu0 }
 0x418   : > { %9110 = vst.msk [vmem:[%s14739_s4 + $0xf4] sm:$0xf] %vm9048_vm3, %v10084_v62  ;;  %v11596_v43 = vadd.f32 %v8338_v41, %v4699_v17  ;;  %v11494_v46 = vpop.f32.mrb[66].mxu0 }
 0x419   : > { %v8634_v13 = vadd.f32 %v11595_v4, %v14730_v31  ;;  %v11597_v36 = vadd.f32 %v11494_v46, %v11078_v45  ;;  %v8341_v44 = vpop.f32.mrb[67].mxu0 }
 0x41a   : > { %v8632_v32 = vadd.f32 %v11596_v43, %v14730_v31  ;;  %v11598_v0 = vadd.f32 %v8341_v44, %v4702_v22 }
 0x41b   : > { %v10089_v29 = vpack.c.bf16 %v8634_v13, %v8634_v13  ;;  %v8635_v50 = vadd.f32 %v11597_v36, %v14730_v31 }
 0x41c   : > { %v11081_v23 = vpop.f32.mrb[68].mxu1  ;;  %v10087_v60 = vpack.c.bf16 %v8632_v32, %v8632_v32  ;;  %v8633_v49 = vadd.f32 %v11598_v0, %v14730_v31 }
 0x41d   : > { %v4715_v39 = vpop.f32.mrb[69].mxu1  ;;  %9115 = vst.msk [vmem:[%s14739_s4 + $0x108] sm:$0xf] %vm9048_vm3, %v10089_v29  ;;  %v10090_v28 = vpack.c.bf16 %v8635_v50, %v8635_v50 }
 0x41e   : > { %v11082_v38 = vpop.f32.mrb[70].mxu1  ;;  %9113 = vst.msk [vmem:[%s14739_s4 + $0x100] sm:$0xf] %vm9048_vm3, %v10087_v60  ;;  %v10088_v51 = vpack.c.bf16 %v8633_v49, %v8633_v49  ;;  %v11497_v3 = vpop.f32.mrb[68].mxu0 }
 0x41f   : > { %v4718_v15 = vpop.f32.mrb[71].mxu1  ;;  %9116 = vst.msk [vmem:[%s14739_s4 + $0x10c] sm:$0xf] %vm9048_vm3, %v10090_v28  ;;  %v11599_v58 = vadd.f32 %v11497_v3, %v11081_v23  ;;  %v8354_v37 = vpop.f32.mrb[69].mxu0 }
 0x420   : > { %9114 = vst.msk [vmem:[%s14739_s4 + $0x104] sm:$0xf] %vm9048_vm3, %v10088_v51  ;;  %v11600_v24 = vadd.f32 %v8354_v37, %v4715_v39  ;;  %v11498_v42 = vpop.f32.mrb[70].mxu0 }
 0x421   : > { %v8638_v59 = vadd.f32 %v11599_v58, %v14730_v31  ;;  %v11601_v26 = vadd.f32 %v11498_v42, %v11082_v38  ;;  %v8357_v55 = vpop.f32.mrb[71].mxu0 }
 0x422   : > { %v8636_v53 = vadd.f32 %v11600_v24, %v14730_v31  ;;  %v11602_v52 = vadd.f32 %v8357_v55, %v4718_v15 }
 0x423   : > { %v10093_v35 = vpack.c.bf16 %v8638_v59, %v8638_v59  ;;  %v8639_v54 = vadd.f32 %v11601_v26, %v14730_v31 }
 0x424   : > { %v11085_v25 = vpop.f32.mrb[72].mxu1  ;;  %v10091_v30 = vpack.c.bf16 %v8636_v53, %v8636_v53  ;;  %v8637_v20 = vadd.f32 %v11602_v52, %v14730_v31 }
 0x425   : > { %v4731_v16 = vpop.f32.mrb[73].mxu1  ;;  %9119 = vst.msk [vmem:[%s14739_s4 + $0x118] sm:$0xf] %vm9048_vm3, %v10093_v35  ;;  %v10094_v9 = vpack.c.bf16 %v8639_v54, %v8639_v54 }
 0x426   : > { %v11086_v18 = vpop.f32.mrb[74].mxu1  ;;  %9117 = vst.msk [vmem:[%s14739_s4 + $0x110] sm:$0xf] %vm9048_vm3, %v10091_v30  ;;  %v10092_v34 = vpack.c.bf16 %v8637_v20, %v8637_v20  ;;  %v11501_v27 = vpop.f32.mrb[72].mxu0 }
 0x427   : > { %v4734_v11 = vpop.f32.mrb[75].mxu1  ;;  %9120 = vst.msk [vmem:[%s14739_s4 + $0x11c] sm:$0xf] %vm9048_vm3, %v10094_v9  ;;  %v11603_v7 = vadd.f32 %v11501_v27, %v11085_v25  ;;  %v8370_v12 = vpop.f32.mrb[73].mxu0 }
 0x428   : > { %9118 = vst.msk [vmem:[%s14739_s4 + $0x114] sm:$0xf] %vm9048_vm3, %v10092_v34  ;;  %v11604_v47 = vadd.f32 %v8370_v12, %v4731_v16  ;;  %v11502_v56 = vpop.f32.mrb[74].mxu0 }
 0x429   : > { %v8642_v2 = vadd.f32 %v11603_v7, %v14730_v31  ;;  %v11605_v33 = vadd.f32 %v11502_v56, %v11086_v18  ;;  %v8373_v8 = vpop.f32.mrb[75].mxu0 }
 0x42a   : > { %v8640_v10 = vadd.f32 %v11604_v47, %v14730_v31  ;;  %v11606_v5 = vadd.f32 %v8373_v8, %v4734_v11 }
 0x42b   : > { %v10097_v57 = vpack.c.bf16 %v8642_v2, %v8642_v2  ;;  %v8643_v48 = vadd.f32 %v11605_v33, %v14730_v31 }
 0x42c   : > { %v11089_v61 = vpop.f32.mrb[76].mxu1  ;;  %v10095_v6 = vpack.c.bf16 %v8640_v10, %v8640_v10  ;;  %v8641_v19 = vadd.f32 %v11606_v5, %v14730_v31 }
 0x42d   : > { %v4747_v21 = vpop.f32.mrb[77].mxu1  ;;  %9123 = vst.msk [vmem:[%s14739_s4 + $0x128] sm:$0xf] %vm9048_vm3, %v10097_v57  ;;  %v10098_v14 = vpack.c.bf16 %v8643_v48, %v8643_v48 }
 0x42e   : > { %v11090_v17 = vpop.f32.mrb[78].mxu1  ;;  %9121 = vst.msk [vmem:[%s14739_s4 + $0x120] sm:$0xf] %vm9048_vm3, %v10095_v6  ;;  %v10096_v45 = vpack.c.bf16 %v8641_v19, %v8641_v19  ;;  %v11505_v1 = vpop.f32.mrb[76].mxu0 }
 0x42f   : > { %v4750_v63 = vpop.f32.mrb[79].mxu1  ;;  %9124 = vst.msk [vmem:[%s14739_s4 + $0x12c] sm:$0xf] %vm9048_vm3, %v10098_v14  ;;  %v11607_v22 = vadd.f32 %v11505_v1, %v11089_v61  ;;  %v8386_v62 = vpop.f32.mrb[77].mxu0 }
 0x430   : > { %9122 = vst.msk [vmem:[%s14739_s4 + $0x124] sm:$0xf] %vm9048_vm3, %v10096_v45  ;;  %v11608_v40 = vadd.f32 %v8386_v62, %v4747_v21  ;;  %v11506_v4 = vpop.f32.mrb[78].mxu0 }
 0x431   : > { %v8646_v41 = vadd.f32 %v11607_v22, %v14730_v31  ;;  %v11609_v43 = vadd.f32 %v11506_v4, %v11090_v17  ;;  %v8389_v46 = vpop.f32.mrb[79].mxu0 }
 0x432   : > { %v8644_v13 = vadd.f32 %v11608_v40, %v14730_v31  ;;  %v11610_v36 = vadd.f32 %v8389_v46, %v4750_v63 }
 0x433   : > { %v10101_v32 = vpack.c.bf16 %v8646_v41, %v8646_v41  ;;  %v8647_v0 = vadd.f32 %v11609_v43, %v14730_v31 }
 0x434   : > { %v11093_v44 = vpop.f32.mrb[80].mxu1  ;;  %v10099_v29 = vpack.c.bf16 %v8644_v13, %v8644_v13  ;;  %v8645_v50 = vadd.f32 %v11610_v36, %v14730_v31 }
 0x435   : > { %v4763_v23 = vpop.f32.mrb[81].mxu1  ;;  %9127 = vst.msk [vmem:[%s14739_s4 + $0x138] sm:$0xf] %vm9048_vm3, %v10101_v32  ;;  %v10102_v60 = vpack.c.bf16 %v8647_v0, %v8647_v0 }
 0x436   : > { %v11094_v39 = vpop.f32.mrb[82].mxu1  ;;  %9125 = vst.msk [vmem:[%s14739_s4 + $0x130] sm:$0xf] %vm9048_vm3, %v10099_v29  ;;  %v10100_v38 = vpack.c.bf16 %v8645_v50, %v8645_v50  ;;  %v11509_v28 = vpop.f32.mrb[80].mxu0 }
 0x437   : > { %v4766_v49 = vpop.f32.mrb[83].mxu1  ;;  %9128 = vst.msk [vmem:[%s14739_s4 + $0x13c] sm:$0xf] %vm9048_vm3, %v10102_v60  ;;  %v11611_v15 = vadd.f32 %v11509_v28, %v11093_v44  ;;  %v8402_v51 = vpop.f32.mrb[81].mxu0 }
 0x438   : > { %9126 = vst.msk [vmem:[%s14739_s4 + $0x134] sm:$0xf] %vm9048_vm3, %v10100_v38  ;;  %v11612_v3 = vadd.f32 %v8402_v51, %v4763_v23  ;;  %v11510_v58 = vpop.f32.mrb[82].mxu0 }
 0x439   : > { %v8650_v37 = vadd.f32 %v11611_v15, %v14730_v31  ;;  %v11613_v24 = vadd.f32 %v11510_v58, %v11094_v39  ;;  %v8405_v42 = vpop.f32.mrb[83].mxu0  ;;  %v12679_v15 = vld [vmem:[%s15089_s2] ss:$0 sm:$0xff] }
 0x43a   : > { %v8648_v59 = vadd.f32 %v11612_v3, %v14730_v31  ;;  %v11614_v26 = vadd.f32 %v8405_v42, %v4766_v49 }
 0x43b   : > { %v10105_v53 = vpack.c.bf16 %v8650_v37, %v8650_v37  ;;  %v8651_v52 = vadd.f32 %v11613_v24, %v14730_v31 }
 0x43c   : > { %v11097_v55 = vpop.f32.mrb[84].mxu1  ;;  %v10103_v35 = vpack.c.bf16 %v8648_v59, %v8648_v59  ;;  %v8649_v54 = vadd.f32 %v11614_v26, %v14730_v31 }
 0x43d   : > { %v4779_v25 = vpop.f32.mrb[85].mxu1  ;;  %9131 = vst.msk [vmem:[%s14739_s4 + $0x148] sm:$0xf] %vm9048_vm3, %v10105_v53  ;;  %v10106_v30 = vpack.c.bf16 %v8651_v52, %v8651_v52 }
 0x43e   : > { %v11098_v16 = vpop.f32.mrb[86].mxu1  ;;  %9129 = vst.msk [vmem:[%s14739_s4 + $0x140] sm:$0xf] %vm9048_vm3, %v10103_v35  ;;  %v10104_v18 = vpack.c.bf16 %v8649_v54, %v8649_v54  ;;  %v11513_v9 = vpop.f32.mrb[84].mxu0 }
 0x43f   : > { %v4782_v20 = vpop.f32.mrb[87].mxu1  ;;  %9132 = vst.msk [vmem:[%s14739_s4 + $0x14c] sm:$0xf] %vm9048_vm3, %v10106_v30  ;;  %v11615_v11 = vadd.f32 %v11513_v9, %v11097_v55  ;;  %v8418_v34 = vpop.f32.mrb[85].mxu0 }
 0x440   : > { %9130 = vst.msk [vmem:[%s14739_s4 + $0x144] sm:$0xf] %vm9048_vm3, %v10104_v18  ;;  %v11616_v27 = vadd.f32 %v8418_v34, %v4779_v25  ;;  %v11514_v7 = vpop.f32.mrb[86].mxu0 }
 0x441   : > { %v8654_v12 = vadd.f32 %v11615_v11, %v14730_v31  ;;  %v11617_v47 = vadd.f32 %v11514_v7, %v11098_v16  ;;  %v8421_v56 = vpop.f32.mrb[87].mxu0 }
 0x442   : > { %v8652_v2 = vadd.f32 %v11616_v27, %v14730_v31  ;;  %v11618_v33 = vadd.f32 %v8421_v56, %v4782_v20 }
 0x443   : > { %v10109_v10 = vpack.c.bf16 %v8654_v12, %v8654_v12  ;;  %v8655_v5 = vadd.f32 %v11617_v47, %v14730_v31 }
 0x444   : > { %v11101_v8 = vpop.f32.mrb[88].mxu1  ;;  %v10107_v57 = vpack.c.bf16 %v8652_v2, %v8652_v2  ;;  %v8653_v48 = vadd.f32 %v11618_v33, %v14730_v31 }
 0x445   : > { %v4795_v61 = vpop.f32.mrb[89].mxu1  ;;  %9135 = vst.msk [vmem:[%s14739_s4 + $0x158] sm:$0xf] %vm9048_vm3, %v10109_v10  ;;  %v10110_v6 = vpack.c.bf16 %v8655_v5, %v8655_v5 }
 0x446   : > { %v11102_v21 = vpop.f32.mrb[90].mxu1  ;;  %9133 = vst.msk [vmem:[%s14739_s4 + $0x150] sm:$0xf] %vm9048_vm3, %v10107_v57  ;;  %v10108_v17 = vpack.c.bf16 %v8653_v48, %v8653_v48  ;;  %v11517_v14 = vpop.f32.mrb[88].mxu0 }
 0x447   : > { %v4798_v19 = vpop.f32.mrb[91].mxu1  ;;  %9136 = vst.msk [vmem:[%s14739_s4 + $0x15c] sm:$0xf] %vm9048_vm3, %v10110_v6  ;;  %v11619_v63 = vadd.f32 %v11517_v14, %v11101_v8  ;;  %v8434_v45 = vpop.f32.mrb[89].mxu0 }
 0x448   : > { %9134 = vst.msk [vmem:[%s14739_s4 + $0x154] sm:$0xf] %vm9048_vm3, %v10108_v17  ;;  %v11620_v1 = vadd.f32 %v8434_v45, %v4795_v61  ;;  %v11518_v22 = vpop.f32.mrb[90].mxu0 }
 0x449   : > { %v8658_v62 = vadd.f32 %v11619_v63, %v14730_v31  ;;  %v11621_v40 = vadd.f32 %v11518_v22, %v11102_v21  ;;  %v8437_v4 = vpop.f32.mrb[91].mxu0 }
 0x44a   : > { %v8656_v41 = vadd.f32 %v11620_v1, %v14730_v31  ;;  %v11622_v43 = vadd.f32 %v8437_v4, %v4798_v19 }
 0x44b   : > { %v10113_v13 = vpack.c.bf16 %v8658_v62, %v8658_v62  ;;  %v8659_v36 = vadd.f32 %v11621_v40, %v14730_v31 }
 0x44c   : > { %v11105_v46 = vpop.f32.mrb[92].mxu1  ;;  %v10111_v32 = vpack.c.bf16 %v8656_v41, %v8656_v41  ;;  %v8657_v0 = vadd.f32 %v11622_v43, %v14730_v31 }
 0x44d   : > { %v4811_v44 = vpop.f32.mrb[93].mxu1  ;;  %9139 = vst.msk [vmem:[%s14739_s4 + $0x168] sm:$0xf] %vm9048_vm3, %v10113_v13  ;;  %v10114_v29 = vpack.c.bf16 %v8659_v36, %v8659_v36 }
 0x44e   : > { %v11106_v23 = vpop.f32.mrb[94].mxu1  ;;  %9137 = vst.msk [vmem:[%s14739_s4 + $0x160] sm:$0xf] %vm9048_vm3, %v10111_v32  ;;  %v10112_v39 = vpack.c.bf16 %v8657_v0, %v8657_v0  ;;  %v11521_v60 = vpop.f32.mrb[92].mxu0 }
 0x44f   : > { %v4814_v50 = vpop.f32.mrb[95].mxu1  ;;  %9140 = vst.msk [vmem:[%s14739_s4 + $0x16c] sm:$0xf] %vm9048_vm3, %v10114_v29  ;;  %v11623_v49 = vadd.f32 %v11521_v60, %v11105_v46  ;;  %v8450_v38 = vpop.f32.mrb[93].mxu0 }
 0x450   : > { %9138 = vst.msk [vmem:[%s14739_s4 + $0x164] sm:$0xf] %vm9048_vm3, %v10112_v39  ;;  %v11624_v28 = vadd.f32 %v8450_v38, %v4811_v44  ;;  %v11522_v31 = vpop.f32.mrb[94].mxu0 }
 0x451   : > { %v8662_v51 = vadd.f32 %v12679_v15, %v11623_v49  ;;  %v11625_v3 = vadd.f32 %v11522_v31, %v11106_v23  ;;  %v8453_v58 = vpop.f32.mrb[95].mxu0 }
 0x452   : > { %v8660_v37 = vadd.f32 %v12679_v15, %v11624_v28  ;;  %v11626_v24 = vadd.f32 %v8453_v58, %v4814_v50 }
 0x453   : > { %v10117_v42 = vpack.c.bf16 %v8662_v51, %v8662_v51  ;;  %v8663_v59 = vadd.f32 %v12679_v15, %v11625_v3 }
 0x454   : > { %v10115_v26 = vpack.c.bf16 %v8660_v37, %v8660_v37  ;;  %v8661_v55 = vadd.f32 %v12679_v15, %v11626_v24 }
 0x455   : > { %9143 = vst.msk [vmem:[%s14739_s4 + $0x178] sm:$0xf] %vm9048_vm3, %v10117_v42  ;;  %v10118_v53 = vpack.c.bf16 %v8663_v59, %v8663_v59 }
 0x456   : > { %9141 = vst.msk [vmem:[%s14739_s4 + $0x170] sm:$0xf] %vm9048_vm3, %v10115_v26  ;;  %v10116_v52 = vpack.c.bf16 %v8661_v55, %v8661_v55 }
 0x457   : > { %9144 = vst.msk [vmem:[%s14739_s4 + $0x17c] sm:$0xf] %vm9048_vm3, %v10118_v53 }
 0x458   : > { %9142 = vst.msk [vmem:[%s14739_s4 + $0x174] sm:$0xf] %vm9048_vm3, %v10116_v52 }
 0x459 PF: > { %s13_s16 = sadd.s32 1, %s12718_s16   ;;  %s15122_s12 = smov %s12710_s14 }
 0x45a   : > { %p10_p7 = scmp.ge.s32.totalorder %s13_s16, 6   ;;  %s15123_s13 = smov %s12714_s15 }
 0x45b   : > { %s15124_s14 = smov %s15127_s17  ;;  %s15125_s15 = smov %s15131_s18 }
 0x45c   :  { %12 = sbr.rel (!%p10_p7) target bundleno = 3 (0x3), region = 73 }

// kernel: model_forward.5
= control target key start
LH: loop header
LB: loop body
LE: loop exit
PB: predicated region body
PF: predicated region fallthrough
CT: control target
= control target key end

     0   :  { %s12740_s12 = smov 0   ;;  %s12742_s13 = smov 0   ;;  %s15093_s0 = inlined_call_operand.vmem [shape: bf16[2,1648,64], index: 0, kind: input, shape index: {}]   ;;  %s15094_s1 = inlined_call_operand.vmem [shape: bf16[9,64,16], index: 1, kind: input, shape index: {}]   ;;  %s15095_s2 = inlined_call_operand.vmem [shape: f32[1,16], index: 2, kind: input, shape index: {}]   ;;  %s15096_s3 = inlined_call_operand.vmem [shape: f32[2,1536,16], index: 3, kind: output, shape index: {}]  }
   0x1   :  { %s12744_s14 = smov 0   ;;  %s12746_s15 = smov 0  }
   0x2   :  { %s12748_s16 = smov 0  }
   0x3 LB: > { %s22_s17 = sadd.s32 1, %s12710_s14  ;;  %s25_s18 = sadd.s32 1, %s12714_s15  ;;  %s12718_s16 = sphi %s12748_s16, %s13_s16   ;;  %s12714_s15 = sphi %s12746_s15, %s15131_s15   ;;  %s12710_s14 = sphi %s12744_s14, %s15130_s14   ;;  %s12706_s13 = sphi %s12742_s13, %s15129_s13   ;;  %s12702_s12 = sphi %s12740_s12, %s15128_s12  }
   0x4   : > { %p23_p0 = scmp.ge.s32.totalorder %s22_s17, 2  ;;  %p9239_p1 = scmp.ge.s32.totalorder %s12718_s16, 1 }
   0x5   : > { %p151_p2 = scmp.lt.s32.totalorder %s12718_s16, 5 }
   0x6   : > { %s15133_s17 = smov (%p23_p0, %s22_s17), 0  ;;  %s15135_s18 = smov (!%p23_p0, %s25_s18), %s12714_s15 }
   0x7   : > { %p152_p3 = pnand %p9239_p1, %p151_p2  ;;  %p27_p4 = scmp.ge.s32.totalorder %s15135_s18, 2 }
   0x9   : > { %s15137_s18 = smov (%p27_p4, %s15135_s18), 0  ;;  %155 = sbr.rel (%p152_p3) target bundleno = 1131 (0x46b), region = 32 }
  0x10   : > { %v12149_v0 = vld [vmem:[%s15094_s1 + $0x20] sm:$0xff]   ;;  %p179_p5 = scmp.lt.s32.totalorder %s12706_s13, 1  ;;  %s12779_s23 = smul.u32 768, %s12702_s12  ;;  %v12151_v2 = vld [vmem:[%s15094_s1 + $0x28] sm:$0xff]   ;;  %v12153_v4 = vld [vmem:[%s15094_s1 + $0x30] sm:$0xff]   ;;  %vm970_vm0 = vcmask 523264  }
  0x11   : > { %v12150_v1 = vld [vmem:[%s15094_s1 + $0x80] sm:$0xff]   ;;  %10395 = vmatprep.subr.bf16.mxu1 %v12149_v0  ;;  %v12152_v3 = vld [vmem:[%s15094_s1 + $0x88] sm:$0xff]   ;;  %v12154_v5 = vld [vmem:[%s15094_s1 + $0x90] sm:$0xff]   ;;  %vm557_vm1 = vsmask.f32 7424  ;;  %vm2078_vm2 = vcmask 1046528  }
  0x12   : > { %s15139_s13 = smov (!%p179_p5, %s12706_s13), 1  ;;  %10811 = vmatprep.subr.bf16.mxu0 %v12150_v1  ;;  %10396 = vmatpush3.bf16.msra.mxu1 %v12149_v0  ;;  %s196_s28 = sshra.s32 %s12779_s23, 3  ;;  %v12155_v6 = vld [vmem:[%s15094_s1 + $0x38] sm:$0xff]   ;;  %v12162_v15 = vld [vmem:[%s15094_s1] sm:$0xff]   ;;  %vm9048_vm3 = vcmask 130048  }
  0x13   : > { %10812 = vmatpush3.bf16.msra.mxu0 %v12150_v1  ;;  %10397 = vmatprep.subr.bf16.mxu1 %v12151_v2  ;;  %s12107_s4 = smul.u32 824, %s15139_s13  ;;  %s9242_s7 = sshll.u32 %s196_s28, 2  ;;  %v12156_v7 = vld [vmem:[%s15094_s1 + $0x98] sm:$0xff]   ;;  %v12164_v17 = vld [vmem:[%s15094_s1 + $0xa0] sm:$0xff]  }
  0x14   : > { %10813 = vmatprep.subr.bf16.mxu0 %v12152_v3  ;;  %s2857_s24 = sadd.s32 48, %s12779_s23  ;;  %s5709_s11 = sadd.s32 96, %s12779_s23 }
  0x15   : > { %s12803_s19 = scalar_lea.vmem %s15093_s0, %s12107_s4  ;;  %s2858_s25 = sshra.s32 %s2857_s24, 3 }
  0x16   : > { %10398 = vmatpush3.bf16.msra.mxu1 %v12151_v2  ;;  %s12809_s22 = scalar_lea.vmem %s12803_s19, %s9242_s7  ;;  %s9464_s26 = sshll.u32 %s2858_s25, 2 }
  0x17   : > { %10814 = vmatpush3.bf16.msra.mxu0 %v12152_v3  ;;  %10399 = vmatprep.subr.bf16.mxu1 %v12153_v4  ;;  %v12157_v8 = vld [vmem:[%s12809_s22] sm:$0xff]   ;;  %v12158_v9 = vld [vmem:[%s12809_s22 + $0x8] sm:$0xff]   ;;  %v12161_v10 = vld [vmem:[%s12809_s22 + $0x10] sm:$0xff]   ;;  %s12819_s29 = scalar_lea.vmem %s12803_s19, %s9464_s26  ;;  %s5710_s20 = sshra.s32 %s5709_s11, 3 }
  0x18   : > { %10815 = vmatprep.subr.bf16.mxu0 %v12154_v5  ;;  %v559_v11 = vshrl.u32 %v12157_v8, 16  ;;  %v561_v12 = vshll.u32 %v12157_v8, 16  ;;  %v566_v13 = vshll.u32 %v12158_v9, 16  ;;  %v570_v14 = vshrl.u32 %v12158_v9, 16  ;;  %v12825_v20 = vld [vmem:[%s12819_s29] sm:$0xff]   ;;  %v12828_v24 = vld [vmem:[%s12819_s29 + $0x8] sm:$0xff]  }
  0x19   : > { %v574_v16 = vshll.u32 %v12161_v10, 16  ;;  %v578_v25 = vshrl.u32 %v12161_v10, 16  ;;  %v3901_v26 = vshrl.u32 %v12825_v20, 16  ;;  %v3903_v27 = vshll.u32 %v12825_v20, 16  ;;  %v12163_v28 = vld [vmem:[%s12819_s29 + $0x10] sm:$0xff]   ;;  %v12165_v29 = vld [vmem:[%s12809_s22 + $0x18] sm:$0xff]  }
  0x1a   : > { %10400 = vmatpush3.bf16.msra.mxu1 %v12153_v4  ;;  %v563_v18 = vrot.slane %v561_v12, 1  ;;  %v568_v19 = vrot.slane %v566_v13, 1  ;;  %v3907_v31 = vshll.u32 %v12828_v24, 16  ;;  %v3911_v32 = vshrl.u32 %v12828_v24, 16  ;;  %v12840_v38 = vld [vmem:[%s12819_s29 + $0x18] sm:$0xff]   ;;  %v12167_v45 = vld [vmem:[%s12809_s22 + $0x20] sm:$0xff]  }
  0x1b   : > { %10816 = vmatpush3.bf16.msra.mxu0 %v12154_v5  ;;  %10401 = vmatprep.subr.bf16.mxu1 %v12155_v6  ;;  %v576_v21 = vrot.slane %v574_v16, 1  ;;  %v3905_v34 = vrot.slane %v3903_v27, 1  ;;  %v3914_v35 = vshll.u32 %v12163_v28, 16  ;;  %v582_v37 = vshll.u32 %v12165_v29, 16  ;;  %v12168_v48 = vld [vmem:[%s12819_s29 + $0x20] sm:$0xff]   ;;  %v12169_v53 = vld [vmem:[%s12809_s22 + $0x28] sm:$0xff]  }
  0x1c   : > { %10817 = vmatprep.subr.bf16.mxu0 %v12156_v7  ;;  %v564_v22 = vor.u32 %v563_v18, %v559_v11  ;;  %v572_v23 = vor.u32 %v570_v14, %v568_v19  ;;  %v3909_v39 = vrot.slane %v3907_v31, 1  ;;  %v3918_v40 = vshrl.u32 %v12163_v28, 16  ;;  %v12856_v62 = vld [vmem:[%s12819_s29 + $0x28] sm:$0xff]   ;;  %v12171_v5 = vld [vmem:[%s12809_s22 + $0x30] sm:$0xff]   ;;  %v12173_v11 = vld [vmem:[%s12809_s22 + $0x38] sm:$0xff]   ;;  %s9694_s23 = sshll.u32 %s5710_s20, 2 }
  0x1d   : > { %v580_v36 = vor.u32 %v578_v25, %v576_v21  ;;  %v3906_v41 = vor.u32 %v3905_v34, %v3901_v26  ;;  %v3916_v42 = vrot.slane %v3914_v35, 1  ;;  %v584_v43 = vrot.slane %v582_v37, 1  ;;  %v12174_v16 = vld [vmem:[%s12819_s29 + $0x38] sm:$0xff]   ;;  %s13256_s21 = scalar_lea.vmem %s12803_s19, %s9694_s23  ;;  %s184_s26 = smul.u32 96, %s12702_s12 }
  0x1e   : > { %10402 = vmatpush3.bf16.msra.mxu1 %v12155_v6  ;;  %v569_v30 = vsel %vm557_vm1, %v564_v22, %v568_v19  ;;  %v577_v33 = vsel %vm557_vm1, %v572_v23, %v576_v21  ;;  %v3921_v44 = vshll.u32 %v12840_v38, 16  ;;  %v3913_v46 = vor.u32 %v3911_v32, %v3909_v39  ;;  %v12175_v22 = vld [vmem:[%s12809_s22 + $0x40] sm:$0xff]   ;;  %s12108_s12 = smul.u32 192, %s15139_s13 }
  0x1f   : > { %10818 = vmatpush3.bf16.msra.mxu0 %v12156_v7  ;;  %10499 = vmatprep.subr.bf16.mxu1 %v12162_v15  ;;  %v586_v47 = vshrl.u32 %v12165_v29, 16  ;;  %v3910_v49 = vsel %vm557_vm1, %v3906_v41, %v3909_v39  ;;  %v585_v50 = vsel %vm557_vm1, %v580_v36, %v584_v43  ;;  %v3920_v51 = vor.u32 %v3918_v40, %v3916_v42  ;;  %v12172_v7 = vld [vmem:[%s12819_s29 + $0x30] sm:$0xff]   ;;  %v12876_v36 = vld [vmem:[%s12819_s29 + $0x40] sm:$0xff]   ;;  %v12177_v40 = vld [vmem:[%s15094_s1 + $0xa8] sm:$0xff]   ;;  %p187_p6 = scmp.lt.s32.totalorder %s184_s26, 191 }
  0x20   : > { %10915 = vmatprep.subr.bf16.mxu0 %v12164_v17  ;;  %10403 = vmatprep.mubr.msk.bf16.mxu1 %vm970_vm0, %v569_v30  ;;  %v3923_v52 = vrot.slane %v3921_v44, 1  ;;  %v3917_v54 = vsel %vm557_vm1, %v3913_v46, %v3916_v42  ;;  %v590_v56 = vshll.u32 %v12167_v45, 16  ;;  %v3925_v57 = vshrl.u32 %v12840_v38, 16 }
  0x21   : > { %10404 = vmatmul.mubr.msk.bf16.vlgmr.msra.gmra.mrb[0].mxu1 %vm970_vm0, %v577_v33  ;;  %10819 = vmatprep.mubr.msk.bf16.mxu0 %vm970_vm0, %v3910_v49  ;;  %v588_v55 = vor.u32 %v586_v47, %v584_v43  ;;  %v3928_v59 = vshll.u32 %v12168_v48, 16  ;;  %v594_v60 = vshrl.u32 %v12167_v45, 16  ;;  %v598_v61 = vshll.u32 %v12169_v53, 16  ;;  %v12178_v43 = vld [vmem:[%s12809_s22 + $0x48] sm:$0xff]   ;;  %s15141_s26 = smov (!%p187_p6, %s184_s26), 191 }
  0x22   : > { %10500 = vmatpush3.bf16.msra.mxu1 %v12162_v15  ;;  %10407 = vmatprep.mubr.msk.bf16.mxu1 %vm970_vm0, %v585_v50  ;;  %v3924_v58 = vsel %vm557_vm1, %v3920_v51, %v3923_v52  ;;  %v592_v63 = vrot.slane %v590_v56, 1  ;;  %v3927_v0 = vor.u32 %v3925_v57, %v3923_v52  ;;  %v3932_v1 = vshrl.u32 %v12168_v48, 16  ;;  %v12885_v45 = vld [vmem:[%s12819_s29 + $0x48] sm:$0xff]   ;;  %v12180_v48 = vld [vmem:[%s12809_s22 + $0x50] sm:$0xff]   ;;  %s190_s13 = sadd.s32 %s12108_s12, %s15141_s26 }
  0x23   : > { %10820 = vmatmul.mubr.msk.bf16.vlgmr.msra.gmra.mrb[0].mxu0 %vm970_vm0, %v3917_v54  ;;  %v3930_v2 = vrot.slane %v3928_v59, 1  ;;  %v600_v3 = vrot.slane %v598_v61, 1  ;;  %v3935_v4 = vshll.u32 %v12856_v62, 16  ;;  %v602_v6 = vshrl.u32 %v12169_v53, 16  ;;  %s9241_s27 = sshll.u32 %s190_s13, 3 }
  0x24   : > { %10916 = vmatpush3.bf16.msra.mxu0 %v12164_v17  ;;  %10823 = vmatprep.mubr.msk.bf16.mxu0 %vm970_vm0, %v3924_v58  ;;  %v593_v8 = vsel %vm557_vm1, %v588_v55, %v592_v63  ;;  %v596_v9 = vor.u32 %v594_v60, %v592_v63  ;;  %v3939_v10 = vshrl.u32 %v12856_v62, 16  ;;  %v606_v18 = vshll.u32 %v12171_v5, 16  ;;  %v12895_v58 = vld [vmem:[%s12819_s29 + $0x50] sm:$0xff]   ;;  %v12182_v60 = vld [vmem:[%s12809_s22 + $0x58] sm:$0xff]   ;;  %s14753_s4 = scalar_lea.vmem %s15096_s3, %s9241_s27 }
  0x25   : > { %v3931_v12 = vsel %vm557_vm1, %v3927_v0, %v3930_v2  ;;  %v3934_v13 = vor.u32 %v3932_v1, %v3930_v2  ;;  %v3937_v14 = vrot.slane %v3935_v4, 1  ;;  %v604_v15 = vor.u32 %v602_v6, %v600_v3  ;;  %10917 = vmatprep.subr.bf16.mxu0 %v12177_v40  ;;  %v12902_v2 = vld [vmem:[%s12819_s29 + $0x58] sm:$0xff]  }
  0x26   : > { %v601_v17 = vsel %vm557_vm1, %v596_v9, %v600_v3  ;;  %v3942_v19 = vshll.u32 %v12172_v7, 16  ;;  %v610_v21 = vshrl.u32 %v12171_v5, 16  ;;  %v614_v25 = vshll.u32 %v12173_v11, 16 }
  0x27   : > { %v3938_v23 = vsel %vm557_vm1, %v3934_v13, %v3937_v14  ;;  %v3946_v26 = vshrl.u32 %v12172_v7, 16  ;;  %v608_v27 = vrot.slane %v606_v18, 1  ;;  %v3949_v29 = vshll.u32 %v12174_v16, 16 }
  0x28   : > { %v3944_v28 = vrot.slane %v3942_v19, 1  ;;  %v3941_v30 = vor.u32 %v3939_v10, %v3937_v14  ;;  %v616_v31 = vrot.slane %v614_v25, 1  ;;  %v622_v32 = vshll.u32 %v12175_v22, 16  ;;  %10918 = vmatpush3.bf16.msra.mxu0 %v12177_v40  ;;  %v12184_v10 = vld [vmem:[%s12809_s22 + $0x60] sm:$0xff]   ;;  %v12186_v14 = vld [vmem:[%s12809_s22 + $0x68] sm:$0xff]   ;;  %v12191_v40 = vld [vmem:[%s15094_s1 + $0xb0] sm:$0xff]  }
  0x29   : > { %10408 = vmatmul.mubr.msk.bf16.gmra.mrb[4].mxu1 %vm970_vm0, %v593_v8  ;;  %v609_v33 = vsel %vm557_vm1, %v604_v15, %v608_v27  ;;  %v612_v34 = vor.u32 %v610_v21, %v608_v27  ;;  %v618_v35 = vshrl.u32 %v12173_v11, 16  ;;  %v3951_v39 = vrot.slane %v3949_v29, 1  ;;  %v12917_v25 = vld [vmem:[%s12819_s29 + $0x60] sm:$0xff]   ;;  %10919 = vmatprep.subr.bf16.mxu0 %v12191_v40 }
  0x2a   : > { %10411 = vmatprep.mubr.msk.bf16.mxu1 %vm970_vm0, %v601_v17  ;;  %v3948_v37 = vor.u32 %v3946_v26, %v3944_v28  ;;  %v3956_v42 = vshll.u32 %v12876_v36, 16  ;;  %v626_v44 = vshrl.u32 %v12175_v22, 16  ;;  %v3945_v46 = vsel %vm557_vm1, %v3941_v30, %v3944_v28  ;;  %v12189_v26 = vld [vmem:[%s15094_s1 + $0x8] sm:$0xff]  }
  0x2b   : > { %10824 = vmatmul.mubr.msk.bf16.gmra.mrb[4].mxu0 %vm970_vm0, %v3931_v12  ;;  %v617_v41 = vsel %vm557_vm1, %v612_v34, %v616_v31  ;;  %v624_v47 = vrot.slane %v622_v32, 1  ;;  %v620_v49 = vor.u32 %v618_v35, %v616_v31  ;;  %v3953_v50 = vshrl.u32 %v12174_v16, 16  ;;  %v12925_v31 = vld [vmem:[%s12819_s29 + $0x68] sm:$0xff]   ;;  %10501 = vmatprep.subr.bf16.mxu1 %v12189_v26 }
  0x2c   : > { %10827 = vmatprep.mubr.msk.bf16.mxu0 %vm970_vm0, %v3938_v23  ;;  %v630_v51 = vshll.u32 %v12178_v43, 16  ;;  %v3960_v52 = vshrl.u32 %v12876_v36, 16  ;;  %v3952_v53 = vsel %vm557_vm1, %v3948_v37, %v3951_v39  ;;  %v3958_v54 = vrot.slane %v3956_v42, 1  ;;  %10502 = vmatpush3.bf16.msra.mxu1 %v12189_v26 }
  0x2d   : > { %v628_v55 = vor.u32 %v626_v44, %v624_v47  ;;  %v3963_v56 = vshll.u32 %v12885_v45, 16  ;;  %v638_v59 = vshll.u32 %v12180_v48, 16  ;;  %v625_v61 = vsel %vm557_vm1, %v620_v49, %v624_v47  ;;  %v12192_v49 = vld [vmem:[%s12809_s22 + $0x78] sm:$0xff]   ;;  %10920 = vmatpush3.bf16.msra.mxu0 %v12191_v40 }
  0x2e   : > { %v632_v57 = vrot.slane %v630_v51, 1  ;;  %v3955_v63 = vor.u32 %v3953_v50, %v3951_v39  ;;  %v3962_v0 = vor.u32 %v3960_v52, %v3958_v54  ;;  %v634_v1 = vshrl.u32 %v12178_v43, 16  ;;  %v12188_v39 = vld [vmem:[%s12809_s22 + $0x70] sm:$0xff]  }
  0x2f   : > { %v3965_v4 = vrot.slane %v3963_v56, 1  ;;  %v642_v5 = vshrl.u32 %v12180_v48, 16  ;;  %v646_v6 = vshll.u32 %v12182_v60, 16  ;;  %v3970_v7 = vshll.u32 %v12895_v58, 16  ;;  %v12190_v50 = vld [vmem:[%s12819_s29 + $0x70] sm:$0xff]  }
  0x30   : > { %v633_v3 = vsel %vm557_vm1, %v628_v55, %v632_v57  ;;  %v640_v8 = vrot.slane %v638_v59, 1  ;;  %v3967_v9 = vshrl.u32 %v12885_v45, 16  ;;  %v3959_v11 = vsel %vm557_vm1, %v3955_v63, %v3958_v54 }
  0x31   : > { %10412 = vmatmul.mubr.msk.bf16.gmra.mrb[8].mxu1 %vm970_vm0, %v609_v33  ;;  %v636_v12 = vor.u32 %v634_v1, %v632_v57  ;;  %v3977_v13 = vshll.u32 %v12902_v2, 16  ;;  %v3966_v15 = vsel %vm557_vm1, %v3962_v0, %v3965_v4  ;;  %v648_v17 = vrot.slane %v646_v6, 1  ;;  %v12946_v57 = vld [vmem:[%s12819_s29 + $0x78] sm:$0xff]  }
  0x32   : > { %10415 = vmatprep.mubr.msk.bf16.mxu1 %vm970_vm0, %v617_v41  ;;  %v644_v16 = vor.u32 %v642_v5, %v640_v8  ;;  %v3974_v18 = vshrl.u32 %v12895_v58, 16  ;;  %v3972_v19 = vrot.slane %v3970_v7, 1  ;;  %v3969_v21 = vor.u32 %v3967_v9, %v3965_v4  ;;  %v12194_v4 = vld [vmem:[%s12809_s22 + $0x80] sm:$0xff]  }
  0x33   : > { %10828 = vmatmul.mubr.msk.bf16.gmra.mrb[8].mxu0 %vm970_vm0, %v3945_v46  ;;  %v650_v22 = vshrl.u32 %v12182_v60, 16  ;;  %v654_v23 = vshll.u32 %v12184_v10, 16  ;;  %v641_v27 = vsel %vm557_vm1, %v636_v12, %v640_v8  ;;  %v3979_v28 = vrot.slane %v3977_v13, 1  ;;  %v12196_v12 = vld [vmem:[%s12809_s22 + $0x88] sm:$0xff]  }
  0x34   : > { %10831 = vmatprep.mubr.msk.bf16.mxu0 %vm970_vm0, %v3952_v53  ;;  %v658_v29 = vshrl.u32 %v12184_v10, 16  ;;  %v662_v30 = vshll.u32 %v12186_v14, 16  ;;  %v649_v32 = vsel %vm557_vm1, %v644_v16, %v648_v17  ;;  %v3976_v33 = vor.u32 %v3974_v18, %v3972_v19 }
  0x35   : > { %v3981_v34 = vshrl.u32 %v12902_v2, 16  ;;  %v656_v35 = vrot.slane %v654_v23, 1  ;;  %v3984_v37 = vshll.u32 %v12917_v25, 16  ;;  %v3973_v41 = vsel %vm557_vm1, %v3969_v21, %v3972_v19  ;;  %v12964_v21 = vld [vmem:[%s12819_s29 + $0x88] sm:$0xff]  }
  0x36   : > { %v652_v42 = vor.u32 %v650_v22, %v648_v17  ;;  %v3991_v43 = vshll.u32 %v12925_v31, 16  ;;  %v3980_v44 = vsel %vm557_vm1, %v3976_v33, %v3979_v28  ;;  %v664_v47 = vrot.slane %v662_v30, 1  ;;  %v12204_v30 = vld [vmem:[%s15094_s1 + $0xb8] sm:$0xff]   ;;  %v12198_v33 = vld [vmem:[%s12809_s22 + $0x90] sm:$0xff]  }
  0x37   : > { %v660_v46 = vor.u32 %v658_v29, %v656_v35  ;;  %v3988_v48 = vshrl.u32 %v12917_v25, 16  ;;  %v3983_v51 = vor.u32 %v3981_v34, %v3979_v28  ;;  %v3986_v52 = vrot.slane %v3984_v37, 1  ;;  %10921 = vmatprep.subr.bf16.mxu0 %v12204_v30 }
  0x38   : > { %v670_v53 = vshll.u32 %v12188_v39, 16  ;;  %v657_v54 = vsel %vm557_vm1, %v652_v42, %v656_v35  ;;  %v3993_v55 = vrot.slane %v3991_v43, 1  ;;  %v666_v56 = vshrl.u32 %v12186_v14, 16  ;;  %v12958_v14 = vld [vmem:[%s12819_s29 + $0x80] sm:$0xff]   ;;  %v12200_v43 = vld [vmem:[%s12809_s22 + $0x98] sm:$0xff]   ;;  %10922 = vmatpush3.bf16.msra.mxu0 %v12204_v30  ;;  %v12207_v30 = vld [vmem:[%s12809_s22 + $0xb0] sm:$0xff]  }
  0x39   : > { %10416 = vmatmul.mubr.msk.bf16.gmra.mrb[12].mxu1 %vm970_vm0, %v625_v61  ;;  %v665_v59 = vsel %vm557_vm1, %v660_v46, %v664_v47  ;;  %v3990_v60 = vor.u32 %v3988_v48, %v3986_v52  ;;  %v674_v61 = vshrl.u32 %v12188_v39, 16  ;;  %v678_v63 = vshll.u32 %v12192_v49, 16  ;;  %v12982_v48 = vld [vmem:[%s12819_s29 + $0x90] sm:$0xff]  }
  0x3a   : > { %10419 = vmatprep.mubr.msk.bf16.mxu1 %vm970_vm0, %v633_v3  ;;  %v3998_v0 = vshll.u32 %v12190_v50, 16  ;;  %v3987_v1 = vsel %vm557_vm1, %v3983_v51, %v3986_v52  ;;  %v672_v3 = vrot.slane %v670_v53, 1  ;;  %v668_v5 = vor.u32 %v666_v56, %v664_v47  ;;  %v12988_v56 = vld [vmem:[%s12819_s29 + $0x98] sm:$0xff]  }
  0x3b   : > { %10832 = vmatmul.mubr.msk.bf16.gmra.mrb[12].mxu0 %vm970_vm0, %v3959_v11  ;;  %v3995_v6 = vshrl.u32 %v12925_v31, 16  ;;  %v4002_v7 = vshrl.u32 %v12190_v50, 16  ;;  %v4005_v8 = vshll.u32 %v12946_v57, 16  ;;  %v3994_v9 = vsel %vm557_vm1, %v3990_v60, %v3993_v55 }
  0x3c   : > { %10835 = vmatprep.mubr.msk.bf16.mxu0 %vm970_vm0, %v3966_v15  ;;  %v676_v10 = vor.u32 %v674_v61, %v672_v3  ;;  %v680_v11 = vrot.slane %v678_v63, 1  ;;  %v4000_v13 = vrot.slane %v3998_v0, 1  ;;  %v686_v15 = vshll.u32 %v12194_v4, 16  ;;  %v12202_v63 = vld [vmem:[%s12809_s22 + $0xa0] sm:$0xff]  }
  0x3d   : > { %v673_v16 = vsel %vm557_vm1, %v668_v5, %v672_v3  ;;  %v3997_v17 = vor.u32 %v3995_v6, %v3993_v55  ;;  %v682_v19 = vshrl.u32 %v12192_v49, 16  ;;  %v4007_v23 = vrot.slane %v4005_v8, 1 }
  0x3e   : > { %v4004_v18 = vor.u32 %v4002_v7, %v4000_v13  ;;  %v681_v22 = vsel %vm557_vm1, %v676_v10, %v680_v11  ;;  %v690_v26 = vshrl.u32 %v12194_v4, 16  ;;  %v4009_v28 = vshrl.u32 %v12946_v57, 16  ;;  %v12205_v4 = vld [vmem:[%s12809_s22 + $0xa8] sm:$0xff]  }
  0x3f   : > { %v4012_v29 = vshll.u32 %v12958_v14, 16  ;;  %v4001_v34 = vsel %vm557_vm1, %v3997_v17, %v4000_v13  ;;  %v684_v35 = vor.u32 %v682_v19, %v680_v11  ;;  %v4016_v37 = vshrl.u32 %v12958_v14, 16 }
  0x40   : > { %v4019_v39 = vshll.u32 %v12964_v21, 16  ;;  %v4008_v40 = vsel %vm557_vm1, %v4004_v18, %v4007_v23  ;;  %v4011_v46 = vor.u32 %v4009_v28, %v4007_v23  ;;  %v702_v47 = vshll.u32 %v12198_v33, 16  ;;  %v13008_v23 = vld [vmem:[%s12819_s29 + $0xa8] sm:$0xff]  }
  0x41   : > { %10420 = vmatmul.mubr.msk.bf16.gmra.mrb[16].mxu1 %vm970_vm0, %v641_v27  ;;  %v694_v27 = vshll.u32 %v12196_v12, 16  ;;  %v698_v51 = vshrl.u32 %v12196_v12, 16  ;;  %v706_v52 = vshrl.u32 %v12198_v33, 16  ;;  %v710_v55 = vshll.u32 %v12200_v43, 16 }
  0x42   : > { %10423 = vmatprep.mubr.msk.bf16.mxu1 %vm970_vm0, %v649_v32  ;;  %v688_v32 = vrot.slane %v686_v15, 1  ;;  %v4021_v50 = vrot.slane %v4019_v39, 1  ;;  %v4023_v60 = vshrl.u32 %v12964_v21, 16  ;;  %v4026_v61 = vshll.u32 %v12982_v48, 16 }
  0x43   : > { %10836 = vmatmul.mubr.msk.bf16.gmra.mrb[16].mxu0 %vm970_vm0, %v3973_v41  ;;  %v696_v42 = vrot.slane %v694_v27, 1  ;;  %v4030_v3 = vshrl.u32 %v12982_v48, 16  ;;  %v712_v7 = vrot.slane %v710_v55, 1  ;;  %v4033_v8 = vshll.u32 %v12988_v56, 16 }
  0x44   : > { %10839 = vmatprep.mubr.msk.bf16.mxu0 %vm970_vm0, %v3980_v44  ;;  %v692_v41 = vor.u32 %v690_v26, %v688_v32  ;;  %v4014_v44 = vrot.slane %v4012_v29, 1  ;;  %v689_v49 = vsel %vm557_vm1, %v684_v35, %v688_v32  ;;  %v4028_v10 = vrot.slane %v4026_v61, 1  ;;  %v12215_v26 = vld [vmem:[%s15094_s1 + $0x10] sm:$0xff]   ;;  %v13020_v32 = vld [vmem:[%s15094_s1 + $0xc0] sm:$0xff]  }
  0x45   : > { %v718_v11 = vshll.u32 %v12202_v63, 16  ;;  %v4025_v13 = vor.u32 %v4023_v60, %v4021_v50  ;;  %v714_v15 = vshrl.u32 %v12200_v43, 16  ;;  %v4035_v19 = vrot.slane %v4033_v8, 1  ;;  %10503 = vmatprep.subr.bf16.mxu1 %v12215_v26  ;;  %11019 = vmatprep.subr.bf16.mxu0 %v13020_v32 }
  0x46   : > { %v697_v53 = vsel %vm557_vm1, %v692_v41, %v696_v42  ;;  %v4015_v0 = vsel %vm557_vm1, %v4011_v46, %v4014_v44  ;;  %v4032_v18 = vor.u32 %v4030_v3, %v4028_v10  ;;  %v4037_v29 = vshrl.u32 %v12988_v56, 16  ;;  %10504 = vmatpush3.bf16.msra.mxu1 %v12215_v26  ;;  %v13031_v46 = vld [vmem:[%s12819_s29 + $0xb0] sm:$0xff]  }
  0x47   : > { %v720_v28 = vrot.slane %v718_v11, 1  ;;  %v4029_v33 = vsel %vm557_vm1, %v4025_v13, %v4028_v10  ;;  %v4047_v41 = vshll.u32 %v13008_v23, 16  ;;  %v738_v55 = vshrl.u32 %v12207_v30, 16  ;;  %v12213_v10 = vld [vmem:[%s12809_s22 + $0xc8] sm:$0xff]  }
  0x48   : > { %v4036_v39 = vsel %vm557_vm1, %v4032_v18, %v4035_v19  ;;  %v4054_v61 = vshll.u32 %v13031_v46, 16  ;;  %v4051_v3 = vshrl.u32 %v13008_v23, 16  ;;  %v4058_v8 = vshrl.u32 %v13031_v46, 16  ;;  %v13053_v18 = vld [vmem:[%s12819_s29 + $0xc0] sm:$0xff]  }
  0x49   : > { %10424 = vmatmul.mubr.msk.bf16.gmra.mrb[20].mxu1 %vm970_vm0, %v657_v54  ;;  %v4018_v54 = vor.u32 %v4016_v37, %v4014_v44  ;;  %v734_v44 = vshll.u32 %v12207_v30, 16  ;;  %v12214_v30 = vld [vmem:[%s12809_s22 + $0xd0] sm:$0xff]  }
  0x4a   : > { %10427 = vmatprep.mubr.msk.bf16.mxu1 %vm970_vm0, %v665_v59  ;;  %v704_v59 = vrot.slane %v702_v47, 1  ;;  %v4056_v11 = vrot.slane %v4054_v61, 1 }
  0x4b   : > { %10840 = vmatmul.mubr.msk.bf16.gmra.mrb[20].mxu0 %vm970_vm0, %v3987_v1  ;;  %v700_v1 = vor.u32 %v698_v51, %v696_v42  ;;  %v4022_v5 = vsel %vm557_vm1, %v4018_v54, %v4021_v50  ;;  %v12209_v42 = vld [vmem:[%s12809_s22 + $0xb8] sm:$0xff]   ;;  %v730_v51 = vshrl.u32 %v12205_v4, 16  ;;  %v4049_v54 = vrot.slane %v4047_v41, 1 }
  0x4c   : > { %10843 = vmatprep.mubr.msk.bf16.mxu0 %vm970_vm0, %v3994_v9  ;;  %v708_v6 = vor.u32 %v706_v52, %v704_v59  ;;  %v13001_v9 = vld [vmem:[%s12819_s29 + $0xa0] sm:$0xff]   ;;  %v13036_v52 = vld [vmem:[%s12819_s29 + $0xb8] sm:$0xff]   ;;  %v736_v60 = vrot.slane %v734_v44, 1  ;;  %v4931_v44 = vrot.slane %v12825_v20, 1 }
  0x4d   : > { %v705_v12 = vsel %vm557_vm1, %v700_v1, %v704_v59  ;;  %v4040_v27 = vshll.u32 %v13001_v9, 16  ;;  %v4044_v37 = vshrl.u32 %v13001_v9, 16  ;;  %v742_v59 = vshll.u32 %v12209_v42, 16  ;;  %v12217_v41 = vld [vmem:[%s12809_s22 + $0xd8] sm:$0xff]  }
  0x4e   : > { %v713_v17 = vsel %vm557_vm1, %v708_v6, %v712_v7  ;;  %v740_v6 = vor.u32 %v738_v55, %v736_v60  ;;  %v770_v55 = vshrl.u32 %v12214_v30, 16 }
  0x4f   : > { %v4042_v43 = vrot.slane %v4040_v27, 1  ;;  %v758_v27 = vshll.u32 %v12213_v10, 16 }
  0x51   : > { %10428 = vmatmul.mubr.msk.bf16.gmra.mrb[24].mxu1 %vm970_vm0, %v673_v16  ;;  %v726_v16 = vshll.u32 %v12205_v4, 16  ;;  %v4046_v50 = vor.u32 %v4044_v37, %v4042_v43  ;;  %v4061_v4 = vshll.u32 %v13036_v52, 16 }
  0x52   : > { %10431 = vmatprep.mubr.msk.bf16.mxu1 %vm970_vm0, %v681_v22  ;;  %v722_v22 = vshrl.u32 %v12202_v63, 16  ;;  %v12211_v63 = vld [vmem:[%s12809_s22 + $0xc0] sm:$0xff]  }
  0x53   : > { %10844 = vmatmul.mubr.msk.bf16.gmra.mrb[24].mxu0 %vm970_vm0, %v4001_v34  ;;  %v716_v34 = vor.u32 %v714_v15, %v712_v7  ;;  %v728_v35 = vrot.slane %v726_v16, 1  ;;  %v744_v7 = vrot.slane %v742_v59, 1  ;;  %v750_v13 = vshll.u32 %v12211_v63, 16 }
  0x54   : > { %10847 = vmatprep.mubr.msk.bf16.mxu0 %vm970_vm0, %v4008_v40  ;;  %v724_v40 = vor.u32 %v722_v22, %v720_v28  ;;  %v4053_v16 = vor.u32 %v4051_v3, %v4049_v54  ;;  %v4060_v22 = vor.u32 %v4058_v8, %v4056_v11  ;;  %v754_v26 = vshrl.u32 %v12211_v63, 16  ;;  %v12219_v3 = vld [vmem:[%s12809_s22 + $0xe8] sm:$0xff]  }
  0x55   : > { %v721_v47 = vsel %vm557_vm1, %v716_v34, %v720_v28  ;;  %v732_v1 = vor.u32 %v730_v51, %v728_v35  ;;  %v752_v28 = vrot.slane %v750_v13, 1  ;;  %v4932_v51 = vrot.slane %v12828_v24, 1 }
  0x56   : > { %v774_v59 = vshll.u32 %v12217_v41, 16  ;;  %v778_v8 = vshrl.u32 %v12217_v41, 16  ;;  %v790_v13 = vshll.u32 %v12219_v3, 16 }
  0x57   : > { %v737_v15 = vsel %vm557_vm1, %v732_v1, %v736_v60  ;;  %v12218_v60 = vld [vmem:[%s12809_s22 + $0xe0] sm:$0xff]   ;;  %v4933_v24 = vsel %vm2078_vm2, %v4931_v44, %v4932_v51 }
  0x58   : > { %v776_v1 = vrot.slane %v774_v59, 1  ;;  %v12222_v44 = vld [vmem:[%s12809_s22 + $0x100] sm:$0xff]  }
  0x59   : > { %10432 = vmatmul.mubr.msk.bf16.gmra.mrb[28].mxu1 %vm970_vm0, %v689_v49  ;;  %v4039_v49 = vor.u32 %v4037_v29, %v4035_v19  ;;  %v745_v19 = vsel %vm557_vm1, %v740_v6, %v744_v7  ;;  %v4065_v29 = vshrl.u32 %v13036_v52, 16  ;;  %v12524_v6 = vld [vmem:[%s12819_s29 + $0x10] sm:$0xff]  }
  0x5a   : > { %10435 = vmatprep.mubr.msk.bf16.mxu1 %vm970_vm0, %v697_v53  ;;  %v729_v53 = vsel %vm557_vm1, %v724_v40, %v728_v35  ;;  %v4068_v35 = vshll.u32 %v13053_v18, 16  ;;  %v760_v40 = vrot.slane %v758_v27, 1 }
  0x5b   : > { %10848 = vmatmul.mubr.msk.bf16.gmra.mrb[28].mxu0 %vm970_vm0, %v4015_v0  ;;  %v4043_v0 = vsel %vm557_vm1, %v4039_v49, %v4042_v43 }
  0x5c   : > { %10851 = vmatprep.mubr.msk.bf16.mxu0 %vm970_vm0, %v4022_v5  ;;  %v4050_v5 = vsel %vm557_vm1, %v4046_v50, %v4049_v54  ;;  %v13071_v50 = vrot.slane %v4068_v35, 1 }
  0x5e   : > { %15112 = vst [vmem:[#allocation2_spill] sm:$0xff] %v13071_v50 }
  0x61   : > { %10436 = vmatmul.mubr.msk.bf16.gmra.mrb[32].mxu1 %vm970_vm0, %v705_v12  ;;  %v746_v12 = vshrl.u32 %v12209_v42, 16  ;;  %v12229_v42 = vld [vmem:[%s15094_s1 + $0x18] sm:$0xff]  }
  0x62   : > { %10439 = vmatprep.mubr.msk.bf16.mxu1 %vm970_vm0, %v713_v17  ;;  %v4063_v17 = vrot.slane %v4061_v4, 1  ;;  %10505 = vmatprep.subr.bf16.mxu1 %v12229_v42  ;;  %v782_v4 = vshll.u32 %v12218_v60, 16 }
  0x63   : > { %10852 = vmatmul.mubr.msk.bf16.gmra.mrb[32].mxu0 %vm970_vm0, %v4029_v33  ;;  %v4057_v33 = vsel %vm557_vm1, %v4053_v16, %v4056_v11  ;;  %v748_v34 = vor.u32 %v746_v12, %v744_v7  ;;  %10506 = vmatpush3.bf16.msra.mxu1 %v12229_v42  ;;  %v4934_v7 = vrot.slane %v12524_v6, 1  ;;  %v4936_v11 = vrot.slane %v12840_v38, 1  ;;  %v12220_v16 = vld [vmem:[%s12809_s22 + $0xf0] sm:$0xff]  }
  0x64   : > { %10855 = vmatprep.mubr.msk.bf16.mxu0 %vm970_vm0, %v4036_v39  ;;  %v4064_v37 = vsel %vm557_vm1, %v4060_v22, %v4063_v17  ;;  %v756_v39 = vor.u32 %v754_v26, %v752_v28  ;;  %v4067_v43 = vor.u32 %v4065_v29, %v4063_v17  ;;  %v786_v12 = vshrl.u32 %v12218_v60, 16  ;;  %v12221_v22 = vld [vmem:[%s12809_s22 + $0xf8] sm:$0xff]   ;;  %v13096_v26 = vld [vmem:[%s15094_s1 + $0x40] sm:$0xff]   ;;  %v12230_v29 = vld [vmem:[%s15094_s1 + $0xc8] sm:$0xff]  }
  0x65   : > { %v753_v49 = vsel %vm557_vm1, %v748_v34, %v752_v28  ;;  %v4935_v17 = vsel %vm2078_vm2, %v4932_v51, %v4934_v7  ;;  %v4937_v38 = vsel %vm2078_vm2, %v4934_v7, %v4936_v11  ;;  %v792_v28 = vrot.slane %v790_v13, 1  ;;  %10603 = vmatprep.subr.bf16.mxu1 %v13096_v26  ;;  %v12525_v34 = vld [vmem:[%s12819_s29 + $0x20] sm:$0xff]  }
  0x66   : > { %v761_v54 = vsel %vm557_vm1, %v756_v39, %v760_v40  ;;  %v4071_v61 = vsel %vm557_vm1, %v4067_v43, %v13071_v50  ;;  %v4938_v35 = vrot.slane %v12525_v34, 1  ;;  %v802_v41 = vshrl.u32 %v12220_v16, 16 }
  0x67   : > { %v806_v42 = vshll.u32 %v12221_v22, 16 }
  0x69   : > { %10440 = vmatmul.mubr.msk.bf16.gmra.mrb[36].mxu1 %vm970_vm0, %v721_v47  ;;  %v766_v47 = vshll.u32 %v12214_v30, 16  ;;  %v798_v30 = vshll.u32 %v12220_v16, 16 }
  0x6a   : > { %10443 = vmatprep.mubr.msk.bf16.mxu1 %vm970_vm0, %v729_v53  ;;  %v762_v53 = vshrl.u32 %v12213_v10, 16 }
  0x6b   : > { %10856 = vmatmul.mubr.msk.bf16.gmra.mrb[36].mxu0 %vm970_vm0, %v4043_v0  ;;  %v768_v20 = vrot.slane %v766_v47, 1  ;;  %v800_v43 = vrot.slane %v798_v30, 1  ;;  %v4939_v47 = vsel %vm2078_vm2, %v4936_v11, %v4938_v35 }
  0x6c   : > { %10859 = vmatprep.mubr.msk.bf16.mxu0 %vm970_vm0, %v4050_v5  ;;  %v764_v63 = vor.u32 %v762_v53, %v760_v40  ;;  %v4940_v40 = vrot.slane %v12856_v62, 1  ;;  %v808_v53 = vrot.slane %v806_v42, 1 }
  0x6d   : > { %v772_v0 = vor.u32 %v770_v55, %v768_v20  ;;  %v804_v51 = vor.u32 %v802_v41, %v800_v43  ;;  %v12526_v55 = vld [vmem:[%s12819_s29 + $0x30] sm:$0xff]  }
  0x6e   : > { %v769_v5 = vsel %vm557_vm1, %v764_v63, %v768_v20  ;;  %v4941_v62 = vsel %vm2078_vm2, %v4938_v35, %v4940_v40  ;;  %v4942_v59 = vrot.slane %v12526_v55, 1  ;;  %v814_v20 = vshll.u32 %v12222_v44, 16 }
  0x6f   : > { %v777_v10 = vsel %vm557_vm1, %v772_v0, %v776_v1  ;;  %v809_v0 = vsel %vm557_vm1, %v804_v51, %v808_v53  ;;  %v4956_v55 = vrot.slane %v12925_v31, 1 }
  0x70   : > { %v4943_v6 = vsel %vm2078_vm2, %v4940_v40, %v4942_v59 }
  0x71   : > { %10444 = vmatmul.mubr.msk.bf16.gmra.mrb[40].mxu1 %vm970_vm0, %v737_v15  ;;  %v784_v15 = vrot.slane %v782_v4, 1  ;;  %v13126_v4 = vld [vmem:[%s12809_s22 + $0x110] sm:$0xff]  }
  0x72   : > { %10447 = vmatprep.mubr.msk.bf16.mxu1 %vm970_vm0, %v745_v19  ;;  %v780_v19 = vor.u32 %v778_v8, %v776_v1  ;;  %v818_v1 = vshrl.u32 %v12222_v44, 16  ;;  %v4946_v8 = vrot.slane %v12876_v36, 1  ;;  %v12258_v36 = vld [vmem:[%s15094_s1 + $0xd8] sm:$0xff]   ;;  %v13168_v44 = vld [vmem:[%s12809_s22 + $0x130] sm:$0xff]  }
  0x73   : > { %10860 = vmatmul.mubr.msk.bf16.gmra.mrb[40].mxu0 %vm970_vm0, %v4057_v33  ;;  %v788_v27 = vor.u32 %v786_v12, %v784_v15 }
  0x74   : > { %10863 = vmatprep.mubr.msk.bf16.mxu0 %vm970_vm0, %v4064_v37  ;;  %v785_v33 = vsel %vm557_vm1, %v780_v19, %v784_v15  ;;  %v794_v37 = vshrl.u32 %v12219_v3, 16  ;;  %v4948_v15 = vrot.slane %v12885_v45, 1  ;;  %v13139_v19 = vld [vmem:[%s12809_s22 + $0x120] sm:$0xff]  }
  0x75   : > { %v793_v39 = vsel %vm557_vm1, %v788_v27, %v792_v28  ;;  %v834_v27 = vshrl.u32 %v13126_v4, 16 }
  0x79   : > { %10448 = vmatmul.mubr.msk.bf16.gmra.mrb[44].mxu1 %vm970_vm0, %v753_v49  ;;  %v796_v49 = vor.u32 %v794_v37, %v792_v28  ;;  %v846_v37 = vshll.u32 %v13139_v19, 16 }
  0x7a   : > { %10451 = vmatprep.mubr.msk.bf16.mxu1 %vm970_vm0, %v761_v54  ;;  %v12223_v54 = vld [vmem:[%s12809_s22 + $0x108] sm:$0xff]  }
  0x7b   : > { %10864 = vmatmul.mubr.msk.bf16.gmra.mrb[44].mxu0 %vm970_vm0, %v4071_v61  ;;  %v801_v60 = vsel %vm557_vm1, %v796_v49, %v800_v43  ;;  %v12527_v61 = vld [vmem:[%s12819_s29 + $0x38] sm:$0xff]   ;;  %v822_v3 = vshll.u32 %v12223_v54, 16  ;;  %v826_v16 = vshrl.u32 %v12223_v54, 16  ;;  %v850_v43 = vshrl.u32 %v13139_v19, 16 }
  0x7c   : > { %10923 = vmatprep.mubr.msk.bf16.mxu0 %vm970_vm0, %v4933_v24  ;;  %v4944_v63 = vrot.slane %v12527_v61, 1  ;;  %v810_v24 = vshrl.u32 %v12221_v22, 16  ;;  %v4950_v22 = vrot.slane %v12895_v58, 1  ;;  %v4952_v58 = vrot.slane %v12902_v2, 1 }
  0x7d   : > { %v824_v13 = vrot.slane %v822_v3, 1  ;;  %v4954_v49 = vrot.slane %v12917_v25, 1 }
  0x7e   : > { %v812_v7 = vor.u32 %v810_v24, %v808_v53  ;;  %v4945_v11 = vsel %vm2078_vm2, %v4942_v59, %v4944_v63  ;;  %v4951_v51 = vsel %vm2078_vm2, %v4948_v15, %v4950_v22  ;;  %v4953_v59 = vsel %vm2078_vm2, %v4950_v22, %v4952_v58 }
  0x7f   : > { %v828_v34 = vor.u32 %v826_v16, %v824_v13  ;;  %v866_v24 = vshrl.u32 %v13168_v44, 16  ;;  %v4955_v3 = vsel %vm2078_vm2, %v4952_v58, %v4954_v49 }
  0x81   : > { %10452 = vmatmul.mubr.msk.bf16.gmra.mrb[48].mxu1 %vm970_vm0, %v769_v5  ;;  %v816_v5 = vrot.slane %v814_v20, 1 }
  0x82   : > { %10455 = vmatprep.mubr.msk.bf16.mxu1 %vm970_vm0, %v777_v10  ;;  %v13133_v10 = vld [vmem:[%s12809_s22 + $0x118] sm:$0xff]  }
  0x83   : > { %10924 = vmatmul.mubr.msk.bf16.vlgmr.msra.gmra.mrb[0].mxu0 %vm970_vm0, %v4935_v17  ;;  %v820_v12 = vor.u32 %v818_v1, %v816_v5  ;;  %v830_v17 = vshll.u32 %v13126_v4, 16  ;;  %v838_v45 = vshll.u32 %v13133_v10, 16  ;;  %v842_v2 = vshrl.u32 %v13133_v10, 16  ;;  %v13189_v1 = vld [vmem:[%s12809_s22 + $0x140] sm:$0xff]  }
  0x84   : > { %11020 = vmatpush3.bf16.msra.mxu0 %v13020_v32  ;;  %10927 = vmatprep.mubr.msk.bf16.mxu0 %vm970_vm0, %v4937_v38  ;;  %v12244_v32 = vld [vmem:[%s15094_s1 + $0xd0] sm:$0xff]   ;;  %v817_v38 = vsel %vm557_vm1, %v812_v7, %v816_v5 }
  0x85   : > { %11021 = vmatprep.subr.bf16.mxu0 %v12230_v29  ;;  %v825_v28 = vsel %vm557_vm1, %v820_v12, %v824_v13  ;;  %v832_v30 = vrot.slane %v830_v17, 1  ;;  %v840_v35 = vrot.slane %v838_v45, 1  ;;  %v878_v12 = vshll.u32 %v13189_v1, 16 }
  0x87   : > { %v836_v40 = vor.u32 %v834_v27, %v832_v30  ;;  %v833_v42 = vsel %vm557_vm1, %v828_v34, %v832_v30  ;;  %v844_v53 = vor.u32 %v842_v2, %v840_v35  ;;  %v880_v45 = vrot.slane %v878_v12, 1 }
  0x88   : > { %11022 = vmatpush3.bf16.msra.mxu0 %v12230_v29  ;;  %v13152_v29 = vld [vmem:[%s12809_s22 + $0x128] sm:$0xff]  }
  0x89   : > { %10456 = vmatmul.mubr.msk.bf16.gmra.mrb[52].mxu1 %vm970_vm0, %v785_v33  ;;  %11023 = vmatprep.subr.bf16.mxu0 %v12244_v32  ;;  %v4947_v33 = vsel %vm2078_vm2, %v4944_v63, %v4946_v8  ;;  %v854_v41 = vshll.u32 %v13152_v29, 16  ;;  %v858_v25 = vshrl.u32 %v13152_v29, 16 }
  0x8a   : > { %10459 = vmatprep.mubr.msk.bf16.mxu1 %vm970_vm0, %v793_v39  ;;  %v4949_v39 = vsel %vm2078_vm2, %v4946_v8, %v4948_v15  ;;  %v12528_v15 = vld [vmem:[%s12819_s29 + $0x70] sm:$0xff]  }
  0x8b   : > { %10928 = vmatmul.mubr.msk.bf16.gmra.mrb[4].mxu0 %vm970_vm0, %v4939_v47  ;;  %v848_v47 = vrot.slane %v846_v37, 1  ;;  %v856_v54 = vrot.slane %v854_v41, 1  ;;  %v4958_v16 = vrot.slane %v12528_v15, 1 }
  0x8c   : > { %10931 = vmatprep.mubr.msk.bf16.mxu0 %vm970_vm0, %v4941_v62  ;;  %11024 = vmatpush3.bf16.msra.mxu0 %v12244_v32  ;;  %v841_v32 = vsel %vm557_vm1, %v836_v40, %v840_v35  ;;  %v13173_v62 = vld [vmem:[%s12809_s22 + $0x138] sm:$0xff]   ;;  %v4962_v40 = vrot.slane %v12958_v14, 1 }
  0x8d   : > { %11025 = vmatprep.subr.bf16.mxu0 %v12258_v36  ;;  %v852_v20 = vor.u32 %v850_v43, %v848_v47  ;;  %v849_v61 = vsel %vm557_vm1, %v844_v53, %v848_v47  ;;  %v870_v31 = vshll.u32 %v13173_v62, 16  ;;  %v860_v5 = vor.u32 %v858_v25, %v856_v54  ;;  %v13234_v53 = vld [vmem:[%s12809_s22 + $0x168] sm:$0xff]  }
  0x8e   : > { %v874_v17 = vshrl.u32 %v13173_v62, 16  ;;  %v4959_v30 = vsel %vm2078_vm2, %v4956_v55, %v4958_v16  ;;  %v4966_v25 = vrot.slane %v12982_v48, 1  ;;  %v922_v15 = vshrl.u32 %v13234_v53, 16 }
  0x8f   : > { %v857_v63 = vsel %vm557_vm1, %v852_v20, %v856_v54  ;;  %v872_v8 = vrot.slane %v870_v31, 1  ;;  %v4968_v31 = vrot.slane %v12988_v56, 1 }
  0x90   : > { %11026 = vmatpush3.bf16.msra.mxu0 %v12258_v36  ;;  %v4960_v36 = vrot.slane %v12946_v57, 1  ;;  %v13215_v57 = vld [vmem:[%s12809_s22 + $0x158] sm:$0xff]  }
  0x91   : > { %10460 = vmatmul.mubr.msk.bf16.gmra.mrb[56].mxu1 %vm970_vm0, %v801_v60  ;;  %v862_v60 = vshll.u32 %v13168_v44, 16  ;;  %v876_v58 = vor.u32 %v874_v17, %v872_v8  ;;  %v902_v43 = vshll.u32 %v13215_v57, 16  ;;  %v13271_v17 = vld [vmem:[%s15094_s1 + $0xe0] sm:$0xff]  }
  0x92   : > { %10463 = vmatprep.mubr.msk.bf16.mxu1 %vm970_vm0, %v809_v0  ;;  %11123 = vmatprep.subr.bf16.mxu0 %v13271_v17 }
  0x93   : > { %10932 = vmatmul.mubr.msk.bf16.gmra.mrb[8].mxu0 %vm970_vm0, %v4943_v6  ;;  %v864_v0 = vrot.slane %v862_v60, 1  ;;  %v4957_v6 = vsel %vm2078_vm2, %v4954_v49, %v4956_v55  ;;  %v13229_v49 = vld [vmem:[%s12809_s22 + $0x160] sm:$0xff]   ;;  %v904_v55 = vrot.slane %v902_v43, 1  ;;  %v906_v60 = vshrl.u32 %v13215_v57, 16 }
  0x94   : > { %10935 = vmatprep.mubr.msk.bf16.mxu0 %vm970_vm0, %v4945_v11  ;;  %v13195_v11 = vld [vmem:[%s12809_s22 + $0x148] sm:$0xff]  }
  0x95   : > { %v868_v7 = vor.u32 %v866_v24, %v864_v0  ;;  %v865_v13 = vsel %vm557_vm1, %v860_v5, %v864_v0  ;;  %v886_v27 = vshll.u32 %v13195_v11, 16  ;;  %v890_v2 = vshrl.u32 %v13195_v11, 16  ;;  %v13253_v5 = vld [vmem:[%s12809_s22 + $0x178] sm:$0xff]  }
  0x96   : > { %v914_v0 = vshrl.u32 %v13229_v49, 16  ;;  %v908_v56 = vor.u32 %v906_v60, %v904_v55  ;;  %v12256_v60 = vld [vmem:[%s15094_s1 + $0x48] sm:$0xff]  }
  0x97   : > { %v873_v22 = vsel %vm557_vm1, %v868_v7, %v872_v8  ;;  %v888_v35 = vrot.slane %v886_v27, 1 }
  0x99   : > { %10464 = vmatmul.mubr.msk.bf16.gmra.mrb[60].mxu1 %vm970_vm0, %v817_v38  ;;  %v882_v38 = vshrl.u32 %v13189_v1, 16  ;;  %v892_v14 = vor.u32 %v890_v2, %v888_v35 }
  0x9a   : > { %10467 = vmatprep.mubr.msk.bf16.mxu1 %vm970_vm0, %v825_v28  ;;  %v13209_v28 = vld [vmem:[%s12809_s22 + $0x150] sm:$0xff]  }
  0x9b   : > { %10936 = vmatmul.mubr.msk.bf16.gmra.mrb[12].mxu0 %vm970_vm0, %v4947_v33  ;;  %v4961_v33 = vsel %vm2078_vm2, %v4958_v16, %v4960_v36  ;;  %v884_v34 = vor.u32 %v882_v38, %v880_v45  ;;  %v894_v37 = vshll.u32 %v13209_v28, 16  ;;  %v4974_v16 = vrot.slane %v13031_v46, 1 }
  0x9c   : > { %10939 = vmatprep.mubr.msk.bf16.mxu0 %vm970_vm0, %v4949_v39  ;;  %v881_v39 = vsel %vm557_vm1, %v876_v58, %v880_v45  ;;  %v12240_v45 = vld [vmem:[%s12809_s22 + $0x180] ss:$0 sps:$4 sm:$0xff]  }
  0x9d   : > { %v889_v41 = vsel %vm557_vm1, %v884_v34, %v888_v35  ;;  %v896_v47 = vrot.slane %v894_v37, 1  ;;  %v938_v37 = vshrl.u32 %v13253_v5, 16 }
  0x9f   : > { %v897_v20 = vsel %vm557_vm1, %v892_v14, %v896_v47 }
  0xa1   : > { %10468 = vmatmul.mubr.msk.bf16.gmra.mrb[64].mxu1 %vm970_vm0, %v833_v42  ;;  %v4964_v42 = vrot.slane %v12964_v21, 1 }
  0xa2   : > { %10471 = vmatprep.mubr.msk.bf16.mxu1 %vm970_vm0, %v841_v32  ;;  %v898_v32 = vshrl.u32 %v13209_v28, 16 }
  0xa3   : > { %10940 = vmatmul.mubr.msk.bf16.gmra.mrb[16].mxu0 %vm970_vm0, %v4951_v51  ;;  %v4963_v51 = vsel %vm2078_vm2, %v4960_v36, %v4962_v40  ;;  %v4965_v54 = vsel %vm2078_vm2, %v4962_v40, %v4964_v42  ;;  %v4967_v7 = vsel %vm2078_vm2, %v4964_v42, %v4966_v25 }
  0xa4   : > { %10943 = vmatprep.mubr.msk.bf16.mxu0 %vm970_vm0, %v4953_v59  ;;  %v900_v21 = vor.u32 %v898_v32, %v896_v47  ;;  %v910_v59 = vshll.u32 %v13229_v49, 16  ;;  %v12243_v47 = vld [vmem:[%s12819_s29 + $0xd0] sm:$0xff]  }
  0xa6   : > { %v905_v24 = vsel %vm557_vm1, %v900_v21, %v904_v55  ;;  %v912_v48 = vrot.slane %v910_v59, 1  ;;  %v4982_v21 = vrot.slane %v12243_v47, 1  ;;  %v12245_v55 = vld [vmem:[%s12819_s29 + $0xd8] sm:$0xff]   ;;  %v12254_v47 = vld [vmem:[%s12819_s29 + $0x120] sm:$0xff]  }
  0xa9   : > { %10472 = vmatmul.mubr.msk.bf16.gmra.mrb[68].mxu1 %vm970_vm0, %v849_v61  ;;  %v918_v61 = vshll.u32 %v13234_v53, 16 }
  0xaa   : > { %10475 = vmatprep.mubr.msk.bf16.mxu1 %vm970_vm0, %v857_v63  ;;  %v13246_v63 = vld [vmem:[%s12809_s22 + $0x170] sm:$0xff]  }
  0xab   : > { %10944 = vmatmul.mubr.msk.bf16.gmra.mrb[20].mxu0 %vm970_vm0, %v4955_v3  ;;  %v4970_v3 = vrot.slane %v13001_v9, 1  ;;  %v920_v8 = vrot.slane %v918_v61, 1  ;;  %v926_v12 = vshll.u32 %v13246_v63, 16  ;;  %v4969_v9 = vsel %vm2078_vm2, %v4966_v25, %v4968_v31  ;;  %v12246_v61 = vld [vmem:[%s12819_s29 + $0xe0] sm:$0xff]  }
  0xac   : > { %10947 = vmatprep.mubr.msk.bf16.mxu0 %vm970_vm0, %v4957_v6  ;;  %v4972_v6 = vrot.slane %v13008_v23, 1  ;;  %v934_v23 = vshll.u32 %v13253_v5, 16  ;;  %v930_v38 = vshrl.u32 %v13246_v63, 16  ;;  %v4984_v25 = vrot.slane %v12245_v55, 1  ;;  %v13401_v55 = vld [vmem:[%s12809_s22 + $0x58] sm:$0xff]  }
  0xad   : > { %v928_v36 = vrot.slane %v926_v12, 1  ;;  %v4971_v58 = vsel %vm2078_vm2, %v4968_v31, %v4970_v3  ;;  %v12247_v31 = vld [vmem:[%s12819_s29 + $0xe8] sm:$0xff]   ;;  %v13340_v12 = vld [vmem:[%s12809_s22 + $0x20] sm:$0xff]  }
  0xae   : > { %v936_v46 = vrot.slane %v934_v23, 1  ;;  %v4973_v34 = vsel %vm2078_vm2, %v4970_v3, %v4972_v6  ;;  %v4975_v42 = vsel %vm2078_vm2, %v4972_v6, %v4974_v16  ;;  %v4985_v6 = vsel %vm2078_vm2, %v4982_v21, %v4984_v25 }
  0xaf   : > { %v932_v35 = vor.u32 %v930_v38, %v928_v36 }
  0xb0   : > { %v940_v32 = vor.u32 %v938_v37, %v936_v46  ;;  %v13375_v37 = vld [vmem:[%s12809_s22 + $0x40] sm:$0xff]  }
  0xb1   : > { %10476 = vmatmul.mubr.msk.bf16.gmra.mrb[72].mxu1 %vm970_vm0, %v865_v13  ;;  %v916_v13 = vor.u32 %v914_v0, %v912_v48  ;;  %v12270_v0 = vld [vmem:[%s15094_s1 + $0x50] sm:$0xff]  }
  0xb2   : > { %10479 = vmatprep.mubr.msk.bf16.mxu1 %vm970_vm0, %v873_v22  ;;  %v913_v22 = vsel %vm557_vm1, %v908_v56, %v912_v48  ;;  %v13326_v48 = vld [vmem:[%s12809_s22 + $0x10] sm:$0xff]   ;;  %v4988_v56 = vrot.slane %v12247_v31, 1 }
  0xb3   : > { %10948 = vmatmul.mubr.msk.bf16.gmra.mrb[24].mxu0 %vm970_vm0, %v4959_v30  ;;  %v921_v27 = vsel %vm557_vm1, %v916_v13, %v920_v8  ;;  %v4976_v30 = vrot.slane %v13036_v52, 1  ;;  %v937_v52 = vsel %vm557_vm1, %v932_v35, %v936_v46 }
  0xb4   : > { %10951 = vmatprep.mubr.msk.bf16.mxu0 %vm970_vm0, %v4961_v33  ;;  %v924_v33 = vor.u32 %v922_v15, %v920_v8  ;;  %v12249_v15 = vld [vmem:[%s12819_s29 + $0xf8] sm:$0xff]  }
  0xb5   : > { %v4977_v43 = vsel %vm2078_vm2, %v4974_v16, %v4976_v30  ;;  %v4992_v23 = vrot.slane %v12249_v15, 1 }
  0xb6   : > { %v929_v40 = vsel %vm557_vm1, %v924_v33, %v928_v36  ;;  %v12284_v36 = vld [vmem:[%s15094_s1 + $0x58] sm:$0xff]  }
  0xb9   : > { %10480 = vmatmul.mubr.msk.bf16.gmra.mrb[76].mxu1 %vm970_vm0, %v881_v39  ;;  %v942_v39 = vshll.u32 %v12240_v45, 16  ;;  %v12250_v45 = vld [vmem:[%s12819_s29 + $0x100] sm:$0xff]  }
  0xba   : > { %10483 = vmatprep.mubr.msk.bf16.mxu1 %vm970_vm0, %v889_v41  ;;  %v12241_v41 = vld [vmem:[%s12819_s29 + $0xc8] sm:$0xff]  }
  0xbb   : > { %10952 = vmatmul.mubr.msk.bf16.gmra.mrb[28].mxu0 %vm970_vm0, %v4963_v51  ;;  %v944_v2 = vrot.slane %v942_v39, 1  ;;  %v4978_v51 = vrot.slane %v13053_v18, 1  ;;  %v4980_v14 = vrot.slane %v12241_v41, 1  ;;  %v12252_v39 = vld [vmem:[%s12819_s29 + $0x110] sm:$0xff]  }
  0xbc   : > { %10955 = vmatprep.mubr.msk.bf16.mxu0 %vm970_vm0, %v4965_v54 }
  0xbd   : > { %v945_v54 = vsel %vm557_vm1, %v940_v32, %v944_v2  ;;  %v4979_v59 = vsel %vm2078_vm2, %v4976_v30, %v4978_v51  ;;  %v4981_v18 = vsel %vm2078_vm2, %v4978_v51, %v4980_v14  ;;  %v4983_v3 = vsel %vm2078_vm2, %v4980_v14, %v4982_v21  ;;  %v12251_v30 = vld [vmem:[%s12819_s29 + $0x108] sm:$0xff]  }
  0xbe   : > { %v4996_v33 = vrot.slane %v12251_v30, 1  ;;  %v4998_v2 = vrot.slane %v12252_v39, 1  ;;  %v12255_v14 = vld [vmem:[%s12819_s29 + $0x128] sm:$0xff]  }
  0xbf   : > { %v5004_v21 = vrot.slane %v12255_v14, 1 }
  0xc0   : > { %v4999_v32 = vsel %vm2078_vm2, %v4996_v33, %v4998_v2 }
  0xc1   : > { %10484 = vmatmul.mubr.msk.bf16.gmra.mrb[80].mxu1 %vm970_vm0, %v897_v20  ;;  %v13303_v20 = vld [vmem:[%s12809_s22] sm:$0xff]  }
  0xc2   : > { %10487 = vmatprep.mubr.msk.bf16.mxu1 %vm970_vm0, %v905_v24  ;;  %v13315_v24 = vld [vmem:[%s12809_s22 + $0x8] sm:$0xff]  }
  0xc3   : > { %10956 = vmatmul.mubr.msk.bf16.gmra.mrb[32].mxu0 %vm970_vm0, %v4967_v7  ;;  %v4986_v7 = vrot.slane %v12246_v61, 1  ;;  %v12259_v61 = vld [vmem:[%s12819_s29 + $0x138] sm:$0xff]   ;;  %v2080_v50 = vrot.slane %v13315_v24, 1 }
  0xc4   : > { %10959 = vmatprep.mubr.msk.bf16.mxu0 %vm970_vm0, %v4969_v9  ;;  %v12248_v9 = vld [vmem:[%s12819_s29 + $0xf0] sm:$0xff]  }
  0xc5   : > { %v4987_v8 = vsel %vm2078_vm2, %v4984_v25, %v4986_v7  ;;  %v4989_v13 = vsel %vm2078_vm2, %v4986_v7, %v4988_v56  ;;  %v4990_v16 = vrot.slane %v12248_v9, 1  ;;  %v12257_v25 = vld [vmem:[%s12819_s29 + $0x130] sm:$0xff]   ;;  %v12261_v9 = vld [vmem:[%s12819_s29 + $0x148] sm:$0xff]  }
  0xc6   : > { %v5006_v31 = vrot.slane %v12257_v25, 1  ;;  %v13423_v7 = vld [vmem:[%s12809_s22 + $0x70] sm:$0xff]   ;;  %v5012_v15 = vrot.slane %v12261_v9, 1  ;;  %v12267_v25 = vld [vmem:[%s12819_s29 + $0x178] sm:$0xff]  }
  0xc7   : > { %v4991_v38 = vsel %vm2078_vm2, %v4988_v56, %v4990_v16  ;;  %v4993_v46 = vsel %vm2078_vm2, %v4990_v16, %v4992_v23  ;;  %v12260_v56 = vld [vmem:[%s12819_s29 + $0x140] sm:$0xff]   ;;  %v13433_v16 = vld [vmem:[%s12809_s22 + $0x78] sm:$0xff]  }
  0xc9   : > { %10488 = vmatmul.mubr.msk.bf16.gmra.mrb[84].mxu1 %vm970_vm0, %v913_v22  ;;  %v13350_v22 = vld [vmem:[%s12809_s22 + $0x28] sm:$0xff]  }
  0xca   : > { %10491 = vmatprep.mubr.msk.bf16.mxu1 %vm970_vm0, %v921_v27  ;;  %v13359_v27 = vld [vmem:[%s12809_s22 + $0x30] sm:$0xff]  }
  0xcb   : > { %10960 = vmatmul.mubr.msk.bf16.gmra.mrb[36].mxu0 %vm970_vm0, %v4971_v58  ;;  %v4994_v58 = vrot.slane %v12250_v45, 1 }
  0xcc   : > { %10963 = vmatprep.mubr.msk.bf16.mxu0 %vm970_vm0, %v4973_v34  ;;  %v13369_v34 = vld [vmem:[%s12809_s22 + $0x38] sm:$0xff]  }
  0xcd   : > { %v4995_v35 = vsel %vm2078_vm2, %v4992_v23, %v4994_v58 }
  0xd1   : > { %10492 = vmatmul.mubr.msk.bf16.gmra.mrb[88].mxu1 %vm970_vm0, %v929_v40  ;;  %v4997_v40 = vsel %vm2078_vm2, %v4994_v58, %v4996_v33  ;;  %v13449_v33 = vld [vmem:[%s12809_s22 + $0x88] sm:$0xff]  }
  0xd2   : > { %10495 = vmatprep.mubr.msk.bf16.mxu1 %vm970_vm0, %v937_v52  ;;  %v12253_v52 = vld [vmem:[%s12819_s29 + $0x118] sm:$0xff]  }
  0xd3   : > { %10964 = vmatmul.mubr.msk.bf16.gmra.mrb[40].mxu0 %vm970_vm0, %v4975_v42  ;;  %v5000_v41 = vrot.slane %v12253_v52, 1  ;;  %v13385_v42 = vld [vmem:[%s12809_s22 + $0x48] sm:$0xff]   ;;  %v12264_v52 = vld [vmem:[%s12819_s29 + $0x160] sm:$0xff]  }
  0xd4   : > { %10967 = vmatprep.mubr.msk.bf16.mxu0 %vm970_vm0, %v4977_v43  ;;  %v13391_v43 = vld [vmem:[%s12809_s22 + $0x50] sm:$0xff]  }
  0xd5   : > { %v5001_v51 = vsel %vm2078_vm2, %v4998_v2, %v5000_v41 }
  0xd9   : > { %10496 = vmatmul.mubr.msk.bf16.gmra.mrb[92].mxu1 %vm970_vm0, %v945_v54  ;;  %v5002_v54 = vrot.slane %v12254_v47, 1 }
  0xda   : > { %10507 = vmatprep.mubr.msk.bf16.mxu1 %vm970_vm0, %v13303_v20 }
  0xdb   : > { %10968 = vmatmul.mubr.msk.bf16.gmra.mrb[44].mxu0 %vm970_vm0, %v4979_v59  ;;  %v5003_v59 = vsel %vm2078_vm2, %v5000_v41, %v5002_v54  ;;  %v12265_v41 = vld [vmem:[%s12819_s29 + $0x168] sm:$0xff]  }
  0xdc   : > { %10971 = vmatprep.mubr.msk.bf16.mxu0 %vm970_vm0, %v4981_v18  ;;  %v13407_v18 = vld [vmem:[%s12809_s22 + $0x60] sm:$0xff]   ;;  %v5020_v47 = vrot.slane %v12265_v41, 1  ;;  %v13551_v41 = vld [vmem:[%s13256_s21 + $0x18] sm:$0xff]  }
  0xe1   : > { %10508 = vmatmul.mubr.msk.bf16.vlgmr.msra.gmra.mrb[0].mxu1 %vm970_vm0, %v13315_v24  ;;  %v2082_v24 = vrot.slane %v13326_v48, 1 }
  0xe2   : > { %10604 = vmatpush3.bf16.msra.mxu1 %v13096_v26  ;;  %10511 = vmatprep.mubr.msk.bf16.mxu1 %vm970_vm0, %v13326_v48  ;;  %v13334_v26 = vld [vmem:[%s12809_s22 + $0x18] sm:$0xff]   ;;  %v13740_v48 = vld [vmem:[%s13256_s21 + $0xc8] sm:$0xff]  }
  0xe3   : > { %10605 = vmatprep.subr.bf16.mxu1 %v12256_v60  ;;  %10972 = vmatmul.mubr.msk.bf16.gmra.mrb[48].mxu0 %vm970_vm0, %v4983_v3  ;;  %v13417_v3 = vld [vmem:[%s12809_s22 + $0x68] sm:$0xff]  }
  0xe4   : > { %10975 = vmatprep.mubr.msk.bf16.mxu0 %vm970_vm0, %v4985_v6  ;;  %v5007_v6 = vsel %vm2078_vm2, %v5004_v21, %v5006_v31 }
  0xe6   : > { %10606 = vmatpush3.bf16.msra.mxu1 %v12256_v60  ;;  %v5005_v60 = vsel %vm2078_vm2, %v5002_v54, %v5004_v21  ;;  %v13477_v54 = vld [vmem:[%s12809_s22 + $0xa0] sm:$0xff]   ;;  %v12266_v21 = vld [vmem:[%s12819_s29 + $0x170] sm:$0xff]  }
  0xe7   : > { %10607 = vmatprep.subr.bf16.mxu1 %v12270_v0 }
  0xe9   : > { %10512 = vmatmul.mubr.msk.bf16.gmra.mrb[4].mxu1 %vm970_vm0, %v13334_v26 }
  0xea   : > { %10515 = vmatprep.mubr.msk.bf16.mxu1 %vm970_vm0, %v13340_v12  ;;  %10608 = vmatpush3.bf16.msra.mxu1 %v12270_v0  ;;  %v5008_v0 = vrot.slane %v12259_v61, 1  ;;  %v5024_v61 = vrot.slane %v12267_v25, 1  ;;  %v12314_v25 = vld [vmem:[%s15094_s1 + $0xf8] sm:$0xff]  }
  0xeb   : > { %10976 = vmatmul.mubr.msk.bf16.gmra.mrb[52].mxu0 %vm970_vm0, %v4987_v8  ;;  %10609 = vmatprep.subr.bf16.mxu1 %v12284_v36 }
  0xec   : > { %10979 = vmatprep.mubr.msk.bf16.mxu0 %vm970_vm0, %v4989_v13  ;;  %v5009_v8 = vsel %vm2078_vm2, %v5006_v31, %v5008_v0  ;;  %v5010_v13 = vrot.slane %v12260_v56, 1  ;;  %v13487_v31 = vld [vmem:[%s12809_s22 + $0xa8] sm:$0xff]   ;;  %v12268_v56 = vld [vmem:[%s12819_s29 + $0x180] ss:$0 sps:$4 sm:$0xff]  }
  0xed   : > { %v5026_v9 = vrot.slane %v12268_v56, 1  ;;  %v13602_v56 = vld [vmem:[%s13256_s21 + $0x40] sm:$0xff]  }
  0xee   : > { %10610 = vmatpush3.bf16.msra.mxu1 %v12284_v36  ;;  %v5011_v23 = vsel %vm2078_vm2, %v5008_v0, %v5010_v13  ;;  %v13439_v36 = vld [vmem:[%s12809_s22 + $0x80] sm:$0xff]   ;;  %v5013_v45 = vsel %vm2078_vm2, %v5010_v13, %v5012_v15  ;;  %v13502_v13 = vld [vmem:[%s12809_s22 + $0xb8] sm:$0xff]  }
  0xf1   : > { %10516 = vmatmul.mubr.msk.bf16.gmra.mrb[8].mxu1 %vm970_vm0, %v13350_v22 }
  0xf2   : > { %10519 = vmatprep.mubr.msk.bf16.mxu1 %vm970_vm0, %v13359_v27 }
  0xf3   : > { %10980 = vmatmul.mubr.msk.bf16.gmra.mrb[56].mxu0 %vm970_vm0, %v4991_v38  ;;  %v12262_v38 = vld [vmem:[%s12819_s29 + $0x150] sm:$0xff]  }
  0xf4   : > { %10983 = vmatprep.mubr.msk.bf16.mxu0 %vm970_vm0, %v4993_v46  ;;  %v12263_v46 = vld [vmem:[%s12819_s29 + $0x158] sm:$0xff]   ;;  %v5014_v30 = vrot.slane %v12262_v38, 1  ;;  %v13513_v38 = vld [vmem:[%s13256_s21] sm:$0xff]  }
  0xf5   : > { %v5016_v58 = vrot.slane %v12263_v46, 1  ;;  %v13524_v46 = vld [vmem:[%s13256_s21 + $0x8] sm:$0xff]  }
  0xf6   : > { %v5015_v39 = vsel %vm2078_vm2, %v5012_v15, %v5014_v30  ;;  %v5027_v15 = vsel %vm2078_vm2, %v5024_v61, %v5026_v9  ;;  %v13614_v9 = vld [vmem:[%s13256_s21 + $0x48] sm:$0xff]  }
  0xf7   : > { %v5017_v2 = vsel %vm2078_vm2, %v5014_v30, %v5016_v58  ;;  %v13527_v30 = vld [vmem:[%s12809_s22 + $0xd0] sm:$0xff]  }
  0xf9   : > { %10520 = vmatmul.mubr.msk.bf16.gmra.mrb[12].mxu1 %vm970_vm0, %v13369_v34 }
  0xfa   : > { %10523 = vmatprep.mubr.msk.bf16.mxu1 %vm970_vm0, %v13375_v37 }
  0xfb   : > { %10984 = vmatmul.mubr.msk.bf16.gmra.mrb[60].mxu0 %vm970_vm0, %v4995_v35  ;;  %v13456_v35 = vld [vmem:[%s15094_s1 + $0x60] sm:$0xff]  }
  0xfc   : > { %10987 = vmatprep.mubr.msk.bf16.mxu0 %vm970_vm0, %v4997_v40  ;;  %v13460_v40 = vld [vmem:[%s12809_s22 + $0x90] sm:$0xff]   ;;  %10707 = vmatprep.subr.bf16.mxu1 %v13456_v35 }
 0x101   : > { %10524 = vmatmul.mubr.msk.bf16.gmra.mrb[16].mxu1 %vm970_vm0, %v13385_v42 }
 0x102   : > { %10527 = vmatprep.mubr.msk.bf16.mxu1 %vm970_vm0, %v13391_v43 }
 0x103   : > { %10988 = vmatmul.mubr.msk.bf16.gmra.mrb[64].mxu0 %vm970_vm0, %v4999_v32  ;;  %v5018_v32 = vrot.slane %v12264_v52, 1  ;;  %v12300_v52 = vld [vmem:[%s15094_s1 + $0xf0] sm:$0xff]  }
 0x104   : > { %10991 = vmatprep.mubr.msk.bf16.mxu0 %vm970_vm0, %v5001_v51  ;;  %v13471_v51 = vld [vmem:[%s12809_s22 + $0x98] sm:$0xff]  }
 0x105   : > { %v5019_v14 = vsel %vm2078_vm2, %v5016_v58, %v5018_v32  ;;  %v13532_v58 = vld [vmem:[%s13256_s21 + $0x10] sm:$0xff]  }
 0x109   : > { %10528 = vmatmul.mubr.msk.bf16.gmra.mrb[20].mxu1 %vm970_vm0, %v13401_v55 }
 0x10a   : > { %10531 = vmatprep.mubr.msk.bf16.mxu1 %vm970_vm0, %v13407_v18 }
 0x10b   : > { %10992 = vmatmul.mubr.msk.bf16.gmra.mrb[68].mxu0 %vm970_vm0, %v5003_v59  ;;  %v5021_v59 = vsel %vm2078_vm2, %v5018_v32, %v5020_v47  ;;  %v13554_v32 = vld [vmem:[%s12809_s22 + $0xe0] sm:$0xff]  }
 0x10c   : > { %10995 = vmatprep.mubr.msk.bf16.mxu0 %vm970_vm0, %v5005_v60  ;;  %v5022_v60 = vrot.slane %v12266_v21, 1  ;;  %v13574_v21 = vld [vmem:[%s12809_s22 + $0xf0] sm:$0xff]  }
 0x10e   : > { %v5023_v0 = vsel %vm2078_vm2, %v5020_v47, %v5022_v60  ;;  %v13566_v47 = vld [vmem:[%s12809_s22 + $0xe8] sm:$0xff]  }
 0x111   : > { %10532 = vmatmul.mubr.msk.bf16.gmra.mrb[24].mxu1 %vm970_vm0, %v13417_v3 }
 0x112   : > { %10535 = vmatprep.mubr.msk.bf16.mxu1 %vm970_vm0, %v13423_v7 }
 0x113   : > { %10996 = vmatmul.mubr.msk.bf16.gmra.mrb[72].mxu0 %vm970_vm0, %v5007_v6  ;;  %v13493_v6 = vld [vmem:[%s12809_s22 + $0xb0] sm:$0xff]  }
 0x114   : > { %10999 = vmatprep.mubr.msk.bf16.mxu0 %vm970_vm0, %v5009_v8  ;;  %v5025_v8 = vsel %vm2078_vm2, %v5022_v60, %v5024_v61  ;;  %v13589_v60 = vld [vmem:[%s12809_s22 + $0xf8] sm:$0xff]  }
 0x115   : > { %v13594_v61 = vld [vmem:[%s13256_s21 + $0x38] sm:$0xff]  }
 0x119   : > { %10536 = vmatmul.mubr.msk.bf16.gmra.mrb[28].mxu1 %vm970_vm0, %v13433_v16 }
 0x11a   : > { %10539 = vmatprep.mubr.msk.bf16.mxu1 %vm970_vm0, %v13439_v36 }
 0x11b   : > { %11000 = vmatmul.mubr.msk.bf16.gmra.mrb[76].mxu0 %vm970_vm0, %v5011_v23  ;;  %v13508_v23 = vld [vmem:[%s12809_s22 + $0xc0] sm:$0xff]  }
 0x11c   : > { %11003 = vmatprep.mubr.msk.bf16.mxu0 %vm970_vm0, %v5013_v45  ;;  %v13519_v45 = vld [vmem:[%s12809_s22 + $0xc8] sm:$0xff]  }
 0x121   : > { %10540 = vmatmul.mubr.msk.bf16.gmra.mrb[32].mxu1 %vm970_vm0, %v13449_v33 }
 0x122   : > { %10543 = vmatprep.mubr.msk.bf16.mxu1 %vm970_vm0, %v13460_v40 }
 0x123   : > { %11004 = vmatmul.mubr.msk.bf16.gmra.mrb[80].mxu0 %vm970_vm0, %v5015_v39  ;;  %v12286_v39 = vld [vmem:[%s15094_s1 + $0xe8] sm:$0xff]  }
 0x124   : > { %11007 = vmatprep.mubr.msk.bf16.mxu0 %vm970_vm0, %v5017_v2  ;;  %v13546_v2 = vld [vmem:[%s12809_s22 + $0xd8] sm:$0xff]  }
 0x129   : > { %10544 = vmatmul.mubr.msk.bf16.gmra.mrb[36].mxu1 %vm970_vm0, %v13471_v51 }
 0x12a   : > { %10547 = vmatprep.mubr.msk.bf16.mxu1 %vm970_vm0, %v13477_v54 }
 0x12b   : > { %11008 = vmatmul.mubr.msk.bf16.gmra.mrb[84].mxu0 %vm970_vm0, %v5019_v14  ;;  %v13571_v14 = vld [vmem:[%s13256_s21 + $0x28] sm:$0xff]  }
 0x12c   : > { %11011 = vmatprep.mubr.msk.bf16.mxu0 %vm970_vm0, %v5021_v59  ;;  %v13579_v59 = vld [vmem:[%s13256_s21 + $0x30] sm:$0xff]  }
 0x131   : > { %10548 = vmatmul.mubr.msk.bf16.gmra.mrb[40].mxu1 %vm970_vm0, %v13487_v31 }
 0x132   : > { %10551 = vmatprep.mubr.msk.bf16.mxu1 %vm970_vm0, %v13493_v6 }
 0x133   : > { %11012 = vmatmul.mubr.msk.bf16.gmra.mrb[88].mxu0 %vm970_vm0, %v5023_v0  ;;  %v13597_v0 = vld [vmem:[%s12809_s22 + $0x100] sm:$0xff]  }
 0x134   : > { %11015 = vmatprep.mubr.msk.bf16.mxu0 %vm970_vm0, %v5025_v8  ;;  %v13609_v8 = vld [vmem:[%s12809_s22 + $0x108] sm:$0xff]  }
 0x139   : > { %10552 = vmatmul.mubr.msk.bf16.gmra.mrb[44].mxu1 %vm970_vm0, %v13502_v13 }
 0x13a   : > { %10555 = vmatprep.mubr.msk.bf16.mxu1 %vm970_vm0, %v13508_v23 }
 0x13b   : > { %11016 = vmatmul.mubr.msk.bf16.gmra.mrb[92].mxu0 %vm970_vm0, %v5027_v15  ;;  %v13619_v15 = vld [vmem:[%s13256_s21 + $0x50] sm:$0xff]  }
 0x13c   : > { %11027 = vmatprep.mubr.msk.bf16.mxu0 %vm970_vm0, %v13513_v38 }
 0x141   : > { %10556 = vmatmul.mubr.msk.bf16.gmra.mrb[48].mxu1 %vm970_vm0, %v13519_v45 }
 0x142   : > { %10559 = vmatprep.mubr.msk.bf16.mxu1 %vm970_vm0, %v13527_v30 }
 0x143   : > { %11028 = vmatmul.mubr.msk.bf16.vlgmr.msra.gmra.mrb[0].mxu0 %vm970_vm0, %v13524_v46 }
 0x144   : > { %11124 = vmatpush3.bf16.msra.mxu0 %v13271_v17  ;;  %11031 = vmatprep.mubr.msk.bf16.mxu0 %vm970_vm0, %v13532_v58  ;;  %v13559_v17 = vld [vmem:[%s13256_s21 + $0x20] sm:$0xff]  }
 0x145   : > { %11125 = vmatprep.subr.bf16.mxu0 %v12286_v39 }
 0x148   : > { %11126 = vmatpush3.bf16.msra.mxu0 %v12286_v39  ;;  %v13628_v39 = vld [vmem:[%s13256_s21 + $0x58] sm:$0xff]  }
 0x149   : > { %10560 = vmatmul.mubr.msk.bf16.gmra.mrb[52].mxu1 %vm970_vm0, %v13546_v2  ;;  %11127 = vmatprep.subr.bf16.mxu0 %v12300_v52 }
 0x14a   : > { %10563 = vmatprep.mubr.msk.bf16.mxu1 %vm970_vm0, %v13554_v32 }
 0x14b   : > { %11032 = vmatmul.mubr.msk.bf16.gmra.mrb[4].mxu0 %vm970_vm0, %v13551_v41 }
 0x14c   : > { %11035 = vmatprep.mubr.msk.bf16.mxu0 %vm970_vm0, %v13559_v17  ;;  %11128 = vmatpush3.bf16.msra.mxu0 %v12300_v52  ;;  %v13633_v52 = vld [vmem:[%s13256_s21 + $0x60] sm:$0xff]  }
 0x14d   : > { %11129 = vmatprep.subr.bf16.mxu0 %v12314_v25 }
 0x150   : > { %11130 = vmatpush3.bf16.msra.mxu0 %v12314_v25  ;;  %v13704_v25 = vld [vmem:[%s13256_s21 + $0xa8] sm:$0xff]  }
 0x151   : > { %10564 = vmatmul.mubr.msk.bf16.gmra.mrb[56].mxu1 %vm970_vm0, %v13566_v47 }
 0x152   : > { %10567 = vmatprep.mubr.msk.bf16.mxu1 %vm970_vm0, %v13574_v21 }
 0x153   : > { %11036 = vmatmul.mubr.msk.bf16.gmra.mrb[8].mxu0 %vm970_vm0, %v13571_v14 }
 0x154   : > { %11039 = vmatprep.mubr.msk.bf16.mxu0 %vm970_vm0, %v13579_v59 }
 0x159   : > { %10568 = vmatmul.mubr.msk.bf16.gmra.mrb[60].mxu1 %vm970_vm0, %v13589_v60 }
 0x15a   : > { %10571 = vmatprep.mubr.msk.bf16.mxu1 %vm970_vm0, %v13597_v0 }
 0x15b   : > { %11040 = vmatmul.mubr.msk.bf16.gmra.mrb[12].mxu0 %vm970_vm0, %v13594_v61 }
 0x15c   : > { %11043 = vmatprep.mubr.msk.bf16.mxu0 %vm970_vm0, %v13602_v56 }
 0x161   : > { %10572 = vmatmul.mubr.msk.bf16.gmra.mrb[64].mxu1 %vm970_vm0, %v13609_v8 }
 0x162   : > { %10575 = vmatprep.mubr.msk.bf16.mxu1 %vm970_vm0, %v13126_v4  ;;  %v13642_v4 = vld [vmem:[%s13256_s21 + $0x68] sm:$0xff]  }
 0x163   : > { %11044 = vmatmul.mubr.msk.bf16.gmra.mrb[16].mxu0 %vm970_vm0, %v13614_v9 }
 0x164   : > { %11047 = vmatprep.mubr.msk.bf16.mxu0 %vm970_vm0, %v13619_v15 }
 0x169   : > { %10576 = vmatmul.mubr.msk.bf16.gmra.mrb[68].mxu1 %vm970_vm0, %v13133_v10  ;;  %v13647_v10 = vld [vmem:[%s13256_s21 + $0x70] sm:$0xff]  }
 0x16a   : > { %10579 = vmatprep.mubr.msk.bf16.mxu1 %vm970_vm0, %v13139_v19  ;;  %v13656_v19 = vld [vmem:[%s13256_s21 + $0x78] sm:$0xff]  }
 0x16b   : > { %11048 = vmatmul.mubr.msk.bf16.gmra.mrb[20].mxu0 %vm970_vm0, %v13628_v39 }
 0x16c   : > { %11051 = vmatprep.mubr.msk.bf16.mxu0 %vm970_vm0, %v13633_v52 }
 0x171   : > { %10580 = vmatmul.mubr.msk.bf16.gmra.mrb[72].mxu1 %vm970_vm0, %v13152_v29  ;;  %v13661_v29 = vld [vmem:[%s13256_s21 + $0x80] sm:$0xff]  }
 0x172   : > { %10583 = vmatprep.mubr.msk.bf16.mxu1 %vm970_vm0, %v13168_v44  ;;  %v13670_v44 = vld [vmem:[%s13256_s21 + $0x88] sm:$0xff]  }
 0x173   : > { %11052 = vmatmul.mubr.msk.bf16.gmra.mrb[24].mxu0 %vm970_vm0, %v13642_v4 }
 0x174   : > { %11055 = vmatprep.mubr.msk.bf16.mxu0 %vm970_vm0, %v13647_v10 }
 0x179   : > { %10584 = vmatmul.mubr.msk.bf16.gmra.mrb[76].mxu1 %vm970_vm0, %v13173_v62  ;;  %v13675_v62 = vld [vmem:[%s13256_s21 + $0x90] sm:$0xff]  }
 0x17a   : > { %10587 = vmatprep.mubr.msk.bf16.mxu1 %vm970_vm0, %v13189_v1  ;;  %v13682_v1 = vld [vmem:[%s15094_s1 + $0x100] sm:$0xff]  }
 0x17b   : > { %11056 = vmatmul.mubr.msk.bf16.gmra.mrb[28].mxu0 %vm970_vm0, %v13656_v19  ;;  %11227 = vmatprep.subr.bf16.mxu0 %v13682_v1 }
 0x17c   : > { %11059 = vmatprep.mubr.msk.bf16.mxu0 %vm970_vm0, %v13661_v29 }
 0x181   : > { %10588 = vmatmul.mubr.msk.bf16.gmra.mrb[80].mxu1 %vm970_vm0, %v13195_v11  ;;  %v13690_v11 = vld [vmem:[%s13256_s21 + $0x98] sm:$0xff]  }
 0x182   : > { %10591 = vmatprep.mubr.msk.bf16.mxu1 %vm970_vm0, %v13209_v28  ;;  %v13695_v28 = vld [vmem:[%s13256_s21 + $0xa0] sm:$0xff]  }
 0x183   : > { %11060 = vmatmul.mubr.msk.bf16.gmra.mrb[32].mxu0 %vm970_vm0, %v13670_v44  ;;  %15113 = vst [vmem:[#allocation3_spill] sm:$0xff] %v13695_v28 }
 0x184   : > { %11063 = vmatprep.mubr.msk.bf16.mxu0 %vm970_vm0, %v13675_v62 }
 0x189   : > { %10592 = vmatmul.mubr.msk.bf16.gmra.mrb[84].mxu1 %vm970_vm0, %v13215_v57  ;;  %v13709_v57 = vld [vmem:[%s13256_s21 + $0xb0] sm:$0xff]  }
 0x18a   : > { %10595 = vmatprep.mubr.msk.bf16.mxu1 %vm970_vm0, %v13229_v49  ;;  %v2079_v49 = vrot.slane %v13303_v20, 1  ;;  %v13725_v20 = vld [vmem:[%s13256_s21 + $0xc0] sm:$0xff]  }
 0x18b   : > { %11064 = vmatmul.mubr.msk.bf16.gmra.mrb[36].mxu0 %vm970_vm0, %v13690_v11  ;;  %15114 = vst [vmem:[#allocation4_spill] sm:$0xff] %v13725_v20 }
 0x18c   : > { %11067 = vmatprep.mubr.msk.bf16.mxu0 %vm970_vm0, %v13695_v28  ;;  %v2084_v28 = vrot.slane %v13334_v26, 1  ;;  %v13745_v26 = vld [vmem:[%s13256_s21 + $0xd0] sm:$0xff]  }
 0x18d   : > { %15115 = vst [vmem:[#allocation5_spill] sm:$0xff] %v13745_v26 }
 0x191   : > { %10596 = vmatmul.mubr.msk.bf16.gmra.mrb[88].mxu1 %vm970_vm0, %v13234_v53  ;;  %v2081_v53 = vsel %vm2078_vm2, %v2079_v49, %v2080_v50  ;;  %v2083_v49 = vsel %vm2078_vm2, %v2080_v50, %v2082_v24  ;;  %v2086_v50 = vrot.slane %v13340_v12, 1  ;;  %v13760_v12 = vld [vmem:[%s13256_s21 + $0xd8] sm:$0xff]  }
 0x192   : > { %10599 = vmatprep.mubr.msk.bf16.mxu1 %vm970_vm0, %v13246_v63  ;;  %v13721_v63 = vld [vmem:[%s13256_s21 + $0xb8] sm:$0xff]  }
 0x193   : > { %11068 = vmatmul.mubr.msk.bf16.gmra.mrb[40].mxu0 %vm970_vm0, %v13704_v25 }
 0x194   : > { %11071 = vmatprep.mubr.msk.bf16.mxu0 %vm970_vm0, %v13709_v57 }
 0x199   : > { %10600 = vmatmul.mubr.msk.bf16.gmra.mrb[92].mxu1 %vm970_vm0, %v13253_v5  ;;  %v2085_v5 = vsel %vm2078_vm2, %v2082_v24, %v2084_v28  ;;  %v2088_v24 = vrot.slane %v13350_v22, 1  ;;  %v13764_v22 = vld [vmem:[%s13256_s21 + $0xe0] sm:$0xff]  }
 0x19a   : > { %10611 = vmatprep.mubr.msk.bf16.mxu1 %vm970_vm0, %v2081_v53  ;;  %v12312_v53 = vld [vmem:[%s15094_s1 + $0x68] sm:$0xff]  }
 0x19b   : > { %11072 = vmatmul.mubr.msk.bf16.gmra.mrb[44].mxu0 %vm970_vm0, %v13721_v63 }
 0x19c   : > { %11075 = vmatprep.mubr.msk.bf16.mxu0 %vm970_vm0, %v13725_v20  ;;  %v12325_v20 = vld [vmem:[%s15094_s1 + $0x70] sm:$0xff]  }
 0x1a1   : > { %10612 = vmatmul.mubr.msk.bf16.vlgmr.msra.gmra.mrb[0].mxu1 %vm970_vm0, %v2083_v49  ;;  %v2089_v49 = vsel %vm2078_vm2, %v2086_v50, %v2088_v24 }
 0x1a2   : > { %10708 = vmatpush3.bf16.msra.mxu1 %v13456_v35  ;;  %10615 = vmatprep.mubr.msk.bf16.mxu1 %vm970_vm0, %v2085_v5  ;;  %v2087_v35 = vsel %vm2078_vm2, %v2084_v28, %v2086_v50  ;;  %v2090_v5 = vrot.slane %v13359_v27, 1  ;;  %v13776_v50 = vld [vmem:[%s13256_s21 + $0xe8] sm:$0xff]   ;;  %v12327_v27 = vld [vmem:[%s15094_s1 + $0x78] sm:$0xff]  }
 0x1a3   : > { %10709 = vmatprep.subr.bf16.mxu1 %v12312_v53  ;;  %11076 = vmatmul.mubr.msk.bf16.gmra.mrb[48].mxu0 %vm970_vm0, %v13740_v48 }
 0x1a4   : > { %11079 = vmatprep.mubr.msk.bf16.mxu0 %vm970_vm0, %v13745_v26  ;;  %v2092_v26 = vrot.slane %v13369_v34, 1  ;;  %v2091_v28 = vsel %vm2078_vm2, %v2088_v24, %v2090_v5  ;;  %v13783_v34 = vld [vmem:[%s13256_s21 + $0xf0] sm:$0xff]   ;;  %v2096_v24 = vrot.slane %v13385_v42, 1 }
 0x1a6   : > { %10710 = vmatpush3.bf16.msra.mxu1 %v12312_v53  ;;  %v2093_v53 = vsel %vm2078_vm2, %v2090_v5, %v2092_v26  ;;  %v13805_v5 = vld [vmem:[%s13256_s21 + $0x100] sm:$0xff]  }
 0x1a7   : > { %10711 = vmatprep.subr.bf16.mxu1 %v12325_v20 }
 0x1a9   : > { %10616 = vmatmul.mubr.msk.bf16.gmra.mrb[4].mxu1 %vm970_vm0, %v2087_v35  ;;  %v13792_v35 = vld [vmem:[%s15094_s1 + $0x80] sm:$0xff]  }
 0x1aa   : > { %10619 = vmatprep.mubr.msk.bf16.mxu1 %vm970_vm0, %v2089_v49  ;;  %10712 = vmatpush3.bf16.msra.mxu1 %v12325_v20  ;;  %v2094_v20 = vrot.slane %v13375_v37, 1  ;;  %v13801_v49 = vld [vmem:[%s13256_s21 + $0xf8] sm:$0xff]  }
 0x1ab   : > { %11080 = vmatmul.mubr.msk.bf16.gmra.mrb[52].mxu0 %vm970_vm0, %v13760_v12  ;;  %10713 = vmatprep.subr.bf16.mxu1 %v12327_v27 }
 0x1ac   : > { %11083 = vmatprep.mubr.msk.bf16.mxu0 %vm970_vm0, %v13764_v22  ;;  %v2095_v37 = vsel %vm2078_vm2, %v2092_v26, %v2094_v20  ;;  %v2097_v42 = vsel %vm2078_vm2, %v2094_v20, %v2096_v24  ;;  %v13817_v20 = vld [vmem:[%s13256_s21 + $0x108] sm:$0xff]  }
 0x1ae   : > { %10714 = vmatpush3.bf16.msra.mxu1 %v12327_v27 }
 0x1af   : > { %11331 = vmatprep.subr.bf16.mxu1 %v13792_v35 }
 0x1b1   : > { %10620 = vmatmul.mubr.msk.bf16.gmra.mrb[8].mxu1 %vm970_vm0, %v2091_v28  ;;  %v2098_v28 = vrot.slane %v13391_v43, 1  ;;  %v13821_v43 = vld [vmem:[%s13256_s21 + $0x110] sm:$0xff]  }
 0x1b2   : > { %10623 = vmatprep.mubr.msk.bf16.mxu1 %vm970_vm0, %v2093_v53  ;;  %v2100_v53 = vrot.slane %v13401_v55, 1  ;;  %v2102_v55 = vrot.slane %v13407_v18, 1  ;;  %v13837_v18 = vld [vmem:[%s13256_s21 + $0x120] sm:$0xff]  }
 0x1b3   : > { %11084 = vmatmul.mubr.msk.bf16.gmra.mrb[56].mxu0 %vm970_vm0, %v13776_v50  ;;  %v2099_v26 = vsel %vm2078_vm2, %v2096_v24, %v2098_v28 }
 0x1b4   : > { %11087 = vmatprep.mubr.msk.bf16.mxu0 %vm970_vm0, %v13783_v34  ;;  %v2101_v27 = vsel %vm2078_vm2, %v2098_v28, %v2100_v53  ;;  %v2103_v24 = vsel %vm2078_vm2, %v2100_v53, %v2102_v55  ;;  %v13833_v28 = vld [vmem:[%s13256_s21 + $0x118] sm:$0xff]  }
 0x1b9   : > { %10624 = vmatmul.mubr.msk.bf16.gmra.mrb[12].mxu1 %vm970_vm0, %v2095_v37  ;;  %v2104_v37 = vrot.slane %v13417_v3, 1  ;;  %v2106_v3 = vrot.slane %v13423_v7, 1  ;;  %v13853_v7 = vld [vmem:[%s13256_s21 + $0x130] sm:$0xff]  }
 0x1ba   : > { %10627 = vmatprep.mubr.msk.bf16.mxu1 %vm970_vm0, %v2097_v42 }
 0x1bb   : > { %11088 = vmatmul.mubr.msk.bf16.gmra.mrb[60].mxu0 %vm970_vm0, %v13801_v49  ;;  %v2105_v42 = vsel %vm2078_vm2, %v2102_v55, %v2104_v37  ;;  %v2107_v53 = vsel %vm2078_vm2, %v2104_v37, %v2106_v3  ;;  %v13849_v55 = vld [vmem:[%s13256_s21 + $0x128] sm:$0xff]  }
 0x1bc   : > { %11091 = vmatprep.mubr.msk.bf16.mxu0 %vm970_vm0, %v13805_v5 }
 0x1c1   : > { %10628 = vmatmul.mubr.msk.bf16.gmra.mrb[16].mxu1 %vm970_vm0, %v2099_v26  ;;  %v2108_v26 = vrot.slane %v13433_v16, 1  ;;  %v2110_v16 = vrot.slane %v13439_v36, 1  ;;  %v13869_v36 = vld [vmem:[%s13256_s21 + $0x140] sm:$0xff]  }
 0x1c2   : > { %10631 = vmatprep.mubr.msk.bf16.mxu1 %vm970_vm0, %v2101_v27 }
 0x1c3   : > { %11092 = vmatmul.mubr.msk.bf16.gmra.mrb[64].mxu0 %vm970_vm0, %v13817_v20  ;;  %v2109_v27 = vsel %vm2078_vm2, %v2106_v3, %v2108_v26  ;;  %v2111_v37 = vsel %vm2078_vm2, %v2108_v26, %v2110_v16  ;;  %v13865_v3 = vld [vmem:[%s13256_s21 + $0x138] sm:$0xff]  }
 0x1c4   : > { %11095 = vmatprep.mubr.msk.bf16.mxu0 %vm970_vm0, %v13821_v43 }
 0x1c9   : > { %10632 = vmatmul.mubr.msk.bf16.gmra.mrb[20].mxu1 %vm970_vm0, %v2103_v24  ;;  %v2112_v24 = vrot.slane %v13449_v33, 1  ;;  %v2114_v33 = vrot.slane %v13460_v40, 1  ;;  %v13885_v40 = vld [vmem:[%s13256_s21 + $0x150] sm:$0xff]  }
 0x1ca   : > { %10635 = vmatprep.mubr.msk.bf16.mxu1 %vm970_vm0, %v2105_v42  ;;  %15116 = vst [vmem:[#allocation6_spill] sm:$0xff] %v13885_v40 }
 0x1cb   : > { %11096 = vmatmul.mubr.msk.bf16.gmra.mrb[68].mxu0 %vm970_vm0, %v13833_v28  ;;  %v2113_v42 = vsel %vm2078_vm2, %v2110_v16, %v2112_v24  ;;  %v2115_v26 = vsel %vm2078_vm2, %v2112_v24, %v2114_v33  ;;  %v13881_v16 = vld [vmem:[%s13256_s21 + $0x148] sm:$0xff]  }
 0x1cc   : > { %11099 = vmatprep.mubr.msk.bf16.mxu0 %vm970_vm0, %v13837_v18 }
 0x1d1   : > { %10636 = vmatmul.mubr.msk.bf16.gmra.mrb[24].mxu1 %vm970_vm0, %v2107_v53  ;;  %v2116_v53 = vrot.slane %v13471_v51, 1  ;;  %v2118_v51 = vrot.slane %v13477_v54, 1  ;;  %v13901_v54 = vld [vmem:[%s13256_s21 + $0x160] sm:$0xff]  }
 0x1d2   : > { %10639 = vmatprep.mubr.msk.bf16.mxu1 %vm970_vm0, %v2109_v27  ;;  %15118 = vst [vmem:[#allocation8_spill] sm:$0xff] %v13901_v54 }
 0x1d3   : > { %11100 = vmatmul.mubr.msk.bf16.gmra.mrb[72].mxu0 %vm970_vm0, %v13849_v55  ;;  %v2117_v27 = vsel %vm2078_vm2, %v2114_v33, %v2116_v53  ;;  %v2119_v24 = vsel %vm2078_vm2, %v2116_v53, %v2118_v51  ;;  %v13897_v33 = vld [vmem:[%s13256_s21 + $0x158] sm:$0xff]  }
 0x1d4   : > { %11103 = vmatprep.mubr.msk.bf16.mxu0 %vm970_vm0, %v13853_v7  ;;  %15117 = vst [vmem:[#allocation7_spill] sm:$0xff] %v13897_v33 }
 0x1d9   : > { %10640 = vmatmul.mubr.msk.bf16.gmra.mrb[28].mxu1 %vm970_vm0, %v2111_v37  ;;  %v2120_v37 = vrot.slane %v13487_v31, 1  ;;  %v2122_v31 = vrot.slane %v13493_v6, 1  ;;  %v13918_v6 = vld [vmem:[%s13256_s21 + $0x170] sm:$0xff]  }
 0x1da   : > { %10643 = vmatprep.mubr.msk.bf16.mxu1 %vm970_vm0, %v2113_v42  ;;  %15119 = vst [vmem:[#allocation9_spill] sm:$0xff] %v13918_v6 }
 0x1db   : > { %11104 = vmatmul.mubr.msk.bf16.gmra.mrb[76].mxu0 %vm970_vm0, %v13865_v3  ;;  %v2121_v42 = vsel %vm2078_vm2, %v2118_v51, %v2120_v37  ;;  %v2123_v53 = vsel %vm2078_vm2, %v2120_v37, %v2122_v31  ;;  %v6755_v51 = vshll.u32 %v13513_v38, 16 }
 0x1dc   : > { %11107 = vmatprep.mubr.msk.bf16.mxu0 %vm970_vm0, %v13869_v36 }
 0x1dd   : > { %v6757_v37 = vrot.slane %v6755_v51, 1  ;;  %v2130_v51 = vrot.slane %v13527_v30, 1 }
 0x1e1   : > { %10644 = vmatmul.mubr.msk.bf16.gmra.mrb[32].mxu1 %vm970_vm0, %v2115_v26  ;;  %v2124_v26 = vrot.slane %v13502_v13, 1  ;;  %v2126_v13 = vrot.slane %v13508_v23, 1  ;;  %v13932_v23 = vld [vmem:[%s13256_s21 + $0x178] sm:$0xff]  }
 0x1e2   : > { %10647 = vmatprep.mubr.msk.bf16.mxu1 %vm970_vm0, %v2117_v27 }
 0x1e3   : > { %11108 = vmatmul.mubr.msk.bf16.gmra.mrb[80].mxu0 %vm970_vm0, %v13881_v16  ;;  %v2125_v27 = vsel %vm2078_vm2, %v2122_v31, %v2124_v26  ;;  %v6759_v31 = vshll.u32 %v13524_v46, 16 }
 0x1e4   : > { %11111 = vmatprep.mubr.msk.bf16.mxu0 %vm970_vm0, %v13885_v40 }
 0x1e5   : > { %v6761_v40 = vrot.slane %v6759_v31, 1 }
 0x1e9   : > { %10648 = vmatmul.mubr.msk.bf16.gmra.mrb[36].mxu1 %vm970_vm0, %v2119_v24  ;;  %v13914_v24 = vld [vmem:[%s13256_s21 + $0x168] sm:$0xff]  }
 0x1ea   : > { %10651 = vmatprep.mubr.msk.bf16.mxu1 %vm970_vm0, %v2121_v42  ;;  %v2128_v42 = vrot.slane %v13519_v45, 1  ;;  %v6763_v45 = vshrl.u32 %v13524_v46, 16 }
 0x1eb   : > { %11112 = vmatmul.mubr.msk.bf16.gmra.mrb[84].mxu0 %vm970_vm0, %v13897_v33 }
 0x1ec   : > { %11115 = vmatprep.mubr.msk.bf16.mxu0 %vm970_vm0, %v13901_v54  ;;  %v6753_v54 = vshrl.u32 %v13513_v38, 16  ;;  %v6766_v38 = vshll.u32 %v13532_v58, 16  ;;  %v6765_v31 = vor.u32 %v6763_v45, %v6761_v40  ;;  %v6787_v45 = vshll.u32 %v13571_v14, 16 }
 0x1ee   : > { %v6758_v33 = vor.u32 %v6757_v37, %v6753_v54  ;;  %v6773_v54 = vshll.u32 %v13551_v41, 16  ;;  %v6768_v37 = vrot.slane %v6766_v38, 1  ;;  %v6784_v38 = vshrl.u32 %v13559_v17, 16 }
 0x1f1   : > { %10652 = vmatmul.mubr.msk.bf16.gmra.mrb[40].mxu1 %vm970_vm0, %v2123_v53  ;;  %v2127_v53 = vsel %vm2078_vm2, %v2124_v26, %v2126_v13  ;;  %v2132_v26 = vrot.slane %v13546_v2, 1  ;;  %v6780_v2 = vshll.u32 %v13559_v17, 16  ;;  %v6789_v17 = vrot.slane %v6787_v45, 1 }
 0x1f2   : > { %10655 = vmatprep.mubr.msk.bf16.mxu1 %vm970_vm0, %v2125_v27  ;;  %v2129_v27 = vsel %vm2078_vm2, %v2126_v13, %v2128_v42  ;;  %v6770_v13 = vshrl.u32 %v13532_v58, 16  ;;  %v6769_v58 = vsel %vm557_vm1, %v6765_v31, %v6768_v37  ;;  %v6794_v31 = vshll.u32 %v13579_v59, 16 }
 0x1f3   : > { %11116 = vmatmul.mubr.msk.bf16.gmra.mrb[88].mxu0 %vm970_vm0, %v13914_v24  ;;  %v2133_v46 = vsel %vm2078_vm2, %v2130_v51, %v2132_v26  ;;  %v6805_v45 = vshrl.u32 %v13594_v61, 16 }
 0x1f4   : > { %11119 = vmatprep.mubr.msk.bf16.mxu0 %vm970_vm0, %v13918_v6  ;;  %v6762_v6 = vsel %vm557_vm1, %v6758_v33, %v6761_v40  ;;  %v6772_v30 = vor.u32 %v6770_v13, %v6768_v37  ;;  %v2134_v33 = vrot.slane %v13554_v32, 1  ;;  %v6777_v40 = vshrl.u32 %v13551_v41, 16  ;;  %v12329_v37 = vld [vmem:[%s15094_s1 + $0x110] sm:$0xff]  }
 0x1f5   : > { %v6782_v13 = vrot.slane %v6780_v2, 1  ;;  %v6801_v2 = vshll.u32 %v13594_v61, 16 }
 0x1f6   : > { %v2135_v41 = vsel %vm2078_vm2, %v2132_v26, %v2134_v33  ;;  %v2138_v26 = vrot.slane %v13574_v21, 1 }
 0x1f9   : > { %10656 = vmatmul.mubr.msk.bf16.gmra.mrb[44].mxu1 %vm970_vm0, %v2127_v53  ;;  %v2131_v53 = vsel %vm2078_vm2, %v2128_v42, %v2130_v51  ;;  %v2136_v42 = vrot.slane %v13566_v47, 1  ;;  %v12328_v51 = vld [vmem:[%s15094_s1 + $0x108] sm:$0xff]  }
 0x1fa   : > { %10659 = vmatprep.mubr.msk.bf16.mxu1 %vm970_vm0, %v2129_v27  ;;  %v6775_v27 = vrot.slane %v6773_v54, 1  ;;  %v6786_v54 = vor.u32 %v6784_v38, %v6782_v13  ;;  %v2142_v38 = vrot.slane %v13597_v0, 1 }
 0x1fb   : > { %11120 = vmatmul.mubr.msk.bf16.gmra.mrb[92].mxu0 %vm970_vm0, %v13932_v23  ;;  %v2137_v47 = vsel %vm2078_vm2, %v2134_v33, %v2136_v42  ;;  %v2139_v33 = vsel %vm2078_vm2, %v2136_v42, %v2138_v26 }
 0x1fc   : > { %11131 = vmatprep.mubr.msk.bf16.mxu0 %vm970_vm0, %v6762_v6  ;;  %v6776_v6 = vsel %vm557_vm1, %v6772_v30, %v6775_v27  ;;  %v6779_v32 = vor.u32 %v6777_v40, %v6775_v27  ;;  %v2140_v30 = vrot.slane %v13589_v60, 1  ;;  %v6798_v27 = vshrl.u32 %v13579_v59, 16 }
 0x1fd   : > { %v6808_v59 = vshll.u32 %v13602_v56, 16 }
 0x1fe   : > { %v2143_v61 = vsel %vm2078_vm2, %v2140_v30, %v2142_v38 }
 0x201   : > { %10660 = vmatmul.mubr.msk.bf16.gmra.mrb[48].mxu1 %vm970_vm0, %v2131_v53  ;;  %v6791_v53 = vshrl.u32 %v13571_v14, 16  ;;  %v2141_v14 = vsel %vm2078_vm2, %v2138_v26, %v2140_v30  ;;  %v6819_v26 = vshrl.u32 %v13614_v9, 16 }
 0x202   : > { %10663 = vmatprep.mubr.msk.bf16.mxu1 %vm970_vm0, %v2133_v46  ;;  %v6790_v46 = vsel %vm557_vm1, %v6786_v54, %v6789_v17 }
 0x203   : > { %11132 = vmatmul.mubr.msk.bf16.vlgmr.msra.gmra.mrb[0].mxu0 %vm970_vm0, %v6769_v58  ;;  %v6796_v58 = vrot.slane %v6794_v31, 1  ;;  %v6793_v21 = vor.u32 %v6791_v53, %v6789_v17  ;;  %v6822_v17 = vshll.u32 %v13619_v15, 16  ;;  %v12564_v31 = vld [vmem:[%s12809_s22 + $0x110] sm:$0xff]  }
 0x204   : > { %11228 = vmatpush3.bf16.msra.mxu0 %v13682_v1  ;;  %11135 = vmatprep.mubr.msk.bf16.mxu0 %vm970_vm0, %v6776_v6  ;;  %v6783_v1 = vsel %vm557_vm1, %v6779_v32, %v6782_v13  ;;  %v6803_v6 = vrot.slane %v6801_v2, 1  ;;  %v6812_v13 = vshrl.u32 %v13602_v56, 16  ;;  %v6810_v32 = vrot.slane %v6808_v59, 1  ;;  %v12566_v59 = vld [vmem:[%s12809_s22 + $0x120] sm:$0xff]  }
 0x205   : > { %11229 = vmatprep.subr.bf16.mxu0 %v12328_v51  ;;  %v6800_v40 = vor.u32 %v6798_v27, %v6796_v58  ;;  %v6797_v60 = vsel %vm557_vm1, %v6793_v21, %v6796_v58  ;;  %v6826_v27 = vshrl.u32 %v13619_v15, 16  ;;  %v6829_v2 = vshll.u32 %v13628_v39, 16 }
 0x206   : > { %v6807_v0 = vor.u32 %v6805_v45, %v6803_v6  ;;  %v6814_v54 = vor.u32 %v6812_v13, %v6810_v32  ;;  %v6824_v58 = vrot.slane %v6822_v17, 1  ;;  %v6840_v13 = vshrl.u32 %v13633_v52, 16 }
 0x207   : > { %v6804_v42 = vsel %vm557_vm1, %v6800_v40, %v6803_v6  ;;  %v6831_v40 = vrot.slane %v6829_v2, 1  ;;  %v6836_v6 = vshll.u32 %v13633_v52, 16 }
 0x208   : > { %11230 = vmatpush3.bf16.msra.mxu0 %v12328_v51  ;;  %v2144_v51 = vrot.slane %v13609_v8, 1 }
 0x209   : > { %10664 = vmatmul.mubr.msk.bf16.gmra.mrb[52].mxu1 %vm970_vm0, %v2135_v41  ;;  %11231 = vmatprep.subr.bf16.mxu0 %v12329_v37  ;;  %v6815_v41 = vshll.u32 %v13614_v9, 16 }
 0x20a   : > { %10667 = vmatprep.mubr.msk.bf16.mxu1 %vm970_vm0, %v2137_v47  ;;  %v12330_v47 = vld [vmem:[%s15094_s1 + $0x118] sm:$0xff]   ;;  %v2145_v8 = vsel %vm2078_vm2, %v2142_v38, %v2144_v51  ;;  %v6833_v38 = vshrl.u32 %v13628_v39, 16 }
 0x20b   : > { %11136 = vmatmul.mubr.msk.bf16.gmra.mrb[4].mxu0 %vm970_vm0, %v6783_v1  ;;  %v6817_v56 = vrot.slane %v6815_v41, 1  ;;  %v2146_v1 = vrot.slane %v12564_v31, 1  ;;  %v6843_v41 = vshll.u32 %v13642_v4, 16 }
 0x20c   : > { %11139 = vmatprep.mubr.msk.bf16.mxu0 %vm970_vm0, %v6790_v46  ;;  %11232 = vmatpush3.bf16.msra.mxu0 %v12329_v37  ;;  %v6811_v37 = vsel %vm557_vm1, %v6807_v0, %v6810_v32  ;;  %v12565_v46 = vld [vmem:[%s12809_s22 + $0x118] sm:$0xff]   ;;  %v6838_v32 = vrot.slane %v6836_v6, 1 }
 0x20d   : > { %11233 = vmatprep.subr.bf16.mxu0 %v12330_v47  ;;  %v6818_v53 = vsel %vm557_vm1, %v6814_v54, %v6817_v56  ;;  %v2148_v30 = vrot.slane %v12565_v46, 1  ;;  %v6821_v21 = vor.u32 %v6819_v26, %v6817_v56  ;;  %v6850_v54 = vshll.u32 %v13647_v10, 16  ;;  %v12568_v56 = vld [vmem:[%s12809_s22 + $0x130] sm:$0xff]  }
 0x20e   : > { %v6842_v0 = vor.u32 %v6840_v13, %v6838_v32  ;;  %v2154_v17 = vrot.slane %v12568_v56, 1  ;;  %v6857_v46 = vshll.u32 %v13656_v19, 16  ;;  %v6885_v56 = vshll.u32 %v13690_v11, 16 }
 0x20f   : > { %v2149_v9 = vsel %vm2078_vm2, %v2146_v1, %v2148_v30  ;;  %v6825_v15 = vsel %vm557_vm1, %v6821_v21, %v6824_v58  ;;  %v6864_v21 = vshll.u32 %v13661_v29, 16 }
 0x210   : > { %11234 = vmatpush3.bf16.msra.mxu0 %v12330_v47 }
 0x211   : > { %10668 = vmatmul.mubr.msk.bf16.gmra.mrb[56].mxu1 %vm970_vm0, %v2139_v33  ;;  %v2147_v33 = vsel %vm2078_vm2, %v2144_v51, %v2146_v1  ;;  %v12569_v1 = vld [vmem:[%s12809_s22 + $0x138] sm:$0xff]  }
 0x212   : > { %10671 = vmatprep.mubr.msk.bf16.mxu1 %vm970_vm0, %v2141_v14  ;;  %v6828_v14 = vor.u32 %v6826_v27, %v6824_v58  ;;  %v2156_v26 = vrot.slane %v12569_v1, 1 }
 0x213   : > { %11140 = vmatmul.mubr.msk.bf16.gmra.mrb[8].mxu0 %vm970_vm0, %v6797_v60  ;;  %v2150_v60 = vrot.slane %v12566_v59, 1 }
 0x214   : > { %11143 = vmatprep.mubr.msk.bf16.mxu0 %vm970_vm0, %v6804_v42  ;;  %v6832_v45 = vsel %vm557_vm1, %v6828_v14, %v6831_v40  ;;  %v12567_v42 = vld [vmem:[%s12809_s22 + $0x128] sm:$0xff]  }
 0x215   : > { %v2152_v51 = vrot.slane %v12567_v42, 1  ;;  %v2151_v47 = vsel %vm2078_vm2, %v2148_v30, %v2150_v60  ;;  %v6852_v30 = vrot.slane %v6850_v54, 1 }
 0x217   : > { %v2153_v39 = vsel %vm2078_vm2, %v2150_v60, %v2152_v51  ;;  %v2155_v27 = vsel %vm2078_vm2, %v2152_v51, %v2154_v17  ;;  %v6868_v60 = vshrl.u32 %v13661_v29, 16 }
 0x219   : > { %10672 = vmatmul.mubr.msk.bf16.gmra.mrb[60].mxu1 %vm970_vm0, %v2143_v61  ;;  %v6835_v61 = vor.u32 %v6833_v38, %v6831_v40  ;;  %v6861_v40 = vshrl.u32 %v13656_v19, 16  ;;  %v6871_v38 = vshll.u32 %v13670_v44, 16 }
 0x21a   : > { %10675 = vmatprep.mubr.msk.bf16.mxu1 %vm970_vm0, %v2145_v8  ;;  %v6845_v8 = vrot.slane %v6843_v41, 1 }
 0x21b   : > { %11144 = vmatmul.mubr.msk.bf16.gmra.mrb[12].mxu0 %vm970_vm0, %v6811_v37  ;;  %v6839_v52 = vsel %vm557_vm1, %v6835_v61, %v6838_v32  ;;  %v6847_v37 = vshrl.u32 %v13642_v4, 16  ;;  %v2157_v4 = vsel %vm2078_vm2, %v2154_v17, %v2156_v26  ;;  %v6873_v41 = vrot.slane %v6871_v38, 1  ;;  %v12576_v38 = vld [vmem:[%s12809_s22 + $0x170] sm:$0xff]  }
 0x21c   : > { %11147 = vmatprep.mubr.msk.bf16.mxu0 %vm970_vm0, %v6818_v53  ;;  %v6846_v31 = vsel %vm557_vm1, %v6842_v0, %v6845_v8  ;;  %v6854_v53 = vshrl.u32 %v13647_v10, 16  ;;  %v6878_v32 = vshll.u32 %v13675_v62, 16 }
 0x21d   : > { %v6849_v2 = vor.u32 %v6847_v37, %v6845_v8  ;;  %v12573_v8 = vld [vmem:[%s12809_s22 + $0x158] sm:$0xff]  }
 0x21e   : > { %v6856_v58 = vor.u32 %v6854_v53, %v6852_v30  ;;  %v2164_v54 = vrot.slane %v12573_v8, 1  ;;  %v6880_v17 = vrot.slane %v6878_v32, 1  ;;  %v15120_v53 = vld [vmem:[#allocation3_spill] sm:$0xff]  ;;  %v6913_v32 = vshll.u32 %v13721_v63, 16  ;;  %v15121_v8 = vld [vmem:[#allocation4_spill] sm:$0xff] }
 0x21f   : > { %v6853_v10 = vsel %vm557_vm1, %v6849_v2, %v6852_v30  ;;  %v12574_v30 = vld [vmem:[%s12809_s22 + $0x160] sm:$0xff]   ;;  %v6889_v2 = vshrl.u32 %v13690_v11, 16 }
 0x221   : > { %10676 = vmatmul.mubr.msk.bf16.gmra.mrb[64].mxu1 %vm970_vm0, %v2147_v33  ;;  %v6859_v33 = vrot.slane %v6857_v46, 1  ;;  %v6892_v46 = vshll.u32 %v15120_v53, 16 }
 0x222   : > { %10679 = vmatprep.mubr.msk.bf16.mxu1 %vm970_vm0, %v2149_v9  ;;  %v12570_v9 = vld [vmem:[%s12809_s22 + $0x140] sm:$0xff]  }
 0x223   : > { %11148 = vmatmul.mubr.msk.bf16.gmra.mrb[16].mxu0 %vm970_vm0, %v6825_v15  ;;  %v2158_v14 = vrot.slane %v12570_v9, 1  ;;  %v6860_v6 = vsel %vm557_vm1, %v6856_v58, %v6859_v33  ;;  %v12571_v15 = vld [vmem:[%s12809_s22 + $0x148] sm:$0xff]   ;;  %v6863_v51 = vor.u32 %v6861_v40, %v6859_v33  ;;  %v6894_v9 = vrot.slane %v6892_v46, 1 }
 0x224   : > { %11151 = vmatprep.mubr.msk.bf16.mxu0 %vm970_vm0, %v6832_v45  ;;  %v2160_v59 = vrot.slane %v12571_v15, 1  ;;  %v6866_v45 = vrot.slane %v6864_v21, 1  ;;  %v12575_v58 = vld [vmem:[%s12809_s22 + $0x168] sm:$0xff]   ;;  %v6896_v21 = vshrl.u32 %v15120_v53, 16 }
 0x225   : > { %v2159_v42 = vsel %vm2078_vm2, %v2156_v26, %v2158_v14  ;;  %v6887_v26 = vrot.slane %v6885_v56, 1  ;;  %v2168_v33 = vrot.slane %v12575_v58, 1 }
 0x226   : > { %v2161_v19 = vsel %vm2078_vm2, %v2158_v14, %v2160_v59  ;;  %v6870_v13 = vor.u32 %v6868_v60, %v6866_v45  ;;  %v6867_v29 = vsel %vm557_vm1, %v6863_v51, %v6866_v45  ;;  %v2170_v45 = vrot.slane %v12576_v38, 1 }
 0x227   : > { %v6891_v40 = vor.u32 %v6889_v2, %v6887_v26  ;;  %v12579_v2 = vld [vmem:[%s12819_s29] sm:$0xff]   ;;  %v6952_v38 = vshrl.u32 %v13764_v22, 16 }
 0x228   : > { %v6874_v0 = vsel %vm557_vm1, %v6870_v13, %v6873_v41 }
 0x229   : > { %10680 = vmatmul.mubr.msk.bf16.gmra.mrb[68].mxu1 %vm970_vm0, %v2151_v47  ;;  %v12572_v47 = vld [vmem:[%s12809_s22 + $0x150] sm:$0xff]   ;;  %v6895_v60 = vsel %vm557_vm1, %v6891_v40, %v6894_v9 }
 0x22a   : > { %10683 = vmatprep.mubr.msk.bf16.mxu1 %vm970_vm0, %v2153_v39  ;;  %v2162_v61 = vrot.slane %v12572_v47, 1  ;;  %v6875_v39 = vshrl.u32 %v13670_v44, 16  ;;  %v2171_v47 = vsel %vm2078_vm2, %v2168_v33, %v2170_v45 }
 0x22b   : > { %11152 = vmatmul.mubr.msk.bf16.gmra.mrb[20].mxu0 %vm970_vm0, %v6839_v52  ;;  %v6882_v52 = vshrl.u32 %v13675_v62, 16 }
 0x22c   : > { %11155 = vmatprep.mubr.msk.bf16.mxu0 %vm970_vm0, %v6846_v31  ;;  %v2163_v37 = vsel %vm2078_vm2, %v2160_v59, %v2162_v61  ;;  %v6877_v31 = vor.u32 %v6875_v39, %v6873_v41  ;;  %v2165_v44 = vsel %vm2078_vm2, %v2162_v61, %v2164_v54  ;;  %v6906_v59 = vshll.u32 %v13709_v57, 16 }
 0x22d   : > { %v6884_v1 = vor.u32 %v6882_v52, %v6880_v17  ;;  %v6910_v41 = vshrl.u32 %v13709_v57, 16  ;;  %v12578_v52 = vld [vmem:[%s12809_s22 + $0x180] ss:$0 sps:$4 sm:$0xff]  }
 0x22e   : > { %v6881_v62 = vsel %vm557_vm1, %v6877_v31, %v6880_v17  ;;  %v2174_v56 = vrot.slane %v12578_v52, 1  ;;  %v6917_v17 = vshrl.u32 %v13721_v63, 16  ;;  %v6924_v31 = vshrl.u32 %v15121_v8, 16  ;;  %v15122_v63 = vld [vmem:[#allocation5_spill] sm:$0xff]  ;;  %v12587_v52 = vld [vmem:[%s12819_s29 + $0x28] sm:$0xff]  }
 0x231   : > { %10684 = vmatmul.mubr.msk.bf16.gmra.mrb[72].mxu1 %vm970_vm0, %v2155_v27  ;;  %v2166_v27 = vrot.slane %v12574_v30, 1  ;;  %v6934_v30 = vshll.u32 %v15122_v63, 16 }
 0x232   : > { %10687 = vmatprep.mubr.msk.bf16.mxu1 %vm970_vm0, %v2157_v4  ;;  %v6888_v4 = vsel %vm557_vm1, %v6884_v1, %v6887_v26 }
 0x233   : > { %11156 = vmatmul.mubr.msk.bf16.gmra.mrb[24].mxu0 %vm970_vm0, %v6853_v10  ;;  %v6899_v10 = vshll.u32 %v13704_v25, 16  ;;  %v2167_v14 = vsel %vm2078_vm2, %v2164_v54, %v2166_v27  ;;  %v2169_v11 = vsel %vm2078_vm2, %v2166_v27, %v2168_v33  ;;  %v6920_v54 = vshll.u32 %v15121_v8, 16 }
 0x234   : > { %11159 = vmatprep.mubr.msk.bf16.mxu0 %vm970_vm0, %v6860_v6  ;;  %v6898_v6 = vor.u32 %v6896_v21, %v6894_v9  ;;  %v6938_v33 = vshrl.u32 %v15122_v63, 16  ;;  %v6941_v21 = vshll.u32 %v13760_v12, 16  ;;  %v12589_v63 = vld [vmem:[%s12819_s29 + $0x38] sm:$0xff]  }
 0x235   : > { %v6901_v15 = vrot.slane %v6899_v10, 1  ;;  %v6922_v1 = vrot.slane %v6920_v54, 1  ;;  %v6936_v10 = vrot.slane %v6934_v30, 1 }
 0x236   : > { %v6943_v40 = vrot.slane %v6941_v21, 1 }
 0x237   : > { %v6902_v51 = vsel %vm557_vm1, %v6898_v6, %v6901_v15  ;;  %v6926_v46 = vor.u32 %v6924_v31, %v6922_v1  ;;  %v6948_v6 = vshll.u32 %v13764_v22, 16  ;;  %v12583_v22 = vld [vmem:[%s15094_s1 + $0x90] sm:$0xff]  }
 0x239   : > { %10688 = vmatmul.mubr.msk.bf16.gmra.mrb[76].mxu1 %vm970_vm0, %v2159_v42  ;;  %v6903_v42 = vshrl.u32 %v13704_v25, 16 }
 0x23a   : > { %10691 = vmatprep.mubr.msk.bf16.mxu1 %vm970_vm0, %v2161_v19  ;;  %v12577_v19 = vld [vmem:[%s12809_s22 + $0x178] sm:$0xff]  }
 0x23b   : > { %11160 = vmatmul.mubr.msk.bf16.gmra.mrb[28].mxu0 %vm970_vm0, %v6867_v29  ;;  %v2172_v13 = vrot.slane %v12577_v19, 1  ;;  %v6908_v29 = vrot.slane %v6906_v59, 1  ;;  %v6905_v61 = vor.u32 %v6903_v42, %v6901_v15  ;;  %v12581_v15 = vld [vmem:[%s12819_s29 + $0x10] sm:$0xff]   ;;  %v6945_v59 = vshrl.u32 %v13760_v12, 16  ;;  %v12582_v42 = vld [vmem:[%s15094_s1 + $0x88] sm:$0xff]  }
 0x23c   : > { %11163 = vmatprep.mubr.msk.bf16.mxu0 %vm970_vm0, %v6874_v0  ;;  %v6915_v0 = vrot.slane %v6913_v32, 1 }
 0x23d   : > { %v2173_v39 = vsel %vm2078_vm2, %v2170_v45, %v2172_v13  ;;  %v6912_v25 = vor.u32 %v6910_v41, %v6908_v29  ;;  %v6909_v57 = vsel %vm557_vm1, %v6905_v61, %v6908_v29  ;;  %v2175_v26 = vsel %vm2078_vm2, %v2172_v13, %v2174_v56  ;;  %v12584_v13 = vld [vmem:[%s12819_s29 + $0x18] sm:$0xff]   ;;  %v12585_v29 = vld [vmem:[%s12819_s29 + $0x20] sm:$0xff]  }
 0x23e   : > { %v6919_v53 = vor.u32 %v6917_v17, %v6915_v0  ;;  %v6955_v45 = vshll.u32 %v13776_v50, 16  ;;  %v6962_v41 = vshll.u32 %v13783_v34, 16  ;;  %v12588_v17 = vld [vmem:[%s12819_s29 + $0x30] sm:$0xff]  }
 0x240   : > { %v6923_v27 = vsel %vm557_vm1, %v6919_v53, %v6922_v1  ;;  %v6957_v19 = vrot.slane %v6955_v45, 1  ;;  %v6964_v8 = vrot.slane %v6962_v41, 1  ;;  %v6983_v1 = vshll.u32 %v13817_v20, 16 }
 0x241   : > { %10692 = vmatmul.mubr.msk.bf16.gmra.mrb[80].mxu1 %vm970_vm0, %v2163_v37  ;;  %v6916_v37 = vsel %vm557_vm1, %v6912_v25, %v6915_v0  ;;  %v6969_v25 = vshll.u32 %v13801_v49, 16  ;;  %v12586_v0 = vld [vmem:[%s15094_s1 + $0x98] sm:$0xff]  }
 0x242   : > { %10695 = vmatprep.mubr.msk.bf16.mxu1 %vm970_vm0, %v2165_v44  ;;  %v6927_v44 = vshll.u32 %v13740_v48, 16 }
 0x243   : > { %11164 = vmatmul.mubr.msk.bf16.gmra.mrb[32].mxu0 %vm970_vm0, %v6881_v62 }
 0x244   : > { %11167 = vmatprep.mubr.msk.bf16.mxu0 %vm970_vm0, %v6888_v4  ;;  %v6929_v62 = vrot.slane %v6927_v44, 1  ;;  %v6931_v4 = vshrl.u32 %v13740_v48, 16  ;;  %v6980_v44 = vshrl.u32 %v13805_v5, 16 }
 0x246   : > { %v6930_v58 = vsel %vm557_vm1, %v6926_v46, %v6929_v62  ;;  %v6933_v9 = vor.u32 %v6931_v4, %v6929_v62  ;;  %v6985_v62 = vrot.slane %v6983_v1, 1  ;;  %v6994_v4 = vshrl.u32 %v13821_v43, 16  ;;  %v15124_v1 = vld [vmem:[#allocation7_spill] sm:$0xff] }
 0x248   : > { %v6937_v48 = vsel %vm557_vm1, %v6933_v9, %v6936_v10 }
 0x249   : > { %10696 = vmatmul.mubr.msk.bf16.gmra.mrb[84].mxu1 %vm970_vm0, %v2167_v14  ;;  %v6940_v14 = vor.u32 %v6938_v33, %v6936_v10 }
 0x24a   : > { %10699 = vmatprep.mubr.msk.bf16.mxu1 %vm970_vm0, %v2169_v11  ;;  %v12580_v11 = vld [vmem:[%s12819_s29 + $0x8] sm:$0xff]  }
 0x24b   : > { %11168 = vmatmul.mubr.msk.bf16.gmra.mrb[36].mxu0 %vm970_vm0, %v6895_v60  ;;  %v6944_v60 = vsel %vm557_vm1, %v6940_v14, %v6943_v40  ;;  %v12591_v14 = vld [vmem:[%s12819_s29 + $0x48] sm:$0xff]  }
 0x24c   : > { %11171 = vmatprep.mubr.msk.bf16.mxu0 %vm970_vm0, %v6902_v51  ;;  %v6947_v51 = vor.u32 %v6945_v59, %v6943_v40 }
 0x251   : > { %10700 = vmatmul.mubr.msk.bf16.gmra.mrb[88].mxu1 %vm970_vm0, %v2171_v47  ;;  %v6959_v47 = vshrl.u32 %v13776_v50, 16 }
 0x252   : > { %10703 = vmatprep.mubr.msk.bf16.mxu1 %vm970_vm0, %v2173_v39  ;;  %v6966_v39 = vshrl.u32 %v13783_v34, 16  ;;  %v6976_v34 = vshll.u32 %v13805_v5, 16  ;;  %v6987_v5 = vshrl.u32 %v13817_v20, 16  ;;  %v7004_v20 = vshll.u32 %v13837_v18, 16 }
 0x253   : > { %11172 = vmatmul.mubr.msk.bf16.gmra.mrb[40].mxu0 %vm970_vm0, %v6909_v57  ;;  %v6961_v54 = vor.u32 %v6959_v47, %v6957_v19  ;;  %v6971_v57 = vrot.slane %v6969_v25, 1  ;;  %v12595_v47 = vld [vmem:[%s12819_s29 + $0x68] sm:$0xff]  }
 0x254   : > { %11175 = vmatprep.mubr.msk.bf16.mxu0 %vm970_vm0, %v6916_v37  ;;  %v6968_v50 = vor.u32 %v6966_v39, %v6964_v8  ;;  %v6973_v37 = vshrl.u32 %v13801_v49, 16  ;;  %v6990_v49 = vshll.u32 %v13821_v43, 16  ;;  %v6989_v21 = vor.u32 %v6987_v5, %v6985_v62  ;;  %v12596_v39 = vld [vmem:[%s12819_s29 + $0x70] sm:$0xff]  }
 0x255   : > { %v6965_v56 = vsel %vm557_vm1, %v6961_v54, %v6964_v8  ;;  %v7001_v43 = vshrl.u32 %v13833_v28, 16  ;;  %v7006_v59 = vrot.slane %v7004_v20, 1  ;;  %v7039_v8 = vshll.u32 %v13881_v16, 16  ;;  %v12600_v5 = vld [vmem:[%s12819_s29 + $0x90] sm:$0xff]   ;;  %v12601_v20 = vld [vmem:[%s12819_s29 + $0x98] sm:$0xff]  }
 0x256   : > { %v6972_v31 = vsel %vm557_vm1, %v6968_v50, %v6971_v57  ;;  %v6975_v53 = vor.u32 %v6973_v37, %v6971_v57  ;;  %v6992_v33 = vrot.slane %v6990_v49, 1  ;;  %v12598_v37 = vld [vmem:[%s12819_s29 + $0x80] sm:$0xff]   ;;  %v12599_v49 = vld [vmem:[%s12819_s29 + $0x88] sm:$0xff]  }
 0x258   : > { %v6996_v10 = vor.u32 %v6994_v4, %v6992_v33  ;;  %v6993_v40 = vsel %vm557_vm1, %v6989_v21, %v6992_v33  ;;  %v7067_v33 = vshll.u32 %v13914_v24, 16 }
 0x259   : > { %10704 = vmatmul.mubr.msk.bf16.gmra.mrb[92].mxu1 %vm970_vm0, %v2175_v26  ;;  %v6978_v26 = vrot.slane %v6976_v34, 1  ;;  %v12597_v34 = vld [vmem:[%s12819_s29 + $0x78] sm:$0xff]  }
 0x25a   : > { %10715 = vmatprep.mubr.msk.bf16.mxu1 %vm970_vm0, %v12579_v2 }
 0x25b   : > { %11176 = vmatmul.mubr.msk.bf16.gmra.mrb[44].mxu0 %vm970_vm0, %v6923_v27  ;;  %v6982_v46 = vor.u32 %v6980_v44, %v6978_v26  ;;  %v6979_v30 = vsel %vm557_vm1, %v6975_v53, %v6978_v26  ;;  %v12590_v27 = vld [vmem:[%s12819_s29 + $0x40] sm:$0xff]   ;;  %v7053_v26 = vshll.u32 %v15124_v1, 16 }
 0x25c   : > { %11179 = vmatprep.mubr.msk.bf16.mxu0 %vm970_vm0, %v6930_v58  ;;  %v6997_v58 = vshll.u32 %v13833_v28, 16  ;;  %v7018_v28 = vshll.u32 %v13853_v7, 16 }
 0x25d   : > { %v6986_v2 = vsel %vm557_vm1, %v6982_v46, %v6985_v62 }
 0x25e   : > { %v6999_v9 = vrot.slane %v6997_v58, 1 }
 0x261   : > { %10716 = vmatmul.mubr.msk.bf16.vlgmr.msra.gmra.mrb[0].mxu1 %vm970_vm0, %v12580_v11  ;;  %v12592_v11 = vld [vmem:[%s12819_s29 + $0x50] sm:$0xff]  }
 0x262   : > { %11335 = vmatpush3.bf16.msra.mxu1 %v13792_v35  ;;  %10719 = vmatprep.mubr.msk.bf16.mxu1 %vm970_vm0, %v12581_v15  ;;  %v6950_v35 = vrot.slane %v6948_v6, 1  ;;  %v7000_v6 = vsel %vm557_vm1, %v6996_v10, %v6999_v9  ;;  %v7011_v15 = vshll.u32 %v13849_v55, 16 }
 0x263   : > { %11332 = vmatprep.subr.bf16.mxu1 %v12582_v42  ;;  %11180 = vmatmul.mubr.msk.bf16.gmra.mrb[48].mxu0 %vm970_vm0, %v6937_v48  ;;  %v7008_v48 = vshrl.u32 %v13837_v18, 16  ;;  %v7015_v18 = vshrl.u32 %v13849_v55, 16  ;;  %v7032_v55 = vshll.u32 %v13869_v36, 16 }
 0x264   : > { %11183 = vmatprep.mubr.msk.bf16.mxu0 %vm970_vm0, %v6944_v60  ;;  %v6954_v12 = vor.u32 %v6952_v38, %v6950_v35  ;;  %v6951_v32 = vsel %vm557_vm1, %v6947_v51, %v6950_v35  ;;  %v7003_v60 = vor.u32 %v7001_v43, %v6999_v9  ;;  %v7013_v45 = vrot.slane %v7011_v15, 1  ;;  %v12594_v51 = vld [vmem:[%s12819_s29 + $0x60] sm:$0xff]  }
 0x265   : > { %v7010_v38 = vor.u32 %v7008_v48, %v7006_v59  ;;  %v7034_v54 = vrot.slane %v7032_v55, 1  ;;  %v7071_v48 = vshrl.u32 %v13914_v24, 16 }
 0x266   : > { %11336 = vmatpush3.bf16.msra.mxu1 %v12582_v42  ;;  %v6958_v61 = vsel %vm557_vm1, %v6954_v12, %v6957_v19  ;;  %v12593_v42 = vld [vmem:[%s12819_s29 + $0x58] sm:$0xff]   ;;  %v7007_v35 = vsel %vm557_vm1, %v7003_v60, %v7006_v59  ;;  %v7022_v19 = vshrl.u32 %v13853_v7, 16  ;;  %v7017_v41 = vor.u32 %v7015_v18, %v7013_v45  ;;  %v12604_v18 = vld [vmem:[%s12819_s29 + $0xb0] sm:$0xff]  }
 0x267   : > { %11333 = vmatprep.subr.bf16.mxu1 %v12583_v22  ;;  %v7014_v12 = vsel %vm557_vm1, %v7010_v38, %v7013_v45  ;;  %v7029_v7 = vshrl.u32 %v13865_v3, 16  ;;  %v7081_v60 = vshll.u32 %v13932_v23, 16 }
 0x269   : > { %10720 = vmatmul.mubr.msk.bf16.gmra.mrb[4].mxu1 %vm970_vm0, %v12584_v13  ;;  %v7020_v13 = vrot.slane %v7018_v28, 1 }
 0x26a   : > { %10723 = vmatprep.mubr.msk.bf16.mxu1 %vm970_vm0, %v12585_v29  ;;  %11337 = vmatpush3.bf16.msra.mxu1 %v12583_v22  ;;  %v7025_v22 = vshll.u32 %v13865_v3, 16 }
 0x26b   : > { %11334 = vmatprep.subr.bf16.mxu1 %v12586_v0  ;;  %11184 = vmatmul.mubr.msk.bf16.gmra.mrb[52].mxu0 %vm970_vm0, %v6951_v32  ;;  %v7024_v32 = vor.u32 %v7022_v19, %v7020_v13 }
 0x26c   : > { %11187 = vmatprep.mubr.msk.bf16.mxu0 %vm970_vm0, %v6958_v61  ;;  %v7027_v29 = vrot.slane %v7025_v22, 1  ;;  %v7021_v61 = vsel %vm557_vm1, %v7017_v41, %v7020_v13 }
 0x26e   : > { %11338 = vmatpush3.bf16.msra.mxu1 %v12586_v0  ;;  %v7028_v25 = vsel %vm557_vm1, %v7024_v32, %v7027_v29  ;;  %v7036_v0 = vshrl.u32 %v13869_v36, 16  ;;  %v7031_v50 = vor.u32 %v7029_v7, %v7027_v29  ;;  %v7043_v36 = vshrl.u32 %v13881_v16, 16  ;;  %v12605_v32 = vld [vmem:[%s13256_s21] sm:$0xff]  }
 0x26f   : > { %v7783_v29 = vrot.slane %v12605_v32, 1 }
 0x270   : > { %v7038_v57 = vor.u32 %v7036_v0, %v7034_v54 }
 0x271   : > { %10724 = vmatmul.mubr.msk.bf16.gmra.mrb[8].mxu1 %vm970_vm0, %v12587_v52  ;;  %v7041_v52 = vrot.slane %v7039_v8, 1  ;;  %v12610_v8 = vld [vmem:[%s13256_s21 + $0x18] sm:$0xff]  }
 0x272   : > { %10727 = vmatprep.mubr.msk.bf16.mxu1 %vm970_vm0, %v12588_v17  ;;  %v7035_v17 = vsel %vm557_vm1, %v7031_v50, %v7034_v54  ;;  %v7788_v54 = vrot.slane %v12610_v8, 1  ;;  %v14279_v50 = vld [vmem:[%s12819_s29 + $0xc8] sm:$0xff]   ;;  %v12641_v8 = vld [vmem:[%s13256_s21 + $0x90] sm:$0xff]  }
 0x273   : > { %11188 = vmatmul.mubr.msk.bf16.gmra.mrb[56].mxu0 %vm970_vm0, %v6965_v56  ;;  %v15123_v56 = vld [vmem:[#allocation6_spill] sm:$0xff]  ;;  %v7045_v46 = vor.u32 %v7043_v36, %v7041_v52  ;;  %v14295_v36 = vld [vmem:[%s12819_s29 + $0xd8] sm:$0xff]  }
 0x274   : > { %11191 = vmatprep.mubr.msk.bf16.mxu0 %vm970_vm0, %v6972_v31  ;;  %v7046_v3 = vshll.u32 %v15123_v56, 16  ;;  %v7042_v31 = vsel %vm557_vm1, %v7038_v57, %v7041_v52  ;;  %v7050_v44 = vshrl.u32 %v15123_v56, 16  ;;  %v14285_v52 = vld [vmem:[%s12819_s29 + $0xd0] sm:$0xff]   ;;  %v12613_v56 = vld [vmem:[%s13256_s21 + $0x20] sm:$0xff]  }
 0x276   : > { %v7048_v53 = vrot.slane %v7046_v3, 1  ;;  %v7790_v3 = vrot.slane %v12613_v56, 1  ;;  %v14407_v56 = vld [vmem:[%s12819_s29 + $0x148] sm:$0xff]  }
 0x278   : > { %v7052_v62 = vor.u32 %v7050_v44, %v7048_v53  ;;  %v14301_v44 = vld [vmem:[%s12819_s29 + $0xe0] sm:$0xff]  }
 0x279   : > { %10728 = vmatmul.mubr.msk.bf16.gmra.mrb[12].mxu1 %vm970_vm0, %v12589_v63  ;;  %v7055_v63 = vrot.slane %v7053_v26, 1  ;;  %v12617_v26 = vld [vmem:[%s13256_s21 + $0x30] sm:$0xff]  }
 0x27a   : > { %10731 = vmatprep.mubr.msk.bf16.mxu1 %vm970_vm0, %v12590_v27  ;;  %v7049_v27 = vsel %vm557_vm1, %v7045_v46, %v7048_v53  ;;  %v7794_v53 = vrot.slane %v12617_v26, 1  ;;  %v12618_v46 = vld [vmem:[%s13256_s21 + $0x38] sm:$0xff]   ;;  %v12646_v26 = vld [vmem:[%s13256_s21 + $0xa8] sm:$0xff]  }
 0x27b   : > { %11192 = vmatmul.mubr.msk.bf16.gmra.mrb[60].mxu0 %vm970_vm0, %v6979_v30  ;;  %v15125_v30 = vld [vmem:[#allocation8_spill] sm:$0xff]  ;;  %v7056_v4 = vsel %vm557_vm1, %v7052_v62, %v7055_v63  ;;  %v7796_v62 = vrot.slane %v12618_v46, 1  ;;  %v14423_v46 = vld [vmem:[%s12819_s29 + $0x158] sm:$0xff]  }
 0x27c   : > { %11195 = vmatprep.mubr.msk.bf16.mxu0 %vm970_vm0, %v6986_v2  ;;  %v7060_v16 = vshll.u32 %v15125_v30, 16  ;;  %v7057_v2 = vshrl.u32 %v15124_v1, 16  ;;  %v7064_v58 = vshrl.u32 %v15125_v30, 16  ;;  %v14317_v30 = vld [vmem:[%s12819_s29 + $0xf0] sm:$0xff]  }
 0x27e   : > { %v7062_v21 = vrot.slane %v7060_v16, 1  ;;  %v7059_v10 = vor.u32 %v7057_v2, %v7055_v63  ;;  %v14311_v63 = vld [vmem:[%s12819_s29 + $0xe8] sm:$0xff]   ;;  %v7797_v16 = vsel %vm2078_vm2, %v7794_v53, %v7796_v62 }
 0x27f   : > { %v12622_v2 = vld [vmem:[%s13256_s21 + $0x48] sm:$0xff]  }
 0x280   : > { %v7066_v9 = vor.u32 %v7064_v58, %v7062_v21  ;;  %v7063_v43 = vsel %vm557_vm1, %v7059_v10, %v7062_v21  ;;  %v14327_v58 = vld [vmem:[%s12819_s29 + $0xf8] sm:$0xff]   ;;  %v14333_v21 = vld [vmem:[%s12819_s29 + $0x100] sm:$0xff]  }
 0x281   : > { %10732 = vmatmul.mubr.msk.bf16.gmra.mrb[16].mxu1 %vm970_vm0, %v12591_v14  ;;  %v7069_v14 = vrot.slane %v7067_v33, 1 }
 0x282   : > { %10735 = vmatprep.mubr.msk.bf16.mxu1 %vm970_vm0, %v12592_v11 }
 0x283   : > { %11196 = vmatmul.mubr.msk.bf16.gmra.mrb[64].mxu0 %vm970_vm0, %v6993_v40  ;;  %v15126_v40 = vld [vmem:[#allocation9_spill] sm:$0xff]  ;;  %v7070_v15 = vsel %vm557_vm1, %v7066_v9, %v7069_v14  ;;  %v7073_v45 = vor.u32 %v7071_v48, %v7069_v14  ;;  %v12625_v9 = vld [vmem:[%s13256_s21 + $0x50] sm:$0xff]  }
 0x284   : > { %11199 = vmatprep.mubr.msk.bf16.mxu0 %vm970_vm0, %v7000_v6  ;;  %v7074_v11 = vshll.u32 %v15126_v40, 16  ;;  %v12602_v6 = vld [vmem:[%s12819_s29 + $0xa0] sm:$0xff]   ;;  %v7078_v59 = vshrl.u32 %v15126_v40, 16  ;;  %v7802_v14 = vrot.slane %v12625_v9, 1  ;;  %v14441_v9 = vld [vmem:[%s12819_s29 + $0x168] sm:$0xff]  }
 0x286   : > { %v7076_v38 = vrot.slane %v7074_v11, 1  ;;  %v14343_v11 = vld [vmem:[%s12819_s29 + $0x108] sm:$0xff]  }
 0x288   : > { %v7080_v28 = vor.u32 %v7078_v59, %v7076_v38  ;;  %v7077_v24 = vsel %vm557_vm1, %v7073_v45, %v7076_v38  ;;  %v14359_v45 = vld [vmem:[%s12819_s29 + $0x118] sm:$0xff]  }
 0x289   : > { %10736 = vmatmul.mubr.msk.bf16.gmra.mrb[20].mxu1 %vm970_vm0, %v12593_v42  ;;  %v14251_v42 = vld [vmem:[%s13256_s21 + $0x180] ss:$0 sps:$4 sm:$0xff]  }
 0x28a   : > { %10739 = vmatprep.mubr.msk.bf16.mxu1 %vm970_vm0, %v12594_v51  ;;  %v12603_v51 = vld [vmem:[%s12819_s29 + $0xa8] sm:$0xff]   ;;  %v7089_v19 = vshll.u32 %v14251_v42, 16 }
 0x28b   : > { %11200 = vmatmul.mubr.msk.bf16.gmra.mrb[68].mxu0 %vm970_vm0, %v7007_v35  ;;  %v7083_v35 = vrot.slane %v7081_v60, 1  ;;  %v12630_v60 = vld [vmem:[%s13256_s21 + $0x68] sm:$0xff]  }
 0x28c   : > { %11203 = vmatprep.mubr.msk.bf16.mxu0 %vm970_vm0, %v7014_v12  ;;  %v7085_v12 = vshrl.u32 %v13932_v23, 16  ;;  %v7091_v41 = vrot.slane %v7089_v19, 1  ;;  %v7808_v38 = vrot.slane %v12630_v60, 1 }
 0x28d   : > { %v7084_v22 = vsel %vm557_vm1, %v7080_v28, %v7083_v35 }
 0x28e   : > { %v7087_v13 = vor.u32 %v7085_v12, %v7083_v35  ;;  %v14365_v35 = vld [vmem:[%s12819_s29 + $0x120] sm:$0xff]   ;;  %v12634_v12 = vld [vmem:[%s13256_s21 + $0x78] sm:$0xff]  }
 0x28f   : > { %v7812_v19 = vrot.slane %v12634_v12, 1  ;;  %v4089_v12 = vshll.u32 %v14295_v36, 16 }
 0x290   : > { %v7092_v23 = vsel %vm557_vm1, %v7087_v13, %v7091_v41  ;;  %v14381_v41 = vld [vmem:[%s12819_s29 + $0x130] sm:$0xff]  }
 0x291   : > { %10740 = vmatmul.mubr.msk.bf16.gmra.mrb[24].mxu1 %vm970_vm0, %v12595_v47  ;;  %v12606_v47 = vld [vmem:[%s13256_s21 + $0x8] sm:$0xff]  }
 0x292   : > { %10743 = vmatprep.mubr.msk.bf16.mxu1 %vm970_vm0, %v12596_v39  ;;  %v7784_v55 = vrot.slane %v12606_v47, 1  ;;  %v14269_v39 = vld [vmem:[%s12819_s29 + $0xc0] sm:$0xff]  }
 0x293   : > { %11204 = vmatmul.mubr.msk.bf16.gmra.mrb[72].mxu0 %vm970_vm0, %v7021_v61  ;;  %v12607_v61 = vld [vmem:[%s12819_s29 + $0xb8] sm:$0xff]  }
 0x294   : > { %11207 = vmatprep.mubr.msk.bf16.mxu0 %vm970_vm0, %v7028_v25  ;;  %v7785_v7 = vsel %vm2078_vm2, %v7783_v29, %v7784_v55  ;;  %v12609_v25 = vld [vmem:[%s13256_s21 + $0x10] sm:$0xff]   ;;  %v12637_v29 = vld [vmem:[%s13256_s21 + $0x80] sm:$0xff]  }
 0x295   : > { %v7786_v0 = vrot.slane %v12609_v25, 1  ;;  %v7814_v47 = vrot.slane %v12637_v29, 1  ;;  %v14397_v25 = vld [vmem:[%s12819_s29 + $0x140] sm:$0xff]  }
 0x297   : > { %v7787_v57 = vsel %vm2078_vm2, %v7784_v55, %v7786_v0  ;;  %v12638_v55 = vld [vmem:[%s13256_s21 + $0x88] sm:$0xff]  }
 0x299   : > { %10744 = vmatmul.mubr.msk.bf16.gmra.mrb[28].mxu1 %vm970_vm0, %v12597_v34  ;;  %v7789_v34 = vsel %vm2078_vm2, %v7786_v0, %v7788_v54 }
 0x29a   : > { %10747 = vmatprep.mubr.msk.bf16.mxu1 %vm970_vm0, %v12598_v37 }
 0x29b   : > { %11208 = vmatmul.mubr.msk.bf16.gmra.mrb[76].mxu0 %vm970_vm0, %v7035_v17  ;;  %v12614_v17 = vld [vmem:[%s13256_s21 + $0x28] sm:$0xff]  }
 0x29c   : > { %11211 = vmatprep.mubr.msk.bf16.mxu0 %vm970_vm0, %v7042_v31  ;;  %v7792_v37 = vrot.slane %v12614_v17, 1  ;;  %v7791_v31 = vsel %vm2078_vm2, %v7788_v54, %v7790_v3  ;;  %v7818_v54 = vrot.slane %v12641_v8, 1  ;;  %v14413_v17 = vld [vmem:[%s12819_s29 + $0x150] sm:$0xff]   ;;  %v4093_v8 = vshrl.u32 %v14295_v36, 16 }
 0x29e   : > { %v7793_v1 = vsel %vm2078_vm2, %v7790_v3, %v7792_v37 }
 0x2a1   : > { %10748 = vmatmul.mubr.msk.bf16.gmra.mrb[32].mxu1 %vm970_vm0, %v12599_v49  ;;  %v7795_v49 = vsel %vm2078_vm2, %v7792_v37, %v7794_v53  ;;  %v7824_v53 = vrot.slane %v12646_v26, 1 }
 0x2a2   : > { %10751 = vmatprep.mubr.msk.bf16.mxu1 %vm970_vm0, %v12600_v5 }
 0x2a3   : > { %11212 = vmatmul.mubr.msk.bf16.gmra.mrb[80].mxu0 %vm970_vm0, %v7049_v27  ;;  %v12621_v27 = vld [vmem:[%s13256_s21 + $0x40] sm:$0xff]  }
 0x2a4   : > { %11215 = vmatprep.mubr.msk.bf16.mxu0 %vm970_vm0, %v7056_v4  ;;  %v7798_v5 = vrot.slane %v12621_v27, 1  ;;  %v7800_v4 = vrot.slane %v12622_v2, 1  ;;  %v12649_v27 = vld [vmem:[%s13256_s21 + $0xb0] sm:$0xff]   ;;  %v12650_v2 = vld [vmem:[%s13256_s21 + $0xb8] sm:$0xff]  }
 0x2a6   : > { %v7799_v33 = vsel %vm2078_vm2, %v7796_v62, %v7798_v5  ;;  %v7801_v10 = vsel %vm2078_vm2, %v7798_v5, %v7800_v4  ;;  %v7826_v5 = vrot.slane %v12649_v27, 1  ;;  %v12658_v27 = vld [vmem:[%s13256_s21 + $0xe0] sm:$0xff]  }
 0x2a9   : > { %10752 = vmatmul.mubr.msk.bf16.gmra.mrb[36].mxu1 %vm970_vm0, %v12601_v20  ;;  %v12626_v20 = vld [vmem:[%s13256_s21 + $0x58] sm:$0xff]  }
 0x2aa   : > { %10755 = vmatprep.mubr.msk.bf16.mxu1 %vm970_vm0, %v12602_v6  ;;  %v7804_v40 = vrot.slane %v12626_v20, 1  ;;  %v14349_v6 = vld [vmem:[%s12819_s29 + $0x110] sm:$0xff]  }
 0x2ab   : > { %11216 = vmatmul.mubr.msk.bf16.gmra.mrb[84].mxu0 %vm970_vm0, %v7063_v43  ;;  %v7803_v43 = vsel %vm2078_vm2, %v7800_v4, %v7802_v14  ;;  %v7828_v4 = vrot.slane %v12650_v2, 1  ;;  %v14447_v20 = vld [vmem:[%s12819_s29 + $0x170] sm:$0xff]   ;;  %v4107_v2 = vshrl.u32 %v14311_v63, 16 }
 0x2ac   : > { %11219 = vmatprep.mubr.msk.bf16.mxu0 %vm970_vm0, %v7070_v15  ;;  %v7805_v48 = vsel %vm2078_vm2, %v7802_v14, %v7804_v40  ;;  %v12629_v15 = vld [vmem:[%s13256_s21 + $0x60] sm:$0xff]   ;;  %v7827_v14 = vsel %vm2078_vm2, %v7824_v53, %v7826_v5 }
 0x2ad   : > { %v7806_v59 = vrot.slane %v12629_v15, 1  ;;  %v4082_v15 = vshll.u32 %v14285_v52, 16 }
 0x2af   : > { %v7807_v28 = vsel %vm2078_vm2, %v7804_v40, %v7806_v59  ;;  %v7829_v40 = vsel %vm2078_vm2, %v7826_v5, %v7828_v4  ;;  %v7838_v5 = vrot.slane %v12658_v27, 1 }
 0x2b1   : > { %10756 = vmatmul.mubr.msk.bf16.gmra.mrb[40].mxu1 %vm970_vm0, %v12603_v51  ;;  %v7809_v51 = vsel %vm2078_vm2, %v7806_v59, %v7808_v38  ;;  %v12653_v59 = vld [vmem:[%s13256_s21 + $0xc0] sm:$0xff]  }
 0x2b2   : > { %10759 = vmatprep.mubr.msk.bf16.mxu1 %vm970_vm0, %v12604_v18  ;;  %v7830_v60 = vrot.slane %v12653_v59, 1 }
 0x2b3   : > { %11220 = vmatmul.mubr.msk.bf16.gmra.mrb[88].mxu0 %vm970_vm0, %v7077_v24  ;;  %v12633_v24 = vld [vmem:[%s13256_s21 + $0x70] sm:$0xff]  }
 0x2b4   : > { %11223 = vmatprep.mubr.msk.bf16.mxu0 %vm970_vm0, %v7084_v22  ;;  %v7810_v18 = vrot.slane %v12633_v24, 1  ;;  %v14375_v22 = vld [vmem:[%s12819_s29 + $0x128] sm:$0xff]  }
 0x2b6   : > { %v7811_v13 = vsel %vm2078_vm2, %v7808_v38, %v7810_v18  ;;  %v7813_v32 = vsel %vm2078_vm2, %v7810_v18, %v7812_v19  ;;  %v4079_v38 = vshrl.u32 %v14279_v50, 16  ;;  %v4086_v18 = vshrl.u32 %v14285_v52, 16 }
 0x2b9   : > { %10760 = vmatmul.mubr.msk.bf16.gmra.mrb[44].mxu1 %vm970_vm0, %v12607_v61  ;;  %v7816_v61 = vrot.slane %v12638_v55, 1  ;;  %v4091_v55 = vrot.slane %v4089_v12, 1 }
 0x2ba   : > { %10763 = vmatprep.mubr.msk.bf16.mxu1 %vm970_vm0, %v14269_v39 }
 0x2bb   : > { %11224 = vmatmul.mubr.msk.bf16.gmra.mrb[92].mxu0 %vm970_vm0, %v7092_v23  ;;  %v14391_v23 = vld [vmem:[%s12819_s29 + $0x138] sm:$0xff]   ;;  %v7817_v0 = vsel %vm2078_vm2, %v7814_v47, %v7816_v61  ;;  %v7819_v3 = vsel %vm2078_vm2, %v7816_v61, %v7818_v54  ;;  %v4095_v26 = vor.u32 %v4093_v8, %v4091_v55 }
 0x2bc   : > { %11235 = vmatprep.mubr.msk.bf16.mxu0 %vm970_vm0, %v7785_v7  ;;  %v7815_v7 = vsel %vm2078_vm2, %v7812_v19, %v7814_v47  ;;  %v14463_v19 = vld [vmem:[%s12819_s29 + $0x178] sm:$0xff]  }
 0x2c1   : > { %10764 = vmatmul.mubr.msk.bf16.gmra.mrb[48].mxu1 %vm970_vm0, %v14279_v50 }
 0x2c2   : > { %10767 = vmatprep.mubr.msk.bf16.mxu1 %vm970_vm0, %v14285_v52  ;;  %v4096_v52 = vshll.u32 %v14301_v44, 16 }
 0x2c3   : > { %11236 = vmatmul.mubr.msk.bf16.vlgmr.msra.gmra.mrb[0].mxu0 %vm970_vm0, %v7787_v57  ;;  %v12642_v57 = vld [vmem:[%s13256_s21 + $0x98] sm:$0xff]  }
 0x2c4   : > { %11239 = vmatprep.mubr.msk.bf16.mxu0 %vm970_vm0, %v7789_v34  ;;  %v7820_v34 = vrot.slane %v12642_v57, 1  ;;  %v12657_v57 = vld [vmem:[%s13256_s21 + $0xd8] sm:$0xff]  }
 0x2c6   : > { %v7821_v37 = vsel %vm2078_vm2, %v7818_v54, %v7820_v34 }
 0x2c9   : > { %10768 = vmatmul.mubr.msk.bf16.gmra.mrb[52].mxu1 %vm970_vm0, %v14295_v36 }
 0x2ca   : > { %10771 = vmatprep.mubr.msk.bf16.mxu1 %vm970_vm0, %v14301_v44 }
 0x2cb   : > { %11240 = vmatmul.mubr.msk.bf16.gmra.mrb[4].mxu0 %vm970_vm0, %v7791_v31  ;;  %v12645_v31 = vld [vmem:[%s13256_s21 + $0xa0] sm:$0xff]  }
 0x2cc   : > { %11243 = vmatprep.mubr.msk.bf16.mxu0 %vm970_vm0, %v7793_v1  ;;  %v7822_v1 = vrot.slane %v12645_v31, 1  ;;  %v4098_v31 = vrot.slane %v4096_v52, 1 }
 0x2ce   : > { %v7823_v62 = vsel %vm2078_vm2, %v7820_v34, %v7822_v1  ;;  %v7836_v34 = vrot.slane %v12657_v57, 1 }
 0x2d1   : > { %10772 = vmatmul.mubr.msk.bf16.gmra.mrb[56].mxu1 %vm970_vm0, %v14311_v63 }
 0x2d2   : > { %10775 = vmatprep.mubr.msk.bf16.mxu1 %vm970_vm0, %v14317_v30 }
 0x2d3   : > { %11244 = vmatmul.mubr.msk.bf16.gmra.mrb[8].mxu0 %vm970_vm0, %v7795_v49  ;;  %v14429_v49 = vld [vmem:[%s12819_s29 + $0x160] sm:$0xff]  }
 0x2d4   : > { %11247 = vmatprep.mubr.msk.bf16.mxu0 %vm970_vm0, %v7797_v16  ;;  %v7825_v16 = vsel %vm2078_vm2, %v7822_v1, %v7824_v53 }
 0x2d9   : > { %10776 = vmatmul.mubr.msk.bf16.gmra.mrb[60].mxu1 %vm970_vm0, %v14327_v58 }
 0x2da   : > { %10779 = vmatprep.mubr.msk.bf16.mxu1 %vm970_vm0, %v14333_v21 }
 0x2db   : > { %11248 = vmatmul.mubr.msk.bf16.gmra.mrb[12].mxu0 %vm970_vm0, %v7799_v33  ;;  %v4072_v33 = vshrl.u32 %v14269_v39, 16 }
 0x2dc   : > { %11251 = vmatprep.mubr.msk.bf16.mxu0 %vm970_vm0, %v7801_v10  ;;  %v4075_v10 = vshll.u32 %v14279_v50, 16 }
 0x2e1   : > { %10780 = vmatmul.mubr.msk.bf16.gmra.mrb[64].mxu1 %vm970_vm0, %v14343_v11 }
 0x2e2   : > { %10783 = vmatprep.mubr.msk.bf16.mxu1 %vm970_vm0, %v14349_v6 }
 0x2e3   : > { %11252 = vmatmul.mubr.msk.bf16.gmra.mrb[16].mxu0 %vm970_vm0, %v7803_v43  ;;  %v15127_v43 = vld [vmem:[#allocation2_spill] sm:$0xff] }
 0x2e4   : > { %11255 = vmatprep.mubr.msk.bf16.mxu0 %vm970_vm0, %v7805_v48  ;;  %v4074_v39 = vor.u32 %v4072_v33, %v15127_v43  ;;  %v4077_v48 = vrot.slane %v4075_v10, 1  ;;  %v12659_v33 = vld [vmem:[%s13256_s21 + $0xe8] sm:$0xff]  }
 0x2e5   : > { %v7840_v10 = vrot.slane %v12659_v33, 1 }
 0x2e6   : > { %v4081_v29 = vor.u32 %v4079_v38, %v4077_v48  ;;  %v12660_v38 = vld [vmem:[%s13256_s21 + $0xf0] sm:$0xff]  }
 0x2e9   : > { %10784 = vmatmul.mubr.msk.bf16.gmra.mrb[68].mxu1 %vm970_vm0, %v14359_v45 }
 0x2ea   : > { %10787 = vmatprep.mubr.msk.bf16.mxu1 %vm970_vm0, %v14365_v35 }
 0x2eb   : > { %11256 = vmatmul.mubr.msk.bf16.gmra.mrb[20].mxu0 %vm970_vm0, %v7807_v28  ;;  %v4078_v28 = vsel %vm557_vm1, %v4074_v39, %v4077_v48  ;;  %v7839_v39 = vsel %vm2078_vm2, %v7836_v34, %v7838_v5 }
 0x2ec   : > { %11259 = vmatprep.mubr.msk.bf16.mxu0 %vm970_vm0, %v7809_v51  ;;  %v12654_v51 = vld [vmem:[%s13256_s21 + $0xc8] sm:$0xff]  }
 0x2ed   : > { %v7832_v24 = vrot.slane %v12654_v51, 1  ;;  %v4121_v51 = vshrl.u32 %v14327_v58, 16 }
 0x2ef   : > { %v7833_v50 = vsel %vm2078_vm2, %v7830_v60, %v7832_v24 }
 0x2f1   : > { %10788 = vmatmul.mubr.msk.bf16.gmra.mrb[72].mxu1 %vm970_vm0, %v14375_v22 }
 0x2f2   : > { %10791 = vmatprep.mubr.msk.bf16.mxu1 %vm970_vm0, %v14381_v41 }
 0x2f3   : > { %11260 = vmatmul.mubr.msk.bf16.gmra.mrb[24].mxu0 %vm970_vm0, %v7811_v13  ;;  %v4084_v13 = vrot.slane %v4082_v15, 1 }
 0x2f4   : > { %11263 = vmatprep.mubr.msk.bf16.mxu0 %vm970_vm0, %v7813_v32  ;;  %v7831_v32 = vsel %vm2078_vm2, %v7828_v4, %v7830_v60  ;;  %v4124_v60 = vshll.u32 %v14333_v21, 16 }
 0x2f5   : > { %v4088_v47 = vor.u32 %v4086_v18, %v4084_v13  ;;  %v4085_v61 = vsel %vm557_vm1, %v4081_v29, %v4084_v13  ;;  %v12661_v18 = vld [vmem:[%s13256_s21 + $0xf8] sm:$0xff]   ;;  %v4128_v13 = vshrl.u32 %v14333_v21, 16 }
 0x2f6   : > { %v7844_v12 = vrot.slane %v12661_v18, 1  ;;  %v4126_v29 = vrot.slane %v4124_v60, 1  ;;  %v4166_v18 = vshll.u32 %v14381_v41, 16 }
 0x2f7   : > { %v4092_v54 = vsel %vm557_vm1, %v4088_v47, %v4091_v55 }
 0x2f8   : > { %v4130_v55 = vor.u32 %v4128_v13, %v4126_v29 }
 0x2f9   : > { %10792 = vmatmul.mubr.msk.bf16.gmra.mrb[76].mxu1 %vm970_vm0, %v14391_v23 }
 0x2fa   : > { %10795 = vmatprep.mubr.msk.bf16.mxu1 %vm970_vm0, %v14397_v25 }
 0x2fb   : > { %11264 = vmatmul.mubr.msk.bf16.gmra.mrb[28].mxu0 %vm970_vm0, %v7815_v7  ;;  %v12656_v7 = vld [vmem:[%s13256_s21 + $0xd0] sm:$0xff]  }
 0x2fc   : > { %11267 = vmatprep.mubr.msk.bf16.mxu0 %vm970_vm0, %v7817_v0  ;;  %v7834_v0 = vrot.slane %v12656_v7, 1  ;;  %v4138_v7 = vshll.u32 %v14349_v6, 16 }
 0x2fe   : > { %v7835_v1 = vsel %vm2078_vm2, %v7832_v24, %v7834_v0  ;;  %v7837_v36 = vsel %vm2078_vm2, %v7834_v0, %v7836_v34  ;;  %v4135_v34 = vshrl.u32 %v14343_v11, 16 }
 0x301   : > { %10796 = vmatmul.mubr.msk.bf16.gmra.mrb[80].mxu1 %vm970_vm0, %v14407_v56 }
 0x302   : > { %10799 = vmatprep.mubr.msk.bf16.mxu1 %vm970_vm0, %v14413_v17 }
 0x303   : > { %11268 = vmatmul.mubr.msk.bf16.gmra.mrb[32].mxu0 %vm970_vm0, %v7819_v3  ;;  %v4100_v3 = vshrl.u32 %v14301_v44, 16  ;;  %v4099_v44 = vsel %vm557_vm1, %v4095_v26, %v4098_v31  ;;  %v4142_v26 = vshrl.u32 %v14349_v6, 16 }
 0x304   : > { %11271 = vmatprep.mubr.msk.bf16.mxu0 %vm970_vm0, %v7821_v37  ;;  %v4103_v37 = vshll.u32 %v14311_v63, 16  ;;  %v7841_v63 = vsel %vm2078_vm2, %v7838_v5, %v7840_v10 }
 0x305   : > { %v4102_v53 = vor.u32 %v4100_v3, %v4098_v31  ;;  %v12663_v31 = vld [vmem:[%s13256_s21 + $0x108] sm:$0xff]  }
 0x309   : > { %10800 = vmatmul.mubr.msk.bf16.gmra.mrb[84].mxu1 %vm970_vm0, %v14423_v46 }
 0x30a   : > { %10803 = vmatprep.mubr.msk.bf16.mxu1 %vm970_vm0, %v14429_v49 }
 0x30b   : > { %11272 = vmatmul.mubr.msk.bf16.gmra.mrb[36].mxu0 %vm970_vm0, %v7823_v62  ;;  %v4105_v62 = vrot.slane %v4103_v37, 1 }
 0x30c   : > { %11275 = vmatprep.mubr.msk.bf16.mxu0 %vm970_vm0, %v7825_v16  ;;  %v4110_v16 = vshll.u32 %v14317_v30, 16 }
 0x30d   : > { %v4106_v4 = vsel %vm557_vm1, %v4102_v53, %v4105_v62  ;;  %v4109_v48 = vor.u32 %v4107_v2, %v4105_v62  ;;  %v4140_v53 = vrot.slane %v4138_v7, 1  ;;  %v4152_v2 = vshll.u32 %v14365_v35, 16 }
 0x30e   : > { %v4112_v43 = vrot.slane %v4110_v16, 1  ;;  %v4170_v7 = vshrl.u32 %v14381_v41, 16 }
 0x30f   : > { %v4154_v60 = vrot.slane %v4152_v2, 1  ;;  %v12669_v2 = vld [vmem:[%s13256_s21 + $0x138] sm:$0xff]  }
 0x311   : > { %10804 = vmatmul.mubr.msk.bf16.gmra.mrb[88].mxu1 %vm970_vm0, %v14441_v9 }
 0x312   : > { %10807 = vmatprep.mubr.msk.bf16.mxu1 %vm970_vm0, %v14447_v20 }
 0x313   : > { %11276 = vmatmul.mubr.msk.bf16.gmra.mrb[40].mxu0 %vm970_vm0, %v7827_v14  ;;  %v4114_v14 = vshrl.u32 %v14317_v30, 16  ;;  %v4113_v30 = vsel %vm557_vm1, %v4109_v48, %v4112_v43  ;;  %v12665_v48 = vld [vmem:[%s13256_s21 + $0x118] sm:$0xff]  }
 0x314   : > { %11279 = vmatprep.mubr.msk.bf16.mxu0 %vm970_vm0, %v7829_v40  ;;  %v4117_v40 = vshll.u32 %v14327_v58, 16 }
 0x315   : > { %v4116_v15 = vor.u32 %v4114_v14, %v4112_v43 }
 0x316   : > { %v4119_v59 = vrot.slane %v4117_v40, 1  ;;  %v4149_v40 = vshrl.u32 %v14359_v45, 16 }
 0x318   : > { %v4120_v24 = vsel %vm557_vm1, %v4116_v15, %v4119_v59  ;;  %v4123_v47 = vor.u32 %v4121_v51, %v4119_v59  ;;  %v4156_v15 = vshrl.u32 %v14365_v35, 16  ;;  %v4159_v59 = vshll.u32 %v14375_v22, 16 }
 0x319   : > { %10808 = vmatmul.mubr.msk.bf16.gmra.mrb[92].mxu1 %vm970_vm0, %v14463_v19 }
 0x31a   : > { %10867 = vmatprep.mubr.msk.bf16.mxu1 %vm970_vm0, %v4078_v28  ;;  %v7842_v28 = vrot.slane %v12660_v38, 1  ;;  %v4127_v8 = vsel %vm557_vm1, %v4123_v47, %v4126_v29  ;;  %v4161_v51 = vrot.slane %v4159_v59, 1 }
 0x31b   : > { %11280 = vmatmul.mubr.msk.bf16.gmra.mrb[44].mxu0 %vm970_vm0, %v7831_v32  ;;  %v4131_v32 = vshll.u32 %v14343_v11, 16 }
 0x31c   : > { %11283 = vmatprep.mubr.msk.bf16.mxu0 %vm970_vm0, %v7833_v50  ;;  %v7843_v50 = vsel %vm2078_vm2, %v7840_v10, %v7842_v28  ;;  %v7845_v58 = vsel %vm2078_vm2, %v7842_v28, %v7844_v12  ;;  %v12664_v10 = vld [vmem:[%s13256_s21 + $0x110] sm:$0xff]   ;;  %v4158_v28 = vor.u32 %v4156_v15, %v4154_v60 }
 0x31d   : > { %v4133_v52 = vrot.slane %v4131_v32, 1  ;;  %v7850_v14 = vrot.slane %v12664_v10, 1  ;;  %v12666_v32 = vld [vmem:[%s13256_s21 + $0x120] sm:$0xff]   ;;  %v4184_v10 = vshrl.u32 %v14397_v25, 16 }
 0x31e   : > { %v7854_v29 = vrot.slane %v12666_v32, 1  ;;  %v12671_v32 = vld [vmem:[%s13256_s21 + $0x148] sm:$0xff]  }
 0x31f   : > { %v4134_v37 = vsel %vm557_vm1, %v4130_v55, %v4133_v52  ;;  %v4137_v16 = vor.u32 %v4135_v34, %v4133_v52  ;;  %v12667_v55 = vld [vmem:[%s13256_s21 + $0x128] sm:$0xff]  }
 0x320   : > { %v7856_v52 = vrot.slane %v12667_v55, 1 }
 0x321   : > { %10868 = vmatmul.mubr.msk.bf16.vlgmr.msra.gmra.mrb[48].mxu1 %vm970_vm0, %v4085_v61  ;;  %v4141_v33 = vsel %vm557_vm1, %v4137_v16, %v4140_v53 }
 0x322   : > { %10871 = vmatprep.mubr.msk.bf16.mxu1 %vm970_vm0, %v4092_v54  ;;  %v12662_v54 = vld [vmem:[%s13256_s21 + $0x100] sm:$0xff]  }
 0x323   : > { %11284 = vmatmul.mubr.msk.bf16.gmra.mrb[48].mxu0 %vm970_vm0, %v7835_v1  ;;  %v7846_v57 = vrot.slane %v12662_v54, 1  ;;  %v7848_v1 = vrot.slane %v12663_v31, 1  ;;  %v4168_v54 = vrot.slane %v4166_v18, 1 }
 0x324   : > { %11287 = vmatprep.mubr.msk.bf16.mxu0 %vm970_vm0, %v7837_v36  ;;  %v4145_v36 = vshll.u32 %v14359_v45, 16 }
 0x325   : > { %v7847_v62 = vsel %vm2078_vm2, %v7844_v12, %v7846_v57  ;;  %v7849_v11 = vsel %vm2078_vm2, %v7846_v57, %v7848_v1 }
 0x326   : > { %v4147_v27 = vrot.slane %v4145_v36, 1 }
 0x328   : > { %v4151_v38 = vor.u32 %v4149_v40, %v4147_v27 }
 0x329   : > { %10872 = vmatmul.mubr.msk.bf16.gmra.mrb[52].mxu1 %vm970_vm0, %v4099_v44  ;;  %v4144_v44 = vor.u32 %v4142_v26, %v4140_v53  ;;  %v4180_v26 = vshll.u32 %v14397_v25, 16 }
 0x32a   : > { %10875 = vmatprep.mubr.msk.bf16.mxu1 %vm970_vm0, %v4106_v4  ;;  %v4155_v13 = vsel %vm557_vm1, %v4151_v38, %v4154_v60  ;;  %v4194_v60 = vshll.u32 %v14413_v17, 16 }
 0x32b   : > { %11288 = vmatmul.mubr.msk.bf16.gmra.mrb[52].mxu0 %vm970_vm0, %v7839_v39  ;;  %v4148_v39 = vsel %vm557_vm1, %v4144_v44, %v4147_v27  ;;  %v4182_v40 = vrot.slane %v4180_v26, 1 }
 0x32c   : > { %11291 = vmatprep.mubr.msk.bf16.mxu0 %vm970_vm0, %v7841_v63  ;;  %v7852_v63 = vrot.slane %v12665_v48, 1  ;;  %v4196_v55 = vrot.slane %v4194_v60, 1 }
 0x32e   : > { %v7853_v45 = vsel %vm2078_vm2, %v7850_v14, %v7852_v63  ;;  %v7855_v57 = vsel %vm2078_vm2, %v7852_v63, %v7854_v29  ;;  %v4186_v63 = vor.u32 %v4184_v10, %v4182_v40 }
 0x331   : > { %10876 = vmatmul.mubr.msk.bf16.gmra.mrb[56].mxu1 %vm970_vm0, %v4113_v30  ;;  %v7851_v30 = vsel %vm2078_vm2, %v7848_v1, %v7850_v14  ;;  %v4187_v14 = vshll.u32 %v14407_v56, 16 }
 0x332   : > { %10879 = vmatprep.mubr.msk.bf16.mxu1 %vm970_vm0, %v4120_v24 }
 0x333   : > { %11292 = vmatmul.mubr.msk.bf16.gmra.mrb[56].mxu0 %vm970_vm0, %v7843_v50  ;;  %v4163_v50 = vshrl.u32 %v14375_v22, 16  ;;  %v7857_v22 = vsel %vm2078_vm2, %v7854_v29, %v7856_v52  ;;  %v4189_v15 = vrot.slane %v4187_v14, 1  ;;  %v7864_v29 = vrot.slane %v12671_v32, 1  ;;  %v12675_v32 = vld [vmem:[%s13256_s21 + $0x168] sm:$0xff]  }
 0x334   : > { %v14512_v61 = vpop.f32.mrb[0].mxu1  ;;  %11295 = vmatprep.mubr.msk.bf16.mxu0 %vm970_vm0, %v7845_v58  ;;  %v4162_v58 = vsel %vm557_vm1, %v4158_v28, %v4161_v51 }
 0x335   : > { %v14515_v21 = vpop.f32.mrb[1].mxu1  ;;  %v4165_v34 = vor.u32 %v4163_v50, %v4161_v51  ;;  %v4191_v51 = vshrl.u32 %v14407_v56, 16  ;;  %v4198_v50 = vshrl.u32 %v14413_v17, 16 }
 0x336   : > { %v14518_v0 = vpop.f32.mrb[2].mxu1 }
 0x337   : > { %v14524_v3 = vpop.f32.mrb[3].mxu1  ;;  %v4169_v53 = vsel %vm557_vm1, %v4165_v34, %v4168_v54  ;;  %v4208_v34 = vshll.u32 %v14429_v49, 16 }
 0x339   : > { %10880 = vmatmul.mubr.msk.bf16.gmra.mrb[60].mxu1 %vm970_vm0, %v4127_v8  ;;  %v4173_v8 = vshll.u32 %v14391_v23, 16  ;;  %v4210_v10 = vrot.slane %v4208_v34, 1 }
 0x33a   : > { %10883 = vmatprep.mubr.msk.bf16.mxu1 %vm970_vm0, %v4134_v37  ;;  %v4172_v37 = vor.u32 %v4170_v7, %v4168_v54  ;;  %v4193_v7 = vor.u32 %v4191_v51, %v4189_v15 }
 0x33b   : > { %11296 = vmatmul.mubr.msk.bf16.gmra.mrb[60].mxu0 %vm970_vm0, %v7847_v62  ;;  %v4175_v31 = vrot.slane %v4173_v8, 1  ;;  %v12668_v62 = vld [vmem:[%s13256_s21 + $0x130] sm:$0xff]   ;;  %v4200_v8 = vor.u32 %v4198_v50, %v4196_v55  ;;  %v4226_v50 = vshrl.u32 %v14447_v20, 16 }
 0x33c   : > { %v14534_v5 = vpop.f32.mrb[4].mxu1  ;;  %11299 = vmatprep.mubr.msk.bf16.mxu0 %vm970_vm0, %v7849_v11  ;;  %v7858_v16 = vrot.slane %v12668_v62, 1  ;;  %v4177_v11 = vshrl.u32 %v14391_v23, 16 }
 0x33d   : > { %v14537_v6 = vpop.f32.mrb[5].mxu1  ;;  %v4176_v27 = vsel %vm557_vm1, %v4172_v37, %v4175_v31  ;;  %v4197_v37 = vsel %vm557_vm1, %v4193_v7, %v4196_v55 }
 0x33e   : > { %v14540_v4 = vpop.f32.mrb[6].mxu1  ;;  %v4179_v48 = vor.u32 %v4177_v11, %v4175_v31  ;;  %v12672_v31 = vld [vmem:[%s13256_s21 + $0x150] sm:$0xff]   ;;  %v12673_v11 = vld [vmem:[%s13256_s21 + $0x158] sm:$0xff]  }
 0x33f   : > { %v14546_v43 = vpop.f32.mrb[7].mxu1  ;;  %v7866_v26 = vrot.slane %v12672_v31, 1  ;;  %v12676_v31 = vld [vmem:[%s13256_s21 + $0x170] sm:$0xff]  }
 0x340   : > { %v4183_v38 = vsel %vm557_vm1, %v4179_v48, %v4182_v40 }
 0x341   : > { %10884 = vmatmul.mubr.msk.bf16.gmra.mrb[64].mxu1 %vm970_vm0, %v4141_v33  ;;  %v7860_v33 = vrot.slane %v12669_v2, 1  ;;  %v4212_v2 = vshrl.u32 %v14429_v49, 16  ;;  %v7867_v14 = vsel %vm2078_vm2, %v7864_v29, %v7866_v26 }
 0x342   : > { %10887 = vmatprep.mubr.msk.bf16.mxu1 %vm970_vm0, %v4148_v39  ;;  %v7859_v39 = vsel %vm2078_vm2, %v7856_v52, %v7858_v16 }
 0x343   : > { %11300 = vmatmul.mubr.msk.bf16.gmra.mrb[64].mxu0 %vm970_vm0, %v7851_v30  ;;  %v7861_v23 = vsel %vm2078_vm2, %v7858_v16, %v7860_v33 }
 0x344   : > { %v14556_v24 = vpop.f32.mrb[8].mxu1  ;;  %11303 = vmatprep.mubr.msk.bf16.mxu0 %vm970_vm0, %v7853_v45  ;;  %v12670_v45 = vld [vmem:[%s13256_s21 + $0x140] sm:$0xff]  }
 0x345   : > { %v14559_v35 = vpop.f32.mrb[9].mxu1  ;;  %v7862_v28 = vrot.slane %v12670_v45, 1 }
 0x346   : > { %v14562_v12 = vpop.f32.mrb[10].mxu1 }
 0x347   : > { %v14568_v47 = vpop.f32.mrb[11].mxu1  ;;  %v7863_v52 = vsel %vm2078_vm2, %v7860_v33, %v7862_v28  ;;  %v7865_v56 = vsel %vm2078_vm2, %v7862_v28, %v7864_v29  ;;  %v4215_v33 = vshll.u32 %v14441_v9, 16  ;;  %v4219_v28 = vshrl.u32 %v14441_v9, 16 }
 0x348   : > { %v7872_v29 = vrot.slane %v12675_v32, 1 }
 0x349   : > { %10888 = vmatmul.mubr.msk.bf16.gmra.mrb[68].mxu1 %vm970_vm0, %v4155_v13  ;;  %v4190_v13 = vsel %vm557_vm1, %v4186_v63, %v4189_v15  ;;  %v4217_v48 = vrot.slane %v4215_v33, 1  ;;  %v4222_v63 = vshll.u32 %v14447_v20, 16  ;;  %v12678_v33 = vld [vmem:[%s13256_s21 + $0x178] sm:$0xff]  }
 0x34a   : > { %10891 = vmatprep.mubr.msk.bf16.mxu1 %vm970_vm0, %v4162_v58  ;;  %v4201_v58 = vshll.u32 %v14423_v46, 16 }
 0x34b   : > { %11304 = vmatmul.mubr.msk.bf16.gmra.mrb[68].mxu0 %vm970_vm0, %v7855_v57  ;;  %v4224_v55 = vrot.slane %v4222_v63, 1  ;;  %v4221_v9 = vor.u32 %v4219_v28, %v4217_v48 }
 0x34c   : > { %v14578_v1 = vpop.f32.mrb[12].mxu1  ;;  %11307 = vmatprep.mubr.msk.bf16.mxu0 %vm970_vm0, %v7857_v22  ;;  %v4203_v54 = vrot.slane %v4201_v58, 1  ;;  %v4229_v58 = vshll.u32 %v14463_v19, 16 }
 0x34d   : > { %v14581_v41 = vpop.f32.mrb[13].mxu1 }
 0x34e   : > { %v14584_v36 = vpop.f32.mrb[14].mxu1  ;;  %v4204_v16 = vsel %vm557_vm1, %v4200_v8, %v4203_v54  ;;  %v4231_v8 = vrot.slane %v4229_v58, 1 }
 0x34f   : > { %v14590_v44 = vpop.f32.mrb[15].mxu1 }
 0x351   : > { %10892 = vmatmul.mubr.msk.bf16.gmra.mrb[72].mxu1 %vm970_vm0, %v4169_v53  ;;  %v4205_v53 = vshrl.u32 %v14423_v46, 16 }
 0x352   : > { %10895 = vmatprep.mubr.msk.bf16.mxu1 %vm970_vm0, %v4176_v27  ;;  %v7868_v27 = vrot.slane %v12673_v11, 1 }
 0x353   : > { %11308 = vmatmul.mubr.msk.bf16.gmra.mrb[72].mxu0 %vm970_vm0, %v7859_v39  ;;  %v4207_v40 = vor.u32 %v4205_v53, %v4203_v54  ;;  %v4214_v39 = vor.u32 %v4212_v2, %v4210_v10  ;;  %v4233_v53 = vshrl.u32 %v14463_v19, 16 }
 0x354   : > { %v14600_v59 = vpop.f32.mrb[16].mxu1  ;;  %11311 = vmatprep.mubr.msk.bf16.mxu0 %vm970_vm0, %v7861_v23  ;;  %v7869_v46 = vsel %vm2078_vm2, %v7866_v26, %v7868_v27  ;;  %v7874_v26 = vrot.slane %v12676_v31, 1  ;;  %v14728_v31 = vld [vmem:[%s15095_s2] ss:$0 sm:$0xff] }
 0x355   : > { %v14603_v25 = vpop.f32.mrb[17].mxu1  ;;  %v4211_v60 = vsel %vm557_vm1, %v4207_v40, %v4210_v10  ;;  %v7876_v10 = vrot.slane %v12678_v33, 1  ;;  %v4235_v40 = vor.u32 %v4233_v53, %v4231_v8 }
 0x356   : > { %v14606_v30 = vpop.f32.mrb[18].mxu1 }
 0x357   : > { %v14612_v18 = vpop.f32.mrb[19].mxu1 }
 0x359   : > { %10896 = vmatmul.mubr.msk.bf16.gmra.mrb[76].mxu1 %vm970_vm0, %v4183_v38  ;;  %v12674_v38 = vld [vmem:[%s13256_s21 + $0x160] sm:$0xff]  }
 0x35a   : > { %10899 = vmatprep.mubr.msk.bf16.mxu1 %vm970_vm0, %v4190_v13  ;;  %v7870_v45 = vrot.slane %v12674_v38, 1  ;;  %v4218_v13 = vsel %vm557_vm1, %v4214_v39, %v4217_v48  ;;  %v7877_v39 = vsel %vm2078_vm2, %v7874_v26, %v7876_v10  ;;  %v7878_v38 = vrot.slane %v14251_v42, 1 }
 0x35b   : > { %11312 = vmatmul.mubr.msk.bf16.gmra.mrb[76].mxu0 %vm970_vm0, %v7863_v52 }
 0x35c   : > { %v14622_v57 = vpop.f32.mrb[20].mxu1  ;;  %11315 = vmatprep.mubr.msk.bf16.mxu0 %vm970_vm0, %v7865_v56  ;;  %v7871_v52 = vsel %vm2078_vm2, %v7868_v27, %v7870_v45  ;;  %v7873_v7 = vsel %vm2078_vm2, %v7870_v45, %v7872_v29  ;;  %v4228_v56 = vor.u32 %v4226_v50, %v4224_v55  ;;  %v7879_v28 = vsel %vm2078_vm2, %v7876_v10, %v7878_v38 }
 0x35d   : > { %v14625_v17 = vpop.f32.mrb[21].mxu1 }
 0x35e   : > { %v14628_v22 = vpop.f32.mrb[22].mxu1  ;;  %v4232_v2 = vsel %vm557_vm1, %v4228_v56, %v4231_v8 }
 0x35f   : > { %v14634_v62 = vpop.f32.mrb[23].mxu1 }
 0x361   : > { %10900 = vmatmul.mubr.msk.bf16.gmra.mrb[80].mxu1 %vm970_vm0, %v4197_v37  ;;  %v4225_v37 = vsel %vm557_vm1, %v4221_v9, %v4224_v55 }
 0x362   : > { %10903 = vmatprep.mubr.msk.bf16.mxu1 %vm970_vm0, %v4204_v16  ;;  %v12677_v16 = vld [vmem:[%s12819_s29 + $0x180] ss:$0 sps:$4 sm:$0xff]  }
 0x363   : > { %11316 = vmatmul.mubr.msk.bf16.gmra.mrb[80].mxu0 %vm970_vm0, %v7867_v14  ;;  %v4237_v11 = vshll.u32 %v12677_v16, 16  ;;  %v7875_v14 = vsel %vm2078_vm2, %v7872_v29, %v7874_v26 }
 0x364   : > { %v14644_v23 = vpop.f32.mrb[24].mxu1  ;;  %11319 = vmatprep.mubr.msk.bf16.mxu0 %vm970_vm0, %v7869_v46 }
 0x365   : > { %v14647_v49 = vpop.f32.mrb[25].mxu1  ;;  %v4239_v46 = vrot.slane %v4237_v11, 1 }
 0x366   : > { %v14650_v15 = vpop.f32.mrb[26].mxu1 }
 0x367   : > { %v14656_v51 = vpop.f32.mrb[27].mxu1 }
 0x369   : > { %10904 = vmatmul.mubr.msk.bf16.gmra.mrb[84].mxu1 %vm970_vm0, %v4211_v60  ;;  %v4240_v60 = vsel %vm557_vm1, %v4235_v40, %v4239_v46 }
 0x36a   : > { %10907 = vmatprep.mubr.msk.bf16.mxu1 %vm970_vm0, %v4218_v13 }
 0x36b   : > { %11320 = vmatmul.mubr.msk.bf16.gmra.mrb[84].mxu0 %vm970_vm0, %v7871_v52 }
 0x36c   : > { %v14666_v54 = vpop.f32.mrb[28].mxu1  ;;  %11323 = vmatprep.mubr.msk.bf16.mxu0 %vm970_vm0, %v7873_v7 }
 0x36d   : > { %v14669_v20 = vpop.f32.mrb[29].mxu1 }
 0x36e   : > { %v14671_v34 = vpop.f32.mrb[30].mxu1 }
 0x36f   : > { %v14678_v27 = vpop.f32.mrb[31].mxu1 }
 0x371   : > { %10908 = vmatmul.mubr.msk.bf16.gmra.mrb[88].mxu1 %vm970_vm0, %v4225_v37 }
 0x372   : > { %10911 = vmatprep.mubr.msk.bf16.mxu1 %vm970_vm0, %v4232_v2 }
 0x373   : > { %11324 = vmatmul.mubr.msk.bf16.gmra.mrb[88].mxu0 %vm970_vm0, %v7875_v14 }
 0x374   : > { %v14686_v48 = vpop.f32.mrb[32].mxu1  ;;  %11327 = vmatprep.mubr.msk.bf16.mxu0 %vm970_vm0, %v7877_v39 }
 0x375   : > { %v14689_v19 = vpop.f32.mrb[33].mxu1 }
 0x376   : > { %v14691_v63 = vpop.f32.mrb[34].mxu1 }
 0x377   : > { %v14696_v45 = vpop.f32.mrb[35].mxu1 }
 0x379   : > { %10912 = vmatmul.mubr.msk.bf16.gmra.mrb[92].mxu1 %vm970_vm0, %v4240_v60 }
 0x37b   : > { %11328 = vmatmul.mubr.msk.bf16.gmra.mrb[92].mxu0 %vm970_vm0, %v7879_v28 }
 0x37c   : > { %v14700_v13 = vpop.f32.mrb[36].mxu1 }
 0x37d   : > { %v14703_v32 = vpop.f32.mrb[37].mxu1 }
 0x37e   : > { %v14705_v29 = vpop.f32.mrb[38].mxu1 }
 0x37f   : > { %v14707_v50 = vpop.f32.mrb[39].mxu1 }
 0x384   : > { %v14709_v58 = vpop.f32.mrb[40].mxu1 }
 0x385   : > { %v14711_v42 = vpop.f32.mrb[41].mxu1 }
 0x386   : > { %v14713_v55 = vpop.f32.mrb[42].mxu1 }
 0x387   : > { %v14715_v52 = vpop.f32.mrb[43].mxu1 }
 0x38c   : > { %v14717_v9 = vpop.f32.mrb[44].mxu1 }
 0x38d   : > { %v14719_v7 = vpop.f32.mrb[45].mxu1 }
 0x38e   : > { %v14721_v56 = vpop.f32.mrb[46].mxu1 }
 0x38f   : > { %v14723_v8 = vpop.f32.mrb[47].mxu1 }
 0x396   : > { %v11237_v37 = vpop.f32.mrb[0].mxu0 }
 0x397   : > { %v11339_v26 = vadd.f32 %v11237_v37, %v14512_v61  ;;  %v8082_v53 = vpop.f32.mrb[1].mxu0 }
 0x398   : > { %v11340_v16 = vadd.f32 %v8082_v53, %v14515_v21  ;;  %v11238_v11 = vpop.f32.mrb[2].mxu0 }
 0x399   : > { %v8570_v2 = vadd.f32 %v11339_v26, %v14728_v31  ;;  %v11341_v33 = vadd.f32 %v11238_v11, %v14518_v0  ;;  %v8085_v10 = vpop.f32.mrb[3].mxu0 }
 0x39a   : > { %v8568_v14 = vadd.f32 %v11340_v16, %v14728_v31  ;;  %v11342_v40 = vadd.f32 %v8085_v10, %v14524_v3 }
 0x39b   : > { %v8666_v46 = vmax.f32 %v8570_v2, -0.19839156  ;;  %v8571_v39 = vadd.f32 %v11341_v33, %v14728_v31 }
 0x39c   : > { %v8664_v60 = vmax.f32 %v8568_v14, -0.19839156  ;;  %v8569_v61 = vadd.f32 %v11342_v40, %v14728_v31 }
 0x39d   : > { %v8762_v38 = vmin.f32 %v8666_v46, 7.6131787  ;;  %v8667_v28 = vmax.f32 %v8571_v39, -0.19839156 }
 0x39e   : > { %v8760_v21 = vmin.f32 %v8664_v60, 7.6131787  ;;  %v8665_v37 = vmax.f32 %v8569_v61, -0.19839156  ;;  %v11241_v26 = vpop.f32.mrb[4].mxu0 }
 0x39f   : > { %v8858_v0 = vmax.f32 %v8762_v38, 0.0  ;;  %v8763_v53 = vmin.f32 %v8667_v28, 7.6131787  ;;  %v11343_v16 = vadd.f32 %v11241_v26, %v14534_v5  ;;  %v8098_v11 = vpop.f32.mrb[5].mxu0 }
 0x3a0   : > { %v8856_v3 = vmax.f32 %v8760_v21, 0.0  ;;  %v8761_v10 = vmin.f32 %v8665_v37, 7.6131787  ;;  %v11344_v2 = vadd.f32 %v8098_v11, %v14537_v6  ;;  %v11242_v33 = vpop.f32.mrb[6].mxu0 }
 0x3a1   : > { %12332 = vtanh.f32 %v8858_v0  ;;  %v8859_v14 = vmax.f32 %v8763_v53, 0.0  ;;  %v8574_v40 = vadd.f32 %v11343_v16, %v14728_v31  ;;  %v11345_v46 = vadd.f32 %v11242_v33, %v14540_v4  ;;  %v8101_v39 = vpop.f32.mrb[7].mxu0 }
 0x3a2   : > { %12334 = vtanh.f32 %v8856_v3  ;;  %v8857_v60 = vmax.f32 %v8761_v10, 0.0  ;;  %v8572_v61 = vadd.f32 %v11344_v2, %v14728_v31  ;;  %v11346_v38 = vadd.f32 %v8101_v39, %v14546_v43 }
 0x3a3   : > { %12336 = vtanh.f32 %v8859_v14  ;;  %v8670_v5 = vmax.f32 %v8574_v40, -0.19839156  ;;  %v8575_v28 = vadd.f32 %v11345_v46, %v14728_v31 }
 0x3a4   : > { %12338 = vtanh.f32 %v8857_v60  ;;  %v8668_v6 = vmax.f32 %v8572_v61, -0.19839156  ;;  %v8573_v21 = vadd.f32 %v11346_v38, %v14728_v31 }
 0x3a5   : > { %v8766_v37 = vmin.f32 %v8670_v5, 7.6131787  ;;  %v8671_v26 = vmax.f32 %v8575_v28, -0.19839156 }
 0x3a6   : > { %v8764_v4 = vmin.f32 %v8668_v6, 7.6131787  ;;  %v8669_v0 = vmax.f32 %v8573_v21, -0.19839156  ;;  %v11245_v53 = vpop.f32.mrb[8].mxu0 }
 0x3a7   : > { %v8862_v16 = vmax.f32 %v8766_v37, 0.0  ;;  %v8767_v11 = vmin.f32 %v8671_v26, 7.6131787  ;;  %v11347_v3 = vadd.f32 %v11245_v53, %v14556_v24  ;;  %v8114_v43 = vpop.f32.mrb[9].mxu0 }
 0x3a8   : > { %v8860_v10 = vmax.f32 %v8764_v4, 0.0  ;;  %v8765_v2 = vmin.f32 %v8669_v0, 7.6131787  ;;  %v11348_v33 = vadd.f32 %v8114_v43, %v14559_v35  ;;  %v11246_v14 = vpop.f32.mrb[10].mxu0 }
 0x3a9   : > { %12340 = vtanh.f32 %v8862_v16  ;;  %v8863_v40 = vmax.f32 %v8767_v11, 0.0  ;;  %v8578_v46 = vadd.f32 %v11347_v3, %v14728_v31  ;;  %v11349_v39 = vadd.f32 %v11246_v14, %v14562_v12  ;;  %v8117_v24 = vpop.f32.mrb[11].mxu0 }
 0x3aa   : > { %12342 = vtanh.f32 %v8860_v10  ;;  %v8861_v60 = vmax.f32 %v8765_v2, 0.0  ;;  %v8576_v61 = vadd.f32 %v11348_v33, %v14728_v31  ;;  %v11350_v35 = vadd.f32 %v8117_v24, %v14568_v47 }
 0x3ab   : > { %v12333_v38 = vpop.eup %12332  ;;  %12344 = vtanh.f32 %v8863_v40  ;;  %v8674_v5 = vmax.f32 %v8578_v46, -0.19839156  ;;  %v8579_v28 = vadd.f32 %v11349_v39, %v14728_v31 }
 0x3ac   : > { %v12335_v6 = vpop.eup %12334  ;;  %9051 = vst.msk [vmem:[%s14753_s4 + $0x10] sm:$0xff] %vm9048_vm3, %v12333_v38  ;;  %12346 = vtanh.f32 %v8861_v60  ;;  %v8672_v12 = vmax.f32 %v8576_v61, -0.19839156  ;;  %v8577_v21 = vadd.f32 %v11350_v35, %v14728_v31 }
 0x3ad   : > { %v12337_v37 = vpop.eup %12336  ;;  %9049 = vst.msk [vmem:[%s14753_s4] sm:$0xff] %vm9048_vm3, %v12335_v6  ;;  %v8770_v26 = vmin.f32 %v8674_v5, 7.6131787  ;;  %v8675_v4 = vmax.f32 %v8579_v28, -0.19839156 }
 0x3ae   : > { %v12339_v0 = vpop.eup %12338  ;;  %9052 = vst.msk [vmem:[%s14753_s4 + $0x18] sm:$0xff] %vm9048_vm3, %v12337_v37  ;;  %v8768_v47 = vmin.f32 %v8672_v12, 7.6131787  ;;  %v8673_v53 = vmax.f32 %v8577_v21, -0.19839156 }
 0x3af   : > { %v11249_v16 = vpop.f32.mrb[12].mxu0  ;;  %9050 = vst.msk [vmem:[%s14753_s4 + $0x8] sm:$0xff] %vm9048_vm3, %v12339_v0  ;;  %v8866_v11 = vmax.f32 %v8770_v26, 0.0  ;;  %v8771_v3 = vmin.f32 %v8675_v4, 7.6131787 }
 0x3b0   : > { %v11351_v43 = vadd.f32 %v11249_v16, %v14578_v1  ;;  %v8130_v10 = vpop.f32.mrb[13].mxu0  ;;  %v8864_v2 = vmax.f32 %v8768_v47, 0.0  ;;  %v8769_v33 = vmin.f32 %v8673_v53, 7.6131787 }
 0x3b1   : > { %v11352_v14 = vadd.f32 %v8130_v10, %v14581_v41  ;;  %v11250_v40 = vpop.f32.mrb[14].mxu0  ;;  %12348 = vtanh.f32 %v8866_v11  ;;  %v8867_v46 = vmax.f32 %v8771_v3, 0.0 }
 0x3b2   : > { %v8582_v39 = vadd.f32 %v11351_v43, %v14728_v31  ;;  %v11353_v24 = vadd.f32 %v11250_v40, %v14584_v36  ;;  %v8133_v60 = vpop.f32.mrb[15].mxu0  ;;  %12350 = vtanh.f32 %v8864_v2  ;;  %v8865_v61 = vmax.f32 %v8769_v33, 0.0 }
 0x3b3   : > { %v8580_v35 = vadd.f32 %v11352_v14, %v14728_v31  ;;  %v11354_v1 = vadd.f32 %v8133_v60, %v14590_v44  ;;  %v12341_v38 = vpop.eup %12340  ;;  %12352 = vtanh.f32 %v8867_v46 }
 0x3b4   : > { %v8678_v41 = vmax.f32 %v8582_v39, -0.19839156  ;;  %v8583_v5 = vadd.f32 %v11353_v24, %v14728_v31  ;;  %v12343_v28 = vpop.eup %12342  ;;  %9055 = vst.msk [vmem:[%s14753_s4 + $0x30] sm:$0xff] %vm9048_vm3, %v12341_v38  ;;  %12354 = vtanh.f32 %v8865_v61 }
 0x3b5   : > { %v8676_v36 = vmax.f32 %v8580_v35, -0.19839156  ;;  %v8581_v6 = vadd.f32 %v11354_v1, %v14728_v31  ;;  %v12345_v12 = vpop.eup %12344  ;;  %9053 = vst.msk [vmem:[%s14753_s4 + $0x20] sm:$0xff] %vm9048_vm3, %v12343_v28 }
 0x3b6   : > { %v8774_v21 = vmin.f32 %v8678_v41, 7.6131787  ;;  %v8679_v37 = vmax.f32 %v8583_v5, -0.19839156  ;;  %v12347_v26 = vpop.eup %12346  ;;  %9056 = vst.msk [vmem:[%s14753_s4 + $0x38] sm:$0xff] %vm9048_vm3, %v12345_v12 }
 0x3b7   : > { %v8772_v44 = vmin.f32 %v8676_v36, 7.6131787  ;;  %v8677_v4 = vmax.f32 %v8581_v6, -0.19839156  ;;  %v11253_v0 = vpop.f32.mrb[16].mxu0 }
 0x3b8   : > { %9054 = vst.msk [vmem:[%s14753_s4 + $0x28] sm:$0xff] %vm9048_vm3, %v12347_v26  ;;  %v8870_v47 = vmax.f32 %v8774_v21, 0.0  ;;  %v8775_v53 = vmin.f32 %v8679_v37, 7.6131787  ;;  %v11355_v16 = vadd.f32 %v11253_v0, %v14600_v59  ;;  %v8146_v11 = vpop.f32.mrb[17].mxu0 }
 0x3b9   : > { %v8868_v3 = vmax.f32 %v8772_v44, 0.0  ;;  %v8773_v43 = vmin.f32 %v8677_v4, 7.6131787  ;;  %v11356_v10 = vadd.f32 %v8146_v11, %v14603_v25  ;;  %v11254_v2 = vpop.f32.mrb[18].mxu0 }
 0x3ba   : > { %12356 = vtanh.f32 %v8870_v47  ;;  %v8871_v33 = vmax.f32 %v8775_v53, 0.0  ;;  %v8586_v14 = vadd.f32 %v11355_v16, %v14728_v31  ;;  %v11357_v40 = vadd.f32 %v11254_v2, %v14606_v30  ;;  %v8149_v46 = vpop.f32.mrb[19].mxu0 }
 0x3bb   : > { %12358 = vtanh.f32 %v8868_v3  ;;  %v8869_v39 = vmax.f32 %v8773_v43, 0.0  ;;  %v8584_v24 = vadd.f32 %v11356_v10, %v14728_v31  ;;  %v11358_v59 = vadd.f32 %v8149_v46, %v14612_v18  ;;  %v12349_v60 = vpop.eup %12348 }
 0x3bc   : > { %12360 = vtanh.f32 %v8871_v33  ;;  %v8682_v25 = vmax.f32 %v8586_v14, -0.19839156  ;;  %v8587_v61 = vadd.f32 %v11357_v40, %v14728_v31  ;;  %v12351_v35 = vpop.eup %12350  ;;  %9059 = vst.msk [vmem:[%s14753_s4 + $0x50] sm:$0xff] %vm9048_vm3, %v12349_v60 }
 0x3bd   : > { %12362 = vtanh.f32 %v8869_v39  ;;  %v8680_v30 = vmax.f32 %v8584_v24, -0.19839156  ;;  %v8585_v1 = vadd.f32 %v11358_v59, %v14728_v31  ;;  %v12353_v38 = vpop.eup %12352  ;;  %9057 = vst.msk [vmem:[%s14753_s4 + $0x40] sm:$0xff] %vm9048_vm3, %v12351_v35 }
 0x3be   : > { %v8778_v41 = vmin.f32 %v8682_v25, 7.6131787  ;;  %v8683_v5 = vmax.f32 %v8587_v61, -0.19839156  ;;  %v12355_v28 = vpop.eup %12354  ;;  %9060 = vst.msk [vmem:[%s14753_s4 + $0x58] sm:$0xff] %vm9048_vm3, %v12353_v38 }
 0x3bf   : > { %v8776_v18 = vmin.f32 %v8680_v30, 7.6131787  ;;  %v8681_v36 = vmax.f32 %v8585_v1, -0.19839156  ;;  %v11257_v6 = vpop.f32.mrb[20].mxu0 }
 0x3c0   : > { %9058 = vst.msk [vmem:[%s14753_s4 + $0x48] sm:$0xff] %vm9048_vm3, %v12355_v28  ;;  %v8874_v12 = vmax.f32 %v8778_v41, 0.0  ;;  %v8779_v21 = vmin.f32 %v8683_v5, 7.6131787  ;;  %v11359_v37 = vadd.f32 %v11257_v6, %v14622_v57  ;;  %v8162_v26 = vpop.f32.mrb[21].mxu0 }
 0x3c1   : > { %v8872_v44 = vmax.f32 %v8776_v18, 0.0  ;;  %v8777_v4 = vmin.f32 %v8681_v36, 7.6131787  ;;  %v11360_v0 = vadd.f32 %v8162_v26, %v14625_v17  ;;  %v11258_v47 = vpop.f32.mrb[22].mxu0 }
 0x3c2   : > { %12364 = vtanh.f32 %v8874_v12  ;;  %v8875_v53 = vmax.f32 %v8779_v21, 0.0  ;;  %v8590_v16 = vadd.f32 %v11359_v37, %v14728_v31  ;;  %v11361_v11 = vadd.f32 %v11258_v47, %v14628_v22  ;;  %v8165_v3 = vpop.f32.mrb[23].mxu0 }
 0x3c3   : > { %12366 = vtanh.f32 %v8872_v44  ;;  %v8873_v43 = vmax.f32 %v8777_v4, 0.0  ;;  %v8588_v10 = vadd.f32 %v11360_v0, %v14728_v31  ;;  %v11362_v57 = vadd.f32 %v8165_v3, %v14634_v62 }
 0x3c4   : > { %v12357_v2 = vpop.eup %12356  ;;  %12368 = vtanh.f32 %v8875_v53  ;;  %v8686_v17 = vmax.f32 %v8590_v16, -0.19839156  ;;  %v8591_v33 = vadd.f32 %v11361_v11, %v14728_v31 }
 0x3c5   : > { %v12359_v14 = vpop.eup %12358  ;;  %9063 = vst.msk [vmem:[%s14753_s4 + $0x70] sm:$0xff] %vm9048_vm3, %v12357_v2  ;;  %12370 = vtanh.f32 %v8873_v43  ;;  %v8684_v22 = vmax.f32 %v8588_v10, -0.19839156  ;;  %v8589_v40 = vadd.f32 %v11362_v57, %v14728_v31 }
 0x3c6   : > { %v12361_v46 = vpop.eup %12360  ;;  %9061 = vst.msk [vmem:[%s14753_s4 + $0x60] sm:$0xff] %vm9048_vm3, %v12359_v14  ;;  %v8782_v39 = vmin.f32 %v8686_v17, 7.6131787  ;;  %v8687_v24 = vmax.f32 %v8591_v33, -0.19839156 }
 0x3c7   : > { %v12363_v59 = vpop.eup %12362  ;;  %9064 = vst.msk [vmem:[%s14753_s4 + $0x78] sm:$0xff] %vm9048_vm3, %v12361_v46  ;;  %v8780_v62 = vmin.f32 %v8684_v22, 7.6131787  ;;  %v8685_v60 = vmax.f32 %v8589_v40, -0.19839156 }
 0x3c8   : > { %v11261_v25 = vpop.f32.mrb[24].mxu0  ;;  %9062 = vst.msk [vmem:[%s14753_s4 + $0x68] sm:$0xff] %vm9048_vm3, %v12363_v59  ;;  %v8878_v61 = vmax.f32 %v8782_v39, 0.0  ;;  %v8783_v35 = vmin.f32 %v8687_v24, 7.6131787 }
 0x3c9   : > { %v11363_v30 = vadd.f32 %v11261_v25, %v14644_v23  ;;  %v8178_v1 = vpop.f32.mrb[25].mxu0  ;;  %v8876_v38 = vmax.f32 %v8780_v62, 0.0  ;;  %v8781_v41 = vmin.f32 %v8685_v60, 7.6131787 }
 0x3ca   : > { %v11364_v5 = vadd.f32 %v8178_v1, %v14647_v49  ;;  %v11262_v28 = vpop.f32.mrb[26].mxu0  ;;  %12372 = vtanh.f32 %v8878_v61  ;;  %v8879_v18 = vmax.f32 %v8783_v35, 0.0 }
 0x3cb   : > { %v8594_v36 = vadd.f32 %v11363_v30, %v14728_v31  ;;  %v11365_v6 = vadd.f32 %v11262_v28, %v14650_v15  ;;  %v8181_v12 = vpop.f32.mrb[27].mxu0  ;;  %12374 = vtanh.f32 %v8876_v38  ;;  %v8877_v21 = vmax.f32 %v8781_v41, 0.0 }
 0x3cc   : > { %v8592_v37 = vadd.f32 %v11364_v5, %v14728_v31  ;;  %v11366_v23 = vadd.f32 %v8181_v12, %v14656_v51  ;;  %v12365_v26 = vpop.eup %12364  ;;  %12376 = vtanh.f32 %v8879_v18 }
 0x3cd   : > { %v8690_v49 = vmax.f32 %v8594_v36, -0.19839156  ;;  %v8595_v44 = vadd.f32 %v11365_v6, %v14728_v31  ;;  %v12367_v4 = vpop.eup %12366  ;;  %9067 = vst.msk [vmem:[%s14753_s4 + $0x90] sm:$0xff] %vm9048_vm3, %v12365_v26  ;;  %12378 = vtanh.f32 %v8877_v21 }
 0x3ce   : > { %v8688_v15 = vmax.f32 %v8592_v37, -0.19839156  ;;  %v8593_v0 = vadd.f32 %v11366_v23, %v14728_v31  ;;  %v12369_v47 = vpop.eup %12368  ;;  %9065 = vst.msk [vmem:[%s14753_s4 + $0x80] sm:$0xff] %vm9048_vm3, %v12367_v4  ;;  %v11265_v43 = vpop.f32.mrb[28].mxu0 }
 0x3cf   : > { %v8786_v53 = vmin.f32 %v8690_v49, 7.6131787  ;;  %v8691_v16 = vmax.f32 %v8595_v44, -0.19839156  ;;  %v12371_v11 = vpop.eup %12370  ;;  %9068 = vst.msk [vmem:[%s14753_s4 + $0x98] sm:$0xff] %vm9048_vm3, %v12369_v47  ;;  %v11367_v2 = vadd.f32 %v11265_v43, %v14666_v54 }
 0x3d0   : > { %v8784_v51 = vmin.f32 %v8688_v15, 7.6131787  ;;  %v8689_v3 = vmax.f32 %v8593_v0, -0.19839156  ;;  %9066 = vst.msk [vmem:[%s14753_s4 + $0x88] sm:$0xff] %vm9048_vm3, %v12371_v11 }
 0x3d1   : > { %v8882_v10 = vmax.f32 %v8786_v53, 0.0  ;;  %v8787_v57 = vmin.f32 %v8691_v16, 7.6131787  ;;  %v8194_v17 = vpop.f32.mrb[29].mxu0  ;;  %v8598_v39 = vadd.f32 %v11367_v2, %v14728_v31 }
 0x3d2   : > { %v8880_v33 = vmax.f32 %v8784_v51, 0.0  ;;  %v8785_v14 = vmin.f32 %v8689_v3, 7.6131787  ;;  %v11368_v22 = vadd.f32 %v8194_v17, %v14669_v20  ;;  %v11266_v40 = vpop.f32.mrb[30].mxu0 }
 0x3d3   : > { %12380 = vtanh.f32 %v8882_v10  ;;  %v8883_v46 = vmax.f32 %v8787_v57, 0.0  ;;  %v11369_v24 = vadd.f32 %v11266_v40, %v14671_v34  ;;  %v8197_v59 = vpop.f32.mrb[31].mxu0  ;;  %v8694_v20 = vmax.f32 %v8598_v39, -0.19839156 }
 0x3d4   : > { %12382 = vtanh.f32 %v8880_v33  ;;  %v8881_v62 = vmax.f32 %v8785_v14, 0.0  ;;  %v8596_v60 = vadd.f32 %v11368_v22, %v14728_v31  ;;  %v11370_v54 = vadd.f32 %v8197_v59, %v14678_v27  ;;  %v12373_v25 = vpop.eup %12372 }
 0x3d5   : > { %12384 = vtanh.f32 %v8883_v46  ;;  %v8599_v61 = vadd.f32 %v11369_v24, %v14728_v31  ;;  %v12375_v35 = vpop.eup %12374  ;;  %9071 = vst.msk [vmem:[%s14753_s4 + $0xb0] sm:$0xff] %vm9048_vm3, %v12373_v25  ;;  %v8790_v38 = vmin.f32 %v8694_v20, 7.6131787 }
 0x3d6   : > { %12386 = vtanh.f32 %v8881_v62  ;;  %v8692_v34 = vmax.f32 %v8596_v60, -0.19839156  ;;  %v8597_v30 = vadd.f32 %v11370_v54, %v14728_v31  ;;  %v12377_v1 = vpop.eup %12376  ;;  %9069 = vst.msk [vmem:[%s14753_s4 + $0xa0] sm:$0xff] %vm9048_vm3, %v12375_v35  ;;  %v11269_v18 = vpop.f32.mrb[32].mxu0 }
 0x3d7   : > { %v8695_v41 = vmax.f32 %v8599_v61, -0.19839156  ;;  %v12379_v5 = vpop.eup %12378  ;;  %9072 = vst.msk [vmem:[%s14753_s4 + $0xb8] sm:$0xff] %vm9048_vm3, %v12377_v1  ;;  %v8886_v36 = vmax.f32 %v8790_v38, 0.0  ;;  %v11371_v12 = vadd.f32 %v11269_v18, %v14686_v48  ;;  %v8210_v21 = vpop.f32.mrb[33].mxu0 }
 0x3d8   : > { %v8788_v27 = vmin.f32 %v8692_v34, 7.6131787  ;;  %v8693_v28 = vmax.f32 %v8597_v30, -0.19839156  ;;  %9070 = vst.msk [vmem:[%s14753_s4 + $0xa8] sm:$0xff] %vm9048_vm3, %v12379_v5  ;;  %v11372_v26 = vadd.f32 %v8210_v21, %v14689_v19 }
 0x3d9   : > { %v8791_v6 = vmin.f32 %v8695_v41, 7.6131787  ;;  %v11270_v49 = vpop.f32.mrb[34].mxu0  ;;  %12388 = vtanh.f32 %v8886_v36  ;;  %v8602_v4 = vadd.f32 %v11371_v12, %v14728_v31 }
 0x3da   : > { %v8884_v37 = vmax.f32 %v8788_v27, 0.0  ;;  %v8789_v23 = vmin.f32 %v8693_v28, 7.6131787  ;;  %v11373_v15 = vadd.f32 %v11270_v49, %v14691_v63  ;;  %v8213_v0 = vpop.f32.mrb[35].mxu0  ;;  %v8600_v53 = vadd.f32 %v11372_v26, %v14728_v31 }
 0x3db   : > { %v8887_v44 = vmax.f32 %v8791_v6, 0.0  ;;  %v11374_v48 = vadd.f32 %v8213_v0, %v14696_v45  ;;  %v8698_v19 = vmax.f32 %v8602_v4, -0.19839156 }
 0x3dc   : > { %12390 = vtanh.f32 %v8884_v37  ;;  %v8885_v47 = vmax.f32 %v8789_v23, 0.0  ;;  %v8603_v11 = vadd.f32 %v11373_v15, %v14728_v31  ;;  %v8696_v63 = vmax.f32 %v8600_v53, -0.19839156 }
 0x3dd   : > { %v12381_v16 = vpop.eup %12380  ;;  %12392 = vtanh.f32 %v8887_v44  ;;  %v8601_v3 = vadd.f32 %v11374_v48, %v14728_v31  ;;  %v8794_v10 = vmin.f32 %v8698_v19, 7.6131787 }
 0x3de   : > { %v12383_v51 = vpop.eup %12382  ;;  %9075 = vst.msk [vmem:[%s14753_s4 + $0xd0] sm:$0xff] %vm9048_vm3, %v12381_v16  ;;  %12394 = vtanh.f32 %v8885_v47  ;;  %v8699_v57 = vmax.f32 %v8603_v11, -0.19839156  ;;  %v8792_v45 = vmin.f32 %v8696_v63, 7.6131787 }
 0x3df   : > { %v12385_v43 = vpop.eup %12384  ;;  %9073 = vst.msk [vmem:[%s14753_s4 + $0xc0] sm:$0xff] %vm9048_vm3, %v12383_v51  ;;  %v8697_v17 = vmax.f32 %v8601_v3, -0.19839156  ;;  %v11273_v33 = vpop.f32.mrb[36].mxu0  ;;  %v8890_v14 = vmax.f32 %v8794_v10, 0.0 }
 0x3e0   : > { %v12387_v2 = vpop.eup %12386  ;;  %9076 = vst.msk [vmem:[%s14753_s4 + $0xd8] sm:$0xff] %vm9048_vm3, %v12385_v43  ;;  %v8795_v22 = vmin.f32 %v8699_v57, 7.6131787  ;;  %v11375_v40 = vadd.f32 %v11273_v33, %v14700_v13  ;;  %v8226_v46 = vpop.f32.mrb[37].mxu0  ;;  %v8888_v39 = vmax.f32 %v8792_v45, 0.0 }
 0x3e1   : > { %9074 = vst.msk [vmem:[%s14753_s4 + $0xc8] sm:$0xff] %vm9048_vm3, %v12387_v2  ;;  %v8793_v24 = vmin.f32 %v8697_v17, 7.6131787  ;;  %v11376_v59 = vadd.f32 %v8226_v46, %v14703_v32  ;;  %v11274_v62 = vpop.f32.mrb[38].mxu0  ;;  %12396 = vtanh.f32 %v8890_v14 }
 0x3e2   : > { %v8891_v60 = vmax.f32 %v8795_v22, 0.0  ;;  %v8606_v54 = vadd.f32 %v11375_v40, %v14728_v31  ;;  %v11377_v25 = vadd.f32 %v11274_v62, %v14705_v29  ;;  %v8229_v20 = vpop.f32.mrb[39].mxu0  ;;  %12398 = vtanh.f32 %v8888_v39 }
 0x3e3   : > { %v8889_v61 = vmax.f32 %v8793_v24, 0.0  ;;  %v8604_v35 = vadd.f32 %v11376_v59, %v14728_v31  ;;  %v11378_v13 = vadd.f32 %v8229_v20, %v14707_v50  ;;  %v12389_v34 = vpop.eup %12388 }
 0x3e4   : > { %12400 = vtanh.f32 %v8891_v60  ;;  %v8702_v32 = vmax.f32 %v8606_v54, -0.19839156  ;;  %v8607_v30 = vadd.f32 %v11377_v25, %v14728_v31  ;;  %9079 = vst.msk [vmem:[%s14753_s4 + $0xf0] sm:$0xff] %vm9048_vm3, %v12389_v34 }
 0x3e5   : > { %12402 = vtanh.f32 %v8889_v61  ;;  %v8700_v29 = vmax.f32 %v8604_v35, -0.19839156  ;;  %v8605_v38 = vadd.f32 %v11378_v13, %v14728_v31 }
 0x3e6   : > { %v12391_v1 = vpop.eup %12390  ;;  %v8798_v5 = vmin.f32 %v8702_v32, 7.6131787  ;;  %v8703_v27 = vmax.f32 %v8607_v30, -0.19839156  ;;  %v11277_v36 = vpop.f32.mrb[40].mxu0 }
 0x3e7   : > { %v12393_v41 = vpop.eup %12392  ;;  %9077 = vst.msk [vmem:[%s14753_s4 + $0xe0] sm:$0xff] %vm9048_vm3, %v12391_v1  ;;  %v8796_v50 = vmin.f32 %v8700_v29, 7.6131787  ;;  %v8701_v18 = vmax.f32 %v8605_v38, -0.19839156  ;;  %v11379_v21 = vadd.f32 %v11277_v36, %v14709_v58 }
 0x3e8   : > { %v12395_v28 = vpop.eup %12394  ;;  %9080 = vst.msk [vmem:[%s14753_s4 + $0xf8] sm:$0xff] %vm9048_vm3, %v12393_v41  ;;  %v8894_v6 = vmax.f32 %v8798_v5, 0.0  ;;  %v8799_v12 = vmin.f32 %v8703_v27, 7.6131787  ;;  %v8242_v37 = vpop.f32.mrb[41].mxu0 }
 0x3e9   : > { %9078 = vst.msk [vmem:[%s14753_s4 + $0xe8] sm:$0xff] %vm9048_vm3, %v12395_v28  ;;  %v8892_v23 = vmax.f32 %v8796_v50, 0.0  ;;  %v8797_v26 = vmin.f32 %v8701_v18, 7.6131787  ;;  %v11380_v49 = vadd.f32 %v8242_v37, %v14711_v42  ;;  %v11278_v44 = vpop.f32.mrb[42].mxu0  ;;  %v8610_v15 = vadd.f32 %v11379_v21, %v14728_v31 }
 0x3ea   : > { %12404 = vtanh.f32 %v8894_v6  ;;  %v8895_v4 = vmax.f32 %v8799_v12, 0.0  ;;  %v11381_v0 = vadd.f32 %v11278_v44, %v14713_v55  ;;  %v8245_v47 = vpop.f32.mrb[43].mxu0 }
 0x3eb   : > { %12406 = vtanh.f32 %v8892_v23  ;;  %v8893_v53 = vmax.f32 %v8797_v26, 0.0  ;;  %v8608_v48 = vadd.f32 %v11380_v49, %v14728_v31  ;;  %v11382_v58 = vadd.f32 %v8245_v47, %v14715_v52  ;;  %v12397_v16 = vpop.eup %12396 }
 0x3ec   : > { %12408 = vtanh.f32 %v8895_v4  ;;  %v8706_v42 = vmax.f32 %v8610_v15, -0.19839156  ;;  %v8611_v19 = vadd.f32 %v11381_v0, %v14728_v31  ;;  %v12399_v11 = vpop.eup %12398  ;;  %9083 = vst.msk [vmem:[%s14753_s4 + $0x110] sm:$0xff] %vm9048_vm3, %v12397_v16 }
 0x3ed   : > { %12410 = vtanh.f32 %v8893_v53  ;;  %v8704_v55 = vmax.f32 %v8608_v48, -0.19839156  ;;  %v8609_v51 = vadd.f32 %v11382_v58, %v14728_v31  ;;  %9081 = vst.msk [vmem:[%s14753_s4 + $0x100] sm:$0xff] %vm9048_vm3, %v12399_v11 }
 0x3ee   : > { %v12401_v63 = vpop.eup %12400  ;;  %v8802_v3 = vmin.f32 %v8706_v42, 7.6131787  ;;  %v8707_v43 = vmax.f32 %v8611_v19, -0.19839156  ;;  %v11281_v2 = vpop.f32.mrb[44].mxu0 }
 0x3ef   : > { %v12403_v10 = vpop.eup %12402  ;;  %9084 = vst.msk [vmem:[%s14753_s4 + $0x118] sm:$0xff] %vm9048_vm3, %v12401_v63  ;;  %v8800_v52 = vmin.f32 %v8704_v55, 7.6131787  ;;  %v8705_v57 = vmax.f32 %v8609_v51, -0.19839156  ;;  %v11383_v33 = vadd.f32 %v11281_v2, %v14717_v9 }
 0x3f0   : > { %9082 = vst.msk [vmem:[%s14753_s4 + $0x108] sm:$0xff] %vm9048_vm3, %v12403_v10  ;;  %v8898_v45 = vmax.f32 %v8802_v3, 0.0  ;;  %v8803_v17 = vmin.f32 %v8707_v43, 7.6131787  ;;  %v8258_v14 = vpop.f32.mrb[45].mxu0 }
 0x3f1   : > { %v8896_v22 = vmax.f32 %v8800_v52, 0.0  ;;  %v8801_v40 = vmin.f32 %v8705_v57, 7.6131787  ;;  %v11384_v46 = vadd.f32 %v8258_v14, %v14719_v7  ;;  %v11282_v39 = vpop.f32.mrb[46].mxu0  ;;  %v8614_v59 = vadd.f32 %v11383_v33, %v14728_v31 }
 0x3f2   : > { %12412 = vtanh.f32 %v8898_v45  ;;  %v8899_v24 = vmax.f32 %v8803_v17, 0.0  ;;  %v11385_v62 = vadd.f32 %v11282_v39, %v14721_v56  ;;  %v8261_v60 = vpop.f32.mrb[47].mxu0 }
 0x3f3   : > { %12414 = vtanh.f32 %v8896_v22  ;;  %v8897_v54 = vmax.f32 %v8801_v40, 0.0  ;;  %v8612_v25 = vadd.f32 %v11384_v46, %v14728_v31  ;;  %v11386_v9 = vadd.f32 %v8261_v60, %v14723_v8 }
 0x3f4   : > { %v10869_v20 = vpop.f32.mrb[48].mxu1  ;;  %v12405_v61 = vpop.eup %12404  ;;  %12416 = vtanh.f32 %v8899_v24  ;;  %v8710_v7 = vmax.f32 %v8614_v59, -0.19839156  ;;  %v8615_v35 = vadd.f32 %v11385_v62, %v14728_v31 }
 0x3f5   : > { %v4635_v13 = vpop.f32.mrb[49].mxu1  ;;  %v12407_v34 = vpop.eup %12406  ;;  %9087 = vst.msk [vmem:[%s14753_s4 + $0x130] sm:$0xff] %vm9048_vm3, %v12405_v61  ;;  %12418 = vtanh.f32 %v8897_v54  ;;  %v8708_v56 = vmax.f32 %v8612_v25, -0.19839156  ;;  %v8613_v32 = vadd.f32 %v11386_v9, %v14728_v31 }
 0x3f6   : > { %v10870_v30 = vpop.f32.mrb[50].mxu1  ;;  %v12409_v1 = vpop.eup %12408  ;;  %9085 = vst.msk [vmem:[%s14753_s4 + $0x120] sm:$0xff] %vm9048_vm3, %v12407_v34  ;;  %v8806_v8 = vmin.f32 %v8710_v7, 7.6131787 }
 0x3f7   : > { %v8711_v29 = vmax.f32 %v8615_v35, -0.19839156  ;;  %v4638_v38 = vpop.f32.mrb[51].mxu1  ;;  %v12411_v41 = vpop.eup %12410  ;;  %9088 = vst.msk [vmem:[%s14753_s4 + $0x138] sm:$0xff] %vm9048_vm3, %v12409_v1  ;;  %v8709_v27 = vmax.f32 %v8613_v32, -0.19839156 }
 0x3f8   : > { %v8804_v5 = vmin.f32 %v8708_v56, 7.6131787  ;;  %v11285_v28 = vpop.f32.mrb[48].mxu0  ;;  %9086 = vst.msk [vmem:[%s14753_s4 + $0x128] sm:$0xff] %vm9048_vm3, %v12411_v41  ;;  %v8902_v50 = vmax.f32 %v8806_v8, 0.0 }
 0x3f9   : > { %v8807_v18 = vmin.f32 %v8711_v29, 7.6131787  ;;  %v11387_v36 = vadd.f32 %v11285_v28, %v10869_v20  ;;  %v8274_v6 = vpop.f32.mrb[49].mxu0  ;;  %v8805_v21 = vmin.f32 %v8709_v27, 7.6131787 }
 0x3fa   : > { %v8900_v12 = vmax.f32 %v8804_v5, 0.0  ;;  %v11388_v37 = vadd.f32 %v8274_v6, %v4635_v13  ;;  %v11286_v23 = vpop.f32.mrb[50].mxu0  ;;  %12420 = vtanh.f32 %v8902_v50 }
 0x3fb   : > { %v8903_v26 = vmax.f32 %v8807_v18, 0.0  ;;  %v8618_v49 = vadd.f32 %v11387_v36, %v14728_v31  ;;  %v11389_v44 = vadd.f32 %v11286_v23, %v10870_v30  ;;  %v8277_v4 = vpop.f32.mrb[51].mxu0  ;;  %v8901_v15 = vmax.f32 %v8805_v21, 0.0 }
 0x3fc   : > { %12422 = vtanh.f32 %v8900_v12  ;;  %v8616_v0 = vadd.f32 %v11388_v37, %v14728_v31  ;;  %v11390_v47 = vadd.f32 %v8277_v4, %v4638_v38  ;;  %v10873_v53 = vpop.f32.mrb[52].mxu1  ;;  %v12413_v48 = vpop.eup %12412 }
 0x3fd   : > { %12424 = vtanh.f32 %v8903_v26  ;;  %v8714_v58 = vmax.f32 %v8618_v49, -0.19839156  ;;  %v8619_v16 = vadd.f32 %v11389_v44, %v14728_v31  ;;  %v4651_v42 = vpop.f32.mrb[53].mxu1  ;;  %v12415_v19 = vpop.eup %12414  ;;  %9091 = vst.msk [vmem:[%s14753_s4 + $0x150] sm:$0xff] %vm9048_vm3, %v12413_v48 }
 0x3fe   : > { %12426 = vtanh.f32 %v8901_v15  ;;  %v8712_v11 = vmax.f32 %v8616_v0, -0.19839156  ;;  %v8617_v55 = vadd.f32 %v11390_v47, %v14728_v31  ;;  %v10874_v51 = vpop.f32.mrb[54].mxu1  ;;  %v12417_v63 = vpop.eup %12416  ;;  %9089 = vst.msk [vmem:[%s14753_s4 + $0x140] sm:$0xff] %vm9048_vm3, %v12415_v19  ;;  %v14941_v47 = vld [vmem:[%s15095_s2] ss:$0 sm:$0xff] }
 0x3ff   : > { %v8810_v3 = vmin.f32 %v8714_v58, 7.6131787  ;;  %v8715_v43 = vmax.f32 %v8619_v16, -0.19839156  ;;  %v4654_v10 = vpop.f32.mrb[55].mxu1  ;;  %v12419_v52 = vpop.eup %12418 }
 0x400   : > { %9092 = vst.msk [vmem:[%s14753_s4 + $0x158] sm:$0xff] %vm9048_vm3, %v12417_v63  ;;  %v8808_v57 = vmin.f32 %v8712_v11, 7.6131787  ;;  %v8713_v2 = vmax.f32 %v8617_v55, -0.19839156  ;;  %9090 = vst.msk [vmem:[%s14753_s4 + $0x148] sm:$0xff] %vm9048_vm3, %v12419_v52 }
 0x401   : > { %v11289_v45 = vpop.f32.mrb[52].mxu0  ;;  %v8906_v17 = vmax.f32 %v8810_v3, 0.0  ;;  %v8811_v33 = vmin.f32 %v8715_v43, 7.6131787 }
 0x402   : > { %v11391_v14 = vadd.f32 %v11289_v45, %v10873_v53  ;;  %v8290_v22 = vpop.f32.mrb[53].mxu0  ;;  %v8904_v40 = vmax.f32 %v8808_v57, 0.0  ;;  %v8809_v46 = vmin.f32 %v8713_v2, 7.6131787 }
 0x403   : > { %v11392_v39 = vadd.f32 %v8290_v22, %v4651_v42  ;;  %v11290_v24 = vpop.f32.mrb[54].mxu0  ;;  %12428 = vtanh.f32 %v8906_v17  ;;  %v8907_v59 = vmax.f32 %v8811_v33, 0.0 }
 0x404   : > { %v8622_v62 = vadd.f32 %v11391_v14, %v14728_v31  ;;  %v11393_v60 = vadd.f32 %v11290_v24, %v10874_v51  ;;  %v8293_v54 = vpop.f32.mrb[55].mxu0  ;;  %12430 = vtanh.f32 %v8904_v40  ;;  %v8905_v25 = vmax.f32 %v8809_v46, 0.0  ;;  %v10877_v61 = vpop.f32.mrb[56].mxu1 }
 0x405   : > { %v8620_v9 = vadd.f32 %v11392_v39, %v14728_v31  ;;  %v11394_v20 = vadd.f32 %v8293_v54, %v4654_v10  ;;  %v12421_v7 = vpop.eup %12420  ;;  %12432 = vtanh.f32 %v8907_v59  ;;  %v4667_v34 = vpop.f32.mrb[57].mxu1 }
 0x406   : > { %v8718_v35 = vmax.f32 %v8622_v62, -0.19839156  ;;  %v8623_v13 = vadd.f32 %v11393_v60, %v14728_v31  ;;  %v12423_v56 = vpop.eup %12422  ;;  %9095 = vst.msk [vmem:[%s14753_s4 + $0x170] sm:$0xff] %vm9048_vm3, %v12421_v7  ;;  %12434 = vtanh.f32 %v8905_v25  ;;  %v10878_v1 = vpop.f32.mrb[58].mxu1 }
 0x407   : > { %v8716_v32 = vmax.f32 %v8620_v9, -0.19839156  ;;  %v8621_v30 = vadd.f32 %v11394_v20, %v14728_v31  ;;  %v12425_v8 = vpop.eup %12424  ;;  %9093 = vst.msk [vmem:[%s14753_s4 + $0x160] sm:$0xff] %vm9048_vm3, %v12423_v56  ;;  %v4670_v41 = vpop.f32.mrb[59].mxu1 }
 0x408   : > { %v8814_v29 = vmin.f32 %v8718_v35, 7.6131787  ;;  %v8719_v38 = vmax.f32 %v8623_v13, -0.19839156  ;;  %v12427_v5 = vpop.eup %12426  ;;  %9096 = vst.msk [vmem:[%s14753_s4 + $0x178] sm:$0xff] %vm9048_vm3, %v12425_v8 }
 0x409   : > { %v8812_v27 = vmin.f32 %v8716_v32, 7.6131787  ;;  %v8717_v28 = vmax.f32 %v8621_v30, -0.19839156  ;;  %v11293_v50 = vpop.f32.mrb[56].mxu0 }
 0x40a   : > { %9094 = vst.msk [vmem:[%s14753_s4 + $0x168] sm:$0xff] %vm9048_vm3, %v12427_v5  ;;  %v8910_v18 = vmax.f32 %v8814_v29, 0.0  ;;  %v8815_v36 = vmin.f32 %v8719_v38, 7.6131787  ;;  %v11395_v6 = vadd.f32 %v11293_v50, %v10877_v61  ;;  %v8306_v12 = vpop.f32.mrb[57].mxu0 }
 0x40b   : > { %v8908_v21 = vmax.f32 %v8812_v27, 0.0  ;;  %v8813_v37 = vmin.f32 %v8717_v28, 7.6131787  ;;  %v11396_v23 = vadd.f32 %v8306_v12, %v4667_v34  ;;  %v11294_v26 = vpop.f32.mrb[58].mxu0 }
 0x40c   : > { %12436 = vtanh.f32 %v8910_v18  ;;  %v8911_v49 = vmax.f32 %v8815_v36, 0.0  ;;  %v8626_v44 = vadd.f32 %v11395_v6, %v14728_v31  ;;  %v11397_v4 = vadd.f32 %v11294_v26, %v10878_v1  ;;  %v8309_v15 = vpop.f32.mrb[59].mxu0  ;;  %v10881_v58 = vpop.f32.mrb[60].mxu1 }
 0x40d   : > { %12438 = vtanh.f32 %v8908_v21  ;;  %v8909_v0 = vmax.f32 %v8813_v37, 0.0  ;;  %v8624_v53 = vadd.f32 %v14941_v47, %v11396_v23  ;;  %v11398_v48 = vadd.f32 %v8309_v15, %v4670_v41  ;;  %v12429_v16 = vpop.eup %12428  ;;  %v4683_v19 = vpop.f32.mrb[61].mxu1 }
 0x40e   : > { %12440 = vtanh.f32 %v8911_v49  ;;  %v8722_v42 = vmax.f32 %v8626_v44, -0.19839156  ;;  %v8627_v31 = vadd.f32 %v14941_v47, %v11397_v4  ;;  %v12431_v11 = vpop.eup %12430  ;;  %9099 = vst.msk [vmem:[%s14753_s4 + $0x190] sm:$0xff] %vm9048_vm3, %v12429_v16  ;;  %v10882_v63 = vpop.f32.mrb[62].mxu1 }
 0x40f   : > { %12442 = vtanh.f32 %v8909_v0  ;;  %v8720_v55 = vmax.f32 %v8624_v53, -0.19839156  ;;  %v8625_v51 = vadd.f32 %v14941_v47, %v11398_v48  ;;  %v12433_v3 = vpop.eup %12432  ;;  %9097 = vst.msk [vmem:[%s14753_s4 + $0x180] sm:$0xff] %vm9048_vm3, %v12431_v11  ;;  %v4686_v52 = vpop.f32.mrb[63].mxu1 }
 0x410   : > { %v8818_v43 = vmin.f32 %v8722_v42, 7.6131787  ;;  %v8723_v10 = vmax.f32 %v8627_v31, -0.19839156  ;;  %v12435_v57 = vpop.eup %12434  ;;  %9100 = vst.msk [vmem:[%s14753_s4 + $0x198] sm:$0xff] %vm9048_vm3, %v12433_v3 }
 0x411   : > { %v8816_v2 = vmin.f32 %v8720_v55, 7.6131787  ;;  %v8721_v45 = vmax.f32 %v8625_v51, -0.19839156  ;;  %v11297_v17 = vpop.f32.mrb[60].mxu0 }
 0x412   : > { %9098 = vst.msk [vmem:[%s14753_s4 + $0x188] sm:$0xff] %vm9048_vm3, %v12435_v57  ;;  %v8914_v33 = vmax.f32 %v8818_v43, 0.0  ;;  %v8819_v14 = vmin.f32 %v8723_v10, 7.6131787  ;;  %v11399_v22 = vadd.f32 %v11297_v17, %v10881_v58  ;;  %v8322_v40 = vpop.f32.mrb[61].mxu0 }
 0x413   : > { %v8912_v46 = vmax.f32 %v8816_v2, 0.0  ;;  %v8817_v39 = vmin.f32 %v8721_v45, 7.6131787  ;;  %v11400_v24 = vadd.f32 %v8322_v40, %v4683_v19  ;;  %v11298_v59 = vpop.f32.mrb[62].mxu0 }
 0x414   : > { %12444 = vtanh.f32 %v8914_v33  ;;  %v8915_v62 = vmax.f32 %v8819_v14, 0.0  ;;  %v8630_v60 = vadd.f32 %v14941_v47, %v11399_v22  ;;  %v11401_v54 = vadd.f32 %v11298_v59, %v10882_v63  ;;  %v8325_v25 = vpop.f32.mrb[63].mxu0  ;;  %v10885_v7 = vpop.f32.mrb[64].mxu1 }
 0x415   : > { %12446 = vtanh.f32 %v8912_v46  ;;  %v8913_v9 = vmax.f32 %v8817_v39, 0.0  ;;  %v8628_v20 = vadd.f32 %v14941_v47, %v11400_v24  ;;  %v11402_v61 = vadd.f32 %v8325_v25, %v4686_v52  ;;  %v4699_v56 = vpop.f32.mrb[65].mxu1 }
 0x416   : > { %v12437_v35 = vpop.eup %12436  ;;  %12448 = vtanh.f32 %v8915_v62  ;;  %v8726_v13 = vmax.f32 %v8630_v60, -0.19839156  ;;  %v8631_v34 = vadd.f32 %v14941_v47, %v11401_v54  ;;  %v10886_v8 = vpop.f32.mrb[66].mxu1 }
 0x417   : > { %v12439_v32 = vpop.eup %12438  ;;  %9103 = vst.msk [vmem:[%s14753_s4 + $0x1b0] sm:$0xff] %vm9048_vm3, %v12437_v35  ;;  %12450 = vtanh.f32 %v8913_v9  ;;  %v8724_v30 = vmax.f32 %v8628_v20, -0.19839156  ;;  %v8629_v1 = vadd.f32 %v14941_v47, %v11402_v61  ;;  %v4702_v5 = vpop.f32.mrb[67].mxu1 }
 0x418   : > { %v12441_v29 = vpop.eup %12440  ;;  %9101 = vst.msk [vmem:[%s14753_s4 + $0x1a0] sm:$0xff] %vm9048_vm3, %v12439_v32  ;;  %v8822_v38 = vmin.f32 %v8726_v13, 7.6131787  ;;  %v8727_v41 = vmax.f32 %v8631_v34, -0.19839156 }
 0x419   : > { %v12443_v27 = vpop.eup %12442  ;;  %9104 = vst.msk [vmem:[%s14753_s4 + $0x1b8] sm:$0xff] %vm9048_vm3, %v12441_v29  ;;  %v8820_v28 = vmin.f32 %v8724_v30, 7.6131787  ;;  %v8725_v50 = vmax.f32 %v8629_v1, -0.19839156 }
 0x41a   : > { %v11301_v18 = vpop.f32.mrb[64].mxu0  ;;  %9102 = vst.msk [vmem:[%s14753_s4 + $0x1a8] sm:$0xff] %vm9048_vm3, %v12443_v27  ;;  %v8918_v36 = vmax.f32 %v8822_v38, 0.0  ;;  %v8823_v6 = vmin.f32 %v8727_v41, 7.6131787 }
 0x41b   : > { %v11403_v12 = vadd.f32 %v11301_v18, %v10885_v7  ;;  %v8338_v21 = vpop.f32.mrb[65].mxu0  ;;  %v8916_v37 = vmax.f32 %v8820_v28, 0.0  ;;  %v8821_v23 = vmin.f32 %v8725_v50, 7.6131787 }
 0x41c   : > { %v11404_v26 = vadd.f32 %v8338_v21, %v4699_v56  ;;  %v11302_v49 = vpop.f32.mrb[66].mxu0  ;;  %12452 = vtanh.f32 %v8918_v36  ;;  %v8919_v44 = vmax.f32 %v8823_v6, 0.0  ;;  %v10889_v16 = vpop.f32.mrb[68].mxu1 }
 0x41d   : > { %v8634_v4 = vadd.f32 %v14941_v47, %v11403_v12  ;;  %v11405_v15 = vadd.f32 %v11302_v49, %v10886_v8  ;;  %v8341_v0 = vpop.f32.mrb[67].mxu0  ;;  %12454 = vtanh.f32 %v8916_v37  ;;  %v8917_v53 = vmax.f32 %v8821_v23, 0.0  ;;  %v4715_v11 = vpop.f32.mrb[69].mxu1 }
 0x41e   : > { %v8632_v48 = vadd.f32 %v14941_v47, %v11404_v26  ;;  %v11406_v58 = vadd.f32 %v8341_v0, %v4702_v5  ;;  %v12445_v42 = vpop.eup %12444  ;;  %12456 = vtanh.f32 %v8919_v44  ;;  %v10890_v3 = vpop.f32.mrb[70].mxu1 }
 0x41f   : > { %v8730_v31 = vmax.f32 %v8634_v4, -0.19839156  ;;  %v8635_v19 = vadd.f32 %v14941_v47, %v11405_v15  ;;  %v12447_v55 = vpop.eup %12446  ;;  %9107 = vst.msk [vmem:[%s14753_s4 + $0x1d0] sm:$0xff] %vm9048_vm3, %v12445_v42  ;;  %12458 = vtanh.f32 %v8917_v53  ;;  %v4718_v57 = vpop.f32.mrb[71].mxu1 }
 0x420   : > { %v8728_v51 = vmax.f32 %v8632_v48, -0.19839156  ;;  %v8633_v63 = vadd.f32 %v14941_v47, %v11406_v58  ;;  %v12449_v43 = vpop.eup %12448  ;;  %9105 = vst.msk [vmem:[%s14753_s4 + $0x1c0] sm:$0xff] %vm9048_vm3, %v12447_v55  ;;  %v11305_v33 = vpop.f32.mrb[68].mxu0 }
 0x421   : > { %v8826_v10 = vmin.f32 %v8730_v31, 7.6131787  ;;  %v8731_v52 = vmax.f32 %v8635_v19, -0.19839156  ;;  %v12451_v2 = vpop.eup %12450  ;;  %9108 = vst.msk [vmem:[%s14753_s4 + $0x1d8] sm:$0xff] %vm9048_vm3, %v12449_v43  ;;  %v11407_v40 = vadd.f32 %v11305_v33, %v10889_v16 }
 0x422   : > { %v8824_v45 = vmin.f32 %v8728_v51, 7.6131787  ;;  %v8729_v17 = vmax.f32 %v8633_v63, -0.19839156  ;;  %9106 = vst.msk [vmem:[%s14753_s4 + $0x1c8] sm:$0xff] %vm9048_vm3, %v12451_v2 }
 0x423   : > { %v8922_v14 = vmax.f32 %v8826_v10, 0.0  ;;  %v8827_v22 = vmin.f32 %v8731_v52, 7.6131787  ;;  %v8354_v46 = vpop.f32.mrb[69].mxu0  ;;  %v8638_v54 = vadd.f32 %v14941_v47, %v11407_v40 }
 0x424   : > { %v8920_v39 = vmax.f32 %v8824_v45, 0.0  ;;  %v8825_v24 = vmin.f32 %v8729_v17, 7.6131787  ;;  %v11408_v59 = vadd.f32 %v8354_v46, %v4715_v11  ;;  %v11306_v62 = vpop.f32.mrb[70].mxu0  ;;  %v10893_v35 = vpop.f32.mrb[72].mxu1 }
 0x425   : > { %12460 = vtanh.f32 %v8922_v14  ;;  %v8923_v60 = vmax.f32 %v8827_v22, 0.0  ;;  %v11409_v25 = vadd.f32 %v11306_v62, %v10890_v3  ;;  %v8357_v9 = vpop.f32.mrb[71].mxu0  ;;  %v8734_v34 = vmax.f32 %v8638_v54, -0.19839156  ;;  %v4731_v32 = vpop.f32.mrb[73].mxu1 }
 0x426   : > { %12462 = vtanh.f32 %v8920_v39  ;;  %v8921_v20 = vmax.f32 %v8825_v24, 0.0  ;;  %v8636_v61 = vadd.f32 %v14941_v47, %v11408_v59  ;;  %v11410_v7 = vadd.f32 %v8357_v9, %v4718_v57  ;;  %v12453_v13 = vpop.eup %12452  ;;  %v10894_v29 = vpop.f32.mrb[74].mxu1 }
 0x427   : > { %12464 = vtanh.f32 %v8923_v60  ;;  %v8639_v56 = vadd.f32 %v14941_v47, %v11409_v25  ;;  %v12455_v30 = vpop.eup %12454  ;;  %9111 = vst.msk [vmem:[%s14753_s4 + $0x1f0] sm:$0xff] %vm9048_vm3, %v12453_v13  ;;  %v8830_v41 = vmin.f32 %v8734_v34, 7.6131787  ;;  %v4734_v27 = vpop.f32.mrb[75].mxu1 }
 0x428   : > { %12466 = vtanh.f32 %v8921_v20  ;;  %v8732_v1 = vmax.f32 %v8636_v61, -0.19839156  ;;  %v8637_v8 = vadd.f32 %v14941_v47, %v11410_v7  ;;  %v12457_v38 = vpop.eup %12456  ;;  %9109 = vst.msk [vmem:[%s14753_s4 + $0x1e0] sm:$0xff] %vm9048_vm3, %v12455_v30  ;;  %v11309_v36 = vpop.f32.mrb[72].mxu0 }
 0x429   : > { %v8735_v5 = vmax.f32 %v8639_v56, -0.19839156  ;;  %v12459_v28 = vpop.eup %12458  ;;  %9112 = vst.msk [vmem:[%s14753_s4 + $0x1f8] sm:$0xff] %vm9048_vm3, %v12457_v38  ;;  %v8926_v6 = vmax.f32 %v8830_v41, 0.0  ;;  %v11411_v21 = vadd.f32 %v11309_v36, %v10893_v35  ;;  %v8370_v37 = vpop.f32.mrb[73].mxu0 }
 0x42a   : > { %v8828_v50 = vmin.f32 %v8732_v1, 7.6131787  ;;  %v8733_v18 = vmax.f32 %v8637_v8, -0.19839156  ;;  %9110 = vst.msk [vmem:[%s14753_s4 + $0x1e8] sm:$0xff] %vm9048_vm3, %v12459_v28  ;;  %v11412_v49 = vadd.f32 %v8370_v37, %v4731_v32 }
 0x42b   : > { %v8831_v12 = vmin.f32 %v8735_v5, 7.6131787  ;;  %v11310_v44 = vpop.f32.mrb[74].mxu0  ;;  %12468 = vtanh.f32 %v8926_v6  ;;  %v8642_v15 = vadd.f32 %v14941_v47, %v11411_v21 }
 0x42c   : > { %v8924_v23 = vmax.f32 %v8828_v50, 0.0  ;;  %v8829_v26 = vmin.f32 %v8733_v18, 7.6131787  ;;  %v11413_v0 = vadd.f32 %v11310_v44, %v10894_v29  ;;  %v8373_v53 = vpop.f32.mrb[75].mxu0  ;;  %v8640_v58 = vadd.f32 %v14941_v47, %v11412_v49  ;;  %v10897_v42 = vpop.f32.mrb[76].mxu1 }
 0x42d   : > { %v8927_v4 = vmax.f32 %v8831_v12, 0.0  ;;  %v11414_v16 = vadd.f32 %v8373_v53, %v4734_v27  ;;  %v8738_v19 = vmax.f32 %v8642_v15, -0.19839156  ;;  %v4747_v55 = vpop.f32.mrb[77].mxu1 }
 0x42e   : > { %12470 = vtanh.f32 %v8924_v23  ;;  %v8925_v48 = vmax.f32 %v8829_v26, 0.0  ;;  %v8643_v11 = vadd.f32 %v14941_v47, %v11413_v0  ;;  %v8736_v63 = vmax.f32 %v8640_v58, -0.19839156  ;;  %v10898_v43 = vpop.f32.mrb[78].mxu1  ;;  %v11313_v14 = vpop.f32.mrb[76].mxu0 }
 0x42f   : > { %v12461_v31 = vpop.eup %12460  ;;  %12472 = vtanh.f32 %v8927_v4  ;;  %v8641_v3 = vadd.f32 %v14941_v47, %v11414_v16  ;;  %v8834_v52 = vmin.f32 %v8738_v19, 7.6131787  ;;  %v4750_v2 = vpop.f32.mrb[79].mxu1  ;;  %v11415_v46 = vadd.f32 %v11313_v14, %v10897_v42 }
 0x430   : > { %v12463_v51 = vpop.eup %12462  ;;  %9115 = vst.msk [vmem:[%s14753_s4 + $0x210] sm:$0xff] %vm9048_vm3, %v12461_v31  ;;  %12474 = vtanh.f32 %v8925_v48  ;;  %v8739_v57 = vmax.f32 %v8643_v11, -0.19839156  ;;  %v8832_v17 = vmin.f32 %v8736_v63, 7.6131787 }
 0x431   : > { %v12465_v10 = vpop.eup %12464  ;;  %9113 = vst.msk [vmem:[%s14753_s4 + $0x200] sm:$0xff] %vm9048_vm3, %v12463_v51  ;;  %v8737_v33 = vmax.f32 %v8641_v3, -0.19839156  ;;  %v8930_v22 = vmax.f32 %v8834_v52, 0.0  ;;  %v8386_v39 = vpop.f32.mrb[77].mxu0  ;;  %v8646_v25 = vadd.f32 %v14941_v47, %v11415_v46 }
 0x432   : > { %v12467_v45 = vpop.eup %12466  ;;  %9116 = vst.msk [vmem:[%s14753_s4 + $0x218] sm:$0xff] %vm9048_vm3, %v12465_v10  ;;  %v8835_v40 = vmin.f32 %v8739_v57, 7.6131787  ;;  %v8928_v24 = vmax.f32 %v8832_v17, 0.0  ;;  %v11416_v62 = vadd.f32 %v8386_v39, %v4747_v55  ;;  %v11314_v60 = vpop.f32.mrb[78].mxu0 }
 0x433   : > { %9114 = vst.msk [vmem:[%s14753_s4 + $0x208] sm:$0xff] %vm9048_vm3, %v12467_v45  ;;  %v8833_v59 = vmin.f32 %v8737_v33, 7.6131787  ;;  %12476 = vtanh.f32 %v8930_v22  ;;  %v11417_v9 = vadd.f32 %v11314_v60, %v10898_v43  ;;  %v8389_v20 = vpop.f32.mrb[79].mxu0 }
 0x434   : > { %v8931_v54 = vmax.f32 %v8835_v40, 0.0  ;;  %12478 = vtanh.f32 %v8928_v24  ;;  %v8644_v7 = vadd.f32 %v14941_v47, %v11416_v62  ;;  %v11418_v35 = vadd.f32 %v8389_v20, %v4750_v2  ;;  %v10901_v13 = vpop.f32.mrb[80].mxu1 }
 0x435   : > { %v8929_v61 = vmax.f32 %v8833_v59, 0.0  ;;  %v12469_v34 = vpop.eup %12468  ;;  %v8742_v56 = vmax.f32 %v8646_v25, -0.19839156  ;;  %v8647_v32 = vadd.f32 %v14941_v47, %v11417_v9  ;;  %v4763_v30 = vpop.f32.mrb[81].mxu1 }
 0x436   : > { %12480 = vtanh.f32 %v8931_v54  ;;  %9119 = vst.msk [vmem:[%s14753_s4 + $0x230] sm:$0xff] %vm9048_vm3, %v12469_v34  ;;  %v8740_v8 = vmax.f32 %v8644_v7, -0.19839156  ;;  %v8645_v29 = vadd.f32 %v14941_v47, %v11418_v35  ;;  %v10902_v38 = vpop.f32.mrb[82].mxu1  ;;  %v11317_v6 = vpop.f32.mrb[80].mxu0 }
 0x437   : > { %12482 = vtanh.f32 %v8929_v61  ;;  %v8838_v5 = vmin.f32 %v8742_v56, 7.6131787  ;;  %v8743_v27 = vmax.f32 %v8647_v32, -0.19839156  ;;  %v4766_v28 = vpop.f32.mrb[83].mxu1  ;;  %v11419_v37 = vadd.f32 %v11317_v6, %v10901_v13  ;;  %v8402_v23 = vpop.f32.mrb[81].mxu0 }
 0x438   : > { %v12471_v1 = vpop.eup %12470  ;;  %v8836_v18 = vmin.f32 %v8740_v8, 7.6131787  ;;  %v8741_v36 = vmax.f32 %v8645_v29, -0.19839156  ;;  %v11420_v44 = vadd.f32 %v8402_v23, %v4763_v30  ;;  %v11318_v4 = vpop.f32.mrb[82].mxu0 }
 0x439   : > { %v12473_v41 = vpop.eup %12472  ;;  %9117 = vst.msk [vmem:[%s14753_s4 + $0x220] sm:$0xff] %vm9048_vm3, %v12471_v1  ;;  %v8934_v12 = vmax.f32 %v8838_v5, 0.0  ;;  %v8839_v21 = vmin.f32 %v8743_v27, 7.6131787  ;;  %v8650_v0 = vadd.f32 %v14941_v47, %v11419_v37  ;;  %v11421_v53 = vadd.f32 %v11318_v4, %v10902_v38  ;;  %v8405_v48 = vpop.f32.mrb[83].mxu0 }
 0x43a   : > { %v12475_v50 = vpop.eup %12474  ;;  %9120 = vst.msk [vmem:[%s14753_s4 + $0x238] sm:$0xff] %vm9048_vm3, %v12473_v41  ;;  %v8932_v26 = vmax.f32 %v8836_v18, 0.0  ;;  %v8837_v49 = vmin.f32 %v8741_v36, 7.6131787  ;;  %v8648_v16 = vadd.f32 %v14941_v47, %v11420_v44  ;;  %v11422_v42 = vadd.f32 %v8405_v48, %v4766_v28 }
 0x43b   : > { %9118 = vst.msk [vmem:[%s14753_s4 + $0x228] sm:$0xff] %vm9048_vm3, %v12475_v50  ;;  %12484 = vtanh.f32 %v8934_v12  ;;  %v8935_v15 = vmax.f32 %v8839_v21, 0.0  ;;  %v8746_v11 = vmax.f32 %v8650_v0, -0.19839156  ;;  %v8651_v55 = vadd.f32 %v14941_v47, %v11421_v53 }
 0x43c   : > { %12486 = vtanh.f32 %v8932_v26  ;;  %v8933_v58 = vmax.f32 %v8837_v49, 0.0  ;;  %v10905_v31 = vpop.f32.mrb[84].mxu1  ;;  %v8744_v3 = vmax.f32 %v8648_v16, -0.19839156  ;;  %v8649_v43 = vadd.f32 %v14941_v47, %v11422_v42 }
 0x43d   : > { %v12477_v19 = vpop.eup %12476  ;;  %12488 = vtanh.f32 %v8935_v15  ;;  %v4779_v51 = vpop.f32.mrb[85].mxu1  ;;  %v8842_v57 = vmin.f32 %v8746_v11, 7.6131787  ;;  %v8747_v2 = vmax.f32 %v8651_v55, -0.19839156 }
 0x43e   : > { %v12479_v63 = vpop.eup %12478  ;;  %9123 = vst.msk [vmem:[%s14753_s4 + $0x250] sm:$0xff] %vm9048_vm3, %v12477_v19  ;;  %12490 = vtanh.f32 %v8933_v58  ;;  %v10906_v10 = vpop.f32.mrb[86].mxu1  ;;  %v8840_v33 = vmin.f32 %v8744_v3, 7.6131787 }
 0x43f   : > { %9121 = vst.msk [vmem:[%s14753_s4 + $0x240] sm:$0xff] %vm9048_vm3, %v12479_v63  ;;  %v4782_v45 = vpop.f32.mrb[87].mxu1  ;;  %v8745_v14 = vmax.f32 %v8649_v43, -0.19839156  ;;  %v11321_v22 = vpop.f32.mrb[84].mxu0  ;;  %v8938_v40 = vmax.f32 %v8842_v57, 0.0 }
 0x440   : > { %v12481_v52 = vpop.eup %12480  ;;  %v8843_v46 = vmin.f32 %v8747_v2, 7.6131787  ;;  %v11423_v39 = vadd.f32 %v11321_v22, %v10905_v31  ;;  %v8418_v24 = vpop.f32.mrb[85].mxu0  ;;  %v8936_v59 = vmax.f32 %v8840_v33, 0.0 }
 0x441   : > { %v12483_v17 = vpop.eup %12482  ;;  %9124 = vst.msk [vmem:[%s14753_s4 + $0x258] sm:$0xff] %vm9048_vm3, %v12481_v52  ;;  %v8841_v62 = vmin.f32 %v8745_v14, 7.6131787  ;;  %v11424_v60 = vadd.f32 %v8418_v24, %v4779_v51  ;;  %v11322_v54 = vpop.f32.mrb[86].mxu0  ;;  %12492 = vtanh.f32 %v8938_v40 }
 0x442   : > { %9122 = vst.msk [vmem:[%s14753_s4 + $0x248] sm:$0xff] %vm9048_vm3, %v12483_v17  ;;  %v8939_v25 = vmax.f32 %v8843_v46, 0.0  ;;  %v8654_v9 = vadd.f32 %v14941_v47, %v11423_v39  ;;  %v11425_v20 = vadd.f32 %v11322_v54, %v10906_v10  ;;  %v8421_v61 = vpop.f32.mrb[87].mxu0  ;;  %12494 = vtanh.f32 %v8936_v59 }
 0x443   : > { %v8937_v7 = vmax.f32 %v8841_v62, 0.0  ;;  %v8652_v35 = vadd.f32 %v14941_v47, %v11424_v60  ;;  %v11426_v13 = vadd.f32 %v8421_v61, %v4782_v45 }
 0x444   : > { %v10909_v34 = vpop.f32.mrb[88].mxu1  ;;  %12496 = vtanh.f32 %v8939_v25  ;;  %v8750_v32 = vmax.f32 %v8654_v9, -0.19839156  ;;  %v8655_v30 = vadd.f32 %v14941_v47, %v11425_v20 }
 0x445   : > { %v12485_v56 = vpop.eup %12484  ;;  %v4795_v1 = vpop.f32.mrb[89].mxu1  ;;  %12498 = vtanh.f32 %v8937_v7  ;;  %v8748_v29 = vmax.f32 %v8652_v35, -0.19839156  ;;  %v8653_v38 = vadd.f32 %v14941_v47, %v11426_v13 }
 0x446   : > { %v12487_v8 = vpop.eup %12486  ;;  %9127 = vst.msk [vmem:[%s14753_s4 + $0x270] sm:$0xff] %vm9048_vm3, %v12485_v56  ;;  %v10910_v41 = vpop.f32.mrb[90].mxu1  ;;  %v8846_v27 = vmin.f32 %v8750_v32, 7.6131787 }
 0x447   : > { %v12489_v5 = vpop.eup %12488  ;;  %9125 = vst.msk [vmem:[%s14753_s4 + $0x260] sm:$0xff] %vm9048_vm3, %v12487_v8  ;;  %v8751_v28 = vmax.f32 %v8655_v30, -0.19839156  ;;  %v4798_v50 = vpop.f32.mrb[91].mxu1  ;;  %v8749_v6 = vmax.f32 %v8653_v38, -0.19839156 }
 0x448   : > { %v12491_v18 = vpop.eup %12490  ;;  %9128 = vst.msk [vmem:[%s14753_s4 + $0x278] sm:$0xff] %vm9048_vm3, %v12489_v5  ;;  %v8844_v36 = vmin.f32 %v8748_v29, 7.6131787  ;;  %v11325_v12 = vpop.f32.mrb[88].mxu0  ;;  %v8942_v21 = vmax.f32 %v8846_v27, 0.0 }
 0x449   : > { %9126 = vst.msk [vmem:[%s14753_s4 + $0x268] sm:$0xff] %vm9048_vm3, %v12491_v18  ;;  %v8847_v37 = vmin.f32 %v8751_v28, 7.6131787  ;;  %v11427_v23 = vadd.f32 %v11325_v12, %v10909_v34  ;;  %v8434_v26 = vpop.f32.mrb[89].mxu0  ;;  %v8845_v44 = vmin.f32 %v8749_v6, 7.6131787 }
 0x44a   : > { %v8940_v49 = vmax.f32 %v8844_v36, 0.0  ;;  %v11428_v4 = vadd.f32 %v8434_v26, %v4795_v1  ;;  %v11326_v15 = vpop.f32.mrb[90].mxu0  ;;  %12500 = vtanh.f32 %v8942_v21 }
 0x44b   : > { %v8943_v0 = vmax.f32 %v8847_v37, 0.0  ;;  %v8658_v53 = vadd.f32 %v14941_v47, %v11427_v23  ;;  %v11429_v48 = vadd.f32 %v11326_v15, %v10910_v41  ;;  %v8437_v58 = vpop.f32.mrb[91].mxu0  ;;  %v8941_v16 = vmax.f32 %v8845_v44, 0.0  ;;  %v12493_v11 = vpop.eup %12492 }
 0x44c   : > { %12502 = vtanh.f32 %v8940_v49  ;;  %v8656_v42 = vadd.f32 %v14941_v47, %v11428_v4  ;;  %v11430_v31 = vadd.f32 %v8437_v58, %v4798_v50  ;;  %v10913_v19 = vpop.f32.mrb[92].mxu1  ;;  %v12495_v3 = vpop.eup %12494  ;;  %9131 = vst.msk [vmem:[%s14753_s4 + $0x290] sm:$0xff] %vm9048_vm3, %v12493_v11 }
 0x44d   : > { %12504 = vtanh.f32 %v8943_v0  ;;  %v8754_v55 = vmax.f32 %v8658_v53, -0.19839156  ;;  %v8659_v51 = vadd.f32 %v14941_v47, %v11429_v48  ;;  %v4811_v63 = vpop.f32.mrb[93].mxu1  ;;  %9129 = vst.msk [vmem:[%s14753_s4 + $0x280] sm:$0xff] %vm9048_vm3, %v12495_v3 }
 0x44e   : > { %12506 = vtanh.f32 %v8941_v16  ;;  %v8752_v43 = vmax.f32 %v8656_v42, -0.19839156  ;;  %v8657_v10 = vadd.f32 %v14941_v47, %v11430_v31  ;;  %v10914_v52 = vpop.f32.mrb[94].mxu1  ;;  %v12497_v57 = vpop.eup %12496 }
 0x44f   : > { %v8850_v2 = vmin.f32 %v8754_v55, 7.6131787  ;;  %v8755_v45 = vmax.f32 %v8659_v51, -0.19839156  ;;  %v4814_v17 = vpop.f32.mrb[95].mxu1  ;;  %v12499_v33 = vpop.eup %12498 }
 0x450   : > { %9132 = vst.msk [vmem:[%s14753_s4 + $0x298] sm:$0xff] %vm9048_vm3, %v12497_v57  ;;  %v8848_v14 = vmin.f32 %v8752_v43, 7.6131787  ;;  %v8753_v22 = vmax.f32 %v8657_v10, -0.19839156  ;;  %9130 = vst.msk [vmem:[%s14753_s4 + $0x288] sm:$0xff] %vm9048_vm3, %v12499_v33 }
 0x451   : > { %v11329_v40 = vpop.f32.mrb[92].mxu0  ;;  %v8946_v46 = vmax.f32 %v8850_v2, 0.0  ;;  %v8851_v39 = vmin.f32 %v8755_v45, 7.6131787 }
 0x452   : > { %v11431_v24 = vadd.f32 %v11329_v40, %v10913_v19  ;;  %v8450_v59 = vpop.f32.mrb[93].mxu0  ;;  %v8944_v62 = vmax.f32 %v8848_v14, 0.0  ;;  %v8849_v60 = vmin.f32 %v8753_v22, 7.6131787 }
 0x453   : > { %v11432_v54 = vadd.f32 %v8450_v59, %v4811_v63  ;;  %v11330_v25 = vpop.f32.mrb[94].mxu0  ;;  %12508 = vtanh.f32 %v8946_v46  ;;  %v8947_v9 = vmax.f32 %v8851_v39, 0.0 }
 0x454   : > { %v8662_v20 = vadd.f32 %v14941_v47, %v11431_v24  ;;  %v11433_v61 = vadd.f32 %v11330_v25, %v10914_v52  ;;  %v8453_v7 = vpop.f32.mrb[95].mxu0  ;;  %12510 = vtanh.f32 %v8944_v62  ;;  %v8945_v35 = vmax.f32 %v8849_v60, 0.0  ;;  %v12501_v56 = vpop.eup %12500 }
 0x455   : > { %v8660_v13 = vadd.f32 %v14941_v47, %v11432_v54  ;;  %v11434_v34 = vadd.f32 %v8453_v7, %v4814_v17  ;;  %12512 = vtanh.f32 %v8947_v9  ;;  %9135 = vst.msk [vmem:[%s14753_s4 + $0x2b0] sm:$0xff] %vm9048_vm3, %v12501_v56 }
 0x456   : > { %v8758_v32 = vmax.f32 %v8662_v20, -0.19839156  ;;  %v8663_v30 = vadd.f32 %v14941_v47, %v11433_v61  ;;  %v12503_v1 = vpop.eup %12502  ;;  %12514 = vtanh.f32 %v8945_v35 }
 0x457   : > { %v8756_v8 = vmax.f32 %v8660_v13, -0.19839156  ;;  %v8661_v29 = vadd.f32 %v14941_v47, %v11434_v34  ;;  %v12505_v38 = vpop.eup %12504  ;;  %9133 = vst.msk [vmem:[%s14753_s4 + $0x2a0] sm:$0xff] %vm9048_vm3, %v12503_v1 }
 0x458   : > { %v8854_v41 = vmin.f32 %v8758_v32, 7.6131787  ;;  %v8759_v5 = vmax.f32 %v8663_v30, -0.19839156  ;;  %v12507_v27 = vpop.eup %12506  ;;  %9136 = vst.msk [vmem:[%s14753_s4 + $0x2b8] sm:$0xff] %vm9048_vm3, %v12505_v38 }
 0x459   : > { %v8852_v28 = vmin.f32 %v8756_v8, 7.6131787  ;;  %v8757_v50 = vmax.f32 %v8661_v29, -0.19839156  ;;  %9134 = vst.msk [vmem:[%s14753_s4 + $0x2a8] sm:$0xff] %vm9048_vm3, %v12507_v27 }
 0x45a   : > { %v8950_v18 = vmax.f32 %v8854_v41, 0.0  ;;  %v8855_v36 = vmin.f32 %v8759_v5, 7.6131787 }
 0x45b   : > { %v8948_v6 = vmax.f32 %v8852_v28, 0.0  ;;  %v8853_v47 = vmin.f32 %v8757_v50, 7.6131787 }
 0x45c   : > { %12516 = vtanh.f32 %v8950_v18  ;;  %v8951_v12 = vmax.f32 %v8855_v36, 0.0 }
 0x45d   : > { %12518 = vtanh.f32 %v8948_v6  ;;  %v8949_v21 = vmax.f32 %v8853_v47, 0.0  ;;  %v12509_v37 = vpop.eup %12508 }
 0x45e   : > { %12520 = vtanh.f32 %v8951_v12  ;;  %v12511_v23 = vpop.eup %12510  ;;  %9139 = vst.msk [vmem:[%s14753_s4 + $0x2d0] sm:$0xff] %vm9048_vm3, %v12509_v37 }
 0x45f   : > { %12522 = vtanh.f32 %v8949_v21  ;;  %v12513_v26 = vpop.eup %12512  ;;  %9137 = vst.msk [vmem:[%s14753_s4 + $0x2c0] sm:$0xff] %vm9048_vm3, %v12511_v23 }
 0x460   : > { %v12515_v49 = vpop.eup %12514  ;;  %9140 = vst.msk [vmem:[%s14753_s4 + $0x2d8] sm:$0xff] %vm9048_vm3, %v12513_v26 }
 0x461   : > { %9138 = vst.msk [vmem:[%s14753_s4 + $0x2c8] sm:$0xff] %vm9048_vm3, %v12515_v49 }
 0x466   : > { %v12517_v44 = vpop.eup %12516 }
 0x467   : > { %v12519_v4 = vpop.eup %12518  ;;  %9143 = vst.msk [vmem:[%s14753_s4 + $0x2f0] sm:$0xff] %vm9048_vm3, %v12517_v44 }
 0x468   : > { %v12521_v15 = vpop.eup %12520  ;;  %9141 = vst.msk [vmem:[%s14753_s4 + $0x2e0] sm:$0xff] %vm9048_vm3, %v12519_v4 }
 0x469   : > { %v12523_v0 = vpop.eup %12522  ;;  %9144 = vst.msk [vmem:[%s14753_s4 + $0x2f8] sm:$0xff] %vm9048_vm3, %v12521_v15 }
 0x46a   : > { %9142 = vst.msk [vmem:[%s14753_s4 + $0x2e8] sm:$0xff] %vm9048_vm3, %v12523_v0 }
 0x46b PF: > { %s13_s16 = sadd.s32 1, %s12718_s16   ;;  %s15128_s12 = smov %s12710_s14 }
 0x46c   : > { %p10_p7 = scmp.ge.s32.totalorder %s13_s16, 6   ;;  %s15129_s13 = smov %s12714_s15 }
 0x46d   : > { %s15130_s14 = smov %s15133_s17  ;;  %s15131_s15 = smov %s15137_s18 }
 0x46e   :  { %12 = sbr.rel (!%p10_p7) target bundleno = 3 (0x3), region = 73 }

</bundles_post_ra>
